<compile_context>
chip_gen: v5e
topology: v5e:2x2
jax: 0.10.0
libtpu: 0.0.40
codegen_flags: <defaults>
</compile_context>

<pallas_src>
import functools

import jax
import jax.numpy as jnp
from jax.experimental import pallas as pl
from jax.experimental.pallas import tpu as pltpu


_BN_EPS = 1e-5


# ----------------------------------------------------------------------------
# Fused Pallas kernels (one pallas_call per layer)
# ----------------------------------------------------------------------------
def _conv_bn_relu_kernel(a_ref, w_ref, g_ref, b_ref, o_ref):
    """(M,K)@(K,O) on the MXU (bf16 in, f32 acc) + train-mode BN + affine + ReLU."""
    acc = jnp.dot(a_ref[...], w_ref[...], preferred_element_type=jnp.float32)
    mean = jnp.mean(acc, axis=0, keepdims=True)
    var = jnp.mean(jnp.square(acc - mean), axis=0, keepdims=True)
    y = (acc - mean) * jax.lax.rsqrt(var + _BN_EPS)
    o_ref[...] = jnp.maximum(y * g_ref[...] + b_ref[...], 0.0)


def _conv_bn_relu_res_kernel(a_ref, w_ref, g_ref, b_ref, r_ref, o_ref):
    """ResnetBlock: residual + ReLU(BN(conv(x))), all fused in one kernel."""
    acc = jnp.dot(a_ref[...], w_ref[...], preferred_element_type=jnp.float32)
    mean = jnp.mean(acc, axis=0, keepdims=True)
    var = jnp.mean(jnp.square(acc - mean), axis=0, keepdims=True)
    y = (acc - mean) * jax.lax.rsqrt(var + _BN_EPS)
    o_ref[...] = r_ref[...] + jnp.maximum(y * g_ref[...] + b_ref[...], 0.0)


def _conv_bias_tanh_kernel(a_ref, w_ref, bias_ref, o_ref):
    """Output conv: matmul + bias + tanh (f32 elementwise)."""
    acc = jnp.dot(a_ref[...], w_ref[...], preferred_element_type=jnp.float32)
    o_ref[...] = jnp.tanh(acc + bias_ref[...])


def _call_fused(kernel, out_shape, *inputs):
    """Grid-free pallas_call: every operand is a single whole-array VMEM block."""
    return pl.pallas_call(
        kernel,
        out_shape=out_shape,
        in_specs=[pl.BlockSpec(memory_space=pltpu.MemorySpace.VMEM)] * len(inputs),
        out_specs=pl.BlockSpec(memory_space=pltpu.MemorySpace.VMEM),
    )(*inputs)


# ----------------------------------------------------------------------------
# Layout glue: im2col on NHWC tensors (no transposes -- data is already NHWC)
# ----------------------------------------------------------------------------
def _im2col_nhwc(x, KH, KW, *, stride=1, dilation=1, padding=0, pad_mode="zero"):
    """x: (N, H, W, C) -> patches (N*H_out*W_out, KH*KW*C), plus output spatial dims."""
    N, H, W, C = x.shape
    if padding > 0:
        mode = "reflect" if pad_mode == "reflect" else "constant"
        x = jnp.pad(x, ((0, 0), (padding, padding), (padding, padding), (0, 0)), mode=mode)
    Hp, Wp = x.shape[1], x.shape[2]
    H_out = (Hp - dilation * (KH - 1) - 1) // stride + 1
    W_out = (Wp - dilation * (KW - 1) - 1) // stride + 1
    cols = []
    for i in range(KH):
        for j in range(KW):
            hs, ws = i * dilation, j * dilation
            cols.append(x[:, hs:hs + stride * (H_out - 1) + 1:stride,
                             ws:ws + stride * (W_out - 1) + 1:stride, :])
    a = jnp.stack(cols, axis=3).reshape(N * H_out * W_out, KH * KW * C)
    return a, H_out, W_out


def _weight_to_matrix(weight_oihw):
    """PyTorch (Cout, Cin, KH, KW) -> (KH*KW*Cin, Cout), matching im2col column order."""
    O, Cin, KH, KW = weight_oihw.shape
    return jnp.transpose(weight_oihw, (2, 3, 1, 0)).reshape(KH * KW * Cin, O)


# ----------------------------------------------------------------------------
# Fused layers (conv / conv-transpose + BN + ReLU, output conv + tanh)
# ----------------------------------------------------------------------------
def fused_conv_bn_relu(x_nhwc, weight_oihw, gamma, beta, *, stride=1, dilation=1,
                       padding=0, pad_mode="reflect", residual=None):
    N = x_nhwc.shape[0]
    O = weight_oihw.shape[0]
    KH, KW = weight_oihw.shape[2], weight_oihw.shape[3]
    a, H_out, W_out = _im2col_nhwc(x_nhwc, KH, KW, stride=stride, dilation=dilation,
                                   padding=padding, pad_mode=pad_mode)
    a = a.astype(jnp.bfloat16)                      # MXU-native operands
    w = _weight_to_matrix(weight_oihw).astype(jnp.bfloat16)
    g = gamma.reshape(1, O).astype(jnp.float32)
    b = beta.reshape(1, O).astype(jnp.float32)
    M = a.shape[0]
    out_shape = jax.ShapeDtypeStruct((M, O), jnp.float32)
    if residual is None:
        y = _call_fused(_conv_bn_relu_kernel, out_shape, a, w, g, b)
    else:
        r = residual.reshape(M, O).astype(jnp.float32)
        y = _call_fused(_conv_bn_relu_res_kernel, out_shape, a, w, g, b, r)
    return y.reshape(N, H_out, W_out, O)


def fused_convtranspose_bn_relu(x_nhwc, weight_iohw, gamma, beta, *, stride=2,
                                padding=1, output_padding=1):
    """ConvTranspose2d (PyTorch weight layout (Cin, Cout, KH, KW)) + BN + ReLU, fused.

    Implemented as zero-dilation + equivalent direct conv feeding the fused kernel;
    at these sizes the dilated tensor is ~KBs so the 4x zero-FLOP overhead is negligible.
    """
    N, H, W, C = x_nhwc.shape
    Cin, Cout, KH, KW = weight_iohw.shape
    Hd, Wd = (H - 1) * stride + 1, (W - 1) * stride + 1
    xd = jnp.zeros((N, Hd, Wd, C), x_nhwc.dtype).at[:, ::stride, ::stride, :].set(x_nhwc)
    lo = KH - 1 - padding
    hi = KH - 1 - padding + output_padding
    xd = jnp.pad(xd, ((0, 0), (lo, hi), (lo, hi), (0, 0)))
    # Equivalent direct conv: flip spatial dims, swap in/out channel axes.
    w_conv = jnp.transpose(weight_iohw[:, :, ::-1, ::-1], (1, 0, 2, 3))
    return fused_conv_bn_relu(xd, w_conv, gamma, beta, stride=1, dilation=1,
                              padding=0, pad_mode="zero")


def fused_conv_bias_tanh(x_nhwc, weight_oihw, bias, *, padding=3, pad_mode="reflect"):
    N = x_nhwc.shape[0]
    O = weight_oihw.shape[0]
    KH, KW = weight_oihw.shape[2], weight_oihw.shape[3]
    a, H_out, W_out = _im2col_nhwc(x_nhwc, KH, KW, padding=padding, pad_mode=pad_mode)
    a = a.astype(jnp.bfloat16)
    w = _weight_to_matrix(weight_oihw).astype(jnp.bfloat16)
    bias2 = bias.reshape(1, O).astype(jnp.float32)
    M = a.shape[0]
    y = _call_fused(_conv_bias_tanh_kernel,
                    jax.ShapeDtypeStruct((M, O), jnp.float32), a, w, bias2)
    return y.reshape(N, H_out, W_out, O)


# ----------------------------------------------------------------------------
# Parameter construction (deterministic) and full forward pass
# ----------------------------------------------------------------------------
def make_params(key, input_nc=4, output_nc=4, ngf=8, n_blocks=2,
                dilation_order=0, n_levels=1):
    assert n_blocks >= 0 and dilation_order < n_blocks
    keys = iter(jax.random.split(key, 64))

    def w(shape, scale=0.1):
        return scale * jax.random.normal(next(keys), shape, jnp.float32)

    def bn(c):
        return (1.0 + 0.1 * jax.random.normal(next(keys), (c,), jnp.float32),
                0.1 * jax.random.normal(next(keys), (c,), jnp.float32))

    p = {}
    p["w_in"] = w((ngf, input_nc, 7, 7))                       # io conv (large rf), no bias
    p["g0"], p["b0"] = bn(ngf)

    p["down"] = []
    for i in range(n_levels):
        mult = 2 ** i
        g, b = bn(ngf * mult * 2)
        p["down"].append({"w": w((ngf * mult * 2, ngf * mult, 3, 3)), "g": g, "b": b})

    mult = 2 ** n_levels
    p["blocks"] = []
    for _ in range(n_blocks):
        g, b = bn(ngf * mult)
        p["blocks"].append({"w": w((ngf * mult, ngf * mult, 3, 3)), "g": g, "b": b})

    p["up"] = []
    for i in range(n_levels):
        mult = 2 ** (n_levels - i)
        cin, cout = ngf * mult, ngf * mult // 2
        g, b = bn(cout)
        p["up"].append({"w": w((cin, cout, 3, 3)), "g": g, "b": b})   # ConvTranspose layout

    p["w_out"] = w((output_nc, ngf, 7, 7))                     # final io conv: bias=True
    p["bias_out"] = 0.05 * jax.random.normal(next(keys), (output_nc,), jnp.float32)
    return p


def resnet2d_forward(x_nchw, params, n_blocks=2, dilation_order=0):
    """x_nchw: (N, Cin, H, W) -> (N, Cout, H, W).  n_blocks/dilation_order are static."""
    # NCHW -> NHWC exactly once; everything downstream stays NHWC / (M, C).
    h = jnp.transpose(x_nchw, (0, 2, 3, 1))

    # Input io conv: ReflectionPad(3) + Conv7x7 (no bias) + BN + ReLU (one fused kernel)
    h = fused_conv_bn_relu(h, params["w_in"], params["g0"], params["b0"],
                           padding=3, pad_mode="reflect")

    # Encoder: strided 3x3 conv (zero pad, no bias) + BN + ReLU
    for lvl in params["down"]:
        h = fused_conv_bn_relu(h, lvl["w"], lvl["g"], lvl["b"],
                               stride=2, padding=1, pad_mode="zero")

    # Resnet blocks: x + ReLU(BN(Conv3x3_reflect(x))); dilation is a static Python int.
    d_start = n_blocks - dilation_order - 1
    for i, blk in enumerate(params["blocks"]):
        dilation = 2 ** (i - d_start) if d_start <= i <= d_start + dilation_order else 1
        h = fused_conv_bn_relu(h, blk["w"], blk["g"], blk["b"],
                               dilation=dilation, padding=dilation,
                               pad_mode="reflect", residual=h)

    # Decoder: ConvTranspose3x3 stride2 (no bias) + BN + ReLU
    for lvl in params["up"]:
        h = fused_convtranspose_bn_relu(h, lvl["w"], lvl["g"], lvl["b"])

    # Output io conv: ReflectionPad(3) + Conv7x7 (bias) + Tanh (one fused kernel)
    h = fused_conv_bias_tanh(h, params["w_out"], params["bias_out"],
                             padding=3, pad_mode="reflect")

    # NHWC -> NCHW exactly once at the boundary.
    return jnp.transpose(h, (0, 3, 1, 2))


if __name__ == "__main__":
    key = jax.random.PRNGKey(0)
    k_x, k_p = jax.random.split(key)

    N, Cin, H, W = 2, 4, 16, 16
    x = jax.random.normal(k_x, (N, Cin, H, W), jnp.float32)
    params = make_params(k_p, input_nc=Cin, output_nc=4, ngf=8,
                         n_blocks=2, dilation_order=0, n_levels=1)

    fwd = jax.jit(functools.partial(resnet2d_forward, n_blocks=2, dilation_order=0))
    out = fwd(x, params)
    out = jax.block_until_ready(out)

    assert out.shape == (N, 4, H, W), out.shape
    assert bool(jnp.all(jnp.isfinite(out)))
    assert bool(jnp.all(jnp.abs(out) <= 1.0))  # tanh output range
    print("KERNEL_OK")
</pallas_src>

<mosaic_0001>
module attributes {stable_mosaic.version = 11 : i64} {
  func.func @_conv_bn_relu_kernel(%arg0: memref<512x196xbf16, #tpu.memory_space<vmem>>, %arg1: memref<196x8xbf16, #tpu.memory_space<vmem>>, %arg2: memref<1x8xf32, #tpu.memory_space<vmem>>, %arg3: memref<1x8xf32, #tpu.memory_space<vmem>>, %arg4: memref<512x8xf32, #tpu.memory_space<vmem>>) attributes {dimension_semantics = [], scalar_prefetch = 0 : i64, scratch_operands = 0 : i64, tpu.core_type = #tpu.core_type<tc>} {
    %c0 = arith.constant 0 : index
    %c0_0 = arith.constant 0 : index
    %0 = vector.load %arg0[%c0, %c0_0] : memref<512x196xbf16, #tpu.memory_space<vmem>>, vector<512x196xbf16>
    %c0_1 = arith.constant 0 : index
    %c0_2 = arith.constant 0 : index
    %1 = vector.load %arg1[%c0_1, %c0_2] : memref<196x8xbf16, #tpu.memory_space<vmem>>, vector<196x8xbf16>
    %cst = arith.constant dense<0.000000e+00> : vector<512x8xf32>
    %2 = tpu.matmul %0, %1, %cst {dimension_numbers = #tpu.dot_dimension_numbers<[1], [0], [0], [1], [0, 0, 1, 1], [], []>} : vector<512x196xbf16>, vector<196x8xbf16>, vector<512x8xf32> -> vector<512x8xf32>
    %cst_3 = arith.constant dense<0.000000e+00> : vector<8xf32>
    %3 = vector.multi_reduction <add>, %2, %cst_3 [0] : vector<512x8xf32> to vector<8xf32>
    %4 = vector.shape_cast %3 : vector<8xf32> to vector<1x8xf32>
    %cst_4 = arith.constant 5.120000e+02 : f32
    %5 = vector.broadcast %cst_4 : f32 to vector<1x8xf32>
    %6 = arith.divf %4, %5 : vector<1x8xf32>
    %7 = vector.broadcast %6 : vector<1x8xf32> to vector<512x8xf32>
    %8 = arith.subf %2, %7 : vector<512x8xf32>
    %9 = arith.mulf %8, %8 : vector<512x8xf32>
    %cst_5 = arith.constant dense<0.000000e+00> : vector<8xf32>
    %10 = vector.multi_reduction <add>, %9, %cst_5 [0] : vector<512x8xf32> to vector<8xf32>
    %11 = vector.shape_cast %10 : vector<8xf32> to vector<1x8xf32>
    %cst_6 = arith.constant 5.120000e+02 : f32
    %12 = vector.broadcast %cst_6 : f32 to vector<1x8xf32>
    %13 = arith.divf %11, %12 : vector<1x8xf32>
    %14 = vector.broadcast %6 : vector<1x8xf32> to vector<512x8xf32>
    %15 = arith.subf %2, %14 : vector<512x8xf32>
    %cst_7 = arith.constant 9.99999974E-6 : f32
    %16 = vector.broadcast %cst_7 : f32 to vector<1x8xf32>
    %17 = arith.addf %13, %16 : vector<1x8xf32>
    %18 = math.rsqrt %17 : vector<1x8xf32>
    %19 = vector.broadcast %18 : vector<1x8xf32> to vector<512x8xf32>
    %20 = arith.mulf %15, %19 : vector<512x8xf32>
    %c0_8 = arith.constant 0 : index
    %c0_9 = arith.constant 0 : index
    %21 = vector.load %arg2[%c0_8, %c0_9] : memref<1x8xf32, #tpu.memory_space<vmem>>, vector<1x8xf32>
    %22 = vector.broadcast %21 : vector<1x8xf32> to vector<512x8xf32>
    %23 = arith.mulf %20, %22 : vector<512x8xf32>
    %c0_10 = arith.constant 0 : index
    %c0_11 = arith.constant 0 : index
    %24 = vector.load %arg3[%c0_10, %c0_11] : memref<1x8xf32, #tpu.memory_space<vmem>>, vector<1x8xf32>
    %25 = vector.broadcast %24 : vector<1x8xf32> to vector<512x8xf32>
    %26 = arith.addf %23, %25 : vector<512x8xf32>
    %cst_12 = arith.constant 0.000000e+00 : f32
    %27 = vector.broadcast %cst_12 : f32 to vector<512x8xf32>
    %28 = arith.maximumf %26, %27 : vector<512x8xf32>
    %c0_13 = arith.constant 0 : index
    %c0_14 = arith.constant 0 : index
    %29 = vector.load %arg4[%c0_13, %c0_14] : memref<512x8xf32, #tpu.memory_space<vmem>>, vector<512x8xf32>
    tpu.vector_store %arg4[%c0_13, %c0_14], %28 {strides = array<i32>} : memref<512x8xf32, #tpu.memory_space<vmem>>, vector<512x8xf32>,
    return
  }
}

module attributes {stable_mosaic.version = 11 : i64} {
  func.func @_conv_bn_relu_kernel(%arg0: memref<128x72xbf16, #tpu.memory_space<vmem>>, %arg1: memref<72x16xbf16, #tpu.memory_space<vmem>>, %arg2: memref<1x16xf32, #tpu.memory_space<vmem>>, %arg3: memref<1x16xf32, #tpu.memory_space<vmem>>, %arg4: memref<128x16xf32, #tpu.memory_space<vmem>>) attributes {dimension_semantics = [], scalar_prefetch = 0 : i64, scratch_operands = 0 : i64, tpu.core_type = #tpu.core_type<tc>} {
    %c0 = arith.constant 0 : index
    %c0_0 = arith.constant 0 : index
    %0 = vector.load %arg0[%c0, %c0_0] : memref<128x72xbf16, #tpu.memory_space<vmem>>, vector<128x72xbf16>
    %c0_1 = arith.constant 0 : index
    %c0_2 = arith.constant 0 : index
    %1 = vector.load %arg1[%c0_1, %c0_2] : memref<72x16xbf16, #tpu.memory_space<vmem>>, vector<72x16xbf16>
    %cst = arith.constant dense<0.000000e+00> : vector<128x16xf32>
    %2 = tpu.matmul %0, %1, %cst {dimension_numbers = #tpu.dot_dimension_numbers<[1], [0], [0], [1], [0, 0, 1, 1], [], []>} : vector<128x72xbf16>, vector<72x16xbf16>, vector<128x16xf32> -> vector<128x16xf32>
    %cst_3 = arith.constant dense<0.000000e+00> : vector<16xf32>
    %3 = vector.multi_reduction <add>, %2, %cst_3 [0] : vector<128x16xf32> to vector<16xf32>
    %4 = vector.shape_cast %3 : vector<16xf32> to vector<1x16xf32>
    %cst_4 = arith.constant 1.280000e+02 : f32
    %5 = vector.broadcast %cst_4 : f32 to vector<1x16xf32>
    %6 = arith.divf %4, %5 : vector<1x16xf32>
    %7 = vector.broadcast %6 : vector<1x16xf32> to vector<128x16xf32>
    %8 = arith.subf %2, %7 : vector<128x16xf32>
    %9 = arith.mulf %8, %8 : vector<128x16xf32>
    %cst_5 = arith.constant dense<0.000000e+00> : vector<16xf32>
    %10 = vector.multi_reduction <add>, %9, %cst_5 [0] : vector<128x16xf32> to vector<16xf32>
    %11 = vector.shape_cast %10 : vector<16xf32> to vector<1x16xf32>
    %cst_6 = arith.constant 1.280000e+02 : f32
    %12 = vector.broadcast %cst_6 : f32 to vector<1x16xf32>
    %13 = arith.divf %11, %12 : vector<1x16xf32>
    %14 = vector.broadcast %6 : vector<1x16xf32> to vector<128x16xf32>
    %15 = arith.subf %2, %14 : vector<128x16xf32>
    %cst_7 = arith.constant 9.99999974E-6 : f32
    %16 = vector.broadcast %cst_7 : f32 to vector<1x16xf32>
    %17 = arith.addf %13, %16 : vector<1x16xf32>
    %18 = math.rsqrt %17 : vector<1x16xf32>
    %19 = vector.broadcast %18 : vector<1x16xf32> to vector<128x16xf32>
    %20 = arith.mulf %15, %19 : vector<128x16xf32>
    %c0_8 = arith.constant 0 : index
    %c0_9 = arith.constant 0 : index
    %21 = vector.load %arg2[%c0_8, %c0_9] : memref<1x16xf32, #tpu.memory_space<vmem>>, vector<1x16xf32>
    %22 = vector.broadcast %21 : vector<1x16xf32> to vector<128x16xf32>
    %23 = arith.mulf %20, %22 : vector<128x16xf32>
    %c0_10 = arith.constant 0 : index
    %c0_11 = arith.constant 0 : index
    %24 = vector.load %arg3[%c0_10, %c0_11] : memref<1x16xf32, #tpu.memory_space<vmem>>, vector<1x16xf32>
    %25 = vector.broadcast %24 : vector<1x16xf32> to vector<128x16xf32>
    %26 = arith.addf %23, %25 : vector<128x16xf32>
    %cst_12 = arith.constant 0.000000e+00 : f32
    %27 = vector.broadcast %cst_12 : f32 to vector<128x16xf32>
    %28 = arith.maximumf %26, %27 : vector<128x16xf32>
    %c0_13 = arith.constant 0 : index
    %c0_14 = arith.constant 0 : index
    %29 = vector.load %arg4[%c0_13, %c0_14] : memref<128x16xf32, #tpu.memory_space<vmem>>, vector<128x16xf32>
    tpu.vector_store %arg4[%c0_13, %c0_14], %28 {strides = array<i32>} : memref<128x16xf32, #tpu.memory_space<vmem>>, vector<128x16xf32>,
    return
  }
}

module attributes {stable_mosaic.version = 11 : i64} {
  func.func @_conv_bn_relu_res_kernel(%arg0: memref<128x144xbf16, #tpu.memory_space<vmem>>, %arg1: memref<144x16xbf16, #tpu.memory_space<vmem>>, %arg2: memref<1x16xf32, #tpu.memory_space<vmem>>, %arg3: memref<1x16xf32, #tpu.memory_space<vmem>>, %arg4: memref<128x16xf32, #tpu.memory_space<vmem>>, %arg5: memref<128x16xf32, #tpu.memory_space<vmem>>) attributes {dimension_semantics = [], scalar_prefetch = 0 : i64, scratch_operands = 0 : i64, tpu.core_type = #tpu.core_type<tc>} {
    %c0 = arith.constant 0 : index
    %c0_0 = arith.constant 0 : index
    %0 = vector.load %arg0[%c0, %c0_0] : memref<128x144xbf16, #tpu.memory_space<vmem>>, vector<128x144xbf16>
    %c0_1 = arith.constant 0 : index
    %c0_2 = arith.constant 0 : index
    %1 = vector.load %arg1[%c0_1, %c0_2] : memref<144x16xbf16, #tpu.memory_space<vmem>>, vector<144x16xbf16>
    %cst = arith.constant dense<0.000000e+00> : vector<128x16xf32>
    %2 = tpu.matmul %0, %1, %cst {dimension_numbers = #tpu.dot_dimension_numbers<[1], [0], [0], [1], [0, 0, 1, 1], [], []>} : vector<128x144xbf16>, vector<144x16xbf16>, vector<128x16xf32> -> vector<128x16xf32>
    %cst_3 = arith.constant dense<0.000000e+00> : vector<16xf32>
    %3 = vector.multi_reduction <add>, %2, %cst_3 [0] : vector<128x16xf32> to vector<16xf32>
    %4 = vector.shape_cast %3 : vector<16xf32> to vector<1x16xf32>
    %cst_4 = arith.constant 1.280000e+02 : f32
    %5 = vector.broadcast %cst_4 : f32 to vector<1x16xf32>
    %6 = arith.divf %4, %5 : vector<1x16xf32>
    %7 = vector.broadcast %6 : vector<1x16xf32> to vector<128x16xf32>
    %8 = arith.subf %2, %7 : vector<128x16xf32>
    %9 = arith.mulf %8, %8 : vector<128x16xf32>
    %cst_5 = arith.constant dense<0.000000e+00> : vector<16xf32>
    %10 = vector.multi_reduction <add>, %9, %cst_5 [0] : vector<128x16xf32> to vector<16xf32>
    %11 = vector.shape_cast %10 : vector<16xf32> to vector<1x16xf32>
    %cst_6 = arith.constant 1.280000e+02 : f32
    %12 = vector.broadcast %cst_6 : f32 to vector<1x16xf32>
    %13 = arith.divf %11, %12 : vector<1x16xf32>
    %14 = vector.broadcast %6 : vector<1x16xf32> to vector<128x16xf32>
    %15 = arith.subf %2, %14 : vector<128x16xf32>
    %cst_7 = arith.constant 9.99999974E-6 : f32
    %16 = vector.broadcast %cst_7 : f32 to vector<1x16xf32>
    %17 = arith.addf %13, %16 : vector<1x16xf32>
    %18 = math.rsqrt %17 : vector<1x16xf32>
    %19 = vector.broadcast %18 : vector<1x16xf32> to vector<128x16xf32>
    %20 = arith.mulf %15, %19 : vector<128x16xf32>
    %c0_8 = arith.constant 0 : index
    %c0_9 = arith.constant 0 : index
    %21 = vector.load %arg4[%c0_8, %c0_9] : memref<128x16xf32, #tpu.memory_space<vmem>>, vector<128x16xf32>
    %c0_10 = arith.constant 0 : index
    %c0_11 = arith.constant 0 : index
    %22 = vector.load %arg2[%c0_10, %c0_11] : memref<1x16xf32, #tpu.memory_space<vmem>>, vector<1x16xf32>
    %23 = vector.broadcast %22 : vector<1x16xf32> to vector<128x16xf32>
    %24 = arith.mulf %20, %23 : vector<128x16xf32>
    %c0_12 = arith.constant 0 : index
    %c0_13 = arith.constant 0 : index
    %25 = vector.load %arg3[%c0_12, %c0_13] : memref<1x16xf32, #tpu.memory_space<vmem>>, vector<1x16xf32>
    %26 = vector.broadcast %25 : vector<1x16xf32> to vector<128x16xf32>
    %27 = arith.addf %24, %26 : vector<128x16xf32>
    %cst_14 = arith.constant 0.000000e+00 : f32
    %28 = vector.broadcast %cst_14 : f32 to vector<128x16xf32>
    %29 = arith.maximumf %27, %28 : vector<128x16xf32>
    %30 = arith.addf %21, %29 : vector<128x16xf32>
    %c0_15 = arith.constant 0 : index
    %c0_16 = arith.constant 0 : index
    %31 = vector.load %arg5[%c0_15, %c0_16] : memref<128x16xf32, #tpu.memory_space<vmem>>, vector<128x16xf32>
    tpu.vector_store %arg5[%c0_15, %c0_16], %30 {strides = array<i32>} : memref<128x16xf32, #tpu.memory_space<vmem>>, vector<128x16xf32>,
    return
  }
}

module attributes {stable_mosaic.version = 11 : i64} {
  func.func @_conv_bn_relu_kernel(%arg0: memref<512x144xbf16, #tpu.memory_space<vmem>>, %arg1: memref<144x8xbf16, #tpu.memory_space<vmem>>, %arg2: memref<1x8xf32, #tpu.memory_space<vmem>>, %arg3: memref<1x8xf32, #tpu.memory_space<vmem>>, %arg4: memref<512x8xf32, #tpu.memory_space<vmem>>) attributes {dimension_semantics = [], scalar_prefetch = 0 : i64, scratch_operands = 0 : i64, tpu.core_type = #tpu.core_type<tc>} {
    %c0 = arith.constant 0 : index
    %c0_0 = arith.constant 0 : index
    %0 = vector.load %arg0[%c0, %c0_0] : memref<512x144xbf16, #tpu.memory_space<vmem>>, vector<512x144xbf16>
    %c0_1 = arith.constant 0 : index
    %c0_2 = arith.constant 0 : index
    %1 = vector.load %arg1[%c0_1, %c0_2] : memref<144x8xbf16, #tpu.memory_space<vmem>>, vector<144x8xbf16>
    %cst = arith.constant dense<0.000000e+00> : vector<512x8xf32>
    %2 = tpu.matmul %0, %1, %cst {dimension_numbers = #tpu.dot_dimension_numbers<[1], [0], [0], [1], [0, 0, 1, 1], [], []>} : vector<512x144xbf16>, vector<144x8xbf16>, vector<512x8xf32> -> vector<512x8xf32>
    %cst_3 = arith.constant dense<0.000000e+00> : vector<8xf32>
    %3 = vector.multi_reduction <add>, %2, %cst_3 [0] : vector<512x8xf32> to vector<8xf32>
    %4 = vector.shape_cast %3 : vector<8xf32> to vector<1x8xf32>
    %cst_4 = arith.constant 5.120000e+02 : f32
    %5 = vector.broadcast %cst_4 : f32 to vector<1x8xf32>
    %6 = arith.divf %4, %5 : vector<1x8xf32>
    %7 = vector.broadcast %6 : vector<1x8xf32> to vector<512x8xf32>
    %8 = arith.subf %2, %7 : vector<512x8xf32>
    %9 = arith.mulf %8, %8 : vector<512x8xf32>
    %cst_5 = arith.constant dense<0.000000e+00> : vector<8xf32>
    %10 = vector.multi_reduction <add>, %9, %cst_5 [0] : vector<512x8xf32> to vector<8xf32>
    %11 = vector.shape_cast %10 : vector<8xf32> to vector<1x8xf32>
    %cst_6 = arith.constant 5.120000e+02 : f32
    %12 = vector.broadcast %cst_6 : f32 to vector<1x8xf32>
    %13 = arith.divf %11, %12 : vector<1x8xf32>
    %14 = vector.broadcast %6 : vector<1x8xf32> to vector<512x8xf32>
    %15 = arith.subf %2, %14 : vector<512x8xf32>
    %cst_7 = arith.constant 9.99999974E-6 : f32
    %16 = vector.broadcast %cst_7 : f32 to vector<1x8xf32>
    %17 = arith.addf %13, %16 : vector<1x8xf32>
    %18 = math.rsqrt %17 : vector<1x8xf32>
    %19 = vector.broadcast %18 : vector<1x8xf32> to vector<512x8xf32>
    %20 = arith.mulf %15, %19 : vector<512x8xf32>
    %c0_8 = arith.constant 0 : index
    %c0_9 = arith.constant 0 : index
    %21 = vector.load %arg2[%c0_8, %c0_9] : memref<1x8xf32, #tpu.memory_space<vmem>>, vector<1x8xf32>
    %22 = vector.broadcast %21 : vector<1x8xf32> to vector<512x8xf32>
    %23 = arith.mulf %20, %22 : vector<512x8xf32>
    %c0_10 = arith.constant 0 : index
    %c0_11 = arith.constant 0 : index
    %24 = vector.load %arg3[%c0_10, %c0_11] : memref<1x8xf32, #tpu.memory_space<vmem>>, vector<1x8xf32>
    %25 = vector.broadcast %24 : vector<1x8xf32> to vector<512x8xf32>
    %26 = arith.addf %23, %25 : vector<512x8xf32>
    %cst_12 = arith.constant 0.000000e+00 : f32
    %27 = vector.broadcast %cst_12 : f32 to vector<512x8xf32>
    %28 = arith.maximumf %26, %27 : vector<512x8xf32>
    %c0_13 = arith.constant 0 : index
    %c0_14 = arith.constant 0 : index
    %29 = vector.load %arg4[%c0_13, %c0_14] : memref<512x8xf32, #tpu.memory_space<vmem>>, vector<512x8xf32>
    tpu.vector_store %arg4[%c0_13, %c0_14], %28 {strides = array<i32>} : memref<512x8xf32, #tpu.memory_space<vmem>>, vector<512x8xf32>,
    return
  }
}

module attributes {stable_mosaic.version = 11 : i64} {
  func.func @_conv_bias_tanh_kernel(%arg0: memref<512x392xbf16, #tpu.memory_space<vmem>>, %arg1: memref<392x4xbf16, #tpu.memory_space<vmem>>, %arg2: memref<1x4xf32, #tpu.memory_space<vmem>>, %arg3: memref<512x4xf32, #tpu.memory_space<vmem>>) attributes {dimension_semantics = [], scalar_prefetch = 0 : i64, scratch_operands = 0 : i64, tpu.core_type = #tpu.core_type<tc>} {
    %c0 = arith.constant 0 : index
    %c0_0 = arith.constant 0 : index
    %0 = vector.load %arg0[%c0, %c0_0] : memref<512x392xbf16, #tpu.memory_space<vmem>>, vector<512x392xbf16>
    %c0_1 = arith.constant 0 : index
    %c0_2 = arith.constant 0 : index
    %1 = vector.load %arg1[%c0_1, %c0_2] : memref<392x4xbf16, #tpu.memory_space<vmem>>, vector<392x4xbf16>
    %cst = arith.constant dense<0.000000e+00> : vector<512x4xf32>
    %2 = tpu.matmul %0, %1, %cst {dimension_numbers = #tpu.dot_dimension_numbers<[1], [0], [0], [1], [0, 0, 1, 1], [], []>} : vector<512x392xbf16>, vector<392x4xbf16>, vector<512x4xf32> -> vector<512x4xf32>
    %c0_3 = arith.constant 0 : index
    %c0_4 = arith.constant 0 : index
    %3 = vector.load %arg2[%c0_3, %c0_4] : memref<1x4xf32, #tpu.memory_space<vmem>>, vector<1x4xf32>
    %4 = vector.broadcast %3 : vector<1x4xf32> to vector<512x4xf32>
    %5 = arith.addf %2, %4 : vector<512x4xf32>
    %6 = math.tanh %5 : vector<512x4xf32>
    %c0_5 = arith.constant 0 : index
    %c0_6 = arith.constant 0 : index
    %7 = vector.load %arg3[%c0_5, %c0_6] : memref<512x4xf32, #tpu.memory_space<vmem>>, vector<512x4xf32>
    tpu.vector_store %arg3[%c0_5, %c0_6], %6 {strides = array<i32>} : memref<512x4xf32, #tpu.memory_space<vmem>>, vector<512x4xf32>,
    return
  }
}

</mosaic_0001>

<bundles_post_ra>
// kernel: resnet2d_forward.6
= control target key start
LH: loop header
LB: loop body
LE: loop exit
PB: predicated region body
PF: predicated region fallthrough
CT: control target
= control target key end

     0   :  { %vm567_vm0 = vcmask 1041408   ;;  %vm470_vm1 = vcmask 556032   ;;  %vm909_vm2 = vcmask 64512   ;;  %s3855_s1 = inlined_call_operand.vmem [shape: bf16[196,8], index: 1, kind: input, shape index: {}]   ;;  %s3856_s0 = inlined_call_operand.vmem [shape: bf16[512,196], index: 0, kind: input, shape index: {}]   ;;  %s3857_s2 = inlined_call_operand.vmem [shape: f32[1,8], index: 2, kind: input, shape index: {}]   ;;  %s3858_s3 = inlined_call_operand.vmem [shape: f32[1,8], index: 3, kind: input, shape index: {}]   ;;  %s3859_s4 = inlined_call_operand.vmem [shape: f32[512,8], index: 4, kind: output, shape index: {}]  }
   0x1   :  { %v2063_v0 = vld [vmem:[%s3855_s1 + $0x38] sm:$0xff]  ;;  %v106_v1 = vld [vmem:[%s3855_s1 + $0x60] sm:$0x3]  ;;  %v2062_v3 = vld [vmem:[%s3855_s1 + $0x30] sm:$0xff] }
   0x2   :  { %v444_v2 = vunpack.c.l.b16 %v106_v1  ;;  %571 = vmatpush.bf16.msra.mxu0 %v2063_v0  ;;  %2068 = vmatpush.bf16.msra.mxu2 %v2063_v0  ;;  %v2067_v6 = vld [vmem:[%s3855_s1 + $0x58] sm:$0xff]  ;;  %v2061_v7 = vld [vmem:[%s3855_s1 + $0x28] sm:$0xff]  ;;  %v2066_v8 = vld [vmem:[%s3855_s1 + $0x50] sm:$0xff] }
   0x3   :  { %v2060_v9 = vld [vmem:[%s3855_s1 + $0x20] sm:$0xff]  ;;  %v2065_v10 = vld [vmem:[%s3855_s1 + $0x48] sm:$0xff]  ;;  %v2059_v11 = vld [vmem:[%s3855_s1 + $0x18] sm:$0xff] }
   0x4   :  { %v457_v4 = vpack.c.b16 %v444_v2, %v444_v2  ;;  %v2064_v12 = vld [vmem:[%s3855_s1 + $0x40] sm:$0xff]  ;;  %v2058_v13 = vld [vmem:[%s3855_s1 + $0x10] sm:$0xff]  ;;  %v1660_v15 = vld [vmem:[%s3856_s0 + $0x8] sm:$0xf0] }
   0x5   :  { %v1992_v14 = vld [vmem:[%s3856_s0 + $0x4] sm:$0xf]  ;;  %v2057_v17 = vld [vmem:[%s3855_s1 + $0x8] sm:$0xff]  ;;  %v1658_v19 = vld [vmem:[%s3856_s0] sm:$0xf] }
   0x6   :  { %v569_v5 = vsel %vm567_vm0, %v457_v4, 0  ;;  %572 = vmatpush.bf16.msra.mxu0 %v2062_v3  ;;  %2069 = vmatpush.bf16.msra.mxu2 %v2062_v3  ;;  %v1663_v16 = vor.u32 %v1992_v14, %v1660_v15  ;;  %v2056_v18 = vld [vmem:[%s3855_s1] sm:$0xff]  ;;  %v1993_v20 = vld [vmem:[%s3856_s0 + $0x4] sm:$0xf0]  ;;  %v1994_v22 = vld [vmem:[%s3856_s0 + $0x14] sm:$0xf] }
   0x7   :  { %743 = vmatpush.bf16.msra.mxu1 %v569_v5  ;;  %2076 = vmatpush.bf16.msra.mxu3 %v569_v5  ;;  %v1659_v21 = vor.u32 %v1993_v20, %v1658_v19  ;;  %v1668_v23 = vld [vmem:[%s3856_s0 + $0x18] sm:$0xf0]  ;;  %v1666_v25 = vld [vmem:[%s3856_s0 + $0x10] sm:$0xf]  ;;  %v1995_v26 = vld [vmem:[%s3856_s0 + $0x14] sm:$0xf0] }
   0x8   :  { %v1671_v24 = vor.u32 %v1994_v22, %v1668_v23  ;;  %v1667_v27 = vor.u32 %v1995_v26, %v1666_v25  ;;  %v1786_v28 = vld [vmem:[%s3856_s0 + $0x100] sm:$0xf]  ;;  %v2025_v29 = vld [vmem:[%s3856_s0 + $0x104] sm:$0xf0]  ;;  %v1996_v30 = vld [vmem:[%s3856_s0 + $0x24] sm:$0xf] }
   0x9   :  { %v1676_v31 = vld [vmem:[%s3856_s0 + $0x28] sm:$0xf0]  ;;  %v1787_v32 = vor.u32 %v2025_v29, %v1786_v28  ;;  %v1674_v34 = vld [vmem:[%s3856_s0 + $0x20] sm:$0xf]  ;;  %v1997_v35 = vld [vmem:[%s3856_s0 + $0x24] sm:$0xf0] }
   0xa   :  { %573 = vmatpush.bf16.msra.mxu0 %v2061_v7  ;;  %2070 = vmatpush.bf16.msra.mxu2 %v2061_v7  ;;  %v1679_v33 = vor.u32 %v1996_v30, %v1676_v31  ;;  %v1675_v36 = vor.u32 %v1997_v35, %v1674_v34  ;;  %v1794_v37 = vld [vmem:[%s3856_s0 + $0x110] sm:$0xf]  ;;  %v2027_v38 = vld [vmem:[%s3856_s0 + $0x114] sm:$0xf0]  ;;  %v2026_v39 = vld [vmem:[%s3856_s0 + $0x114] sm:$0xf] }
   0xb   :  { %744 = vmatpush.bf16.msra.mxu1 %v2067_v6  ;;  %2077 = vmatpush.bf16.msra.mxu3 %v2067_v6  ;;  %v1998_v40 = vld [vmem:[%s3856_s0 + $0x34] sm:$0xf]  ;;  %v1684_v41 = vld [vmem:[%s3856_s0 + $0x38] sm:$0xf0]  ;;  %v1795_v42 = vor.u32 %v2027_v38, %v1794_v37  ;;  %v1682_v46 = vld [vmem:[%s3856_s0 + $0x30] sm:$0xf] }
   0xc   :  { %v1796_v43 = vld [vmem:[%s3856_s0 + $0x118] sm:$0xf0]  ;;  %v1687_v45 = vor.u32 %v1998_v40, %v1684_v41  ;;  %v1999_v47 = vld [vmem:[%s3856_s0 + $0x34] sm:$0xf0]  ;;  %v1802_v49 = vld [vmem:[%s3856_s0 + $0x120] sm:$0xf] }
   0xd   :  { %v1799_v44 = vor.u32 %v2026_v39, %v1796_v43  ;;  %v1683_v48 = vor.u32 %v1999_v47, %v1682_v46  ;;  %v2029_v50 = vld [vmem:[%s3856_s0 + $0x124] sm:$0xf0]  ;;  %v2028_v51 = vld [vmem:[%s3856_s0 + $0x124] sm:$0xf]  ;;  %v1692_v53 = vld [vmem:[%s3856_s0 + $0x48] sm:$0xf0] }
   0xe   :  { %574 = vmatpush.bf16.msra.mxu0 %v2060_v9  ;;  %2071 = vmatpush.bf16.msra.mxu2 %v2060_v9  ;;  %v2000_v52 = vld [vmem:[%s3856_s0 + $0x44] sm:$0xf]  ;;  %v1803_v54 = vor.u32 %v2029_v50, %v1802_v49  ;;  %v1804_v55 = vld [vmem:[%s3856_s0 + $0x128] sm:$0xf0]  ;;  %v1690_v58 = vld [vmem:[%s3856_s0 + $0x40] sm:$0xf] }
   0xf   :  { %745 = vmatpush.bf16.msra.mxu1 %v2066_v8  ;;  %2078 = vmatpush.bf16.msra.mxu3 %v2066_v8  ;;  %v1807_v56 = vor.u32 %v2028_v51, %v1804_v55  ;;  %v1695_v57 = vor.u32 %v2000_v52, %v1692_v53  ;;  %v2001_v59 = vld [vmem:[%s3856_s0 + $0x44] sm:$0xf0]  ;;  %v1810_v61 = vld [vmem:[%s3856_s0 + $0x130] sm:$0xf]  ;;  %v2031_v62 = vld [vmem:[%s3856_s0 + $0x134] sm:$0xf0] }
  0x10   :  { %v1691_v60 = vor.u32 %v2001_v59, %v1690_v58  ;;  %v2030_v63 = vld [vmem:[%s3856_s0 + $0x134] sm:$0xf]  ;;  %v1700_v1 = vld [vmem:[%s3856_s0 + $0x58] sm:$0xf0]  ;;  %v1811_v2 = vor.u32 %v2031_v62, %v1810_v61  ;;  %v1698_v6 = vld [vmem:[%s3856_s0 + $0x50] sm:$0xf] }
  0x11   :  { %v2002_v0 = vld [vmem:[%s3856_s0 + $0x54] sm:$0xf]  ;;  %v1812_v3 = vld [vmem:[%s3856_s0 + $0x138] sm:$0xf0]  ;;  %v2003_v7 = vld [vmem:[%s3856_s0 + $0x54] sm:$0xf0] }
  0x12   :  { %575 = vmatpush.bf16.msra.mxu0 %v2059_v11  ;;  %2072 = vmatpush.bf16.msra.mxu2 %v2059_v11  ;;  %v1815_v4 = vor.u32 %v2030_v63, %v1812_v3  ;;  %v1703_v5 = vor.u32 %v2002_v0, %v1700_v1  ;;  %v1699_v8 = vor.u32 %v2003_v7, %v1698_v6  ;;  %v2004_v9 = vld [vmem:[%s3856_s0 + $0x64] sm:$0xf]  ;;  %v1818_v11 = vld [vmem:[%s3856_s0 + $0x140] sm:$0xf]  ;;  %v2005_v19 = vld [vmem:[%s3856_s0 + $0x64] sm:$0xf0] }
  0x13   :  { %746 = vmatpush.bf16.msra.mxu1 %v2065_v10  ;;  %2079 = vmatpush.bf16.msra.mxu3 %v2065_v10  ;;  %v1708_v10 = vld [vmem:[%s3856_s0 + $0x68] sm:$0xf0]  ;;  %v1716_v22 = vld [vmem:[%s3856_s0 + $0x78] sm:$0xf0]  ;;  %v1826_v23 = vld [vmem:[%s3856_s0 + $0x150] sm:$0xf] }
  0x14   :  { %v1711_v14 = vor.u32 %v2004_v9, %v1708_v10  ;;  %v2034_v25 = vld [vmem:[%s3856_s0 + $0x154] sm:$0xf]  ;;  %v1828_v28 = vld [vmem:[%s3856_s0 + $0x158] sm:$0xf0]  ;;  %v1714_v30 = vld [vmem:[%s3856_s0 + $0x70] sm:$0xf] }
  0x15   :  { %v1831_v29 = vor.u32 %v2034_v25, %v1828_v28  ;;  %v2007_v31 = vld [vmem:[%s3856_s0 + $0x74] sm:$0xf0]  ;;  %v1724_v34 = vld [vmem:[%s3856_s0 + $0x88] sm:$0xf0]  ;;  %v1834_v35 = vld [vmem:[%s3856_s0 + $0x160] sm:$0xf] }
  0x16   :  { %576 = vmatpush.bf16.msra.mxu0 %v2058_v13  ;;  %2073 = vmatpush.bf16.msra.mxu2 %v2058_v13  ;;  %v2032_v13 = vld [vmem:[%s3856_s0 + $0x144] sm:$0xf]  ;;  %v1836_v40 = vld [vmem:[%s3856_s0 + $0x168] sm:$0xf0]  ;;  %v1722_v43 = vld [vmem:[%s3856_s0 + $0x80] sm:$0xf] }
  0x17   :  { %747 = vmatpush.bf16.msra.mxu1 %v2064_v12  ;;  %2080 = vmatpush.bf16.msra.mxu3 %v2064_v12  ;;  %v2033_v12 = vld [vmem:[%s3856_s0 + $0x144] sm:$0xf0]  ;;  %v2036_v37 = vld [vmem:[%s3856_s0 + $0x164] sm:$0xf]  ;;  %v2010_v49 = vld [vmem:[%s3856_s0 + $0x94] sm:$0xf] }
  0x18   :  { %v1819_v15 = vor.u32 %v2033_v12, %v1818_v11  ;;  %v1732_v50 = vld [vmem:[%s3856_s0 + $0x98] sm:$0xf0]  ;;  %v1842_v51 = vld [vmem:[%s3856_s0 + $0x170] sm:$0xf]  ;;  %v2039_v52 = vld [vmem:[%s3856_s0 + $0x174] sm:$0xf0] }
  0x19   :  { %v2038_v53 = vld [vmem:[%s3856_s0 + $0x174] sm:$0xf]  ;;  %v1843_v55 = vor.u32 %v2039_v52, %v1842_v51  ;;  %v1730_v61 = vld [vmem:[%s3856_s0 + $0x90] sm:$0xf]  ;;  %v2011_v62 = vld [vmem:[%s3856_s0 + $0x94] sm:$0xf0] }
  0x1a   :  { %1960 = vmatmul.msk.bf16.vlgmr.msra.gmra.mxu1 %vm470_vm1, %v1663_v16  ;;  %577 = vmatpush.bf16.msra.mxu0 %v2057_v17  ;;  %v1820_v16 = vld [vmem:[%s3856_s0 + $0x148] sm:$0xf0]  ;;  %v1731_v63 = vor.u32 %v2011_v62, %v1730_v61  ;;  %v2012_v3 = vld [vmem:[%s3856_s0 + $0xa4] sm:$0xf]  ;;  %v2041_v6 = vld [vmem:[%s3856_s0 + $0x184] sm:$0xf0] }
  0x1b   :  { %2074 = vmatpush.bf16.msra.mxu2 %v2057_v17  ;;  %1977 = vmatmul.msk.bf16.vlgmr.msra.gmra.mxu3 %vm470_vm1, %v1799_v44  ;;  %v1823_v17 = vor.u32 %v2032_v13, %v1820_v16  ;;  %v2009_v44 = vld [vmem:[%s3856_s0 + $0x84] sm:$0xf0]  ;;  %v2040_v7 = vld [vmem:[%s3856_s0 + $0x184] sm:$0xf]  ;;  %v1852_v10 = vld [vmem:[%s3856_s0 + $0x188] sm:$0xf0] }
  0x1c   :  { %v1855_v13 = vor.u32 %v2040_v7, %v1852_v10  ;;  %v2013_v16 = vld [vmem:[%s3856_s0 + $0xa4] sm:$0xf0]  ;;  %v1858_v25 = vld [vmem:[%s3856_s0 + $0x190] sm:$0xf]  ;;  %v2044_v52 = vld [vmem:[%s3856_s0 + $0x1a4] sm:$0xf] }
  0x1d   :  { %v2045_v51 = vld [vmem:[%s3856_s0 + $0x1a4] sm:$0xf0]  ;;  %v1754_v61 = vld [vmem:[%s3856_s0 + $0xc0] sm:$0xf]  ;;  %v2018_v7 = vld [vmem:[%s3856_s0 + $0xd4] sm:$0xf] }
  0x1e   :  { %578 = vmatpush.bf16.msra.mxu0 %v2056_v18  ;;  %v2017_v62 = vld [vmem:[%s3856_s0 + $0xc4] sm:$0xf0] }
  0x1f   :  { %2075 = vmatpush.bf16.msra.mxu2 %v2056_v18  ;;  %v1706_v18 = vld [vmem:[%s3856_s0 + $0x60] sm:$0xf] }
  0x20   :  { %v1707_v20 = vor.u32 %v2005_v19, %v1706_v18 }
  0x21   :  { %579 = vmatmul.bf16.vlgmr.msra.gmra.mxu0 %v1659_v21  ;;  %v2006_v21 = vld [vmem:[%s3856_s0 + $0x74] sm:$0xf] }
  0x22   :  { %659 = vmatmul.bf16.vlgmr.msra.gmra.mxu2 %v1787_v32  ;;  %v1719_v26 = vor.u32 %v2006_v21, %v1716_v22  ;;  %v1715_v32 = vor.u32 %v2007_v31, %v1714_v30  ;;  %v2014_v22 = vld [vmem:[%s3856_s0 + $0xb4] sm:$0xf]  ;;  %v1860_v30 = vld [vmem:[%s3856_s0 + $0x198] sm:$0xf0] }
  0x2a   :  { %1961 = vmatmul.msk.bf16.gmra.mxu1 %vm470_vm1, %v1671_v24  ;;  %v2035_v24 = vld [vmem:[%s3856_s0 + $0x154] sm:$0xf0] }
  0x2b   :  { %1978 = vmatmul.msk.bf16.gmra.mxu3 %vm470_vm1, %v1807_v56  ;;  %v1844_v56 = vld [vmem:[%s3856_s0 + $0x178] sm:$0xf0] }
  0x2c   :  { %v1847_v59 = vor.u32 %v2038_v53, %v1844_v56 }
  0x31   :  { %584 = vmatmul.bf16.gmra.mxu0 %v1667_v27  ;;  %v1827_v27 = vor.u32 %v2035_v24, %v1826_v23  ;;  %v1748_v23 = vld [vmem:[%s3856_s0 + $0xb8] sm:$0xf0] }
  0x32   :  { %664 = vmatmul.bf16.gmra.mxu2 %v1795_v42  ;;  %v1839_v42 = vor.u32 %v2036_v37, %v1836_v40  ;;  %v1751_v28 = vor.u32 %v2014_v22, %v1748_v23 }
  0x3a   :  { %1962 = vmatmul.msk.bf16.gmra.mxu1 %vm470_vm1, %v1679_v33  ;;  %v2008_v33 = vld [vmem:[%s3856_s0 + $0x84] sm:$0xf] }
  0x3b   :  { %1979 = vmatmul.msk.bf16.gmra.mxu3 %vm470_vm1, %v1815_v4  ;;  %v1727_v38 = vor.u32 %v2008_v33, %v1724_v34  ;;  %v1740_v4 = vld [vmem:[%s3856_s0 + $0xa8] sm:$0xf0] }
  0x41   :  { %589 = vmatmul.bf16.gmra.mxu0 %v1675_v36  ;;  %v2037_v36 = vld [vmem:[%s3856_s0 + $0x164] sm:$0xf0] }
  0x42   :  { %669 = vmatmul.bf16.gmra.mxu2 %v1803_v54  ;;  %v1835_v39 = vor.u32 %v2037_v36, %v1834_v35  ;;  %v1735_v54 = vor.u32 %v2010_v49, %v1732_v50  ;;  %v1746_v35 = vld [vmem:[%s3856_s0 + $0xb0] sm:$0xf]  ;;  %v2015_v36 = vld [vmem:[%s3856_s0 + $0xb4] sm:$0xf0]  ;;  %v1866_v50 = vld [vmem:[%s3856_s0 + $0x1a0] sm:$0xf] }
  0x43   :  { %v1747_v40 = vor.u32 %v2015_v36, %v1746_v35  ;;  %v2020_v36 = vld [vmem:[%s3856_s0 + $0xe4] sm:$0xf] }
  0x4a   :  { %1963 = vmatmul.msk.bf16.gmra.mxu1 %vm470_vm1, %v1687_v45  ;;  %v1723_v45 = vor.u32 %v2009_v44, %v1722_v43  ;;  %v2016_v44 = vld [vmem:[%s3856_s0 + $0xc4] sm:$0xf] }
  0x4b   :  { %1980 = vmatmul.msk.bf16.gmra.mxu3 %vm470_vm1, %v1823_v17 }
  0x51   :  { %594 = vmatmul.bf16.gmra.mxu0 %v1683_v48 }
  0x52   :  { %674 = vmatmul.bf16.gmra.mxu2 %v1811_v2 }
  0x5a   :  { %1964 = vmatmul.msk.bf16.gmra.mxu1 %vm470_vm1, %v1695_v57 }
  0x5b   :  { %1981 = vmatmul.msk.bf16.gmra.mxu3 %vm470_vm1, %v1831_v29 }
  0x61   :  { %599 = vmatmul.bf16.gmra.mxu0 %v1691_v60 }
  0x62   :  { %679 = vmatmul.bf16.gmra.mxu2 %v1819_v15  ;;  %v1738_v15 = vld [vmem:[%s3856_s0 + $0xa0] sm:$0xf] }
  0x63   :  { %v1739_v18 = vor.u32 %v2013_v16, %v1738_v15  ;;  %v2046_v15 = vld [vmem:[%s3856_s0 + $0x1b4] sm:$0xf] }
  0x6a   :  { %1965 = vmatmul.msk.bf16.gmra.mxu1 %vm470_vm1, %v1703_v5  ;;  %v1850_v5 = vld [vmem:[%s3856_s0 + $0x180] sm:$0xf] }
  0x6b   :  { %1982 = vmatmul.msk.bf16.gmra.mxu3 %vm470_vm1, %v1839_v42  ;;  %v1851_v9 = vor.u32 %v2041_v6, %v1850_v5 }
  0x71   :  { %604 = vmatmul.bf16.gmra.mxu0 %v1699_v8  ;;  %v1743_v8 = vor.u32 %v2012_v3, %v1740_v4  ;;  %v1755_v3 = vor.u32 %v2017_v62, %v1754_v61 }
  0x72   :  { %684 = vmatmul.bf16.gmra.mxu2 %v1827_v27  ;;  %v2042_v27 = vld [vmem:[%s3856_s0 + $0x194] sm:$0xf] }
  0x73   :  { %v1863_v33 = vor.u32 %v2042_v27, %v1860_v30  ;;  %v2019_v27 = vld [vmem:[%s3856_s0 + $0xd4] sm:$0xf0] }
  0x7a   :  { %1966 = vmatmul.msk.bf16.gmra.mxu1 %vm470_vm1, %v1711_v14 }
  0x7b   :  { %1983 = vmatmul.msk.bf16.gmra.mxu3 %vm470_vm1, %v1847_v59 }
  0x81   :  { %609 = vmatmul.bf16.gmra.mxu0 %v1707_v20 }
  0x82   :  { %689 = vmatmul.bf16.gmra.mxu2 %v1835_v39 }
  0x8a   :  { %1967 = vmatmul.msk.bf16.gmra.mxu1 %vm470_vm1, %v1719_v26  ;;  %v2043_v26 = vld [vmem:[%s3856_s0 + $0x194] sm:$0xf0] }
  0x8b   :  { %1984 = vmatmul.msk.bf16.gmra.mxu3 %vm470_vm1, %v1855_v13  ;;  %v1859_v29 = vor.u32 %v2043_v26, %v1858_v25  ;;  %v2047_v13 = vld [vmem:[%s3856_s0 + $0x1b4] sm:$0xf0]  ;;  %v1762_v26 = vld [vmem:[%s3856_s0 + $0xd0] sm:$0xf] }
  0x91   :  { %614 = vmatmul.bf16.gmra.mxu0 %v1715_v32 }
  0x92   :  { %694 = vmatmul.bf16.gmra.mxu2 %v1843_v55  ;;  %v1868_v55 = vld [vmem:[%s3856_s0 + $0x1a8] sm:$0xf0] }
  0x97   :  { %v749_v41 = vpop.f32.mrf.mxu1 }
  0x9a   :  { %1968 = vmatmul.msk.bf16.gmra.mxu1 %vm470_vm1, %v1727_v38 }
  0x9b   :  { %1985 = vmatmul.msk.bf16.gmra.mxu3 %vm470_vm1, %v1863_v33 }
  0x9e   :  { %v580_v47 = vpop.f32.mrf.mxu0  ;;  %v834_v38 = vpop.f32.mrf.mxu3 }
  0x9f   :  { %v751_v46 = vpop.f32.mrf.mxu1  ;;  %v2354_v48 = vadd.f32 %v749_v41, %v580_v47 }
  0xa1   :  { %619 = vmatmul.bf16.gmra.mxu0 %v1723_v45  ;;  %v1756_v45 = vld [vmem:[%s3856_s0 + $0xc8] sm:$0xf0] }
  0xa2   :  { %699 = vmatmul.bf16.gmra.mxu2 %v1851_v9  ;;  %v1759_v53 = vor.u32 %v2016_v44, %v1756_v45  ;;  %v2049_v44 = vld [vmem:[%s3856_s0 + $0x1c4] sm:$0xf0]  ;;  %v2048_v45 = vld [vmem:[%s3856_s0 + $0x1c4] sm:$0xf] }
  0xa5   :  { %v2414_v17 = vpop.f32.mrf.mxu2 }
  0xa6   :  { %v582_v58 = vpop.f32.mrf.mxu0  ;;  %v836_v47 = vpop.f32.mrf.mxu3 }
  0xa7   :  { %v754_v57 = vpop.f32.mrf.mxu1  ;;  %v2374_v60 = vadd.f32 %v751_v46, %v582_v58  ;;  %v1871_v58 = vor.u32 %v2044_v52, %v1868_v55  ;;  %v1770_v55 = vld [vmem:[%s3856_s0 + $0xe0] sm:$0xf] }
  0xa9   :  { %3899 = vst [vmem:[#allocation2_spill] sm:$0xff] %v2374_v60 }
  0xaa   :  { %1969 = vmatmul.msk.bf16.gmra.mxu1 %vm470_vm1, %v1735_v54  ;;  %v1867_v54 = vor.u32 %v2045_v51, %v1866_v50  ;;  %v1884_v50 = vld [vmem:[%s3856_s0 + $0x1c8] sm:$0xf0] }
  0xab   :  { %1986 = vmatmul.msk.bf16.gmra.mxu3 %vm470_vm1, %v1871_v58 }
  0xad   :  { %v2424_v24 = vpop.f32.mrf.mxu2 }
  0xae   :  { %v585_v1 = vpop.f32.mrf.mxu0 }
  0xaf   :  { %v756_v0 = vpop.f32.mrf.mxu1  ;;  %v2384_v2 = vadd.f32 %v754_v57, %v585_v1 }
  0xb1   :  { %624 = vmatmul.bf16.gmra.mxu0 %v1731_v63 }
  0xb2   :  { %704 = vmatmul.bf16.gmra.mxu2 %v1859_v29 }
  0xb5   :  { %v665_v37 = vpop.f32.mrf.mxu2 }
  0xb6   :  { %v587_v12 = vpop.f32.mrf.mxu0  ;;  %v2448_v39 = vadd.f32 %v834_v38, %v665_v37  ;;  %v1772_v37 = vld [vmem:[%s3856_s0 + $0xe8] sm:$0xf0] }
  0xb7   :  { %v759_v11 = vpop.f32.mrf.mxu1  ;;  %v2404_v14 = vadd.f32 %v756_v0, %v587_v12  ;;  %v839_v0 = vpop.f32.mrf.mxu3  ;;  %v1874_v12 = vld [vmem:[%s3856_s0 + $0x1b0] sm:$0xf] }
  0xba   :  { %1970 = vmatmul.msk.bf16.gmra.mxu1 %vm470_vm1, %v1743_v8  ;;  %v1764_v8 = vld [vmem:[%s3856_s0 + $0xd8] sm:$0xf0] }
  0xbb   :  { %v1767_v16 = vor.u32 %v2018_v7, %v1764_v8 }
  0xbd   :  { %v667_v46 = vpop.f32.mrf.mxu2 }
  0xbe   :  { %v590_v20 = vpop.f32.mrf.mxu0  ;;  %v2458_v49 = vadd.f32 %v836_v47, %v667_v46  ;;  %v1775_v46 = vor.u32 %v2020_v36, %v1772_v37 }
  0xbf   :  { %v761_v19 = vpop.f32.mrf.mxu1  ;;  %v2416_v21 = vadd.f32 %v759_v11, %v590_v20  ;;  %v841_v10 = vpop.f32.mrf.mxu3 }
  0xc1   :  { %3900 = vst [vmem:[#allocation3_spill] sm:$0xff] %v2416_v21  ;;  %629 = vmatmul.bf16.gmra.mxu0 %v1739_v18  ;;  %v1875_v18 = vor.u32 %v2047_v13, %v1874_v12  ;;  %v2051_v12 = vld [vmem:[%s3856_s0 + $0x1d4] sm:$0xf0]  ;;  %v2050_v13 = vld [vmem:[%s3856_s0 + $0x1d4] sm:$0xf] }
  0xc2   :  { %709 = vmatmul.bf16.gmra.mxu2 %v1867_v54 }
  0xc5   :  { %v670_v63 = vpop.f32.mrf.mxu2 }
  0xc6   :  { %v592_v32 = vpop.f32.mrf.mxu0  ;;  %v2482_v1 = vadd.f32 %v839_v0, %v670_v63 }
  0xc7   :  { %v764_v31 = vpop.f32.mrf.mxu1  ;;  %v2438_v34 = vadd.f32 %v761_v19, %v592_v32  ;;  %v1876_v19 = vld [vmem:[%s3856_s0 + $0x1b8] sm:$0xf0]  ;;  %v844_v29 = vpop.f32.mrf.mxu3 }
  0xc8   :  { %v1879_v23 = vor.u32 %v2046_v15, %v1876_v19 }
  0xc9   :  { %3901 = vst [vmem:[#allocation4_spill] sm:$0xff] %v2438_v34 }
  0xca   :  { %1971 = vmatmul.msk.bf16.gmra.mxu1 %vm470_vm1, %v1751_v28  ;;  %1987 = vmatmul.msk.bf16.gmra.mxu3 %vm470_vm1, %v1879_v23 }
  0xcd   :  { %v672_v9 = vpop.f32.mrf.mxu2 }
  0xce   :  { %v595_v42 = vpop.f32.mrf.mxu0  ;;  %v2492_v11 = vadd.f32 %v841_v10, %v672_v9  ;;  %v1890_v10 = vld [vmem:[%s3856_s0 + $0x1d0] sm:$0xf] }
  0xcf   :  { %v766_v41 = vpop.f32.mrf.mxu1  ;;  %v2450_v43 = vadd.f32 %v764_v31, %v595_v42  ;;  %v1763_v31 = vor.u32 %v2019_v27, %v1762_v26  ;;  %v1882_v42 = vld [vmem:[%s3856_s0 + $0x1c0] sm:$0xf]  ;;  %v1778_v26 = vld [vmem:[%s3856_s0 + $0xf0] sm:$0xf]  ;;  %v2023_v27 = vld [vmem:[%s3856_s0 + $0xf4] sm:$0xf0] }
  0xd0   :  { %3903 = vst [vmem:[#allocation6_spill] sm:$0xff] %v2492_v11  ;;  %v1883_v47 = vor.u32 %v2049_v44, %v1882_v42 }
  0xd1   :  { %634 = vmatmul.bf16.gmra.mxu0 %v1747_v40  ;;  %v846_v40 = vpop.f32.mrf.mxu3 }
  0xd2   :  { %714 = vmatmul.bf16.gmra.mxu2 %v1875_v18  ;;  %v1892_v18 = vld [vmem:[%s3856_s0 + $0x1d8] sm:$0xf0] }
  0xd5   :  { %v675_v28 = vpop.f32.mrf.mxu2 }
  0xd6   :  { %v597_v57 = vpop.f32.mrf.mxu0  ;;  %v2516_v30 = vadd.f32 %v844_v29, %v675_v28 }
  0xd7   :  { %v769_v56 = vpop.f32.mrf.mxu1  ;;  %v2472_v59 = vadd.f32 %v766_v41, %v597_v57 }
  0xd8   :  { %3905 = vst [vmem:[#allocation8_spill] sm:$0xff] %v2516_v30 }
  0xd9   :  { %v849_v58 = vpop.f32.mrf.mxu3 }
  0xda   :  { %1972 = vmatmul.msk.bf16.gmra.mxu1 %vm470_vm1, %v1759_v53  ;;  %v1887_v53 = vor.u32 %v2048_v45, %v1884_v50  ;;  %v2052_v50 = vld [vmem:[%s3856_s0 + $0x1e4] sm:$0xf] }
  0xdc   :  { %1988 = vmatmul.msk.bf16.gmra.mxu3 %vm470_vm1, %v1887_v53  ;;  %v1900_v53 = vld [vmem:[%s3856_s0 + $0x1e8] sm:$0xf0] }
  0xdd   :  { %v677_v38 = vpop.f32.mrf.mxu2 }
  0xde   :  { %v600_v5 = vpop.f32.mrf.mxu0  ;;  %v2526_v41 = vadd.f32 %v846_v40, %v677_v38  ;;  %v2024_v38 = vld [vmem:[%s3856_s0 + $0x104] sm:$0xf]  ;;  %v1788_v40 = vld [vmem:[%s3856_s0 + $0x108] sm:$0xf0] }
  0xdf   :  { %v771_v4 = vpop.f32.mrf.mxu1  ;;  %v2484_v6 = vadd.f32 %v769_v56, %v600_v5  ;;  %v2021_v56 = vld [vmem:[%s3856_s0 + $0xe4] sm:$0xf0]  ;;  %v1780_v5 = vld [vmem:[%s3856_s0 + $0xf8] sm:$0xf0] }
  0xe0   :  { %v1771_v62 = vor.u32 %v2021_v56, %v1770_v55 }
  0xe1   :  { %3902 = vst [vmem:[#allocation5_spill] sm:$0xff] %v2484_v6  ;;  %639 = vmatmul.bf16.gmra.mxu0 %v1755_v3  ;;  %v851_v8 = vpop.f32.mrf.mxu3 }
  0xe2   :  { %719 = vmatmul.bf16.gmra.mxu2 %v1883_v47  ;;  %v2053_v47 = vld [vmem:[%s3856_s0 + $0x1e4] sm:$0xf0] }
  0xe5   :  { %v680_v57 = vpop.f32.mrf.mxu2 }
  0xe6   :  { %v602_v22 = vpop.f32.mrf.mxu0  ;;  %v2550_v61 = vadd.f32 %v849_v58, %v680_v57  ;;  %v1903_v57 = vor.u32 %v2052_v50, %v1900_v53 }
  0xe7   :  { %v774_v20 = vpop.f32.mrf.mxu1  ;;  %v2506_v25 = vadd.f32 %v771_v4, %v602_v22  ;;  %v2022_v4 = vld [vmem:[%s3856_s0 + $0xf4] sm:$0xf]  ;;  %v1895_v22 = vor.u32 %v2050_v13, %v1892_v18  ;;  %v1906_v13 = vld [vmem:[%s3856_s0 + $0x1f0] sm:$0xf] }
  0xe8   :  { %v1783_v15 = vor.u32 %v2022_v4, %v1780_v5 }
  0xe9   :  { %3904 = vst [vmem:[#allocation7_spill] sm:$0xff] %v2506_v25  ;;  %v854_v29 = vpop.f32.mrf.mxu3 }
  0xea   :  { %1973 = vmatmul.msk.bf16.gmra.mxu1 %vm470_vm1, %v1767_v16  ;;  %v1891_v16 = vor.u32 %v2051_v12, %v1890_v10 }
  0xec   :  { %1989 = vmatmul.msk.bf16.gmra.mxu3 %vm470_vm1, %v1895_v22 }
  0xed   :  { %v682_v7 = vpop.f32.mrf.mxu2 }
  0xee   :  { %v605_v33 = vpop.f32.mrf.mxu0  ;;  %v2560_v9 = vadd.f32 %v851_v8, %v682_v7 }
  0xef   :  { %v776_v32 = vpop.f32.mrf.mxu1  ;;  %v2518_v35 = vadd.f32 %v774_v20, %v605_v33 }
  0xf1   :  { %644 = vmatmul.bf16.gmra.mxu0 %v1763_v31  ;;  %v856_v44 = vpop.f32.mrf.mxu3 }
  0xf2   :  { %724 = vmatmul.bf16.gmra.mxu2 %v1891_v16  ;;  %v2054_v16 = vld [vmem:[%s3856_s0 + $0x1f4] sm:$0xf] }
  0xf5   :  { %v685_v28 = vpop.f32.mrf.mxu2 }
  0xf6   :  { %v607_v52 = vpop.f32.mrf.mxu0  ;;  %v2584_v31 = vadd.f32 %v854_v29, %v685_v28 }
  0xf7   :  { %v779_v51 = vpop.f32.mrf.mxu1  ;;  %v2540_v54 = vadd.f32 %v776_v32, %v607_v52  ;;  %v1779_v32 = vor.u32 %v2023_v27, %v1778_v26 }
  0xf8   :  { %3908 = vst [vmem:[#allocation11_spill] sm:$0xff] %v2584_v31 }
  0xfa   :  { %1974 = vmatmul.msk.bf16.gmra.mxu1 %vm470_vm1, %v1775_v46  ;;  %v1898_v46 = vld [vmem:[%s3856_s0 + $0x1e0] sm:$0xf] }
  0xfb   :  { %v1899_v52 = vor.u32 %v2053_v47, %v1898_v46 }
  0xfc   :  { %1990 = vmatmul.msk.bf16.gmra.mxu3 %vm470_vm1, %v1903_v57 }
  0xfd   :  { %v687_v42 = vpop.f32.mrf.mxu2 }
  0xfe   :  { %v610_v0 = vpop.f32.mrf.mxu0  ;;  %v2594_v45 = vadd.f32 %v856_v44, %v687_v42 }
  0xff   :  { %v781_v63 = vpop.f32.mrf.mxu1  ;;  %v2552_v3 = vadd.f32 %v779_v51, %v610_v0  ;;  %v1791_v51 = vor.u32 %v2024_v38, %v1788_v40 }
 0x100   :  { %3909 = vst [vmem:[#allocation12_spill] sm:$0xff] %v2594_v45 }
 0x101   :  { %3906 = vst [vmem:[#allocation9_spill] sm:$0xff] %v2552_v3  ;;  %649 = vmatmul.bf16.gmra.mxu0 %v1771_v62 }
 0x102   :  { %729 = vmatmul.bf16.gmra.mxu2 %v1899_v52 }
 0x105   :  { %v690_v62 = vpop.f32.mrf.mxu2 }
 0x106   :  { %v612_v20 = vpop.f32.mrf.mxu0 }
 0x107   :  { %v784_v19 = vpop.f32.mrf.mxu1  ;;  %v2574_v23 = vadd.f32 %v781_v63, %v612_v20  ;;  %v859_v63 = vpop.f32.mrf.mxu3 }
 0x108   :  { %v2612_v0 = vadd.f32 %v859_v63, %v690_v62 }
 0x109   :  { %3907 = vst [vmem:[#allocation10_spill] sm:$0xff] %v2574_v23 }
 0x10a   :  { %1975 = vmatmul.msk.bf16.gmra.mxu1 %vm470_vm1, %v1783_v15  ;;  %v2055_v15 = vld [vmem:[%s3856_s0 + $0x1f4] sm:$0xf0] }
 0x10b   :  { %v1907_v18 = vor.u32 %v2055_v15, %v1906_v13 }
 0x10d   :  { %v692_v8 = vpop.f32.mrf.mxu2 }
 0x10e   :  { %v615_v36 = vpop.f32.mrf.mxu0 }
 0x10f   :  { %v786_v33 = vpop.f32.mrf.mxu1  ;;  %v2586_v37 = vadd.f32 %v784_v19, %v615_v36  ;;  %v861_v10 = vpop.f32.mrf.mxu3  ;;  %v1908_v19 = vld [vmem:[%s3856_s0 + $0x1f8] sm:$0xf0] }
 0x110   :  { %v2616_v12 = vadd.f32 %v861_v10, %v692_v8  ;;  %v1911_v26 = vor.u32 %v2054_v16, %v1908_v19 }
 0x111   :  { %654 = vmatmul.bf16.gmra.mxu0 %v1779_v32 }
 0x112   :  { %734 = vmatmul.bf16.gmra.mxu2 %v1907_v18  ;;  %1991 = vmatmul.msk.bf16.gmra.mxu3 %vm470_vm1, %v1911_v26 }
 0x115   :  { %v695_v28 = vpop.f32.mrf.mxu2 }
 0x116   :  { %v617_v56 = vpop.f32.mrf.mxu0 }
 0x117   :  { %v789_v55 = vpop.f32.mrf.mxu1  ;;  %v2608_v58 = vadd.f32 %v786_v33, %v617_v56  ;;  %v864_v29 = vpop.f32.mrf.mxu3 }
 0x118   :  { %v2633_v32 = vadd.f32 %v864_v29, %v695_v28 }
 0x119   :  { %3910 = vst [vmem:[#allocation13_spill] sm:$0xff] %v2608_v58 }
 0x11a   :  { %1976 = vmatmul.msk.bf16.gmra.mxu1 %vm470_vm1, %v1791_v51 }
 0x11d   :  { %v697_v40 = vpop.f32.mrf.mxu2 }
 0x11e   :  { %v620_v5 = vpop.f32.mrf.mxu0 }
 0x11f   :  { %v791_v4 = vpop.f32.mrf.mxu1  ;;  %v2614_v7 = vadd.f32 %v789_v55, %v620_v5  ;;  %v866_v42 = vpop.f32.mrf.mxu3 }
 0x120   :  { %v2637_v44 = vadd.f32 %v866_v42, %v697_v40  ;;  %v911_v40 = vsel %vm909_vm2, %v2374_v60, 0.0 }
 0x125   :  { %v700_v51 = vpop.f32.mrf.mxu2 }
 0x126   :  { %v622_v22 = vpop.f32.mrf.mxu0 }
 0x127   :  { %v794_v20 = vpop.f32.mrf.mxu1  ;;  %v2630_v27 = vadd.f32 %v791_v4, %v622_v22  ;;  %v869_v52 = vpop.f32.mrf.mxu3 }
 0x128   :  { %v2641_v53 = vadd.f32 %v869_v52, %v700_v51  ;;  %v913_v51 = vsel %vm909_vm2, %v2384_v2, 0.0 }
 0x12d   :  { %v702_v62 = vpop.f32.mrf.mxu2 }
 0x12e   :  { %v625_v36 = vpop.f32.mrf.mxu0 }
 0x12f   :  { %v796_v33 = vpop.f32.mrf.mxu1  ;;  %v2635_v38 = vadd.f32 %v794_v20, %v625_v36  ;;  %v871_v63 = vpop.f32.mrf.mxu3 }
 0x130   :  { %v2647_v4 = vadd.f32 %v871_v63, %v702_v62  ;;  %v917_v63 = vsel %vm909_vm2, %v2416_v21, 0.0 }
 0x135   :  { %v705_v10 = vpop.f32.mrf.mxu2 }
 0x136   :  { %v627_v47 = vpop.f32.mrf.mxu0 }
 0x137   :  { %v799_v46 = vpop.f32.mrf.mxu1  ;;  %v2639_v50 = vadd.f32 %v796_v33, %v627_v47  ;;  %v874_v13 = vpop.f32.mrf.mxu3  ;;  %v910_v47 = vsel %vm909_vm2, %v2354_v48, 0.0 }
 0x138   :  { %v2653_v15 = vadd.f32 %v874_v13, %v705_v10  ;;  %v912_v52 = vadd.f32 %v911_v40, %v910_v47  ;;  %v919_v13 = vsel %vm909_vm2, %v2438_v34, 0.0  ;;  %v923_v40 = vsel %vm909_vm2, %v2472_v59, 0.0 }
 0x13a   :  { %v914_v62 = vadd.f32 %v913_v51, %v912_v52  ;;  %v925_v51 = vsel %vm909_vm2, %v2484_v6, 0.0 }
 0x13d   :  { %v707_v19 = vpop.f32.mrf.mxu2 }
 0x13e   :  { %v630_v56 = vpop.f32.mrf.mxu0 }
 0x13f   :  { %v2643_v55 = vpop.f32.mrf.mxu1  ;;  %v2645_v57 = vadd.f32 %v799_v46, %v630_v56  ;;  %v876_v20 = vpop.f32.mrf.mxu3  ;;  %v915_v56 = vsel %vm909_vm2, %v2404_v14, 0.0 }
 0x140   :  { %v2659_v22 = vadd.f32 %v876_v20, %v707_v19  ;;  %v916_v10 = vadd.f32 %v915_v56, %v914_v62  ;;  %v927_v56 = vsel %vm909_vm2, %v2506_v25, 0.0 }
 0x141   :  { %3911 = vst [vmem:[#allocation14_spill] sm:$0xff] %v2645_v57 }
 0x142   :  { %v918_v19 = vadd.f32 %v917_v63, %v916_v10  ;;  %v929_v10 = vsel %vm909_vm2, %v2518_v35, 0.0 }
 0x144   :  { %v920_v60 = vadd.f32 %v919_v13, %v918_v19  ;;  %v931_v13 = vsel %vm909_vm2, %v2540_v54, 0.0 }
 0x145   :  { %v710_v29 = vpop.f32.mrf.mxu2 }
 0x146   :  { %v2651_v8 = vpop.f32.mrf.mxu0 }
 0x147   :  { %v2649_v5 = vpop.f32.mrf.mxu1  ;;  %v879_v33 = vpop.f32.mrf.mxu3 }
 0x148   :  { %v2665_v36 = vadd.f32 %v879_v33, %v710_v29  ;;  %v921_v33 = vsel %vm909_vm2, %v2450_v43, 0.0 }
 0x149   :  { %v922_v47 = vadd.f32 %v921_v33, %v920_v60  ;;  %v933_v60 = vsel %vm909_vm2, %v2552_v3, 0.0 }
 0x14b   :  { %v924_v52 = vadd.f32 %v923_v40, %v922_v47  ;;  %v935_v40 = vsel %vm909_vm2, %v2574_v23, 0.0 }
 0x14d   :  { %v926_v62 = vadd.f32 %v925_v51, %v924_v52  ;;  %v937_v52 = vsel %vm909_vm2, %v2586_v37, 0.0 }
 0x14e   :  { %v2657_v18 = vpop.f32.mrf.mxu0 }
 0x14f   :  { %v2655_v16 = vpop.f32.mrf.mxu1  ;;  %v928_v21 = vadd.f32 %v927_v56, %v926_v62  ;;  %v939_v56 = vsel %vm909_vm2, %v2608_v58, 0.0  ;;  %v2701_v62 = vpop.f32.mrf.mxu2  ;;  %v947_v58 = vsel %vm909_vm2, %v2639_v50, 0.0 }
 0x151   :  { %v930_v19 = vadd.f32 %v929_v10, %v928_v21  ;;  %v2703_v21 = vpop.f32.mrf.mxu3 }
 0x153   :  { %v932_v33 = vadd.f32 %v931_v13, %v930_v19  ;;  %v941_v13 = vsel %vm909_vm2, %v2614_v7, 0.0 }
 0x155   :  { %v934_v47 = vadd.f32 %v933_v60, %v932_v33  ;;  %v943_v60 = vsel %vm909_vm2, %v2630_v27, 0.0 }
 0x156   :  { %v2663_v28 = vpop.f32.mrf.mxu0 }
 0x157   :  { %v2661_v26 = vpop.f32.mrf.mxu1  ;;  %v936_v6 = vadd.f32 %v935_v40, %v934_v47  ;;  %v945_v40 = vsel %vm909_vm2, %v2635_v38, 0.0 }
 0x159   :  { %v938_v10 = vadd.f32 %v937_v52, %v936_v6  ;;  %v2715_v6 = vadd.f32 %v2643_v55, %v2651_v8  ;;  %v2731_v55 = vadd.f32 %v2655_v16, %v2663_v28 }
 0x15b   :  { %v940_v19 = vadd.f32 %v939_v56, %v938_v10  ;;  %3912 = vst [vmem:[#allocation15_spill] sm:$0xff] %v2715_v6  ;;  %v949_v56 = vsel %vm909_vm2, %v2645_v57, 0.0  ;;  %v2721_v10 = vadd.f32 %v2649_v5, %v2657_v18 }
 0x15d   :  { %v942_v33 = vadd.f32 %v941_v13, %v940_v19  ;;  %3913 = vst [vmem:[#allocation16_spill] sm:$0xff] %v2721_v10  ;;  %v2723_v13 = vpop.f32.mrf.mxu2  ;;  %v2725_v19 = vpop.f32.mrf.mxu3  ;;  %v953_v57 = vsel %vm909_vm2, %v2721_v10, 0.0 }
 0x15e   :  { %v640_v46 = vpop.f32.mrf.mxu0 }
 0x15f   :  { %v2669_v42 = vpop.f32.mrf.mxu1  ;;  %v944_v47 = vadd.f32 %v943_v60, %v942_v33  ;;  %v951_v33 = vsel %vm909_vm2, %v2715_v6, 0.0  ;;  %v2736_v5 = vadd.f32 %v2661_v26, %v640_v46 }
 0x161   :  { %v946_v52 = vadd.f32 %v945_v40, %v944_v47  ;;  %v957_v16 = vsel %vm909_vm2, %v2736_v5, 0.0 }
 0x163   :  { %v948_v60 = vadd.f32 %v947_v58, %v946_v52  ;;  %v955_v58 = vsel %vm909_vm2, %v2731_v55, 0.0 }
 0x165   :  { %v950_v8 = vadd.f32 %v949_v56, %v948_v60  ;;  %v2751_v26 = vpop.f32.mrf.mxu2  ;;  %v2753_v46 = vpop.f32.mrf.mxu3 }
 0x166   :  { %v642_v29 = vpop.f32.mrf.mxu0 }
 0x167   :  { %v814_v20 = vpop.f32.mrf.mxu1  ;;  %v952_v18 = vadd.f32 %v951_v33, %v950_v8  ;;  %v2741_v52 = vadd.f32 %v2669_v42, %v642_v29 }
 0x169   :  { %v954_v6 = vadd.f32 %v953_v57, %v952_v18  ;;  %v959_v60 = vsel %vm909_vm2, %v2741_v52, 0.0 }
 0x16b   :  { %v956_v56 = vadd.f32 %v955_v58, %v954_v6 }
 0x16d   :  { %v958_v33 = vadd.f32 %v957_v16, %v956_v56 }
 0x16e   :  { %v645_v63 = vpop.f32.mrf.mxu0 }
 0x16f   :  { %v816_v34 = vpop.f32.mrf.mxu1  ;;  %v2745_v28 = vadd.f32 %v814_v20, %v645_v63  ;;  %v960_v20 = vadd.f32 %v959_v60, %v958_v33  ;;  %v2775_v33 = vpop.f32.mrf.mxu3 }
 0x171   :  { %3914 = vst [vmem:[#allocation17_spill] sm:$0xff] %v2745_v28  ;;  %v961_v57 = vsel %vm909_vm2, %v2745_v28, 0.0 }
 0x176   :  { %v647_v51 = vpop.f32.mrf.mxu0 }
 0x177   :  { %v819_v25 = vpop.f32.mrf.mxu1  ;;  %v2749_v10 = vadd.f32 %v816_v34, %v647_v51  ;;  %v962_v34 = vadd.f32 %v961_v57, %v960_v20 }
 0x179   :  { %v963_v63 = vsel %vm909_vm2, %v2749_v10, 0.0 }
 0x17a   :  { %v964_v58 = vadd.f32 %v963_v63, %v962_v34 }
 0x17e   :  { %v650_v3 = vpop.f32.mrf.mxu0 }
 0x17f   :  { %v821_v23 = vpop.f32.mrf.mxu1  ;;  %v2757_v29 = vadd.f32 %v819_v25, %v650_v3 }
 0x181   :  { %v965_v51 = vsel %vm909_vm2, %v2757_v29, 0.0 }
 0x182   :  { %v966_v56 = vadd.f32 %v965_v51, %v964_v58 }
 0x186   :  { %v652_v47 = vpop.f32.mrf.mxu0 }
 0x187   :  { %v824_v40 = vpop.f32.mrf.mxu1  ;;  %v2761_v6 = vadd.f32 %v821_v23, %v652_v47  ;;  %v2773_v47 = vpop.f32.mrf.mxu2 }
 0x189   :  { %v967_v16 = vsel %vm909_vm2, %v2761_v6, 0.0 }
 0x18a   :  { %v968_v23 = vadd.f32 %v967_v16, %v966_v56 }
 0x18e   :  { %v655_v42 = vpop.f32.mrf.mxu0 }
 0x18f   :  { %v826_v8 = vpop.f32.mrf.mxu1  ;;  %v2765_v18 = vadd.f32 %v824_v40, %v655_v42  ;;  %v722_v56 = vpop.f32.mrf.mxu2 }
 0x191   :  { %v969_v3 = vsel %vm909_vm2, %v2765_v18, 0.0 }
 0x192   :  { %v970_v42 = vadd.f32 %v969_v3, %v968_v23  ;;  %v977_v3 = vsel %vm909_vm2, %v2448_v39, 0.0 }
 0x196   :  { %v657_v25 = vpop.f32.mrf.mxu0 }
 0x197   :  { %v829_v28 = vpop.f32.mrf.mxu1  ;;  %v2771_v60 = vadd.f32 %v826_v8, %v657_v25  ;;  %v891_v25 = vpop.f32.mrf.mxu3 }
 0x198   :  { %v2780_v57 = vadd.f32 %v829_v28, %v2414_v17  ;;  %v979_v28 = vsel %vm909_vm2, %v2458_v49, 0.0 }
 0x199   :  { %v971_v40 = vsel %vm909_vm2, %v2771_v60, 0.0 }
 0x19a   :  { %v972_v20 = vadd.f32 %v971_v40, %v970_v42  ;;  %v973_v34 = vsel %vm909_vm2, %v2780_v57, 0.0  ;;  %v981_v40 = vsel %vm909_vm2, %v2482_v1, 0.0  ;;  %v983_v42 = vsel %vm909_vm2, %v2492_v11, 0.0 }
 0x19c   :  { %v974_v51 = vadd.f32 %v973_v34, %v972_v20 }
 0x19f   :  { %v831_v63 = vpop.f32.mrf.mxu1 }
 0x1a0   :  { %v2785_v8 = vadd.f32 %v831_v63, %v2424_v24  ;;  %v985_v63 = vsel %vm909_vm2, %v2516_v30, 0.0 }
 0x1a2   :  { %v975_v58 = vsel %vm909_vm2, %v2785_v8, 0.0 }
 0x1a3   :  { %v976_v16 = vadd.f32 %v975_v58, %v974_v51  ;;  %v725_v51 = vpop.f32.mrf.mxu2  ;;  %v894_v58 = vpop.f32.mrf.mxu3 }
 0x1a5   :  { %v978_v17 = vadd.f32 %v977_v3, %v976_v16  ;;  %v987_v16 = vsel %vm909_vm2, %v2526_v41, 0.0 }
 0x1a7   :  { %v980_v23 = vadd.f32 %v979_v28, %v978_v17  ;;  %v989_v17 = vsel %vm909_vm2, %v2550_v61, 0.0 }
 0x1a9   :  { %v982_v24 = vadd.f32 %v981_v40, %v980_v23  ;;  %v991_v23 = vsel %vm909_vm2, %v2560_v9, 0.0 }
 0x1ab   :  { %v984_v20 = vadd.f32 %v983_v42, %v982_v24  ;;  %v993_v24 = vsel %vm909_vm2, %v2584_v31, 0.0  ;;  %v727_v30 = vpop.f32.mrf.mxu2  ;;  %v896_v11 = vpop.f32.mrf.mxu3 }
 0x1ad   :  { %v986_v34 = vadd.f32 %v985_v63, %v984_v20  ;;  %v995_v20 = vsel %vm909_vm2, %v2594_v45, 0.0 }
 0x1af   :  { %v988_v3 = vadd.f32 %v987_v16, %v986_v34  ;;  %v997_v34 = vsel %vm909_vm2, %v2612_v0, 0.0 }
 0x1b1   :  { %v990_v28 = vadd.f32 %v989_v17, %v988_v3  ;;  %v999_v3 = vsel %vm909_vm2, %v2616_v12, 0.0 }
 0x1b3   :  { %v992_v40 = vadd.f32 %v991_v23, %v990_v28  ;;  %v1001_v28 = vsel %vm909_vm2, %v2633_v32, 0.0  ;;  %v730_v45 = vpop.f32.mrf.mxu2  ;;  %v899_v31 = vpop.f32.mrf.mxu3 }
 0x1b5   :  { %v994_v42 = vadd.f32 %v993_v24, %v992_v40  ;;  %v1003_v40 = vsel %vm909_vm2, %v2637_v44, 0.0 }
 0x1b7   :  { %v996_v63 = vadd.f32 %v995_v20, %v994_v42  ;;  %v1005_v42 = vsel %vm909_vm2, %v2641_v53, 0.0 }
 0x1b9   :  { %v998_v16 = vadd.f32 %v997_v34, %v996_v63  ;;  %v1007_v63 = vsel %vm909_vm2, %v2647_v4, 0.0 }
 0x1bb   :  { %v1000_v17 = vadd.f32 %v999_v3, %v998_v16  ;;  %v1009_v16 = vsel %vm909_vm2, %v2653_v15, 0.0 }
 0x1bd   :  { %v1002_v23 = vadd.f32 %v1001_v28, %v1000_v17  ;;  %v1011_v17 = vsel %vm909_vm2, %v2659_v22, 0.0  ;;  %v2827_v28 = vadd.f32 %v2703_v21, %v2701_v62  ;;  %v901_v62 = vpop.f32.mrf.mxu3 }
 0x1bf   :  { %v1004_v24 = vadd.f32 %v1003_v40, %v1002_v23  ;;  %v1013_v40 = vsel %vm909_vm2, %v2665_v36, 0.0 }
 0x1c1   :  { %v1006_v20 = vadd.f32 %v1005_v42, %v1004_v24  ;;  %v2833_v24 = vadd.f32 %v2725_v19, %v2723_v13 }
 0x1c3   :  { %v1008_v34 = vadd.f32 %v1007_v63, %v1006_v20  ;;  %v1015_v20 = vsel %vm909_vm2, %v2827_v28, 0.0  ;;  %v2839_v63 = vadd.f32 %v2753_v46, %v2751_v26  ;;  %v1017_v21 = vsel %vm909_vm2, %v2833_v24, 0.0 }
 0x1c4   :  { %v2853_v46 = vadd.f32 %v894_v58, %v725_v51 }
 0x1c5   :  { %v1010_v3 = vadd.f32 %v1009_v16, %v1008_v34  ;;  %v732_v16 = vpop.f32.mrf.mxu2  ;;  %v1019_v19 = vsel %vm909_vm2, %v2839_v63, 0.0 }
 0x1c7   :  { %v1012_v23 = vadd.f32 %v1011_v17, %v1010_v3  ;;  %v2845_v3 = vadd.f32 %v2775_v33, %v2773_v47  ;;  %v2849_v17 = vadd.f32 %v891_v25, %v722_v56  ;;  %v1025_v33 = vsel %vm909_vm2, %v2853_v46, 0.0  ;;  %v904_v56 = vpop.f32.mrf.mxu3 }
 0x1c9   :  { %v1014_v42 = vadd.f32 %v1013_v40, %v1012_v23  ;;  %v1021_v26 = vsel %vm909_vm2, %v2845_v3, 0.0 }
 0x1cb   :  { %v1016_v34 = vadd.f32 %v1015_v20, %v1014_v42  ;;  %v1023_v42 = vsel %vm909_vm2, %v2849_v17, 0.0  ;;  %v2857_v20 = vadd.f32 %v896_v11, %v727_v30 }
 0x1cd   :  { %v1018_v13 = vadd.f32 %v1017_v21, %v1016_v34  ;;  %v735_v21 = vpop.f32.mrf.mxu2  ;;  %v1027_v25 = vsel %vm909_vm2, %v2857_v20, 0.0 }
 0x1cf   :  { %v1020_v23 = vadd.f32 %v1019_v19, %v1018_v13  ;;  %v2863_v13 = vadd.f32 %v899_v31, %v730_v45  ;;  %v2867_v19 = vadd.f32 %v901_v62, %v732_v16  ;;  %v2088_v62 = vmov 512.0  }
 0x1d0   :  { %2084 = vrcp.f32 %v2088_v62 }
 0x1d1   :  { %v1022_v40 = vadd.f32 %v1021_v26, %v1020_v23  ;;  %3915 = vst [vmem:[#allocation18_spill] sm:$0xff] %v2863_v13  ;;  %v1029_v58 = vsel %vm909_vm2, %v2863_v13, 0.0  ;;  %v1031_v30 = vsel %vm909_vm2, %v2867_v19, 0.0  ;;  %v2871_v23 = vadd.f32 %v904_v56, %v735_v21 }
 0x1d2   :  { %3916 = vst [vmem:[#allocation19_spill] sm:$0xff] %v2867_v19 }
 0x1d3   :  { %v1024_v47 = vadd.f32 %v1023_v42, %v1022_v40  ;;  %v906_v42 = vpop.f32.mrf.mxu3 }
 0x1d5   :  { %v1026_v34 = vadd.f32 %v1025_v33, %v1024_v47  ;;  %v737_v40 = vpop.f32.mrf.mxu2  ;;  %v1033_v47 = vsel %vm909_vm2, %v2871_v23, 0.0 }
 0x1d6   :  { %v2875_v31 = vadd.f32 %v906_v42, %v737_v40 }
 0x1d7   :  { %v1028_v51 = vadd.f32 %v1027_v25, %v1026_v34  ;;  %v2085_v25 = vpop.eup %2084 }
 0x1d8   :  { %v1035_v33 = vsel %vm909_vm2, %v2875_v31, 0.0  ;;  %v1044_v21 = vmul.f32 512.0, %v2085_v25  ;;  %vm1048_vm3 = vweird.f32 %v2085_v25 }
 0x1d9   :  { %v1030_v11 = vadd.f32 %v1029_v58, %v1028_v51 }
 0x1da   :  { %v1045_v58 = vsub.f32 1.0, %v1044_v21 }
 0x1db   :  { %v1032_v26 = vadd.f32 %v1031_v30, %v1030_v11 }
 0x1dc   :  { %v1046_v30 = vmul.f32 %v2085_v25, %v1045_v58 }
 0x1dd   :  { %v1034_v45 = vadd.f32 %v1033_v47, %v1032_v26 }
 0x1de   :  { %v1047_v13 = vadd.f32 %v2085_v25, %v1046_v30 }
 0x1df   :  { %v1036_v16 = vadd.f32 %v1035_v33, %v1034_v45  ;;  %v3917_v45 = vld [vmem:[#allocation2_spill] sm:$0xff] }
 0x1e0   :  { %v2879_v42 = vsel %vm1048_vm3, %v2085_v25, %v1047_v13 }
 0x1e1   :  { %v1037_v34 = vrot.slane %v1036_v16, 4 }
 0x1e3   :  { %v1038_v51 = vadd.f32 %v1037_v34, %v1036_v16 }
 0x1e5   :  { %v1039_v56 = vrot.slane %v1038_v51, 2 }
 0x1e7   :  { %v1040_v11 = vadd.f32 %v1039_v56, %v1038_v51 }
 0x1e9   :  { %v1041_v19 = vrot.slane %v1040_v11, 1 }
 0x1eb   :  { %v1042_v40 = vadd.f32 %v1041_v19, %v1040_v11 }
 0x1ed   :  { %v2882_v26 = vmul.f32 %v2879_v42, %v1042_v40 }
 0x1ef   :  { %v2886_v47 = vsub.f32 %v2354_v48, %v2882_v26  ;;  %v2890_v33 = vsub.f32 %v3917_v45, %v2882_v26  ;;  %v2894_v16 = vsub.f32 %v2384_v2, %v2882_v26  ;;  %v2898_v19 = vsub.f32 %v2404_v14, %v2882_v26  ;;  %v3918_v48 = vld [vmem:[#allocation3_spill] sm:$0xff]  ;;  %v3919_v2 = vld [vmem:[#allocation4_spill] sm:$0xff] }
 0x1f0   :  { %v2906_v34 = vsub.f32 %v3918_v48, %v2882_v26  ;;  %v2912_v51 = vsub.f32 %v3919_v2, %v2882_v26  ;;  %v2920_v11 = vsub.f32 %v2450_v43, %v2882_v26  ;;  %v2927_v48 = vsub.f32 %v2472_v59, %v2882_v26 }
 0x1f1   :  { %v1115_v13 = vmul.f32 %v2886_v47, %v2886_v47  ;;  %v1116_v62 = vmul.f32 %v2890_v33, %v2890_v33  ;;  %v1117_v25 = vmul.f32 %v2894_v16, %v2894_v16  ;;  %v1118_v14 = vmul.f32 %v2898_v19, %v2898_v19 }
 0x1f2   :  { %3920 = vst [vmem:[#allocation2_spill] sm:$0xff] %v2912_v51  ;;  %v1119_v30 = vmul.f32 %v2906_v34, %v2906_v34 }
 0x1f3   :  { %v1179_v21 = vsel %vm909_vm2, %v1115_v13, 0.0  ;;  %v1180_v56 = vsel %vm909_vm2, %v1116_v62, 0.0  ;;  %v1182_v40 = vsel %vm909_vm2, %v1117_v25, 0.0  ;;  %v1120_v13 = vmul.f32 %v2912_v51, %v2912_v51 }
 0x1f4   :  { %v1181_v58 = vadd.f32 %v1180_v56, %v1179_v21  ;;  %v1184_v62 = vsel %vm909_vm2, %v1118_v14, 0.0  ;;  %v3921_v21 = vld [vmem:[#allocation5_spill] sm:$0xff]  ;;  %v1121_v56 = vmul.f32 %v2920_v11, %v2920_v11  ;;  %v1186_v25 = vsel %vm909_vm2, %v1119_v30, 0.0 }
 0x1f5   :  { %v2934_v43 = vsub.f32 %v3921_v21, %v2882_v26  ;;  %v1122_v51 = vmul.f32 %v2927_v48, %v2927_v48  ;;  %v1188_v14 = vsel %vm909_vm2, %v1120_v13, 0.0 }
 0x1f6   :  { %v1183_v45 = vadd.f32 %v1182_v40, %v1181_v58  ;;  %v3923_v40 = vld [vmem:[#allocation7_spill] sm:$0xff]  ;;  %v1190_v30 = vsel %vm909_vm2, %v1121_v56, 0.0 }
 0x1f7   :  { %3922 = vst [vmem:[#allocation3_spill] sm:$0xff] %v2934_v43  ;;  %v2941_v59 = vsub.f32 %v3923_v40, %v2882_v26  ;;  %v1123_v21 = vmul.f32 %v2934_v43, %v2934_v43  ;;  %v1192_v13 = vsel %vm909_vm2, %v1122_v51, 0.0 }
 0x1f8   :  { %v1185_v2 = vadd.f32 %v1184_v62, %v1183_v45  ;;  %v2948_v62 = vsub.f32 %v2518_v35, %v2882_v26 }
 0x1f9   :  { %3924 = vst [vmem:[#allocation4_spill] sm:$0xff] %v2941_v59  ;;  %v1124_v40 = vmul.f32 %v2941_v59, %v2941_v59  ;;  %v1194_v56 = vsel %vm909_vm2, %v1123_v21, 0.0 }
 0x1fa   :  { %v1187_v58 = vadd.f32 %v1186_v25, %v1185_v2  ;;  %v2955_v25 = vsub.f32 %v2540_v54, %v2882_v26  ;;  %v1125_v43 = vmul.f32 %v2948_v62, %v2948_v62 }
 0x1fb   :  { %v1196_v51 = vsel %vm909_vm2, %v1124_v40, 0.0 }
 0x1fc   :  { %v1189_v45 = vadd.f32 %v1188_v14, %v1187_v58  ;;  %3925 = vst [vmem:[#allocation5_spill] sm:$0xff] %v2955_v25  ;;  %v3926_v14 = vld [vmem:[#allocation9_spill] sm:$0xff]  ;;  %v1126_v59 = vmul.f32 %v2955_v25, %v2955_v25  ;;  %v1198_v21 = vsel %vm909_vm2, %v1125_v43, 0.0 }
 0x1fd   :  { %v2962_v35 = vsub.f32 %v3926_v14, %v2882_v26 }
 0x1fe   :  { %v1191_v2 = vadd.f32 %v1190_v30, %v1189_v45  ;;  %v3927_v30 = vld [vmem:[#allocation10_spill] sm:$0xff]  ;;  %v1200_v40 = vsel %vm909_vm2, %v1126_v59, 0.0 }
 0x1ff   :  { %v2969_v54 = vsub.f32 %v3927_v30, %v2882_v26  ;;  %v1127_v14 = vmul.f32 %v2962_v35, %v2962_v35 }
 0x200   :  { %v1193_v58 = vadd.f32 %v1192_v13, %v1191_v2  ;;  %v2976_v13 = vsub.f32 %v2586_v37, %v2882_v26  ;;  %v2990_v37 = vsub.f32 %v2614_v7, %v2882_v26  ;;  %v3004_v7 = vsub.f32 %v2635_v38, %v2882_v26 }
 0x201   :  { %v1128_v25 = vmul.f32 %v2969_v54, %v2969_v54  ;;  %v1202_v43 = vsel %vm909_vm2, %v1127_v14, 0.0 }
 0x202   :  { %v1195_v45 = vadd.f32 %v1194_v56, %v1193_v58  ;;  %v3928_v56 = vld [vmem:[#allocation13_spill] sm:$0xff]  ;;  %3929 = vst [vmem:[#allocation7_spill] sm:$0xff] %v2990_v37 }
 0x203   :  { %v2983_v30 = vsub.f32 %v3928_v56, %v2882_v26  ;;  %v1204_v59 = vsel %vm909_vm2, %v1128_v25, 0.0  ;;  %3931 = vst [vmem:[#allocation10_spill] sm:$0xff] %v3004_v7 }
 0x204   :  { %v1197_v2 = vadd.f32 %v1196_v51, %v1195_v45  ;;  %v1129_v51 = vmul.f32 %v2976_v13, %v2976_v13 }
 0x205   :  { %v1130_v56 = vmul.f32 %v2983_v30, %v2983_v30 }
 0x206   :  { %v1199_v58 = vadd.f32 %v1198_v21, %v1197_v2  ;;  %v2997_v21 = vsub.f32 %v2630_v27, %v2882_v26  ;;  %v1206_v14 = vsel %vm909_vm2, %v1129_v51, 0.0  ;;  %v3011_v27 = vsub.f32 %v2639_v50, %v2882_v26 }
 0x207   :  { %v1208_v25 = vsel %vm909_vm2, %v1130_v56, 0.0 }
 0x208   :  { %v1201_v45 = vadd.f32 %v1200_v40, %v1199_v58  ;;  %3930 = vst [vmem:[#allocation9_spill] sm:$0xff] %v2997_v21  ;;  %v1131_v40 = vmul.f32 %v2990_v37, %v2990_v37  ;;  %v1133_v37 = vmul.f32 %v3004_v7, %v3004_v7 }
 0x20a   :  { %v1203_v2 = vadd.f32 %v1202_v43, %v1201_v45  ;;  %v1132_v43 = vmul.f32 %v2997_v21, %v2997_v21  ;;  %v1210_v51 = vsel %vm909_vm2, %v1131_v40, 0.0  ;;  %v1134_v21 = vmul.f32 %v3011_v27, %v3011_v27 }
 0x20b   :  { %v1214_v40 = vsel %vm909_vm2, %v1133_v37, 0.0 }
 0x20c   :  { %v1205_v58 = vadd.f32 %v1204_v59, %v1203_v2  ;;  %v3932_v59 = vld [vmem:[#allocation14_spill] sm:$0xff]  ;;  %v1212_v56 = vsel %vm909_vm2, %v1132_v43, 0.0  ;;  %v1216_v43 = vsel %vm909_vm2, %v1134_v21, 0.0 }
 0x20d   :  { %v3018_v38 = vsub.f32 %v3932_v59, %v2882_v26 }
 0x20e   :  { %v1207_v45 = vadd.f32 %v1206_v14, %v1205_v58  ;;  %v3933_v14 = vld [vmem:[#allocation15_spill] sm:$0xff] }
 0x20f   :  { %v3025_v50 = vsub.f32 %v3933_v14, %v2882_v26  ;;  %v1135_v7 = vmul.f32 %v3018_v38, %v3018_v38 }
 0x210   :  { %v1209_v2 = vadd.f32 %v1208_v25, %v1207_v45  ;;  %v3934_v25 = vld [vmem:[#allocation16_spill] sm:$0xff] }
 0x211   :  { %v3032_v59 = vsub.f32 %v3934_v25, %v2882_v26  ;;  %v1136_v14 = vmul.f32 %v3025_v50, %v3025_v50  ;;  %v1218_v37 = vsel %vm909_vm2, %v1135_v7, 0.0 }
 0x212   :  { %v1211_v58 = vadd.f32 %v1210_v51, %v1209_v2  ;;  %v3039_v51 = vsub.f32 %v2731_v55, %v2882_v26  ;;  %v3053_v55 = vsub.f32 %v2741_v52, %v2882_v26  ;;  %v3067_v52 = vsub.f32 %v2749_v10, %v2882_v26 }
 0x213   :  { %3935 = vst [vmem:[#allocation13_spill] sm:$0xff] %v3032_v59  ;;  %v1137_v25 = vmul.f32 %v3032_v59, %v3032_v59  ;;  %v1220_v21 = vsel %vm909_vm2, %v1136_v14, 0.0  ;;  %v3081_v10 = vsub.f32 %v2761_v6, %v2882_v26  ;;  %v3095_v6 = vsub.f32 %v2771_v60, %v2882_v26 }
 0x214   :  { %v1213_v45 = vadd.f32 %v1212_v56, %v1211_v58  ;;  %v3046_v56 = vsub.f32 %v2736_v5, %v2882_v26  ;;  %v3109_v60 = vsub.f32 %v2785_v8, %v2882_v26  ;;  %v3123_v8 = vsub.f32 %v2458_v49, %v2882_v26 }
 0x215   :  { %v1222_v7 = vsel %vm909_vm2, %v1137_v25, 0.0 }
 0x216   :  { %v1215_v2 = vadd.f32 %v1214_v40, %v1213_v45  ;;  %v1138_v40 = vmul.f32 %v3039_v51, %v3039_v51  ;;  %v1139_v59 = vmul.f32 %v3046_v56, %v3046_v56  ;;  %3937 = vst [vmem:[#allocation14_spill] sm:$0xff] %v3109_v60 }
 0x218   :  { %v1217_v58 = vadd.f32 %v1216_v43, %v1215_v2  ;;  %v3936_v43 = vld [vmem:[#allocation17_spill] sm:$0xff]  ;;  %v1224_v14 = vsel %vm909_vm2, %v1138_v40, 0.0  ;;  %v1226_v25 = vsel %vm909_vm2, %v1139_v59, 0.0 }
 0x219   :  { %v3060_v5 = vsub.f32 %v3936_v43, %v2882_v26 }
 0x21a   :  { %v1219_v45 = vadd.f32 %v1218_v37, %v1217_v58  ;;  %v1140_v37 = vmul.f32 %v3053_v55, %v3053_v55 }
 0x21b   :  { %v1141_v43 = vmul.f32 %v3060_v5, %v3060_v5 }
 0x21c   :  { %v1221_v2 = vadd.f32 %v1220_v21, %v1219_v45  ;;  %v3074_v21 = vsub.f32 %v2757_v29, %v2882_v26  ;;  %v1228_v40 = vsel %vm909_vm2, %v1140_v37, 0.0  ;;  %v3088_v29 = vsub.f32 %v2765_v18, %v2882_v26 }
 0x21d   :  { %v1230_v59 = vsel %vm909_vm2, %v1141_v43, 0.0  ;;  %v3102_v18 = vsub.f32 %v2780_v57, %v2882_v26  ;;  %v3116_v57 = vsub.f32 %v2448_v39, %v2882_v26  ;;  %v3130_v39 = vsub.f32 %v2482_v1, %v2882_v26 }
 0x21e   :  { %v1223_v58 = vadd.f32 %v1222_v7, %v1221_v2  ;;  %v1142_v7 = vmul.f32 %v3067_v52, %v3067_v52 }
 0x21f   :  { %3938 = vst [vmem:[#allocation15_spill] sm:$0xff] %v3116_v57 }
 0x220   :  { %v1225_v45 = vadd.f32 %v1224_v14, %v1223_v58  ;;  %v1143_v14 = vmul.f32 %v3074_v21, %v3074_v21  ;;  %v1232_v37 = vsel %vm909_vm2, %v1142_v7, 0.0 }
 0x222   :  { %v1227_v2 = vadd.f32 %v1226_v25, %v1225_v45  ;;  %v1144_v25 = vmul.f32 %v3081_v10, %v3081_v10  ;;  %v1234_v43 = vsel %vm909_vm2, %v1143_v14, 0.0 }
 0x224   :  { %v1229_v58 = vadd.f32 %v1228_v40, %v1227_v2  ;;  %v1145_v40 = vmul.f32 %v3088_v29, %v3088_v29  ;;  %v1236_v7 = vsel %vm909_vm2, %v1144_v25, 0.0 }
 0x226   :  { %v1231_v45 = vadd.f32 %v1230_v59, %v1229_v58  ;;  %v1146_v59 = vmul.f32 %v3095_v6, %v3095_v6  ;;  %v1238_v14 = vsel %vm909_vm2, %v1145_v40, 0.0 }
 0x228   :  { %v1233_v2 = vadd.f32 %v1232_v37, %v1231_v45  ;;  %v1147_v37 = vmul.f32 %v3102_v18, %v3102_v18  ;;  %v1240_v25 = vsel %vm909_vm2, %v1146_v59, 0.0 }
 0x22a   :  { %v1235_v58 = vadd.f32 %v1234_v43, %v1233_v2  ;;  %v1148_v43 = vmul.f32 %v3109_v60, %v3109_v60  ;;  %v1242_v40 = vsel %vm909_vm2, %v1147_v37, 0.0  ;;  %v1150_v60 = vmul.f32 %v3123_v8, %v3123_v8 }
 0x22c   :  { %v1237_v45 = vadd.f32 %v1236_v7, %v1235_v58  ;;  %v1149_v7 = vmul.f32 %v3116_v57, %v3116_v57  ;;  %v1244_v59 = vsel %vm909_vm2, %v1148_v43, 0.0  ;;  %v1151_v57 = vmul.f32 %v3130_v39, %v3130_v39 }
 0x22d   :  { %v1248_v43 = vsel %vm909_vm2, %v1150_v60, 0.0 }
 0x22e   :  { %v1239_v2 = vadd.f32 %v1238_v14, %v1237_v45  ;;  %v3939_v14 = vld [vmem:[#allocation6_spill] sm:$0xff]  ;;  %v1246_v37 = vsel %vm909_vm2, %v1149_v7, 0.0  ;;  %v1250_v7 = vsel %vm909_vm2, %v1151_v57, 0.0 }
 0x22f   :  { %v3137_v49 = vsub.f32 %v3939_v14, %v2882_v26 }
 0x230   :  { %v1241_v58 = vadd.f32 %v1240_v25, %v1239_v2  ;;  %v3940_v25 = vld [vmem:[#allocation8_spill] sm:$0xff] }
 0x231   :  { %v3144_v1 = vsub.f32 %v3940_v25, %v2882_v26  ;;  %v1152_v14 = vmul.f32 %v3137_v49, %v3137_v49 }
 0x232   :  { %v1243_v45 = vadd.f32 %v1242_v40, %v1241_v58  ;;  %v3151_v40 = vsub.f32 %v2526_v41, %v2882_v26  ;;  %v3165_v41 = vsub.f32 %v2560_v9, %v2882_v26 }
 0x233   :  { %3941 = vst [vmem:[#allocation16_spill] sm:$0xff] %v3144_v1  ;;  %v1153_v25 = vmul.f32 %v3144_v1, %v3144_v1  ;;  %v1252_v60 = vsel %vm909_vm2, %v1152_v14, 0.0 }
 0x234   :  { %v1245_v2 = vadd.f32 %v1244_v59, %v1243_v45  ;;  %3942 = vst [vmem:[#allocation17_spill] sm:$0xff] %v3151_v40  ;;  %v3158_v59 = vsub.f32 %v2550_v61, %v2882_v26 }
 0x235   :  { %v1254_v57 = vsel %vm909_vm2, %v1153_v25, 0.0 }
 0x236   :  { %v1247_v58 = vadd.f32 %v1246_v37, %v1245_v2  ;;  %v1154_v37 = vmul.f32 %v3151_v40, %v3151_v40  ;;  %v1155_v1 = vmul.f32 %v3158_v59, %v3158_v59  ;;  %v1156_v40 = vmul.f32 %v3165_v41, %v3165_v41 }
 0x238   :  { %v1249_v45 = vadd.f32 %v1248_v43, %v1247_v58  ;;  %v3943_v43 = vld [vmem:[#allocation11_spill] sm:$0xff]  ;;  %v1256_v14 = vsel %vm909_vm2, %v1154_v37, 0.0  ;;  %v1258_v25 = vsel %vm909_vm2, %v1155_v1, 0.0  ;;  %v1260_v37 = vsel %vm909_vm2, %v1156_v40, 0.0 }
 0x239   :  { %v3172_v61 = vsub.f32 %v3943_v43, %v2882_v26 }
 0x23a   :  { %v1251_v2 = vadd.f32 %v1250_v7, %v1249_v45  ;;  %v3944_v7 = vld [vmem:[#allocation12_spill] sm:$0xff] }
 0x23b   :  { %v3179_v9 = vsub.f32 %v3944_v7, %v2882_v26  ;;  %v1157_v43 = vmul.f32 %v3172_v61, %v3172_v61 }
 0x23c   :  { %v1253_v58 = vadd.f32 %v1252_v60, %v1251_v2  ;;  %v3186_v60 = vsub.f32 %v2612_v0, %v2882_v26  ;;  %v3200_v0 = vsub.f32 %v2633_v32, %v2882_v26  ;;  %v3214_v32 = vsub.f32 %v2641_v53, %v2882_v26 }
 0x23d   :  { %v1158_v7 = vmul.f32 %v3179_v9, %v3179_v9  ;;  %v1262_v1 = vsel %vm909_vm2, %v1157_v43, 0.0  ;;  %v3228_v53 = vsub.f32 %v2653_v15, %v2882_v26  ;;  %v3242_v15 = vsub.f32 %v2665_v36, %v2882_v26 }
 0x23e   :  { %v1255_v45 = vadd.f32 %v1254_v57, %v1253_v58  ;;  %v3193_v57 = vsub.f32 %v2616_v12, %v2882_v26  ;;  %v3207_v12 = vsub.f32 %v2637_v44, %v2882_v26  ;;  %v3221_v44 = vsub.f32 %v2647_v4, %v2882_v26 }
 0x23f   :  { %v1264_v40 = vsel %vm909_vm2, %v1158_v7, 0.0  ;;  %v3235_v4 = vsub.f32 %v2659_v22, %v2882_v26  ;;  %v3249_v22 = vsub.f32 %v2827_v28, %v2882_v26  ;;  %v3256_v36 = vsub.f32 %v2833_v24, %v2882_v26 }
 0x240   :  { %v1257_v2 = vadd.f32 %v1256_v14, %v1255_v45  ;;  %v1159_v14 = vmul.f32 %v3186_v60, %v3186_v60  ;;  %v3263_v28 = vsub.f32 %v2839_v63, %v2882_v26  ;;  %v3270_v24 = vsub.f32 %v2845_v3, %v2882_v26 }
 0x241   :  { %3945 = vst [vmem:[#allocation6_spill] sm:$0xff] %v3256_v36  ;;  %v3277_v63 = vsub.f32 %v2849_v17, %v2882_v26  ;;  %v3284_v3 = vsub.f32 %v2853_v46, %v2882_v26  ;;  %v3291_v17 = vsub.f32 %v2857_v20, %v2882_v26 }
 0x242   :  { %v1259_v58 = vadd.f32 %v1258_v25, %v1257_v2  ;;  %v1160_v25 = vmul.f32 %v3193_v57, %v3193_v57  ;;  %v1266_v43 = vsel %vm909_vm2, %v1159_v14, 0.0  ;;  %3946 = vst [vmem:[#allocation8_spill] sm:$0xff] %v3263_v28 }
 0x243   :  { %3947 = vst [vmem:[#allocation11_spill] sm:$0xff] %v3270_v24 }
 0x244   :  { %v1261_v45 = vadd.f32 %v1260_v37, %v1259_v58  ;;  %v1161_v37 = vmul.f32 %v3200_v0, %v3200_v0  ;;  %v1268_v7 = vsel %vm909_vm2, %v1160_v25, 0.0  ;;  %3948 = vst [vmem:[#allocation12_spill] sm:$0xff] %v3277_v63 }
 0x245   :  { %3949 = vst [vmem:[#allocation20_spill] sm:$0xff] %v3284_v3 }
 0x246   :  { %v1263_v2 = vadd.f32 %v1262_v1, %v1261_v45  ;;  %v1162_v1 = vmul.f32 %v3207_v12, %v3207_v12  ;;  %v1270_v14 = vsel %vm909_vm2, %v1161_v37, 0.0  ;;  %3950 = vst [vmem:[#allocation21_spill] sm:$0xff] %v3291_v17 }
 0x248   :  { %v1265_v58 = vadd.f32 %v1264_v40, %v1263_v2  ;;  %v1163_v40 = vmul.f32 %v3214_v32, %v3214_v32  ;;  %v1272_v25 = vsel %vm909_vm2, %v1162_v1, 0.0 }
 0x24a   :  { %v1267_v45 = vadd.f32 %v1266_v43, %v1265_v58  ;;  %v1164_v43 = vmul.f32 %v3221_v44, %v3221_v44  ;;  %v1274_v37 = vsel %vm909_vm2, %v1163_v40, 0.0 }
 0x24c   :  { %v1269_v2 = vadd.f32 %v1268_v7, %v1267_v45  ;;  %v1165_v7 = vmul.f32 %v3228_v53, %v3228_v53  ;;  %v1276_v1 = vsel %vm909_vm2, %v1164_v43, 0.0 }
 0x24e   :  { %v1271_v58 = vadd.f32 %v1270_v14, %v1269_v2  ;;  %v1166_v14 = vmul.f32 %v3235_v4, %v3235_v4  ;;  %v1278_v40 = vsel %vm909_vm2, %v1165_v7, 0.0 }
 0x250   :  { %v1273_v45 = vadd.f32 %v1272_v25, %v1271_v58  ;;  %v1167_v25 = vmul.f32 %v3242_v15, %v3242_v15  ;;  %v1280_v43 = vsel %vm909_vm2, %v1166_v14, 0.0 }
 0x252   :  { %v1275_v2 = vadd.f32 %v1274_v37, %v1273_v45  ;;  %v1168_v37 = vmul.f32 %v3249_v22, %v3249_v22  ;;  %v1282_v7 = vsel %vm909_vm2, %v1167_v25, 0.0 }
 0x254   :  { %v1277_v58 = vadd.f32 %v1276_v1, %v1275_v2  ;;  %v1169_v1 = vmul.f32 %v3256_v36, %v3256_v36  ;;  %v1284_v14 = vsel %vm909_vm2, %v1168_v37, 0.0 }
 0x256   :  { %v1279_v45 = vadd.f32 %v1278_v40, %v1277_v58  ;;  %v1170_v40 = vmul.f32 %v3263_v28, %v3263_v28  ;;  %v1286_v25 = vsel %vm909_vm2, %v1169_v1, 0.0 }
 0x258   :  { %v1281_v2 = vadd.f32 %v1280_v43, %v1279_v45  ;;  %v1171_v43 = vmul.f32 %v3270_v24, %v3270_v24  ;;  %v1288_v37 = vsel %vm909_vm2, %v1170_v40, 0.0  ;;  %v1173_v24 = vmul.f32 %v3284_v3, %v3284_v3 }
 0x25a   :  { %v1283_v58 = vadd.f32 %v1282_v7, %v1281_v2  ;;  %v1172_v7 = vmul.f32 %v3277_v63, %v3277_v63  ;;  %v1290_v1 = vsel %vm909_vm2, %v1171_v43, 0.0  ;;  %v1174_v63 = vmul.f32 %v3291_v17, %v3291_v17 }
 0x25b   :  { %v3315_v43 = vsub.f32 %v2871_v23, %v2882_v26 }
 0x25c   :  { %v1285_v45 = vadd.f32 %v1284_v14, %v1283_v58  ;;  %v3951_v14 = vld [vmem:[#allocation18_spill] sm:$0xff]  ;;  %v1292_v40 = vsel %vm909_vm2, %v1172_v7, 0.0 }
 0x25d   :  { %v3298_v46 = vsub.f32 %v3951_v14, %v2882_v26  ;;  %v1294_v14 = vsel %vm909_vm2, %v1173_v24, 0.0  ;;  %3955 = vst [vmem:[#allocation22_spill] sm:$0xff] %v3315_v43  ;;  %v1177_v24 = vmul.f32 %v3315_v43, %v3315_v43 }
 0x25e   :  { %v1287_v2 = vadd.f32 %v1286_v25, %v1285_v45  ;;  %v3953_v25 = vld [vmem:[#allocation19_spill] sm:$0xff] }
 0x25f   :  { %3952 = vst [vmem:[#allocation18_spill] sm:$0xff] %v3298_v46  ;;  %v3305_v20 = vsub.f32 %v3953_v25, %v2882_v26 }
 0x260   :  { %v1289_v58 = vadd.f32 %v1288_v37, %v1287_v2  ;;  %v1175_v37 = vmul.f32 %v3298_v46, %v3298_v46 }
 0x261   :  { %3954 = vst [vmem:[#allocation19_spill] sm:$0xff] %v3305_v20 }
 0x262   :  { %v1291_v45 = vadd.f32 %v1290_v1, %v1289_v58  ;;  %v1176_v58 = vmul.f32 %v3305_v20, %v3305_v20  ;;  %v1296_v1 = vsel %vm909_vm2, %v1174_v63, 0.0  ;;  %v1298_v17 = vsel %vm909_vm2, %v1175_v37, 0.0 }
 0x264   :  { %v1293_v2 = vadd.f32 %v1292_v40, %v1291_v45  ;;  %v1114_v45 = vsub.f32 %v2875_v31, %v2882_v26  ;;  %v1300_v40 = vsel %vm909_vm2, %v1176_v58, 0.0 }
 0x266   :  { %v1295_v28 = vadd.f32 %v1294_v14, %v1293_v2  ;;  %v1178_v23 = vmul.f32 %v1114_v45, %v1114_v45  ;;  %v1302_v14 = vsel %vm909_vm2, %v1177_v24, 0.0 }
 0x268   :  { %v1297_v25 = vadd.f32 %v1296_v1, %v1295_v28  ;;  %v1304_v20 = vsel %vm909_vm2, %v1178_v23, 0.0  ;;  %v3956_v23 = vld [vmem:[#allocation2_spill] sm:$0xff] }
 0x26a   :  { %v1299_v7 = vadd.f32 %v1298_v17, %v1297_v25 }
 0x26c   :  { %v1301_v2 = vadd.f32 %v1300_v40, %v1299_v7 }
 0x26e   :  { %v1303_v46 = vadd.f32 %v1302_v14, %v1301_v2 }
 0x270   :  { %v1305_v63 = vadd.f32 %v1304_v20, %v1303_v46 }
 0x272   :  { %v1306_v28 = vrot.slane %v1305_v63, 4 }
 0x274   :  { %v1307_v1 = vadd.f32 %v1306_v28, %v1305_v63 }
 0x276   :  { %v1308_v37 = vrot.slane %v1307_v1, 2 }
 0x278   :  { %v1309_v17 = vadd.f32 %v1308_v37, %v1307_v1 }
 0x27a   :  { %v1310_v25 = vrot.slane %v1309_v17, 1 }
 0x27c   :  { %v1311_v3 = vadd.f32 %v1310_v25, %v1309_v17  ;;  %v3958_v17 = vld [vmem:[#allocation4_spill] sm:$0xff] }
 0x27e   :  { %v1312_v31 = vmul.f32 %v1311_v3, %v2879_v42  ;;  %v3340_v3 = vld [vmem:[%s3857_s2] ss:$0 sm:$0xff] }
 0x280   :  { %v1313_v26 = vadd.f32 1e-05, %v1312_v31 }
 0x282   :  { %2086 = vrsqrt.f32 %v1313_v26  ;;  %vm1320_vm5 = vweird.f32 %v1313_v26 }
 0x288   :  { %v2087_v43 = vpop.eup %2086 }
 0x289   :  { %v1315_v58 = vmul.f32 %v2087_v43, %v1313_v26  ;;  %vm1321_vm4 = vweird.f32 %v2087_v43 }
 0x28a   :  { %vm1322_vm6 = vmor %vm1320_vm5, %vm1321_vm4 }
 0x28b   :  { %v1316_v7 = vmul.f32 %v2087_v43, %v1315_v58 }
 0x28d   :  { %v1317_v40 = vmul.f32 0.5, %v1316_v7 }
 0x28f   :  { %v1318_v36 = vsub.f32 1.5, %v1317_v40 }
 0x291   :  { %v1319_v24 = vmul.f32 %v2087_v43, %v1318_v36 }
 0x293   :  { %v3329_v46 = vsel %vm1322_vm6, %v2087_v43, %v1319_v24 }
 0x294   :  { %v1324_v20 = vmul.f32 %v3329_v46, %v2886_v47  ;;  %v1325_v2 = vmul.f32 %v3329_v46, %v2890_v33  ;;  %v1326_v42 = vmul.f32 %v3329_v46, %v2894_v16  ;;  %v1327_v36 = vmul.f32 %v3329_v46, %v2898_v19  ;;  %v3357_v19 = vld [vmem:[%s3858_s3] ss:$0 sm:$0xff] }
 0x295   :  { %v1328_v43 = vmul.f32 %v3329_v46, %v2906_v34  ;;  %v1329_v47 = vmul.f32 %v3329_v46, %v3956_v23  ;;  %v1387_v14 = vmul.f32 %v3329_v46, %v1114_v45  ;;  %v1330_v33 = vmul.f32 %v3329_v46, %v2920_v11  ;;  %v3957_v45 = vld [vmem:[#allocation3_spill] sm:$0xff] }
 0x296   :  { %v1392_v16 = vmul.f32 %v3340_v3, %v1324_v20  ;;  %v1393_v63 = vmul.f32 %v3340_v3, %v1325_v2  ;;  %v1394_v28 = vmul.f32 %v3340_v3, %v1326_v42  ;;  %v1331_v34 = vmul.f32 %v3329_v46, %v2927_v48  ;;  %v3959_v20 = vld [vmem:[#allocation5_spill] sm:$0xff] }
 0x297   :  { %v1395_v1 = vmul.f32 %v3340_v3, %v1327_v36  ;;  %v1332_v37 = vmul.f32 %v3329_v46, %v3957_v45  ;;  %v1396_v11 = vmul.f32 %v3340_v3, %v1328_v43  ;;  %v1333_v25 = vmul.f32 %v3329_v46, %v3958_v17  ;;  %v3960_v17 = vld [vmem:[#allocation7_spill] sm:$0xff] }
 0x298   :  { %v1334_v31 = vmul.f32 %v3329_v46, %v2948_v62  ;;  %v1397_v26 = vmul.f32 %v3340_v3, %v1329_v47  ;;  %v1455_v58 = vmul.f32 %v3340_v3, %v1387_v14  ;;  %v1398_v7 = vmul.f32 %v3340_v3, %v1330_v33 }
 0x299   :  { %v1460_v48 = vadd.f32 %v3357_v19, %v1392_v16  ;;  %v1461_v40 = vadd.f32 %v3357_v19, %v1393_v63  ;;  %v1462_v24 = vadd.f32 %v3357_v19, %v1394_v28  ;;  %v1335_v2 = vmul.f32 %v3329_v46, %v3959_v20  ;;  %v3962_v20 = vld [vmem:[#allocation10_spill] sm:$0xff] }
 0x29a   :  { %v1336_v42 = vmul.f32 %v3329_v46, %v2962_v35  ;;  %v1399_v62 = vmul.f32 %v3340_v3, %v1331_v34  ;;  %v1463_v36 = vadd.f32 %v3357_v19, %v1395_v1  ;;  %v1337_v43 = vmul.f32 %v3329_v46, %v2969_v54 }
 0x29b   :  { %v1338_v23 = vmul.f32 %v3329_v46, %v2976_v13  ;;  %v1400_v47 = vmul.f32 %v3340_v3, %v1332_v37  ;;  %v1464_v14 = vadd.f32 %v3357_v19, %v1396_v11  ;;  %v1401_v33 = vmul.f32 %v3340_v3, %v1333_v25 }
 0x29c   :  { %v1402_v16 = vmul.f32 %v3340_v3, %v1334_v31  ;;  %v1465_v35 = vadd.f32 %v3357_v19, %v1397_v26  ;;  %v3391_v63 = vadd.f32 %v3357_v19, %v1455_v58  ;;  %v1466_v28 = vadd.f32 %v3357_v19, %v1398_v7  ;;  %v3961_v7 = vld [vmem:[#allocation9_spill] sm:$0xff] }
 0x29d   :  { %v1524_v34 = vmax.f32 %v1460_v48, 0.0  ;;  %v1525_v54 = vmax.f32 %v1461_v40, 0.0  ;;  %v1526_v1 = vmax.f32 %v1462_v24, 0.0  ;;  %v1339_v13 = vmul.f32 %v3329_v46, %v2983_v30 }
 0x29e   :  { %v1403_v45 = vmul.f32 %v3340_v3, %v1335_v2  ;;  %v1467_v37 = vadd.f32 %v3357_v19, %v1399_v62  ;;  %v1527_v11 = vmax.f32 %v1463_v36, 0.0  ;;  %v1340_v25 = vmul.f32 %v3329_v46, %v3960_v17 }
 0x29f   :  { %v1404_v31 = vmul.f32 %v3340_v3, %v1336_v42  ;;  %v1468_v26 = vadd.f32 %v3357_v19, %v1400_v47  ;;  %v1528_v58 = vmax.f32 %v1464_v14, 0.0  ;;  %1588 = vst.msk [vmem:[%s3859_s4] sm:$0xff] %vm909_vm2, %v1524_v34  ;;  %v1341_v30 = vmul.f32 %v3329_v46, %v3961_v7 }
 0x2a0   :  { %v1405_v48 = vmul.f32 %v3340_v3, %v1337_v43  ;;  %v1469_v40 = vadd.f32 %v3357_v19, %v1401_v33  ;;  %v1529_v24 = vmax.f32 %v1465_v35, 0.0  ;;  %1589 = vst.msk [vmem:[%s3859_s4 + $0x8] sm:$0xff] %vm909_vm2, %v1525_v54  ;;  %v1342_v2 = vmul.f32 %v3329_v46, %v3962_v20 }
 0x2a1   :  { %v1406_v42 = vmul.f32 %v3340_v3, %v1338_v23  ;;  %v1470_v62 = vadd.f32 %v3357_v19, %v1402_v16  ;;  %v1530_v36 = vmax.f32 %v1466_v28, 0.0  ;;  %1590 = vst.msk [vmem:[%s3859_s4 + $0x10] sm:$0xff] %vm909_vm2, %v1526_v1  ;;  %v1343_v43 = vmul.f32 %v3329_v46, %v3011_v27 }
 0x2a2   :  { %v1407_v47 = vmul.f32 %v3340_v3, %v1339_v13  ;;  %v1471_v14 = vadd.f32 %v3357_v19, %v1403_v45  ;;  %v1531_v33 = vmax.f32 %v1467_v37, 0.0  ;;  %1591 = vst.msk [vmem:[%s3859_s4 + $0x18] sm:$0xff] %vm909_vm2, %v1527_v11  ;;  %v1344_v23 = vmul.f32 %v3329_v46, %v3018_v38  ;;  %v3963_v38 = vld [vmem:[#allocation13_spill] sm:$0xff] }
 0x2a3   :  { %v1408_v16 = vmul.f32 %v3340_v3, %v1340_v25  ;;  %v1472_v35 = vadd.f32 %v3357_v19, %v1404_v31  ;;  %v1532_v28 = vmax.f32 %v1468_v26, 0.0  ;;  %1592 = vst.msk [vmem:[%s3859_s4 + $0x20] sm:$0xff] %vm909_vm2, %v1528_v58  ;;  %v1345_v27 = vmul.f32 %v3329_v46, %v3025_v50 }
 0x2a4   :  { %v1409_v34 = vmul.f32 %v3340_v3, %v1341_v30  ;;  %v1473_v54 = vadd.f32 %v3357_v19, %v1405_v48  ;;  %v1533_v1 = vmax.f32 %v1469_v40, 0.0  ;;  %1593 = vst.msk [vmem:[%s3859_s4 + $0x28] sm:$0xff] %vm909_vm2, %v1529_v24  ;;  %v1346_v13 = vmul.f32 %v3329_v46, %v3963_v38 }
 0x2a5   :  { %v1410_v45 = vmul.f32 %v3340_v3, %v1342_v2  ;;  %v1474_v37 = vadd.f32 %v3357_v19, %v1406_v42  ;;  %v1534_v11 = vmax.f32 %v1470_v62, 0.0  ;;  %1594 = vst.msk [vmem:[%s3859_s4 + $0x30] sm:$0xff] %vm909_vm2, %v1530_v36  ;;  %v1347_v50 = vmul.f32 %v3329_v46, %v3039_v51 }
 0x2a6   :  { %v1411_v17 = vmul.f32 %v3340_v3, %v1343_v43  ;;  %v1475_v25 = vadd.f32 %v3357_v19, %v1407_v47  ;;  %v1535_v31 = vmax.f32 %v1471_v14, 0.0  ;;  %1595 = vst.msk [vmem:[%s3859_s4 + $0x38] sm:$0xff] %vm909_vm2, %v1531_v33  ;;  %v1348_v26 = vmul.f32 %v3329_v46, %v3046_v56 }
 0x2a7   :  { %v1412_v58 = vmul.f32 %v3340_v3, %v1344_v23  ;;  %v1476_v7 = vadd.f32 %v3357_v19, %v1408_v16  ;;  %v1536_v30 = vmax.f32 %v1472_v35, 0.0  ;;  %1596 = vst.msk [vmem:[%s3859_s4 + $0x40] sm:$0xff] %vm909_vm2, %v1532_v28  ;;  %v1349_v51 = vmul.f32 %v3329_v46, %v3053_v55 }
 0x2a8   :  { %v1413_v48 = vmul.f32 %v3340_v3, %v1345_v27  ;;  %v1477_v40 = vadd.f32 %v3357_v19, %v1409_v34  ;;  %v1537_v24 = vmax.f32 %v1473_v54, 0.0  ;;  %1597 = vst.msk [vmem:[%s3859_s4 + $0x48] sm:$0xff] %vm909_vm2, %v1533_v1  ;;  %v1350_v56 = vmul.f32 %v3329_v46, %v3060_v5 }
 0x2a9   :  { %v1414_v20 = vmul.f32 %v3340_v3, %v1346_v13  ;;  %v1478_v2 = vadd.f32 %v3357_v19, %v1410_v45  ;;  %v1538_v42 = vmax.f32 %v1474_v37, 0.0  ;;  %1598 = vst.msk [vmem:[%s3859_s4 + $0x50] sm:$0xff] %vm909_vm2, %v1534_v11  ;;  %v1351_v55 = vmul.f32 %v3329_v46, %v3067_v52 }
 0x2aa   :  { %v1415_v62 = vmul.f32 %v3340_v3, %v1347_v50  ;;  %v1479_v36 = vadd.f32 %v3357_v19, %v1411_v17  ;;  %v1539_v43 = vmax.f32 %v1475_v25, 0.0  ;;  %1599 = vst.msk [vmem:[%s3859_s4 + $0x58] sm:$0xff] %vm909_vm2, %v1535_v31  ;;  %v1352_v5 = vmul.f32 %v3329_v46, %v3074_v21 }
 0x2ab   :  { %v1416_v47 = vmul.f32 %v3340_v3, %v1348_v26  ;;  %v1480_v14 = vadd.f32 %v3357_v19, %v1412_v58  ;;  %v1540_v33 = vmax.f32 %v1476_v7, 0.0  ;;  %1600 = vst.msk [vmem:[%s3859_s4 + $0x60] sm:$0xff] %vm909_vm2, %v1536_v30  ;;  %v1353_v52 = vmul.f32 %v3329_v46, %v3081_v10 }
 0x2ac   :  { %v1417_v23 = vmul.f32 %v3340_v3, %v1349_v51  ;;  %v1481_v16 = vadd.f32 %v3357_v19, %v1413_v48  ;;  %v1541_v35 = vmax.f32 %v1477_v40, 0.0  ;;  %1601 = vst.msk [vmem:[%s3859_s4 + $0x68] sm:$0xff] %vm909_vm2, %v1537_v24  ;;  %v1354_v21 = vmul.f32 %v3329_v46, %v3088_v29 }
 0x2ad   :  { %v1418_v28 = vmul.f32 %v3340_v3, %v1350_v56  ;;  %v1482_v27 = vadd.f32 %v3357_v19, %v1414_v20  ;;  %v1542_v34 = vmax.f32 %v1478_v2, 0.0  ;;  %1602 = vst.msk [vmem:[%s3859_s4 + $0x70] sm:$0xff] %vm909_vm2, %v1538_v42  ;;  %v1355_v10 = vmul.f32 %v3329_v46, %v3095_v6  ;;  %v3964_v6 = vld [vmem:[#allocation14_spill] sm:$0xff] }
 0x2ae   :  { %v1419_v54 = vmul.f32 %v3340_v3, %v1351_v55  ;;  %v1483_v1 = vadd.f32 %v3357_v19, %v1415_v62  ;;  %v1543_v38 = vmax.f32 %v1479_v36, 0.0  ;;  %1603 = vst.msk [vmem:[%s3859_s4 + $0x78] sm:$0xff] %vm909_vm2, %v1539_v43  ;;  %v1356_v29 = vmul.f32 %v3329_v46, %v3102_v18  ;;  %v3965_v18 = vld [vmem:[#allocation15_spill] sm:$0xff] }
 0x2af   :  { %v1420_v13 = vmul.f32 %v3340_v3, %v1352_v5  ;;  %v1484_v45 = vadd.f32 %v3357_v19, %v1416_v47  ;;  %v1544_v37 = vmax.f32 %v1480_v14, 0.0  ;;  %1604 = vst.msk [vmem:[%s3859_s4 + $0x80] sm:$0xff] %vm909_vm2, %v1540_v33  ;;  %v1357_v11 = vmul.f32 %v3329_v46, %v3964_v6 }
 0x2b0   :  { %v1421_v50 = vmul.f32 %v3340_v3, %v1353_v52  ;;  %v1485_v17 = vadd.f32 %v3357_v19, %v1417_v23  ;;  %v1545_v25 = vmax.f32 %v1481_v16, 0.0  ;;  %1605 = vst.msk [vmem:[%s3859_s4 + $0x88] sm:$0xff] %vm909_vm2, %v1541_v35  ;;  %v1358_v31 = vmul.f32 %v3329_v46, %v3965_v18 }
 0x2b1   :  { %v1422_v26 = vmul.f32 %v3340_v3, %v1354_v21  ;;  %v1486_v58 = vadd.f32 %v3357_v19, %v1418_v28  ;;  %v1546_v7 = vmax.f32 %v1482_v27, 0.0  ;;  %1606 = vst.msk [vmem:[%s3859_s4 + $0x90] sm:$0xff] %vm909_vm2, %v1542_v34  ;;  %v1359_v30 = vmul.f32 %v3329_v46, %v3123_v8 }
 0x2b2   :  { %v1423_v51 = vmul.f32 %v3340_v3, %v1355_v10  ;;  %v1487_v48 = vadd.f32 %v3357_v19, %v1419_v54  ;;  %v1547_v40 = vmax.f32 %v1483_v1, 0.0  ;;  %1607 = vst.msk [vmem:[%s3859_s4 + $0x98] sm:$0xff] %vm909_vm2, %v1543_v38  ;;  %v1360_v24 = vmul.f32 %v3329_v46, %v3130_v39  ;;  %v3966_v39 = vld [vmem:[#allocation16_spill] sm:$0xff] }
 0x2b3   :  { %v1424_v56 = vmul.f32 %v3340_v3, %v1356_v29  ;;  %v1488_v20 = vadd.f32 %v3357_v19, %v1420_v13  ;;  %v1548_v2 = vmax.f32 %v1484_v45, 0.0  ;;  %1608 = vst.msk [vmem:[%s3859_s4 + $0xa0] sm:$0xff] %vm909_vm2, %v1544_v37  ;;  %v1361_v8 = vmul.f32 %v3329_v46, %v3137_v49  ;;  %v3967_v49 = vld [vmem:[#allocation17_spill] sm:$0xff] }
 0x2b4   :  { %v1425_v42 = vmul.f32 %v3340_v3, %v1357_v11  ;;  %v1489_v55 = vadd.f32 %v3357_v19, %v1421_v50  ;;  %v1549_v62 = vmax.f32 %v1485_v17, 0.0  ;;  %1609 = vst.msk [vmem:[%s3859_s4 + $0xa8] sm:$0xff] %vm909_vm2, %v1545_v25  ;;  %v1362_v36 = vmul.f32 %v3329_v46, %v3966_v39 }
 0x2b5   :  { %v1426_v43 = vmul.f32 %v3340_v3, %v1358_v31  ;;  %v1490_v5 = vadd.f32 %v3357_v19, %v1422_v26  ;;  %v1550_v47 = vmax.f32 %v1486_v58, 0.0  ;;  %1610 = vst.msk [vmem:[%s3859_s4 + $0xb0] sm:$0xff] %vm909_vm2, %v1546_v7  ;;  %v1363_v14 = vmul.f32 %v3329_v46, %v3967_v49 }
 0x2b6   :  { %v1427_v33 = vmul.f32 %v3340_v3, %v1359_v30  ;;  %v1491_v52 = vadd.f32 %v3357_v19, %v1423_v51  ;;  %v1551_v23 = vmax.f32 %v1487_v48, 0.0  ;;  %1611 = vst.msk [vmem:[%s3859_s4 + $0xb8] sm:$0xff] %vm909_vm2, %v1547_v40  ;;  %v1364_v16 = vmul.f32 %v3329_v46, %v3158_v59 }
 0x2b7   :  { %v1428_v35 = vmul.f32 %v3340_v3, %v1360_v24  ;;  %v1492_v21 = vadd.f32 %v3357_v19, %v1424_v56  ;;  %v1552_v28 = vmax.f32 %v1488_v20, 0.0  ;;  %1612 = vst.msk [vmem:[%s3859_s4 + $0xc0] sm:$0xff] %vm909_vm2, %v1548_v2  ;;  %v1365_v27 = vmul.f32 %v3329_v46, %v3165_v41 }
 0x2b8   :  { %v1429_v34 = vmul.f32 %v3340_v3, %v1361_v8  ;;  %v1493_v10 = vadd.f32 %v3357_v19, %v1425_v42  ;;  %v1553_v54 = vmax.f32 %v1489_v55, 0.0  ;;  %1613 = vst.msk [vmem:[%s3859_s4 + $0xc8] sm:$0xff] %vm909_vm2, %v1549_v62  ;;  %v1366_v59 = vmul.f32 %v3329_v46, %v3172_v61 }
 0x2b9   :  { %v1430_v1 = vmul.f32 %v3340_v3, %v1362_v36  ;;  %v1494_v38 = vadd.f32 %v3357_v19, %v1426_v43  ;;  %v1554_v29 = vmax.f32 %v1490_v5, 0.0  ;;  %1614 = vst.msk [vmem:[%s3859_s4 + $0xd0] sm:$0xff] %vm909_vm2, %v1550_v47  ;;  %v1367_v41 = vmul.f32 %v3329_v46, %v3179_v9 }
 0x2ba   :  { %v1431_v13 = vmul.f32 %v3340_v3, %v1363_v14  ;;  %v1495_v45 = vadd.f32 %v3357_v19, %v1427_v33  ;;  %v1555_v37 = vmax.f32 %v1491_v52, 0.0  ;;  %1615 = vst.msk [vmem:[%s3859_s4 + $0xd8] sm:$0xff] %vm909_vm2, %v1551_v23  ;;  %v1368_v61 = vmul.f32 %v3329_v46, %v3186_v60 }
 0x2bb   :  { %v1432_v6 = vmul.f32 %v3340_v3, %v1364_v16  ;;  %v1496_v11 = vadd.f32 %v3357_v19, %v1428_v35  ;;  %v1556_v50 = vmax.f32 %v1492_v21, 0.0  ;;  %1616 = vst.msk [vmem:[%s3859_s4 + $0xe0] sm:$0xff] %vm909_vm2, %v1552_v28  ;;  %v1369_v9 = vmul.f32 %v3329_v46, %v3193_v57 }
 0x2bc   :  { %v1433_v17 = vmul.f32 %v3340_v3, %v1365_v27  ;;  %v1497_v25 = vadd.f32 %v3357_v19, %v1429_v34  ;;  %v1557_v18 = vmax.f32 %v1493_v10, 0.0  ;;  %1617 = vst.msk [vmem:[%s3859_s4 + $0xe8] sm:$0xff] %vm909_vm2, %v1553_v54  ;;  %v1370_v60 = vmul.f32 %v3329_v46, %v3200_v0  ;;  %v3970_v10 = vld [vmem:[#allocation11_spill] sm:$0xff] }
 0x2bd   :  { %v1434_v31 = vmul.f32 %v3340_v3, %v1366_v59  ;;  %v1498_v26 = vadd.f32 %v3357_v19, %v1430_v1  ;;  %v1558_v58 = vmax.f32 %v1494_v38, 0.0  ;;  %1618 = vst.msk [vmem:[%s3859_s4 + $0xf0] sm:$0xff] %vm909_vm2, %v1554_v29  ;;  %v1371_v57 = vmul.f32 %v3329_v46, %v3207_v12  ;;  %v3971_v29 = vld [vmem:[#allocation12_spill] sm:$0xff] }
 0x2be   :  { %v1435_v7 = vmul.f32 %v3340_v3, %v1367_v41  ;;  %v1499_v30 = vadd.f32 %v3357_v19, %v1431_v13  ;;  %v1559_v51 = vmax.f32 %v1495_v45, 0.0  ;;  %1619 = vst.msk [vmem:[%s3859_s4 + $0xf8] sm:$0xff] %vm909_vm2, %v1555_v37  ;;  %v1372_v0 = vmul.f32 %v3329_v46, %v3214_v32 }
 0x2bf   :  { %v1436_v48 = vmul.f32 %v3340_v3, %v1368_v61  ;;  %v1500_v40 = vadd.f32 %v3357_v19, %v1432_v6  ;;  %v1560_v24 = vmax.f32 %v1496_v11, 0.0  ;;  %1620 = vst.msk [vmem:[%s3859_s4 + $0x100] sm:$0xff] %vm909_vm2, %v1556_v50  ;;  %v1373_v12 = vmul.f32 %v3329_v46, %v3221_v44  ;;  %v3972_v61 = vld [vmem:[#allocation20_spill] sm:$0xff] }
 0x2c0   :  { %v1437_v56 = vmul.f32 %v3340_v3, %v1369_v9  ;;  %v1501_v20 = vadd.f32 %v3357_v19, %v1433_v17  ;;  %v1561_v2 = vmax.f32 %v1497_v25, 0.0  ;;  %1621 = vst.msk [vmem:[%s3859_s4 + $0x108] sm:$0xff] %vm909_vm2, %v1557_v18  ;;  %v1374_v32 = vmul.f32 %v3329_v46, %v3228_v53  ;;  %v3973_v17 = vld [vmem:[#allocation21_spill] sm:$0xff] }
 0x2c1   :  { %v1438_v8 = vmul.f32 %v3340_v3, %v1370_v60  ;;  %v1502_v42 = vadd.f32 %v3357_v19, %v1434_v31  ;;  %v1562_v55 = vmax.f32 %v1498_v26, 0.0  ;;  %1622 = vst.msk [vmem:[%s3859_s4 + $0x110] sm:$0xff] %vm909_vm2, %v1558_v58  ;;  %v1375_v44 = vmul.f32 %v3329_v46, %v3235_v4  ;;  %v3974_v26 = vld [vmem:[#allocation18_spill] sm:$0xff] }
 0x2c2   :  { %v1439_v62 = vmul.f32 %v3340_v3, %v1371_v57  ;;  %v1503_v39 = vadd.f32 %v3357_v19, %v1435_v7  ;;  %v1563_v36 = vmax.f32 %v1499_v30, 0.0  ;;  %1623 = vst.msk [vmem:[%s3859_s4 + $0x118] sm:$0xff] %vm909_vm2, %v1559_v51  ;;  %v1376_v53 = vmul.f32 %v3329_v46, %v3242_v15  ;;  %v3968_v15 = vld [vmem:[#allocation6_spill] sm:$0xff]  ;;  %v3975_v51 = vld [vmem:[#allocation19_spill] sm:$0xff] }
 0x2c3   :  { %v1440_v43 = vmul.f32 %v3340_v3, %v1372_v0  ;;  %v1504_v5 = vadd.f32 %v3357_v19, %v1436_v48  ;;  %v1564_v47 = vmax.f32 %v1500_v40, 0.0  ;;  %1624 = vst.msk [vmem:[%s3859_s4 + $0x120] sm:$0xff] %vm909_vm2, %v1560_v24  ;;  %v1377_v4 = vmul.f32 %v3329_v46, %v3249_v22  ;;  %v3969_v22 = vld [vmem:[#allocation8_spill] sm:$0xff] }
 0x2c4   :  { %v1441_v49 = vmul.f32 %v3340_v3, %v1373_v12  ;;  %v1505_v14 = vadd.f32 %v3357_v19, %v1437_v56  ;;  %v1565_v33 = vmax.f32 %v1501_v20, 0.0  ;;  %1625 = vst.msk [vmem:[%s3859_s4 + $0x128] sm:$0xff] %vm909_vm2, %v1561_v2  ;;  %v1378_v52 = vmul.f32 %v3329_v46, %v3968_v15  ;;  %v3976_v12 = vld [vmem:[#allocation22_spill] sm:$0xff] }
 0x2c5   :  { %v1442_v23 = vmul.f32 %v3340_v3, %v1374_v32  ;;  %v1506_v16 = vadd.f32 %v3357_v19, %v1438_v8  ;;  %v1566_v35 = vmax.f32 %v1502_v42, 0.0  ;;  %1626 = vst.msk [vmem:[%s3859_s4 + $0x130] sm:$0xff] %vm909_vm2, %v1562_v55  ;;  %v1379_v21 = vmul.f32 %v3329_v46, %v3969_v22 }
 0x2c6   :  { %v1443_v28 = vmul.f32 %v3340_v3, %v1375_v44  ;;  %v1507_v27 = vadd.f32 %v3357_v19, %v1439_v62  ;;  %v1567_v34 = vmax.f32 %v1503_v39, 0.0  ;;  %1627 = vst.msk [vmem:[%s3859_s4 + $0x138] sm:$0xff] %vm909_vm2, %v1563_v36  ;;  %v1380_v54 = vmul.f32 %v3329_v46, %v3970_v10 }
 0x2c7   :  { %v1444_v59 = vmul.f32 %v3340_v3, %v1376_v53  ;;  %v1508_v1 = vadd.f32 %v3357_v19, %v1440_v43  ;;  %v1568_v38 = vmax.f32 %v1504_v5, 0.0  ;;  %1628 = vst.msk [vmem:[%s3859_s4 + $0x140] sm:$0xff] %vm909_vm2, %v1564_v47  ;;  %v1381_v41 = vmul.f32 %v3329_v46, %v3971_v29 }
 0x2c8   :  { %v1445_v13 = vmul.f32 %v3340_v3, %v1377_v4  ;;  %v1509_v45 = vadd.f32 %v3357_v19, %v1441_v49  ;;  %v1569_v37 = vmax.f32 %v1505_v14, 0.0  ;;  %1629 = vst.msk [vmem:[%s3859_s4 + $0x148] sm:$0xff] %vm909_vm2, %v1565_v33  ;;  %v1382_v6 = vmul.f32 %v3329_v46, %v3972_v61 }
 0x2c9   :  { %v1446_v11 = vmul.f32 %v3340_v3, %v1378_v52  ;;  %v1510_v50 = vadd.f32 %v3357_v19, %v1442_v23  ;;  %v1570_v9 = vmax.f32 %v1506_v16, 0.0  ;;  %1630 = vst.msk [vmem:[%s3859_s4 + $0x150] sm:$0xff] %vm909_vm2, %v1566_v35  ;;  %v1383_v25 = vmul.f32 %v3329_v46, %v3973_v17 }
 0x2ca   :  { %v1447_v18 = vmul.f32 %v3340_v3, %v1379_v21  ;;  %v1511_v60 = vadd.f32 %v3357_v19, %v1443_v28  ;;  %v1571_v31 = vmax.f32 %v1507_v27, 0.0  ;;  %1631 = vst.msk [vmem:[%s3859_s4 + $0x158] sm:$0xff] %vm909_vm2, %v1567_v34  ;;  %v1384_v58 = vmul.f32 %v3329_v46, %v3974_v26 }
 0x2cb   :  { %v1448_v57 = vmul.f32 %v3340_v3, %v1380_v54  ;;  %v1512_v7 = vadd.f32 %v3357_v19, %v1444_v59  ;;  %v1572_v30 = vmax.f32 %v1508_v1, 0.0  ;;  %1632 = vst.msk [vmem:[%s3859_s4 + $0x160] sm:$0xff] %vm909_vm2, %v1568_v38  ;;  %v1385_v0 = vmul.f32 %v3329_v46, %v3975_v51 }
 0x2cc   :  { %v1449_v48 = vmul.f32 %v3340_v3, %v1381_v41  ;;  %v1513_v40 = vadd.f32 %v3357_v19, %v1445_v13  ;;  %v1573_v24 = vmax.f32 %v1509_v45, 0.0  ;;  %1633 = vst.msk [vmem:[%s3859_s4 + $0x168] sm:$0xff] %vm909_vm2, %v1569_v37  ;;  %v1386_v56 = vmul.f32 %v3329_v46, %v3976_v12 }
 0x2cd   :  { %v1450_v20 = vmul.f32 %v3340_v3, %v1382_v6  ;;  %v1514_v2 = vadd.f32 %v3357_v19, %v1446_v11  ;;  %v1574_v32 = vmax.f32 %v1510_v50, 0.0  ;;  %1634 = vst.msk [vmem:[%s3859_s4 + $0x170] sm:$0xff] %vm909_vm2, %v1570_v9  ;;  %v1451_v8 = vmul.f32 %v3340_v3, %v1383_v25 }
 0x2ce   :  { %v1515_v42 = vadd.f32 %v3357_v19, %v1447_v18  ;;  %v1575_v55 = vmax.f32 %v1511_v60, 0.0  ;;  %1635 = vst.msk [vmem:[%s3859_s4 + $0x178] sm:$0xff] %vm909_vm2, %v1571_v31  ;;  %v1452_v46 = vmul.f32 %v3340_v3, %v1384_v58  ;;  %v1516_v44 = vadd.f32 %v3357_v19, %v1448_v57 }
 0x2cf   :  { %v1576_v62 = vmax.f32 %v1512_v7, 0.0  ;;  %1636 = vst.msk [vmem:[%s3859_s4 + $0x180] sm:$0xff] %vm909_vm2, %v1572_v30  ;;  %v1453_v39 = vmul.f32 %v3340_v3, %v1385_v0  ;;  %v1517_v36 = vadd.f32 %v3357_v19, %v1449_v48  ;;  %v1577_v53 = vmax.f32 %v1513_v40, 0.0 }
 0x2d0   :  { %1637 = vst.msk [vmem:[%s3859_s4 + $0x188] sm:$0xff] %vm909_vm2, %v1573_v24  ;;  %v1454_v43 = vmul.f32 %v3340_v3, %v1386_v56  ;;  %v1518_v5 = vadd.f32 %v3357_v19, %v1450_v20  ;;  %v1578_v47 = vmax.f32 %v1514_v2, 0.0  ;;  %v1519_v4 = vadd.f32 %v3357_v19, %v1451_v8 }
 0x2d1   :  { %1638 = vst.msk [vmem:[%s3859_s4 + $0x190] sm:$0xff] %vm909_vm2, %v1574_v32  ;;  %v1579_v49 = vmax.f32 %v1515_v42, 0.0  ;;  %v1520_v14 = vadd.f32 %v3357_v19, %v1452_v46  ;;  %v1580_v33 = vmax.f32 %v1516_v44, 0.0  ;;  %v1521_v3 = vadd.f32 %v3357_v19, %v1453_v39 }
 0x2d2   :  { %1639 = vst.msk [vmem:[%s3859_s4 + $0x198] sm:$0xff] %vm909_vm2, %v1575_v55  ;;  %v1581_v15 = vmax.f32 %v1517_v36, 0.0  ;;  %v1522_v52 = vadd.f32 %v3357_v19, %v1454_v43  ;;  %v1582_v23 = vmax.f32 %v1518_v5, 0.0  ;;  %v1583_v16 = vmax.f32 %v1519_v4, 0.0 }
 0x2d3   :  { %1640 = vst.msk [vmem:[%s3859_s4 + $0x1a0] sm:$0xff] %vm909_vm2, %v1576_v62  ;;  %v1584_v35 = vmax.f32 %v1520_v14, 0.0  ;;  %v1585_v22 = vmax.f32 %v1521_v3, 0.0  ;;  %v1587_v21 = vmax.f32 %v3391_v63, 0.0 }
 0x2d4   :  { %1641 = vst.msk [vmem:[%s3859_s4 + $0x1a8] sm:$0xff] %vm909_vm2, %v1577_v53  ;;  %v1586_v19 = vmax.f32 %v1522_v52, 0.0 }
 0x2d5   :  { %1642 = vst.msk [vmem:[%s3859_s4 + $0x1b0] sm:$0xff] %vm909_vm2, %v1578_v47 }
 0x2d6   :  { %1643 = vst.msk [vmem:[%s3859_s4 + $0x1b8] sm:$0xff] %vm909_vm2, %v1579_v49 }
 0x2d7   :  { %1644 = vst.msk [vmem:[%s3859_s4 + $0x1c0] sm:$0xff] %vm909_vm2, %v1580_v33 }
 0x2d8   :  { %1645 = vst.msk [vmem:[%s3859_s4 + $0x1c8] sm:$0xff] %vm909_vm2, %v1581_v15 }
 0x2d9   :  { %1646 = vst.msk [vmem:[%s3859_s4 + $0x1d0] sm:$0xff] %vm909_vm2, %v1582_v23 }
 0x2da   :  { %1647 = vst.msk [vmem:[%s3859_s4 + $0x1d8] sm:$0xff] %vm909_vm2, %v1583_v16 }
 0x2db   :  { %1648 = vst.msk [vmem:[%s3859_s4 + $0x1e0] sm:$0xff] %vm909_vm2, %v1584_v35 }
 0x2dc   :  { %1649 = vst.msk [vmem:[%s3859_s4 + $0x1e8] sm:$0xff] %vm909_vm2, %v1585_v22 }
 0x2dd   :  { %1650 = vst.msk [vmem:[%s3859_s4 + $0x1f0] sm:$0xff] %vm909_vm2, %v1586_v19 }
 0x2de   :  { %1651 = vst.msk [vmem:[%s3859_s4 + $0x1f8] sm:$0xff] %vm909_vm2, %v1587_v21 }

// kernel: resnet2d_forward.7
= control target key start
LH: loop header
LB: loop body
LE: loop exit
PB: predicated region body
PF: predicated region fallthrough
CT: control target
= control target key end

     0   :  { %vm135_vm0 = vcmask 1043456   ;;  %vm110_vm1 = vcmask 588800   ;;  %vm188_vm2 = vcmask 130048   ;;  %v497_v47 = vmov 128.0   ;;  %s804_s1 = inlined_call_operand.vmem [shape: bf16[72,16], index: 1, kind: input, shape index: {}]   ;;  %s805_s0 = inlined_call_operand.vmem [shape: bf16[128,72], index: 0, kind: input, shape index: {}]   ;;  %s806_s2 = inlined_call_operand.vmem [shape: f32[1,16], index: 2, kind: input, shape index: {}]   ;;  %s807_s3 = inlined_call_operand.vmem [shape: f32[1,16], index: 3, kind: input, shape index: {}]   ;;  %s808_s4 = inlined_call_operand.vmem [shape: f32[128,16], index: 4, kind: output, shape index: {}]  }
   0x1   :  { %v42_v0 = vld [vmem:[%s804_s1 + $0x20] sm:$0xf]  ;;  %v474_v4 = vld [vmem:[%s804_s1 + $0x18] sm:$0xff]  ;;  %v473_v5 = vld [vmem:[%s804_s1 + $0x10] sm:$0xff]  ;;  %493 = vrcp.f32 %v497_v47 }
   0x2   :  { %v100_v1 = vunpack.c.l.b16 %v42_v0  ;;  %v472_v6 = vld [vmem:[%s804_s1 + $0x8] sm:$0xff]  ;;  %v471_v7 = vld [vmem:[%s804_s1] sm:$0xff]  ;;  %v465_v9 = vld [vmem:[%s805_s0 + $0x10] sm:$0xff] }
   0x3   :  { %v463_v8 = vld [vmem:[%s805_s0] sm:$0xff]  ;;  %v469_v11 = vld [vmem:[%s805_s0 + $0x30] sm:$0xff]  ;;  %v464_v12 = vld [vmem:[%s805_s0 + $0x8] sm:$0xff] }
   0x4   :  { %v105_v2 = vpack.c.b16 %v100_v1, %v100_v1  ;;  %v467_v10 = vld [vmem:[%s805_s0 + $0x20] sm:$0xff]  ;;  %v466_v13 = vld [vmem:[%s805_s0 + $0x18] sm:$0xff]  ;;  %v468_v14 = vld [vmem:[%s805_s0 + $0x28] sm:$0xff] }
   0x5   :  { %v470_v15 = vld [vmem:[%s805_s0 + $0x38] sm:$0xff] }
   0x6   :  { %v137_v3 = vsel %vm135_vm0, %v105_v2, 0 }
   0x7   :  { %142 = vmatpush.bf16.msra.mxu0 %v137_v3  ;;  %475 = vmatpush.bf16.msra.mxu1 %v137_v3  ;;  %v494_v54 = vpop.eup %493 }
   0x8   :  { %476 = vmatpush.bf16.msra.mxu2 %v137_v3  ;;  %477 = vmatpush.bf16.msra.mxu3 %v137_v3  ;;  %v227_v59 = vmul.f32 128.0, %v494_v54  ;;  %vm231_vm3 = vweird.f32 %v494_v54 }
   0xa   :  { %v228_v1 = vsub.f32 1.0, %v227_v59 }
   0xb   :  { %143 = vmatpush.bf16.msra.mxu0 %v474_v4  ;;  %478 = vmatpush.bf16.msra.mxu1 %v474_v4 }
   0xc   :  { %479 = vmatpush.bf16.msra.mxu2 %v474_v4  ;;  %480 = vmatpush.bf16.msra.mxu3 %v474_v4  ;;  %v229_v4 = vmul.f32 %v494_v54, %v228_v1 }
   0xf   :  { %144 = vmatpush.bf16.msra.mxu0 %v473_v5  ;;  %481 = vmatpush.bf16.msra.mxu1 %v473_v5 }
  0x10   :  { %482 = vmatpush.bf16.msra.mxu2 %v473_v5  ;;  %483 = vmatpush.bf16.msra.mxu3 %v473_v5 }
  0x13   :  { %145 = vmatpush.bf16.msra.mxu0 %v472_v6  ;;  %484 = vmatpush.bf16.msra.mxu1 %v472_v6 }
  0x14   :  { %485 = vmatpush.bf16.msra.mxu2 %v472_v6  ;;  %486 = vmatpush.bf16.msra.mxu3 %v472_v6 }
  0x17   :  { %146 = vmatpush.bf16.msra.mxu0 %v471_v7  ;;  %487 = vmatpush.bf16.msra.mxu1 %v471_v7 }
  0x18   :  { %488 = vmatpush.bf16.msra.mxu2 %v471_v7  ;;  %489 = vmatpush.bf16.msra.mxu3 %v471_v7  ;;  %v230_v7 = vadd.f32 %v494_v54, %v229_v4 }
  0x1a   :  { %455 = vmatmul.msk.bf16.vlgmr.msra.gmra.mxu0 %vm110_vm1, %v463_v8  ;;  %457 = vmatmul.msk.bf16.vlgmr.msra.gmra.mxu1 %vm110_vm1, %v465_v9 }
  0x1b   :  { %459 = vmatmul.msk.bf16.vlgmr.msra.gmra.mxu2 %vm110_vm1, %v467_v10  ;;  %461 = vmatmul.msk.bf16.vlgmr.msra.gmra.mxu3 %vm110_vm1, %v469_v11  ;;  %v622_v10 = vsel %vm231_vm3, %v494_v54, %v230_v7 }
  0x2a   :  { %456 = vmatmul.msk.bf16.gmra.mxu0 %vm110_vm1, %v464_v12  ;;  %458 = vmatmul.msk.bf16.gmra.mxu1 %vm110_vm1, %v466_v13 }
  0x2b   :  { %460 = vmatmul.msk.bf16.gmra.mxu2 %vm110_vm1, %v468_v14  ;;  %462 = vmatmul.msk.bf16.gmra.mxu3 %vm110_vm1, %v470_v15 }
  0x97   :  { %v570_v16 = vpop.f32.mrf.mxu0  ;;  %v572_v17 = vpop.f32.mrf.mxu1 }
  0x98   :  { %v189_v26 = vsel %vm188_vm2, %v570_v16, 0.0  ;;  %v196_v34 = vsel %vm188_vm2, %v572_v17, 0.0 }
  0x9e   :  { %v576_v19 = vpop.f32.mrf.mxu2  ;;  %v580_v22 = vpop.f32.mrf.mxu3 }
  0x9f   :  { %v574_v18 = vpop.f32.mrf.mxu0  ;;  %v578_v20 = vpop.f32.mrf.mxu1  ;;  %v204_v44 = vsel %vm188_vm2, %v576_v19, 0.0  ;;  %v212_v56 = vsel %vm188_vm2, %v580_v22, 0.0 }
  0xa0   :  { %v190_v24 = vsel %vm188_vm2, %v574_v18, 0.0  ;;  %v198_v37 = vsel %vm188_vm2, %v578_v20, 0.0 }
  0xa1   :  { %v191_v28 = vadd.f32 %v190_v24, %v189_v26 }
  0xa6   :  { %v582_v23 = vpop.f32.mrf.mxu2  ;;  %v592_v33 = vpop.f32.mrf.mxu3 }
  0xa7   :  { %v153_v21 = vpop.f32.mrf.mxu0  ;;  %v586_v25 = vpop.f32.mrf.mxu1  ;;  %v206_v48 = vsel %vm188_vm2, %v582_v23, 0.0  ;;  %v214_v58 = vsel %vm188_vm2, %v592_v33, 0.0 }
  0xa8   :  { %v192_v27 = vsel %vm188_vm2, %v153_v21, 0.0  ;;  %v200_v40 = vsel %vm188_vm2, %v586_v25, 0.0 }
  0xa9   :  { %v193_v29 = vadd.f32 %v192_v27, %v191_v28 }
  0xae   :  { %v596_v36 = vpop.f32.mrf.mxu2  ;;  %v605_v46 = vpop.f32.mrf.mxu3 }
  0xaf   :  { %v155_v30 = vpop.f32.mrf.mxu0  ;;  %v165_v38 = vpop.f32.mrf.mxu1  ;;  %v208_v51 = vsel %vm188_vm2, %v596_v36, 0.0  ;;  %v216_v62 = vsel %vm188_vm2, %v605_v46, 0.0 }
  0xb0   :  { %v194_v31 = vsel %vm188_vm2, %v155_v30, 0.0  ;;  %v202_v42 = vsel %vm188_vm2, %v165_v38, 0.0 }
  0xb1   :  { %v195_v32 = vadd.f32 %v194_v31, %v193_v29 }
  0xb3   :  { %v197_v35 = vadd.f32 %v196_v34, %v195_v32 }
  0xb5   :  { %v199_v39 = vadd.f32 %v198_v37, %v197_v35 }
  0xb6   :  { %v175_v50 = vpop.f32.mrf.mxu2  ;;  %v616_v61 = vpop.f32.mrf.mxu3 }
  0xb7   :  { %v201_v41 = vadd.f32 %v200_v40, %v199_v39  ;;  %v210_v53 = vsel %vm188_vm2, %v175_v50, 0.0  ;;  %v218_v0 = vsel %vm188_vm2, %v616_v61, 0.0 }
  0xb9   :  { %v203_v43 = vadd.f32 %v202_v42, %v201_v41 }
  0xbb   :  { %v205_v45 = vadd.f32 %v204_v44, %v203_v43 }
  0xbd   :  { %v207_v49 = vadd.f32 %v206_v48, %v205_v45 }
  0xbf   :  { %v209_v52 = vadd.f32 %v208_v51, %v207_v49 }
  0xc1   :  { %v211_v55 = vadd.f32 %v210_v53, %v209_v52 }
  0xc3   :  { %v213_v57 = vadd.f32 %v212_v56, %v211_v55 }
  0xc5   :  { %v215_v60 = vadd.f32 %v214_v58, %v213_v57 }
  0xc7   :  { %v217_v63 = vadd.f32 %v216_v62, %v215_v60 }
  0xc9   :  { %v219_v2 = vadd.f32 %v218_v0, %v217_v63 }
  0xcb   :  { %v220_v3 = vrot.slane %v219_v2, 4 }
  0xcd   :  { %v221_v5 = vadd.f32 %v220_v3, %v219_v2 }
  0xcf   :  { %v222_v6 = vrot.slane %v221_v5, 2 }
  0xd1   :  { %v223_v8 = vadd.f32 %v222_v6, %v221_v5 }
  0xd3   :  { %v224_v9 = vrot.slane %v223_v8, 1 }
  0xd5   :  { %v225_v11 = vadd.f32 %v224_v9, %v223_v8 }
  0xd7   :  { %v233_v12 = vmul.f32 %v622_v10, %v225_v11 }
  0xd9   :  { %v626_v13 = vsub.f32 %v570_v16, %v233_v12  ;;  %v629_v14 = vsub.f32 %v574_v18, %v233_v12  ;;  %v631_v15 = vsub.f32 %v153_v21, %v233_v12  ;;  %v633_v24 = vsub.f32 %v155_v30, %v233_v12 }
  0xda   :  { %v640_v28 = vsub.f32 %v572_v17, %v233_v12  ;;  %v645_v29 = vsub.f32 %v578_v20, %v233_v12  ;;  %v652_v32 = vsub.f32 %v586_v25, %v233_v12  ;;  %v657_v37 = vsub.f32 %v165_v38, %v233_v12 }
  0xdb   :  { %v250_v26 = vmul.f32 %v626_v13, %v626_v13  ;;  %v251_v27 = vmul.f32 %v629_v14, %v629_v14  ;;  %v252_v16 = vmul.f32 %v631_v15, %v631_v15  ;;  %v253_v18 = vmul.f32 %v633_v24, %v633_v24 }
  0xdc   :  { %v254_v17 = vmul.f32 %v640_v28, %v640_v28  ;;  %v255_v20 = vmul.f32 %v645_v29, %v645_v29  ;;  %v663_v41 = vsub.f32 %v576_v19, %v233_v12  ;;  %v256_v25 = vmul.f32 %v652_v32, %v652_v32 }
  0xdd   :  { %v266_v21 = vsel %vm188_vm2, %v250_v26, 0.0  ;;  %v267_v30 = vsel %vm188_vm2, %v251_v27, 0.0  ;;  %v269_v34 = vsel %vm188_vm2, %v252_v16, 0.0  ;;  %v271_v39 = vsel %vm188_vm2, %v253_v18, 0.0 }
  0xde   :  { %v268_v31 = vadd.f32 %v267_v30, %v266_v21  ;;  %v273_v42 = vsel %vm188_vm2, %v254_v17, 0.0  ;;  %v669_v44 = vsub.f32 %v582_v23, %v233_v12  ;;  %v257_v38 = vmul.f32 %v657_v37, %v657_v37 }
  0xdf   :  { %v275_v45 = vsel %vm188_vm2, %v255_v20, 0.0  ;;  %v675_v48 = vsub.f32 %v596_v36, %v233_v12  ;;  %v258_v19 = vmul.f32 %v663_v41, %v663_v41  ;;  %v277_v49 = vsel %vm188_vm2, %v256_v25, 0.0 }
  0xe0   :  { %v270_v35 = vadd.f32 %v269_v34, %v268_v31  ;;  %v680_v52 = vsub.f32 %v175_v50, %v233_v12  ;;  %v259_v23 = vmul.f32 %v669_v44, %v669_v44  ;;  %v279_v53 = vsel %vm188_vm2, %v257_v38, 0.0 }
  0xe1   :  { %v686_v55 = vsub.f32 %v580_v22, %v233_v12  ;;  %v260_v36 = vmul.f32 %v675_v48, %v675_v48  ;;  %v281_v56 = vsel %vm188_vm2, %v258_v19, 0.0  ;;  %v692_v58 = vsub.f32 %v592_v33, %v233_v12 }
  0xe2   :  { %v272_v40 = vadd.f32 %v271_v39, %v270_v35  ;;  %v261_v50 = vmul.f32 %v680_v52, %v680_v52  ;;  %v283_v59 = vsel %vm188_vm2, %v259_v23, 0.0  ;;  %v698_v62 = vsub.f32 %v605_v46, %v233_v12 }
  0xe3   :  { %v262_v22 = vmul.f32 %v686_v55, %v686_v55  ;;  %v285_v63 = vsel %vm188_vm2, %v260_v36, 0.0  ;;  %v704_v1 = vsub.f32 %v616_v61, %v233_v12  ;;  %v263_v33 = vmul.f32 %v692_v58, %v692_v58 }
  0xe4   :  { %v274_v43 = vadd.f32 %v273_v42, %v272_v40  ;;  %v287_v2 = vsel %vm188_vm2, %v261_v50, 0.0  ;;  %v264_v4 = vmul.f32 %v698_v62, %v698_v62 }
  0xe5   :  { %v289_v46 = vsel %vm188_vm2, %v262_v22, 0.0  ;;  %v265_v6 = vmul.f32 %v704_v1, %v704_v1  ;;  %v291_v7 = vsel %vm188_vm2, %v263_v33, 0.0 }
  0xe6   :  { %v276_v47 = vadd.f32 %v275_v45, %v274_v43  ;;  %v293_v61 = vsel %vm188_vm2, %v264_v4, 0.0 }
  0xe7   :  { %v295_v11 = vsel %vm188_vm2, %v265_v6, 0.0 }
  0xe8   :  { %v278_v51 = vadd.f32 %v277_v49, %v276_v47 }
  0xea   :  { %v280_v54 = vadd.f32 %v279_v53, %v278_v51 }
  0xec   :  { %v282_v57 = vadd.f32 %v281_v56, %v280_v54 }
  0xee   :  { %v284_v60 = vadd.f32 %v283_v59, %v282_v57 }
  0xf0   :  { %v286_v0 = vadd.f32 %v285_v63, %v284_v60 }
  0xf2   :  { %v288_v3 = vadd.f32 %v287_v2, %v286_v0 }
  0xf4   :  { %v290_v5 = vadd.f32 %v289_v46, %v288_v3 }
  0xf6   :  { %v292_v8 = vadd.f32 %v291_v7, %v290_v5 }
  0xf8   :  { %v294_v9 = vadd.f32 %v293_v61, %v292_v8 }
  0xfa   :  { %v296_v12 = vadd.f32 %v295_v11, %v294_v9 }
  0xfc   :  { %v297_v26 = vrot.slane %v296_v12, 4 }
  0xfe   :  { %v298_v27 = vadd.f32 %v297_v26, %v296_v12 }
 0x100   :  { %v299_v16 = vrot.slane %v298_v27, 2 }
 0x102   :  { %v300_v18 = vadd.f32 %v299_v16, %v298_v27 }
 0x104   :  { %v301_v21 = vrot.slane %v300_v18, 1 }
 0x106   :  { %v302_v30 = vadd.f32 %v301_v21, %v300_v18 }
 0x108   :  { %v303_v31 = vmul.f32 %v302_v30, %v622_v10  ;;  %v491_v10 = vld [vmem:[%s806_s2] ss:$0 sm:$0xff] }
 0x10a   :  { %v304_v17 = vadd.f32 1e-05, %v303_v31 }
 0x10c   :  { %495 = vrsqrt.f32 %v304_v17  ;;  %vm311_vm5 = vweird.f32 %v304_v17 }
 0x112   :  { %v496_v34 = vpop.eup %495 }
 0x113   :  { %v306_v35 = vmul.f32 %v496_v34, %v304_v17  ;;  %vm312_vm4 = vweird.f32 %v496_v34 }
 0x114   :  { %vm313_vm6 = vmor %vm311_vm5, %vm312_vm4 }
 0x115   :  { %v307_v20 = vmul.f32 %v496_v34, %v306_v35 }
 0x117   :  { %v308_v39 = vmul.f32 0.5, %v307_v20 }
 0x119   :  { %v309_v40 = vsub.f32 1.5, %v308_v39 }
 0x11b   :  { %v310_v25 = vmul.f32 %v496_v34, %v309_v40 }
 0x11d   :  { %v314_v42 = vsel %vm313_vm6, %v496_v34, %v310_v25 }
 0x11e   :  { %v315_v43 = vmul.f32 %v314_v42, %v626_v13  ;;  %v316_v38 = vmul.f32 %v314_v42, %v629_v14  ;;  %v317_v45 = vmul.f32 %v314_v42, %v631_v15  ;;  %v318_v47 = vmul.f32 %v314_v42, %v633_v24  ;;  %v492_v13 = vld [vmem:[%s807_s3] ss:$0 sm:$0xff] }
 0x11f   :  { %v319_v19 = vmul.f32 %v314_v42, %v640_v28  ;;  %v320_v49 = vmul.f32 %v314_v42, %v645_v29  ;;  %v321_v51 = vmul.f32 %v314_v42, %v652_v32  ;;  %v322_v14 = vmul.f32 %v314_v42, %v657_v37 }
 0x120   :  { %v335_v23 = vmul.f32 %v491_v10, %v315_v43  ;;  %v336_v53 = vmul.f32 %v491_v10, %v316_v38  ;;  %v337_v54 = vmul.f32 %v491_v10, %v317_v45  ;;  %v338_v15 = vmul.f32 %v491_v10, %v318_v47 }
 0x121   :  { %v323_v36 = vmul.f32 %v314_v42, %v663_v41  ;;  %v339_v56 = vmul.f32 %v491_v10, %v319_v19  ;;  %v324_v24 = vmul.f32 %v314_v42, %v669_v44  ;;  %v325_v28 = vmul.f32 %v314_v42, %v675_v48 }
 0x122   :  { %v340_v29 = vmul.f32 %v491_v10, %v320_v49  ;;  %v341_v57 = vmul.f32 %v491_v10, %v321_v51  ;;  %v355_v32 = vadd.f32 %v492_v13, %v335_v23  ;;  %v356_v50 = vadd.f32 %v492_v13, %v336_v53 }
 0x123   :  { %v357_v59 = vadd.f32 %v492_v13, %v337_v54  ;;  %v326_v60 = vmul.f32 %v314_v42, %v680_v52  ;;  %v342_v22 = vmul.f32 %v491_v10, %v322_v14  ;;  %v358_v63 = vadd.f32 %v492_v13, %v338_v15 }
 0x124   :  { %v327_v0 = vmul.f32 %v314_v42, %v686_v55  ;;  %v328_v37 = vmul.f32 %v314_v42, %v692_v58  ;;  %v343_v33 = vmul.f32 %v491_v10, %v323_v36  ;;  %v359_v41 = vadd.f32 %v492_v13, %v339_v56 }
 0x125   :  { %v329_v2 = vmul.f32 %v314_v42, %v698_v62  ;;  %v344_v44 = vmul.f32 %v491_v10, %v324_v24  ;;  %v345_v3 = vmul.f32 %v491_v10, %v325_v28  ;;  %v360_v48 = vadd.f32 %v492_v13, %v340_v29 }
 0x126   :  { %v361_v4 = vadd.f32 %v492_v13, %v341_v57  ;;  %v371_v46 = vmax.f32 %v355_v32, 0.0  ;;  %v372_v5 = vmax.f32 %v356_v50, 0.0  ;;  %v373_v6 = vmax.f32 %v357_v59, 0.0 }
 0x127   :  { %v330_v7 = vmul.f32 %v314_v42, %v704_v1  ;;  %v346_v52 = vmul.f32 %v491_v10, %v326_v60  ;;  %v362_v8 = vadd.f32 %v492_v13, %v342_v22  ;;  %v374_v61 = vmax.f32 %v358_v63, 0.0 }
 0x128   :  { %v347_v9 = vmul.f32 %v491_v10, %v327_v0  ;;  %v363_v55 = vadd.f32 %v492_v13, %v343_v33  ;;  %v375_v11 = vmax.f32 %v359_v41, 0.0  ;;  %387 = vst.msk [vmem:[%s808_s4] sm:$0xff] %vm188_vm2, %v371_v46  ;;  %v348_v58 = vmul.f32 %v491_v10, %v328_v37 }
 0x129   :  { %v364_v62 = vadd.f32 %v492_v13, %v344_v44  ;;  %v376_v12 = vmax.f32 %v360_v48, 0.0  ;;  %388 = vst.msk [vmem:[%s808_s4 + $0x8] sm:$0xff] %vm188_vm2, %v372_v5  ;;  %v349_v1 = vmul.f32 %v491_v10, %v329_v2  ;;  %v365_v26 = vadd.f32 %v492_v13, %v345_v3 }
 0x12a   :  { %v377_v27 = vmax.f32 %v361_v4, 0.0  ;;  %389 = vst.msk [vmem:[%s808_s4 + $0x10] sm:$0xff] %vm188_vm2, %v373_v6  ;;  %v350_v16 = vmul.f32 %v491_v10, %v330_v7  ;;  %v366_v18 = vadd.f32 %v492_v13, %v346_v52  ;;  %v378_v21 = vmax.f32 %v362_v8, 0.0 }
 0x12b   :  { %390 = vst.msk [vmem:[%s808_s4 + $0x18] sm:$0xff] %vm188_vm2, %v374_v61  ;;  %v367_v30 = vadd.f32 %v492_v13, %v347_v9  ;;  %v379_v31 = vmax.f32 %v363_v55, 0.0  ;;  %v368_v17 = vadd.f32 %v492_v13, %v348_v58  ;;  %v380_v34 = vmax.f32 %v364_v62, 0.0 }
 0x12c   :  { %391 = vst.msk [vmem:[%s808_s4 + $0x20] sm:$0xff] %vm188_vm2, %v375_v11  ;;  %v369_v35 = vadd.f32 %v492_v13, %v349_v1  ;;  %v381_v20 = vmax.f32 %v365_v26, 0.0  ;;  %v370_v39 = vadd.f32 %v492_v13, %v350_v16  ;;  %v382_v40 = vmax.f32 %v366_v18, 0.0 }
 0x12d   :  { %392 = vst.msk [vmem:[%s808_s4 + $0x28] sm:$0xff] %vm188_vm2, %v376_v12  ;;  %v383_v25 = vmax.f32 %v367_v30, 0.0  ;;  %v384_v42 = vmax.f32 %v368_v17, 0.0 }
 0x12e   :  { %393 = vst.msk [vmem:[%s808_s4 + $0x30] sm:$0xff] %vm188_vm2, %v377_v27  ;;  %v385_v43 = vmax.f32 %v369_v35, 0.0  ;;  %v386_v38 = vmax.f32 %v370_v39, 0.0 }
 0x12f   :  { %394 = vst.msk [vmem:[%s808_s4 + $0x38] sm:$0xff] %vm188_vm2, %v378_v21 }
 0x130   :  { %395 = vst.msk [vmem:[%s808_s4 + $0x40] sm:$0xff] %vm188_vm2, %v379_v31 }
 0x131   :  { %396 = vst.msk [vmem:[%s808_s4 + $0x48] sm:$0xff] %vm188_vm2, %v380_v34 }
 0x132   :  { %397 = vst.msk [vmem:[%s808_s4 + $0x50] sm:$0xff] %vm188_vm2, %v381_v20 }
 0x133   :  { %398 = vst.msk [vmem:[%s808_s4 + $0x58] sm:$0xff] %vm188_vm2, %v382_v40 }
 0x134   :  { %399 = vst.msk [vmem:[%s808_s4 + $0x60] sm:$0xff] %vm188_vm2, %v383_v25 }
 0x135   :  { %400 = vst.msk [vmem:[%s808_s4 + $0x68] sm:$0xff] %vm188_vm2, %v384_v42 }
 0x136   :  { %401 = vst.msk [vmem:[%s808_s4 + $0x70] sm:$0xff] %vm188_vm2, %v385_v43 }
 0x137   :  { %402 = vst.msk [vmem:[%s808_s4 + $0x78] sm:$0xff] %vm188_vm2, %v386_v38 }

// kernel: resnet2d_forward.8
= control target key start
LH: loop header
LB: loop body
LE: loop exit
PB: predicated region body
PF: predicated region fallthrough
CT: control target
= control target key end

     0   :  { %vm181_vm0 = vcmask 130048   ;;  %s1181_s1 = inlined_call_operand.vmem [shape: bf16[144,16], index: 1, kind: input, shape index: {}]   ;;  %s1182_s0 = inlined_call_operand.vmem [shape: bf16[128,144], index: 0, kind: input, shape index: {}]   ;;  %s1183_s2 = inlined_call_operand.vmem [shape: f32[1,16], index: 2, kind: input, shape index: {}]   ;;  %s1184_s3 = inlined_call_operand.vmem [shape: f32[1,16], index: 3, kind: input, shape index: {}]   ;;  %s1185_s4 = inlined_call_operand.vmem [shape: f32[128,16], index: 4, kind: input, shape index: {}]   ;;  %s1186_s5 = inlined_call_operand.vmem [shape: f32[128,16], index: 5, kind: output, shape index: {}]  }
   0x1   :  { %v685_v0 = vld [vmem:[%s1181_s1 + $0x38] sm:$0xff]  ;;  %v686_v1 = vld [vmem:[%s1181_s1 + $0x40] sm:$0xff]  ;;  %v558_v3 = vld [vmem:[%s1182_s0 + $0x8] sm:$0xf0] }
   0x2   :  { %v662_v2 = vld [vmem:[%s1182_s0 + $0x4] sm:$0xf]  ;;  %206 = vmatpush.bf16.msra.mxu0 %v685_v0  ;;  %262 = vmatpush.bf16.msra.mxu1 %v686_v1  ;;  %v684_v5 = vld [vmem:[%s1181_s1 + $0x30] sm:$0xff]  ;;  %v683_v6 = vld [vmem:[%s1181_s1 + $0x28] sm:$0xff] }
   0x3   :  { %v561_v4 = vor.u32 %v662_v2, %v558_v3  ;;  %687 = vmatpush.bf16.msra.mxu2 %v685_v0  ;;  %695 = vmatpush.bf16.msra.mxu3 %v686_v1  ;;  %v682_v7 = vld [vmem:[%s1181_s1 + $0x20] sm:$0xff]  ;;  %v681_v8 = vld [vmem:[%s1181_s1 + $0x18] sm:$0xff]  ;;  %v664_v9 = vld [vmem:[%s1182_s0 + $0x14] sm:$0xf] }
   0x4   :  { %v566_v10 = vld [vmem:[%s1182_s0 + $0x18] sm:$0xf0]  ;;  %v672_v11 = vld [vmem:[%s1182_s0 + $0x54] sm:$0xf]  ;;  %v679_v16 = vld [vmem:[%s1181_s1 + $0x8] sm:$0xff] }
   0x5   :  { %654 = vmatmul.msk.bf16.vlgmr.msra.gmra.mxu1 %vm181_vm0, %v561_v4  ;;  %v569_v12 = vor.u32 %v664_v9, %v566_v10  ;;  %v598_v13 = vld [vmem:[%s1182_s0 + $0x58] sm:$0xf0]  ;;  %v680_v14 = vld [vmem:[%s1181_s1 + $0x10] sm:$0xff]  ;;  %v678_v17 = vld [vmem:[%s1181_s1] sm:$0xff] }
   0x6   :  { %207 = vmatpush.bf16.msra.mxu0 %v684_v5  ;;  %v601_v15 = vor.u32 %v672_v11, %v598_v13  ;;  %v556_v18 = vld [vmem:[%s1182_s0] sm:$0xf]  ;;  %v663_v19 = vld [vmem:[%s1182_s0 + $0x4] sm:$0xf0]  ;;  %v666_v24 = vld [vmem:[%s1182_s0 + $0x24] sm:$0xf] }
   0x7   :  { %688 = vmatpush.bf16.msra.mxu2 %v684_v5  ;;  %v588_v20 = vld [vmem:[%s1182_s0 + $0x40] sm:$0xf]  ;;  %v671_v21 = vld [vmem:[%s1182_s0 + $0x44] sm:$0xf0]  ;;  %v557_v22 = vor.u32 %v663_v19, %v556_v18  ;;  %v574_v25 = vld [vmem:[%s1182_s0 + $0x28] sm:$0xf0] }
   0x8   :  { %659 = vmatmul.msk.bf16.vlgmr.msra.gmra.mxu3 %vm181_vm0, %v601_v15  ;;  %v589_v23 = vor.u32 %v671_v21, %v588_v20  ;;  %v674_v26 = vld [vmem:[%s1182_s0 + $0x64] sm:$0xf]  ;;  %v577_v27 = vor.u32 %v666_v24, %v574_v25  ;;  %v606_v28 = vld [vmem:[%s1182_s0 + $0x68] sm:$0xf0]  ;;  %v564_v30 = vld [vmem:[%s1182_s0 + $0x10] sm:$0xf] }
   0x9   :  { %v609_v29 = vor.u32 %v674_v26, %v606_v28  ;;  %v665_v31 = vld [vmem:[%s1182_s0 + $0x14] sm:$0xf0]  ;;  %v596_v32 = vld [vmem:[%s1182_s0 + $0x50] sm:$0xf]  ;;  %v668_v36 = vld [vmem:[%s1182_s0 + $0x34] sm:$0xf] }
   0xa   :  { %208 = vmatpush.bf16.msra.mxu0 %v683_v6  ;;  %v673_v33 = vld [vmem:[%s1182_s0 + $0x54] sm:$0xf0]  ;;  %v565_v34 = vor.u32 %v665_v31, %v564_v30  ;;  %v582_v37 = vld [vmem:[%s1182_s0 + $0x38] sm:$0xf0]  ;;  %v676_v38 = vld [vmem:[%s1182_s0 + $0x74] sm:$0xf] }
   0xb   :  { %689 = vmatpush.bf16.msra.mxu2 %v683_v6  ;;  %v597_v35 = vor.u32 %v673_v33, %v596_v32  ;;  %v585_v39 = vor.u32 %v668_v36, %v582_v37  ;;  %v614_v40 = vld [vmem:[%s1182_s0 + $0x78] sm:$0xf0]  ;;  %v572_v42 = vld [vmem:[%s1182_s0 + $0x20] sm:$0xf]  ;;  %v667_v43 = vld [vmem:[%s1182_s0 + $0x24] sm:$0xf0] }
   0xc   :  { %v617_v41 = vor.u32 %v676_v38, %v614_v40  ;;  %v604_v44 = vld [vmem:[%s1182_s0 + $0x60] sm:$0xf]  ;;  %v675_v45 = vld [vmem:[%s1182_s0 + $0x64] sm:$0xf0]  ;;  %v573_v46 = vor.u32 %v667_v43, %v572_v42  ;;  %v670_v48 = vld [vmem:[%s1182_s0 + $0x44] sm:$0xf] }
   0xd   :  { %v605_v47 = vor.u32 %v675_v45, %v604_v44  ;;  %v590_v49 = vld [vmem:[%s1182_s0 + $0x48] sm:$0xf0]  ;;  %v580_v51 = vld [vmem:[%s1182_s0 + $0x30] sm:$0xf]  ;;  %v669_v52 = vld [vmem:[%s1182_s0 + $0x34] sm:$0xf0] }
   0xe   :  { %209 = vmatpush.bf16.msra.mxu0 %v682_v7  ;;  %v593_v50 = vor.u32 %v670_v48, %v590_v49  ;;  %v612_v53 = vld [vmem:[%s1182_s0 + $0x70] sm:$0xf]  ;;  %v677_v54 = vld [vmem:[%s1182_s0 + $0x74] sm:$0xf0]  ;;  %v581_v55 = vor.u32 %v669_v52, %v580_v51  ;;  %v703_v51 = vmov 128.0  }
   0xf   :  { %690 = vmatpush.bf16.msra.mxu2 %v682_v7  ;;  %v613_v56 = vor.u32 %v677_v54, %v612_v53  ;;  %699 = vrcp.f32 %v703_v51 }
  0x12   :  { %210 = vmatpush.bf16.msra.mxu0 %v681_v8 }
  0x13   :  { %691 = vmatpush.bf16.msra.mxu2 %v681_v8 }
  0x15   :  { %655 = vmatmul.msk.bf16.gmra.mxu1 %vm181_vm0, %v569_v12 }
  0x16   :  { %211 = vmatpush.bf16.msra.mxu0 %v680_v14 }
  0x17   :  { %692 = vmatpush.bf16.msra.mxu2 %v680_v14 }
  0x18   :  { %660 = vmatmul.msk.bf16.gmra.mxu3 %vm181_vm0, %v609_v29 }
  0x1a   :  { %212 = vmatpush.bf16.msra.mxu0 %v679_v16 }
  0x1b   :  { %693 = vmatpush.bf16.msra.mxu2 %v679_v16 }
  0x1e   :  { %213 = vmatpush.bf16.msra.mxu0 %v678_v17 }
  0x1f   :  { %694 = vmatpush.bf16.msra.mxu2 %v678_v17 }
  0x21   :  { %214 = vmatmul.bf16.vlgmr.msra.gmra.mxu0 %v557_v22 }
  0x22   :  { %234 = vmatmul.bf16.vlgmr.msra.gmra.mxu2 %v589_v23 }
  0x25   :  { %656 = vmatmul.msk.bf16.gmra.mxu1 %vm181_vm0, %v577_v27 }
  0x28   :  { %661 = vmatmul.msk.bf16.gmra.mxu3 %vm181_vm0, %v617_v41 }
  0x31   :  { %219 = vmatmul.bf16.gmra.mxu0 %v565_v34 }
  0x32   :  { %239 = vmatmul.bf16.gmra.mxu2 %v597_v35 }
  0x35   :  { %657 = vmatmul.msk.bf16.gmra.mxu1 %vm181_vm0, %v585_v39 }
  0x41   :  { %224 = vmatmul.bf16.gmra.mxu0 %v573_v46 }
  0x42   :  { %244 = vmatmul.bf16.gmra.mxu2 %v605_v47 }
  0x45   :  { %658 = vmatmul.msk.bf16.gmra.mxu1 %vm181_vm0, %v593_v50 }
  0x51   :  { %229 = vmatmul.bf16.gmra.mxu0 %v581_v55 }
  0x52   :  { %249 = vmatmul.bf16.gmra.mxu2 %v613_v56 }
  0x82   :  { %v264_v57 = vpop.f32.mrf.mxu1 }
  0x8a   :  { %v266_v58 = vpop.f32.mrf.mxu1 }
  0x8b   :  { %v289_v4 = vpop.f32.mrf.mxu3 }
  0x92   :  { %v269_v59 = vpop.f32.mrf.mxu1 }
  0x93   :  { %v291_v8 = vpop.f32.mrf.mxu3 }
  0x9a   :  { %v271_v60 = vpop.f32.mrf.mxu1 }
  0x9b   :  { %v294_v12 = vpop.f32.mrf.mxu3 }
  0x9e   :  { %v215_v61 = vpop.f32.mrf.mxu0 }
  0x9f   :  { %v867_v16 = vadd.f32 %v264_v57, %v215_v61 }
  0xa1   :  { %v304_v21 = vsel %vm181_vm0, %v867_v16, 0.0 }
  0xa2   :  { %v274_v62 = vpop.f32.mrf.mxu1 }
  0xa3   :  { %v296_v24 = vpop.f32.mrf.mxu3 }
  0xa5   :  { %v235_v63 = vpop.f32.mrf.mxu2 }
  0xa6   :  { %v217_v0 = vpop.f32.mrf.mxu0 }
  0xa7   :  { %v865_v15 = vadd.f32 %v266_v58, %v217_v0 }
  0xa9   :  { %v305_v18 = vsel %vm181_vm0, %v865_v15, 0.0 }
  0xaa   :  { %v276_v2 = vpop.f32.mrf.mxu1  ;;  %v306_v25 = vadd.f32 %v305_v18, %v304_v21 }
  0xab   :  { %v299_v44 = vpop.f32.mrf.mxu3 }
  0xad   :  { %v237_v1 = vpop.f32.mrf.mxu2 }
  0xae   :  { %v220_v3 = vpop.f32.mrf.mxu0 }
  0xaf   :  { %v869_v17 = vadd.f32 %v269_v59, %v220_v3 }
  0xb1   :  { %v307_v22 = vsel %vm181_vm0, %v869_v17, 0.0 }
  0xb2   :  { %v279_v7 = vpop.f32.mrf.mxu1  ;;  %v308_v30 = vadd.f32 %v307_v22, %v306_v25 }
  0xb5   :  { %v240_v5 = vpop.f32.mrf.mxu2 }
  0xb6   :  { %v222_v6 = vpop.f32.mrf.mxu0  ;;  %v901_v48 = vadd.f32 %v289_v4, %v240_v5 }
  0xb7   :  { %v873_v19 = vadd.f32 %v271_v60, %v222_v6  ;;  %v700_v60 = vpop.eup %699 }
  0xb8   :  { %v323_v55 = vsel %vm181_vm0, %v901_v48, 0.0  ;;  %v342_v5 = vmul.f32 128.0, %v700_v60  ;;  %vm346_vm1 = vweird.f32 %v700_v60 }
  0xb9   :  { %v309_v28 = vsel %vm181_vm0, %v873_v19, 0.0 }
  0xba   :  { %v281_v11 = vpop.f32.mrf.mxu1  ;;  %v310_v33 = vadd.f32 %v309_v28, %v308_v30 }
  0xbd   :  { %v242_v9 = vpop.f32.mrf.mxu2 }
  0xbe   :  { %v225_v10 = vpop.f32.mrf.mxu0  ;;  %v905_v52 = vadd.f32 %v291_v8, %v242_v9 }
  0xbf   :  { %v879_v23 = vadd.f32 %v274_v62, %v225_v10  ;;  %v343_v10 = vsub.f32 1.0, %v342_v5 }
  0xc0   :  { %v325_v58 = vsel %vm181_vm0, %v905_v52, 0.0 }
  0xc1   :  { %v311_v31 = vsel %vm181_vm0, %v879_v23, 0.0 }
  0xc2   :  { %v284_v20 = vpop.f32.mrf.mxu1  ;;  %v312_v35 = vadd.f32 %v311_v31, %v310_v33 }
  0xc3   :  { %v893_v40 = vadd.f32 %v284_v20, %v235_v63  ;;  %v301_v63 = vpop.f32.mrf.mxu3 }
  0xc5   :  { %v245_v13 = vpop.f32.mrf.mxu2  ;;  %v319_v49 = vsel %vm181_vm0, %v893_v40, 0.0 }
  0xc6   :  { %v227_v14 = vpop.f32.mrf.mxu0  ;;  %v911_v56 = vadd.f32 %v294_v12, %v245_v13  ;;  %v344_v13 = vmul.f32 %v700_v60, %v343_v10 }
  0xc7   :  { %v883_v29 = vadd.f32 %v276_v2, %v227_v14 }
  0xc8   :  { %v327_v0 = vsel %vm181_vm0, %v911_v56, 0.0  ;;  %v345_v20 = vadd.f32 %v700_v60, %v344_v13 }
  0xc9   :  { %v313_v34 = vsel %vm181_vm0, %v883_v29, 0.0 }
  0xca   :  { %v314_v37 = vadd.f32 %v313_v34, %v312_v35  ;;  %v286_v38 = vpop.f32.mrf.mxu1 }
  0xcb   :  { %v897_v45 = vadd.f32 %v286_v38, %v237_v1 }
  0xcd   :  { %v247_v27 = vpop.f32.mrf.mxu2  ;;  %v321_v53 = vsel %vm181_vm0, %v897_v45, 0.0 }
  0xce   :  { %v230_v26 = vpop.f32.mrf.mxu0  ;;  %v915_v59 = vadd.f32 %v296_v24, %v247_v27  ;;  %v929_v24 = vsel %vm346_vm1, %v700_v60, %v345_v20 }
  0xcf   :  { %v887_v32 = vadd.f32 %v279_v7, %v230_v26 }
  0xd0   :  { %v329_v3 = vsel %vm181_vm0, %v915_v59, 0.0 }
  0xd1   :  { %v315_v36 = vsel %vm181_vm0, %v887_v32, 0.0 }
  0xd2   :  { %v316_v42 = vadd.f32 %v315_v36, %v314_v37 }
  0xd5   :  { %v250_v43 = vpop.f32.mrf.mxu2 }
  0xd6   :  { %v232_v39 = vpop.f32.mrf.mxu0  ;;  %v919_v1 = vadd.f32 %v299_v44, %v250_v43 }
  0xd7   :  { %v895_v41 = vadd.f32 %v281_v11, %v232_v39 }
  0xd8   :  { %v331_v7 = vsel %vm181_vm0, %v919_v1, 0.0 }
  0xd9   :  { %v317_v46 = vsel %vm181_vm0, %v895_v41, 0.0 }
  0xda   :  { %v318_v47 = vadd.f32 %v317_v46, %v316_v42 }
  0xdc   :  { %v320_v50 = vadd.f32 %v319_v49, %v318_v47 }
  0xdd   :  { %v252_v62 = vpop.f32.mrf.mxu2 }
  0xde   :  { %v322_v54 = vadd.f32 %v321_v53, %v320_v50  ;;  %v923_v4 = vadd.f32 %v301_v63, %v252_v62 }
  0xe0   :  { %v324_v57 = vadd.f32 %v323_v55, %v322_v54  ;;  %v333_v9 = vsel %vm181_vm0, %v923_v4, 0.0 }
  0xe2   :  { %v326_v61 = vadd.f32 %v325_v58, %v324_v57 }
  0xe4   :  { %v328_v2 = vadd.f32 %v327_v0, %v326_v61 }
  0xe6   :  { %v330_v6 = vadd.f32 %v329_v3, %v328_v2 }
  0xe8   :  { %v332_v8 = vadd.f32 %v331_v7, %v330_v6 }
  0xea   :  { %v334_v11 = vadd.f32 %v333_v9, %v332_v8 }
  0xec   :  { %v335_v12 = vrot.slane %v334_v11, 4 }
  0xee   :  { %v336_v14 = vadd.f32 %v335_v12, %v334_v11 }
  0xf0   :  { %v337_v18 = vrot.slane %v336_v14, 2 }
  0xf2   :  { %v338_v21 = vadd.f32 %v337_v18, %v336_v14 }
  0xf4   :  { %v339_v22 = vrot.slane %v338_v21, 1 }
  0xf6   :  { %v340_v25 = vadd.f32 %v339_v22, %v338_v21 }
  0xf8   :  { %v348_v26 = vmul.f32 %v929_v24, %v340_v25 }
  0xfa   :  { %v933_v27 = vsub.f32 %v867_v16, %v348_v26  ;;  %v936_v28 = vsub.f32 %v865_v15, %v348_v26  ;;  %v939_v30 = vsub.f32 %v869_v17, %v348_v26  ;;  %v942_v31 = vsub.f32 %v873_v19, %v348_v26 }
  0xfb   :  { %v949_v35 = vsub.f32 %v879_v23, %v348_v26  ;;  %v954_v15 = vsub.f32 %v883_v29, %v348_v26  ;;  %v961_v38 = vsub.f32 %v887_v32, %v348_v26  ;;  %v967_v29 = vsub.f32 %v895_v41, %v348_v26 }
  0xfc   :  { %v365_v33 = vmul.f32 %v933_v27, %v933_v27  ;;  %v366_v34 = vmul.f32 %v936_v28, %v936_v28  ;;  %v367_v16 = vmul.f32 %v939_v30, %v939_v30  ;;  %v368_v17 = vmul.f32 %v942_v31, %v942_v31 }
  0xfd   :  { %v369_v23 = vmul.f32 %v949_v35, %v949_v35  ;;  %v370_v43 = vmul.f32 %v954_v15, %v954_v15  ;;  %v973_v47 = vsub.f32 %v893_v40, %v348_v26  ;;  %v371_v32 = vmul.f32 %v961_v38, %v961_v38 }
  0xfe   :  { %v381_v19 = vsel %vm181_vm0, %v365_v33, 0.0  ;;  %v382_v36 = vsel %vm181_vm0, %v366_v34, 0.0  ;;  %v384_v39 = vsel %vm181_vm0, %v367_v16, 0.0  ;;  %v386_v44 = vsel %vm181_vm0, %v368_v17, 0.0 }
  0xff   :  { %v383_v37 = vadd.f32 %v382_v36, %v381_v19  ;;  %v388_v49 = vsel %vm181_vm0, %v369_v23, 0.0  ;;  %v979_v51 = vsub.f32 %v897_v45, %v348_v26  ;;  %v372_v41 = vmul.f32 %v967_v29, %v967_v29 }
 0x100   :  { %v390_v53 = vsel %vm181_vm0, %v370_v43, 0.0  ;;  %v985_v55 = vsub.f32 %v901_v48, %v348_v26  ;;  %v373_v40 = vmul.f32 %v973_v47, %v973_v47  ;;  %v392_v57 = vsel %vm181_vm0, %v371_v32, 0.0 }
 0x101   :  { %v385_v42 = vadd.f32 %v384_v39, %v383_v37  ;;  %v991_v60 = vsub.f32 %v905_v52, %v348_v26  ;;  %v374_v45 = vmul.f32 %v979_v51, %v979_v51  ;;  %v394_v61 = vsel %vm181_vm0, %v372_v41, 0.0 }
 0x102   :  { %v997_v63 = vsub.f32 %v911_v56, %v348_v26  ;;  %v375_v48 = vmul.f32 %v985_v55, %v985_v55  ;;  %v396_v0 = vsel %vm181_vm0, %v373_v40, 0.0  ;;  %v1003_v3 = vsub.f32 %v915_v59, %v348_v26 }
 0x103   :  { %v387_v46 = vadd.f32 %v386_v44, %v385_v42  ;;  %v376_v52 = vmul.f32 %v991_v60, %v991_v60  ;;  %v398_v5 = vsel %vm181_vm0, %v374_v45, 0.0  ;;  %v1009_v7 = vsub.f32 %v919_v1, %v348_v26 }
 0x104   :  { %v377_v56 = vmul.f32 %v997_v63, %v997_v63  ;;  %v400_v8 = vsel %vm181_vm0, %v375_v48, 0.0  ;;  %v1015_v10 = vsub.f32 %v923_v4, %v348_v26  ;;  %v378_v59 = vmul.f32 %v1003_v3, %v1003_v3 }
 0x105   :  { %v389_v50 = vadd.f32 %v388_v49, %v387_v46  ;;  %v402_v11 = vsel %vm181_vm0, %v376_v52, 0.0  ;;  %v379_v13 = vmul.f32 %v1009_v7, %v1009_v7 }
 0x106   :  { %v404_v1 = vsel %vm181_vm0, %v377_v56, 0.0  ;;  %v380_v18 = vmul.f32 %v1015_v10, %v1015_v10  ;;  %v406_v20 = vsel %vm181_vm0, %v378_v59, 0.0 }
 0x107   :  { %v391_v54 = vadd.f32 %v390_v53, %v389_v50  ;;  %v408_v4 = vsel %vm181_vm0, %v379_v13, 0.0 }
 0x108   :  { %v410_v25 = vsel %vm181_vm0, %v380_v18, 0.0 }
 0x109   :  { %v393_v58 = vadd.f32 %v392_v57, %v391_v54 }
 0x10b   :  { %v395_v62 = vadd.f32 %v394_v61, %v393_v58 }
 0x10d   :  { %v397_v2 = vadd.f32 %v396_v0, %v395_v62 }
 0x10f   :  { %v399_v6 = vadd.f32 %v398_v5, %v397_v2 }
 0x111   :  { %v401_v9 = vadd.f32 %v400_v8, %v399_v6 }
 0x113   :  { %v403_v12 = vadd.f32 %v402_v11, %v401_v9 }
 0x115   :  { %v405_v14 = vadd.f32 %v404_v1, %v403_v12 }
 0x117   :  { %v407_v21 = vadd.f32 %v406_v20, %v405_v14 }
 0x119   :  { %v409_v22 = vadd.f32 %v408_v4, %v407_v21 }
 0x11b   :  { %v411_v26 = vadd.f32 %v410_v25, %v409_v22 }
 0x11d   :  { %v412_v33 = vrot.slane %v411_v26, 4 }
 0x11f   :  { %v413_v34 = vadd.f32 %v412_v33, %v411_v26 }
 0x121   :  { %v414_v16 = vrot.slane %v413_v34, 2 }
 0x123   :  { %v415_v17 = vadd.f32 %v414_v16, %v413_v34  ;;  %v450_v34 = vld [vmem:[%s1185_s4 + $0x20] sm:$0xff] }
 0x125   :  { %v416_v19 = vrot.slane %v415_v17, 1 }
 0x127   :  { %v417_v36 = vadd.f32 %v416_v19, %v415_v17 }
 0x129   :  { %v418_v37 = vmul.f32 %v417_v36, %v929_v24  ;;  %v697_v24 = vld [vmem:[%s1183_s2] ss:$0 sm:$0xff] }
 0x12b   :  { %v419_v23 = vadd.f32 1e-05, %v418_v37  ;;  %v451_v37 = vld [vmem:[%s1185_s4 + $0x28] sm:$0xff] }
 0x12d   :  { %701 = vrsqrt.f32 %v419_v23  ;;  %vm426_vm3 = vweird.f32 %v419_v23 }
 0x133   :  { %v702_v39 = vpop.eup %701 }
 0x134   :  { %v421_v42 = vmul.f32 %v702_v39, %v419_v23  ;;  %vm427_vm2 = vweird.f32 %v702_v39 }
 0x135   :  { %vm428_vm4 = vmor %vm426_vm3, %vm427_vm2 }
 0x136   :  { %v422_v43 = vmul.f32 %v702_v39, %v421_v42 }
 0x138   :  { %v423_v44 = vmul.f32 0.5, %v422_v43 }
 0x13a   :  { %v424_v46 = vsub.f32 1.5, %v423_v44  ;;  %v452_v44 = vld [vmem:[%s1185_s4 + $0x30] sm:$0xff] }
 0x13c   :  { %v425_v32 = vmul.f32 %v702_v39, %v424_v46 }
 0x13e   :  { %v429_v49 = vsel %vm428_vm4, %v702_v39, %v425_v32 }
 0x13f   :  { %v430_v50 = vmul.f32 %v429_v49, %v933_v27  ;;  %v431_v41 = vmul.f32 %v429_v49, %v936_v28  ;;  %v432_v53 = vmul.f32 %v429_v49, %v939_v30  ;;  %v433_v54 = vmul.f32 %v429_v49, %v942_v31  ;;  %v1042_v27 = vld [vmem:[%s1184_s3] ss:$0 sm:$0xff] }
 0x140   :  { %v434_v40 = vmul.f32 %v429_v49, %v949_v35  ;;  %v435_v57 = vmul.f32 %v429_v49, %v954_v15  ;;  %v436_v58 = vmul.f32 %v429_v49, %v961_v38  ;;  %v437_v28 = vmul.f32 %v429_v49, %v967_v29 }
 0x141   :  { %v466_v45 = vmul.f32 %v697_v24, %v430_v50  ;;  %v467_v61 = vmul.f32 %v697_v24, %v431_v41  ;;  %v468_v62 = vmul.f32 %v697_v24, %v432_v53  ;;  %v469_v30 = vmul.f32 %v697_v24, %v433_v54  ;;  %v453_v41 = vld [vmem:[%s1185_s4 + $0x38] sm:$0xff] }
 0x142   :  { %v438_v48 = vmul.f32 %v429_v49, %v973_v47  ;;  %v470_v31 = vmul.f32 %v697_v24, %v434_v40  ;;  %v439_v35 = vmul.f32 %v429_v49, %v979_v51  ;;  %v440_v15 = vmul.f32 %v429_v49, %v985_v55 }
 0x143   :  { %v471_v0 = vmul.f32 %v697_v24, %v435_v57  ;;  %v472_v38 = vmul.f32 %v697_v24, %v436_v58  ;;  %v486_v2 = vadd.f32 %v1042_v27, %v466_v45  ;;  %v487_v52 = vadd.f32 %v1042_v27, %v467_v61  ;;  %v455_v61 = vld [vmem:[%s1185_s4 + $0x48] sm:$0xff] }
 0x144   :  { %v488_v5 = vadd.f32 %v1042_v27, %v468_v62  ;;  %v441_v6 = vmul.f32 %v429_v49, %v991_v60  ;;  %v473_v56 = vmul.f32 %v697_v24, %v437_v28  ;;  %v489_v29 = vadd.f32 %v1042_v27, %v469_v30 }
 0x145   :  { %v442_v47 = vmul.f32 %v429_v49, %v997_v63  ;;  %v443_v8 = vmul.f32 %v429_v49, %v1003_v3  ;;  %v474_v51 = vmul.f32 %v697_v24, %v438_v48  ;;  %v490_v55 = vadd.f32 %v1042_v27, %v470_v31  ;;  %v446_v63 = vld [vmem:[%s1185_s4] sm:$0xff]  ;;  %v447_v3 = vld [vmem:[%s1185_s4 + $0x8] sm:$0xff]  ;;  %v456_v48 = vld [vmem:[%s1185_s4 + $0x50] sm:$0xff] }
 0x146   :  { %v444_v9 = vmul.f32 %v429_v49, %v1009_v7  ;;  %v475_v59 = vmul.f32 %v697_v24, %v439_v35  ;;  %v476_v11 = vmul.f32 %v697_v24, %v440_v15  ;;  %v491_v12 = vadd.f32 %v1042_v27, %v471_v0  ;;  %v448_v7 = vld [vmem:[%s1185_s4 + $0x10] sm:$0xff]  ;;  %v457_v0 = vld [vmem:[%s1185_s4 + $0x58] sm:$0xff] }
 0x147   :  { %v492_v13 = vadd.f32 %v1042_v27, %v472_v38  ;;  %v502_v1 = vmax.f32 %v486_v2, 0.0  ;;  %v503_v60 = vmax.f32 %v487_v52, 0.0  ;;  %v504_v14 = vmax.f32 %v488_v5, 0.0 }
 0x148   :  { %v445_v18 = vmul.f32 %v429_v49, %v1015_v10  ;;  %v477_v20 = vmul.f32 %v697_v24, %v441_v6  ;;  %v493_v21 = vadd.f32 %v1042_v27, %v473_v56  ;;  %v505_v4 = vmax.f32 %v489_v29, 0.0  ;;  %v449_v10 = vld [vmem:[%s1185_s4 + $0x18] sm:$0xff]  ;;  %v459_v6 = vld [vmem:[%s1185_s4 + $0x68] sm:$0xff] }
 0x149   :  { %v478_v22 = vmul.f32 %v697_v24, %v442_v47  ;;  %v479_v25 = vmul.f32 %v697_v24, %v443_v8  ;;  %v494_v26 = vadd.f32 %v1042_v27, %v474_v51  ;;  %v506_v33 = vmax.f32 %v490_v55, 0.0  ;;  %v460_v47 = vld [vmem:[%s1185_s4 + $0x70] sm:$0xff]  ;;  %v461_v55 = vld [vmem:[%s1185_s4 + $0x78] sm:$0xff] }
 0x14a   :  { %v480_v16 = vmul.f32 %v697_v24, %v444_v9  ;;  %v495_v17 = vadd.f32 %v1042_v27, %v475_v59  ;;  %v496_v19 = vadd.f32 %v1042_v27, %v476_v11  ;;  %v507_v36 = vmax.f32 %v491_v12, 0.0 }
 0x14b   :  { %v508_v23 = vmax.f32 %v492_v13, 0.0  ;;  %v518_v39 = vadd.f32 %v502_v1, %v446_v63  ;;  %v519_v42 = vadd.f32 %v503_v60, %v447_v3  ;;  %v520_v43 = vadd.f32 %v504_v14, %v448_v7 }
 0x14c   :  { %v481_v46 = vmul.f32 %v697_v24, %v445_v18  ;;  %v497_v32 = vadd.f32 %v1042_v27, %v477_v20  ;;  %v509_v49 = vmax.f32 %v493_v21, 0.0  ;;  %v521_v50 = vadd.f32 %v505_v4, %v449_v10  ;;  %v454_v24 = vld [vmem:[%s1185_s4 + $0x40] sm:$0xff] }
 0x14d   :  { %v498_v53 = vadd.f32 %v1042_v27, %v478_v22  ;;  %v510_v54 = vmax.f32 %v494_v26, 0.0  ;;  %v522_v40 = vadd.f32 %v506_v33, %v450_v34  ;;  %534 = vst.msk [vmem:[%s1186_s5] sm:$0xff] %vm181_vm0, %v518_v39  ;;  %v499_v57 = vadd.f32 %v1042_v27, %v479_v25 }
 0x14e   :  { %v511_v58 = vmax.f32 %v495_v17, 0.0  ;;  %v523_v45 = vadd.f32 %v507_v36, %v451_v37  ;;  %535 = vst.msk [vmem:[%s1186_s5 + $0x8] sm:$0xff] %vm181_vm0, %v519_v42  ;;  %v500_v62 = vadd.f32 %v1042_v27, %v480_v16  ;;  %v512_v28 = vmax.f32 %v496_v19, 0.0 }
 0x14f   :  { %v524_v30 = vadd.f32 %v508_v23, %v452_v44  ;;  %536 = vst.msk [vmem:[%s1186_s5 + $0x10] sm:$0xff] %vm181_vm0, %v520_v43  ;;  %v501_v31 = vadd.f32 %v1042_v27, %v481_v46  ;;  %v513_v35 = vmax.f32 %v497_v32, 0.0  ;;  %v525_v15 = vadd.f32 %v509_v49, %v453_v41  ;;  %v458_v27 = vld [vmem:[%s1185_s4 + $0x60] sm:$0xff] }
 0x150   :  { %537 = vst.msk [vmem:[%s1186_s5 + $0x18] sm:$0xff] %vm181_vm0, %v521_v50  ;;  %v514_v38 = vmax.f32 %v498_v53, 0.0  ;;  %v526_v2 = vadd.f32 %v510_v54, %v454_v24  ;;  %v515_v52 = vmax.f32 %v499_v57, 0.0  ;;  %v527_v5 = vadd.f32 %v511_v58, %v455_v61 }
 0x151   :  { %538 = vst.msk [vmem:[%s1186_s5 + $0x20] sm:$0xff] %vm181_vm0, %v522_v40  ;;  %v516_v56 = vmax.f32 %v500_v62, 0.0  ;;  %v528_v29 = vadd.f32 %v512_v28, %v456_v48  ;;  %v517_v8 = vmax.f32 %v501_v31, 0.0  ;;  %v529_v51 = vadd.f32 %v513_v35, %v457_v0 }
 0x152   :  { %539 = vst.msk [vmem:[%s1186_s5 + $0x28] sm:$0xff] %vm181_vm0, %v523_v45  ;;  %v530_v9 = vadd.f32 %v514_v38, %v458_v27  ;;  %v531_v59 = vadd.f32 %v515_v52, %v459_v6 }
 0x153   :  { %540 = vst.msk [vmem:[%s1186_s5 + $0x30] sm:$0xff] %vm181_vm0, %v524_v30  ;;  %v532_v11 = vadd.f32 %v516_v56, %v460_v47  ;;  %v533_v12 = vadd.f32 %v517_v8, %v461_v55 }
 0x154   :  { %541 = vst.msk [vmem:[%s1186_s5 + $0x38] sm:$0xff] %vm181_vm0, %v525_v15 }
 0x155   :  { %542 = vst.msk [vmem:[%s1186_s5 + $0x40] sm:$0xff] %vm181_vm0, %v526_v2 }
 0x156   :  { %543 = vst.msk [vmem:[%s1186_s5 + $0x48] sm:$0xff] %vm181_vm0, %v527_v5 }
 0x157   :  { %544 = vst.msk [vmem:[%s1186_s5 + $0x50] sm:$0xff] %vm181_vm0, %v528_v29 }
 0x158   :  { %545 = vst.msk [vmem:[%s1186_s5 + $0x58] sm:$0xff] %vm181_vm0, %v529_v51 }
 0x159   :  { %546 = vst.msk [vmem:[%s1186_s5 + $0x60] sm:$0xff] %vm181_vm0, %v530_v9 }
 0x15a   :  { %547 = vst.msk [vmem:[%s1186_s5 + $0x68] sm:$0xff] %vm181_vm0, %v531_v59 }
 0x15b   :  { %548 = vst.msk [vmem:[%s1186_s5 + $0x70] sm:$0xff] %vm181_vm0, %v532_v11 }
 0x15c   :  { %549 = vst.msk [vmem:[%s1186_s5 + $0x78] sm:$0xff] %vm181_vm0, %v533_v12 }

// kernel: resnet2d_forward.10
= control target key start
LH: loop header
LB: loop body
LE: loop exit
PB: predicated region body
PF: predicated region fallthrough
CT: control target
= control target key end

     0   :  { %vm442_vm0 = vcmask 130048   ;;  %vm877_vm1 = vcmask 64512   ;;  %s3801_s1 = inlined_call_operand.vmem [shape: bf16[144,8], index: 1, kind: input, shape index: {}]   ;;  %s3802_s0 = inlined_call_operand.vmem [shape: bf16[512,144], index: 0, kind: input, shape index: {}]   ;;  %s3803_s2 = inlined_call_operand.vmem [shape: f32[1,8], index: 2, kind: input, shape index: {}]   ;;  %s3804_s3 = inlined_call_operand.vmem [shape: f32[1,8], index: 3, kind: input, shape index: {}]   ;;  %s3805_s4 = inlined_call_operand.vmem [shape: f32[512,8], index: 4, kind: output, shape index: {}]  }
   0x1   :  { %v2019_v0 = vld [vmem:[%s3801_s1 + $0x38] sm:$0xff]  ;;  %v2020_v1 = vld [vmem:[%s3801_s1 + $0x40] sm:$0xff]  ;;  %v1628_v3 = vld [vmem:[%s3802_s0 + $0x8] sm:$0xf0] }
   0x2   :  { %v1948_v2 = vld [vmem:[%s3802_s0 + $0x4] sm:$0xf]  ;;  %539 = vmatpush.bf16.msra.mxu0 %v2019_v0  ;;  %715 = vmatpush.bf16.msra.mxu1 %v2020_v1  ;;  %v2018_v5 = vld [vmem:[%s3801_s1 + $0x30] sm:$0xff]  ;;  %v2017_v6 = vld [vmem:[%s3801_s1 + $0x28] sm:$0xff] }
   0x3   :  { %v1631_v4 = vor.u32 %v1948_v2, %v1628_v3  ;;  %2021 = vmatpush.bf16.msra.mxu2 %v2019_v0  ;;  %2029 = vmatpush.bf16.msra.mxu3 %v2020_v1  ;;  %v2016_v7 = vld [vmem:[%s3801_s1 + $0x20] sm:$0xff]  ;;  %v2015_v8 = vld [vmem:[%s3801_s1 + $0x18] sm:$0xff]  ;;  %v1950_v9 = vld [vmem:[%s3802_s0 + $0x14] sm:$0xf] }
   0x4   :  { %v1636_v10 = vld [vmem:[%s3802_s0 + $0x18] sm:$0xf0]  ;;  %v2014_v12 = vld [vmem:[%s3801_s1 + $0x10] sm:$0xff]  ;;  %v2013_v13 = vld [vmem:[%s3801_s1 + $0x8] sm:$0xff] }
   0x5   :  { %1916 = vmatmul.msk.bf16.vlgmr.msra.gmra.mxu1 %vm442_vm0, %v1631_v4  ;;  %v1639_v11 = vor.u32 %v1950_v9, %v1636_v10  ;;  %v2012_v14 = vld [vmem:[%s3801_s1] sm:$0xff]  ;;  %v1949_v16 = vld [vmem:[%s3802_s0 + $0x4] sm:$0xf0]  ;;  %v1644_v19 = vld [vmem:[%s3802_s0 + $0x28] sm:$0xf0] }
   0x6   :  { %540 = vmatpush.bf16.msra.mxu0 %v2018_v5  ;;  %v1626_v15 = vld [vmem:[%s3802_s0] sm:$0xf]  ;;  %v1952_v18 = vld [vmem:[%s3802_s0 + $0x24] sm:$0xf]  ;;  %v1634_v21 = vld [vmem:[%s3802_s0 + $0x10] sm:$0xf] }
   0x7   :  { %2022 = vmatpush.bf16.msra.mxu2 %v2018_v5  ;;  %v1627_v17 = vor.u32 %v1949_v16, %v1626_v15  ;;  %v1647_v20 = vor.u32 %v1952_v18, %v1644_v19  ;;  %v1951_v22 = vld [vmem:[%s3802_s0 + $0x14] sm:$0xf0]  ;;  %v1954_v24 = vld [vmem:[%s3802_s0 + $0x34] sm:$0xf]  ;;  %v1652_v25 = vld [vmem:[%s3802_s0 + $0x38] sm:$0xf0] }
   0x8   :  { %v1635_v23 = vor.u32 %v1951_v22, %v1634_v21  ;;  %v1754_v26 = vld [vmem:[%s3802_s0 + $0x100] sm:$0xf]  ;;  %v1981_v27 = vld [vmem:[%s3802_s0 + $0x104] sm:$0xf0]  ;;  %v1655_v28 = vor.u32 %v1954_v24, %v1652_v25  ;;  %v1956_v33 = vld [vmem:[%s3802_s0 + $0x44] sm:$0xf] }
   0x9   :  { %v1755_v29 = vor.u32 %v1981_v27, %v1754_v26  ;;  %v1642_v30 = vld [vmem:[%s3802_s0 + $0x20] sm:$0xf]  ;;  %v1953_v31 = vld [vmem:[%s3802_s0 + $0x24] sm:$0xf0]  ;;  %v1660_v34 = vld [vmem:[%s3802_s0 + $0x48] sm:$0xf0] }
   0xa   :  { %541 = vmatpush.bf16.msra.mxu0 %v2017_v6  ;;  %v1643_v32 = vor.u32 %v1953_v31, %v1642_v30  ;;  %v1762_v35 = vld [vmem:[%s3802_s0 + $0x110] sm:$0xf]  ;;  %v1983_v36 = vld [vmem:[%s3802_s0 + $0x114] sm:$0xf0]  ;;  %v1982_v37 = vld [vmem:[%s3802_s0 + $0x114] sm:$0xf]  ;;  %v1663_v38 = vor.u32 %v1956_v33, %v1660_v34 }
   0xb   :  { %2023 = vmatpush.bf16.msra.mxu2 %v2017_v6  ;;  %v1763_v39 = vor.u32 %v1983_v36, %v1762_v35  ;;  %v1764_v40 = vld [vmem:[%s3802_s0 + $0x118] sm:$0xf0]  ;;  %v1650_v42 = vld [vmem:[%s3802_s0 + $0x30] sm:$0xf]  ;;  %v1955_v43 = vld [vmem:[%s3802_s0 + $0x34] sm:$0xf0] }
   0xc   :  { %v1767_v41 = vor.u32 %v1982_v37, %v1764_v40  ;;  %v1651_v44 = vor.u32 %v1955_v43, %v1650_v42  ;;  %v1958_v45 = vld [vmem:[%s3802_s0 + $0x54] sm:$0xf]  ;;  %v1668_v46 = vld [vmem:[%s3802_s0 + $0x58] sm:$0xf0]  ;;  %v1770_v47 = vld [vmem:[%s3802_s0 + $0x120] sm:$0xf] }
   0xd   :  { %v1985_v48 = vld [vmem:[%s3802_s0 + $0x124] sm:$0xf0]  ;;  %v1984_v49 = vld [vmem:[%s3802_s0 + $0x124] sm:$0xf]  ;;  %v1671_v50 = vor.u32 %v1958_v45, %v1668_v46  ;;  %v1772_v52 = vld [vmem:[%s3802_s0 + $0x128] sm:$0xf0] }
   0xe   :  { %542 = vmatpush.bf16.msra.mxu0 %v2016_v7  ;;  %1933 = vmatmul.msk.bf16.vlgmr.msra.gmra.mxu3 %vm442_vm0, %v1767_v41  ;;  %v1771_v51 = vor.u32 %v1985_v48, %v1770_v47  ;;  %v1775_v53 = vor.u32 %v1984_v49, %v1772_v52  ;;  %v1658_v54 = vld [vmem:[%s3802_s0 + $0x40] sm:$0xf]  ;;  %v1957_v55 = vld [vmem:[%s3802_s0 + $0x44] sm:$0xf0]  ;;  %v1960_v57 = vld [vmem:[%s3802_s0 + $0x64] sm:$0xf] }
   0xf   :  { %2024 = vmatpush.bf16.msra.mxu2 %v2016_v7  ;;  %v1659_v56 = vor.u32 %v1957_v55, %v1658_v54  ;;  %v1676_v58 = vld [vmem:[%s3802_s0 + $0x68] sm:$0xf0]  ;;  %v1778_v59 = vld [vmem:[%s3802_s0 + $0x130] sm:$0xf]  ;;  %v1987_v60 = vld [vmem:[%s3802_s0 + $0x134] sm:$0xf0] }
  0x10   :  { %v1986_v61 = vld [vmem:[%s3802_s0 + $0x134] sm:$0xf]  ;;  %v1679_v62 = vor.u32 %v1960_v57, %v1676_v58  ;;  %v1779_v63 = vor.u32 %v1987_v60, %v1778_v59  ;;  %v1780_v0 = vld [vmem:[%s3802_s0 + $0x138] sm:$0xf0]  ;;  %v1666_v2 = vld [vmem:[%s3802_s0 + $0x50] sm:$0xf] }
  0x11   :  { %v1783_v1 = vor.u32 %v1986_v61, %v1780_v0  ;;  %v1959_v3 = vld [vmem:[%s3802_s0 + $0x54] sm:$0xf0]  ;;  %v1962_v5 = vld [vmem:[%s3802_s0 + $0x74] sm:$0xf]  ;;  %v1684_v6 = vld [vmem:[%s3802_s0 + $0x78] sm:$0xf0] }
  0x12   :  { %543 = vmatpush.bf16.msra.mxu0 %v2015_v8  ;;  %v1667_v4 = vor.u32 %v1959_v3, %v1666_v2  ;;  %v1786_v7 = vld [vmem:[%s3802_s0 + $0x140] sm:$0xf]  ;;  %v1988_v9 = vld [vmem:[%s3802_s0 + $0x144] sm:$0xf]  ;;  %v1687_v10 = vor.u32 %v1962_v5, %v1684_v6  ;;  %v1961_v15 = vld [vmem:[%s3802_s0 + $0x64] sm:$0xf0] }
  0x13   :  { %2025 = vmatpush.bf16.msra.mxu2 %v2015_v8  ;;  %v1989_v8 = vld [vmem:[%s3802_s0 + $0x144] sm:$0xf0]  ;;  %v1692_v18 = vld [vmem:[%s3802_s0 + $0x88] sm:$0xf0]  ;;  %v1794_v19 = vld [vmem:[%s3802_s0 + $0x150] sm:$0xf] }
  0x14   :  { %v1990_v21 = vld [vmem:[%s3802_s0 + $0x154] sm:$0xf]  ;;  %v1796_v24 = vld [vmem:[%s3802_s0 + $0x158] sm:$0xf0]  ;;  %v1802_v33 = vld [vmem:[%s3802_s0 + $0x160] sm:$0xf] }
  0x15   :  { %1917 = vmatmul.msk.bf16.gmra.mxu1 %vm442_vm0, %v1639_v11  ;;  %v1787_v11 = vor.u32 %v1989_v8, %v1786_v7  ;;  %v1799_v26 = vor.u32 %v1990_v21, %v1796_v24  ;;  %v1966_v31 = vld [vmem:[%s3802_s0 + $0x94] sm:$0xf]  ;;  %v1993_v34 = vld [vmem:[%s3802_s0 + $0x164] sm:$0xf0]  ;;  %v1992_v35 = vld [vmem:[%s3802_s0 + $0x164] sm:$0xf] }
  0x16   :  { %544 = vmatpush.bf16.msra.mxu0 %v2014_v12  ;;  %v1803_v37 = vor.u32 %v1993_v34, %v1802_v33  ;;  %v1690_v42 = vld [vmem:[%s3802_s0 + $0x80] sm:$0xf]  ;;  %v1965_v43 = vld [vmem:[%s3802_s0 + $0x84] sm:$0xf0]  ;;  %v1968_v46 = vld [vmem:[%s3802_s0 + $0xa4] sm:$0xf] }
  0x17   :  { %2026 = vmatpush.bf16.msra.mxu2 %v2014_v12  ;;  %v1788_v12 = vld [vmem:[%s3802_s0 + $0x148] sm:$0xf0]  ;;  %v1810_v49 = vld [vmem:[%s3802_s0 + $0x170] sm:$0xf]  ;;  %v1812_v54 = vld [vmem:[%s3802_s0 + $0x178] sm:$0xf0] }
  0x18   :  { %v1708_v47 = vld [vmem:[%s3802_s0 + $0xa8] sm:$0xf0]  ;;  %v1698_v60 = vld [vmem:[%s3802_s0 + $0x90] sm:$0xf]  ;;  %v1967_v61 = vld [vmem:[%s3802_s0 + $0x94] sm:$0xf0] }
  0x19   :  { %v1711_v52 = vor.u32 %v1968_v46, %v1708_v47  ;;  %v1970_v0 = vld [vmem:[%s3802_s0 + $0xb4] sm:$0xf]  ;;  %v1818_v3 = vld [vmem:[%s3802_s0 + $0x180] sm:$0xf]  ;;  %v1996_v5 = vld [vmem:[%s3802_s0 + $0x184] sm:$0xf] }
  0x1a   :  { %545 = vmatpush.bf16.msra.mxu0 %v2013_v13  ;;  %v1820_v8 = vld [vmem:[%s3802_s0 + $0x188] sm:$0xf0]  ;;  %v1999_v24 = vld [vmem:[%s3802_s0 + $0x194] sm:$0xf0]  ;;  %v1834_v47 = vld [vmem:[%s3802_s0 + $0x1a0] sm:$0xf] }
  0x1b   :  { %2027 = vmatpush.bf16.msra.mxu2 %v2013_v13  ;;  %v1791_v13 = vor.u32 %v1988_v9, %v1788_v12 }
  0x1e   :  { %546 = vmatpush.bf16.msra.mxu0 %v2012_v14  ;;  %1934 = vmatmul.msk.bf16.gmra.mxu3 %vm442_vm0, %v1775_v53 }
  0x1f   :  { %2028 = vmatpush.bf16.msra.mxu2 %v2012_v14  ;;  %v1674_v14 = vld [vmem:[%s3802_s0 + $0x60] sm:$0xf] }
  0x20   :  { %v1675_v16 = vor.u32 %v1961_v15, %v1674_v14  ;;  %v1706_v15 = vld [vmem:[%s3802_s0 + $0xa0] sm:$0xf] }
  0x21   :  { %547 = vmatmul.bf16.vlgmr.msra.gmra.mxu0 %v1627_v17  ;;  %v1964_v17 = vld [vmem:[%s3802_s0 + $0x84] sm:$0xf] }
  0x22   :  { %627 = vmatmul.bf16.vlgmr.msra.gmra.mxu2 %v1755_v29  ;;  %v1695_v22 = vor.u32 %v1964_v17, %v1692_v18  ;;  %v1963_v29 = vld [vmem:[%s3802_s0 + $0x74] sm:$0xf0] }
  0x25   :  { %1918 = vmatmul.msk.bf16.gmra.mxu1 %vm442_vm0, %v1647_v20  ;;  %v1991_v20 = vld [vmem:[%s3802_s0 + $0x154] sm:$0xf0] }
  0x2e   :  { %1935 = vmatmul.msk.bf16.gmra.mxu3 %vm442_vm0, %v1783_v1  ;;  %v1716_v1 = vld [vmem:[%s3802_s0 + $0xb8] sm:$0xf0] }
  0x2f   :  { %v1719_v6 = vor.u32 %v1970_v0, %v1716_v1 }
  0x31   :  { %552 = vmatmul.bf16.gmra.mxu0 %v1635_v23  ;;  %v1795_v23 = vor.u32 %v1991_v20, %v1794_v19  ;;  %v1972_v19 = vld [vmem:[%s3802_s0 + $0xc4] sm:$0xf]  ;;  %v1724_v20 = vld [vmem:[%s3802_s0 + $0xc8] sm:$0xf0] }
  0x32   :  { %632 = vmatmul.bf16.gmra.mxu2 %v1763_v39 }
  0x35   :  { %1919 = vmatmul.msk.bf16.gmra.mxu1 %vm442_vm0, %v1655_v28  ;;  %v1682_v28 = vld [vmem:[%s3802_s0 + $0x70] sm:$0xf] }
  0x36   :  { %v1683_v30 = vor.u32 %v1963_v29, %v1682_v28  ;;  %v1828_v28 = vld [vmem:[%s3802_s0 + $0x198] sm:$0xf0] }
  0x3e   :  { %1936 = vmatmul.msk.bf16.gmra.mxu3 %vm442_vm0, %v1791_v13 }
  0x41   :  { %557 = vmatmul.bf16.gmra.mxu0 %v1643_v32  ;;  %v1700_v32 = vld [vmem:[%s3802_s0 + $0x98] sm:$0xf0] }
  0x42   :  { %637 = vmatmul.bf16.gmra.mxu2 %v1771_v51  ;;  %v1703_v36 = vor.u32 %v1966_v31, %v1700_v32  ;;  %v1994_v51 = vld [vmem:[%s3802_s0 + $0x174] sm:$0xf] }
  0x45   :  { %1920 = vmatmul.msk.bf16.gmra.mxu1 %vm442_vm0, %v1663_v38  ;;  %v1804_v38 = vld [vmem:[%s3802_s0 + $0x168] sm:$0xf0] }
  0x46   :  { %v1807_v40 = vor.u32 %v1992_v35, %v1804_v38 }
  0x4e   :  { %1937 = vmatmul.msk.bf16.gmra.mxu3 %vm442_vm0, %v1799_v26  ;;  %v1727_v26 = vor.u32 %v1972_v19, %v1724_v20 }
  0x51   :  { %562 = vmatmul.bf16.gmra.mxu0 %v1651_v44  ;;  %v1691_v44 = vor.u32 %v1965_v43, %v1690_v42  ;;  %v1732_v42 = vld [vmem:[%s3802_s0 + $0xd8] sm:$0xf0] }
  0x52   :  { %642 = vmatmul.bf16.gmra.mxu2 %v1779_v63 }
  0x55   :  { %1921 = vmatmul.msk.bf16.gmra.mxu1 %vm442_vm0, %v1671_v50  ;;  %v1995_v50 = vld [vmem:[%s3802_s0 + $0x174] sm:$0xf0] }
  0x56   :  { %v1811_v53 = vor.u32 %v1995_v50, %v1810_v49  ;;  %v2001_v49 = vld [vmem:[%s3802_s0 + $0x1a4] sm:$0xf0]  ;;  %v2000_v50 = vld [vmem:[%s3802_s0 + $0x1a4] sm:$0xf] }
  0x5e   :  { %1938 = vmatmul.msk.bf16.gmra.mxu3 %vm442_vm0, %v1807_v40 }
  0x61   :  { %567 = vmatmul.bf16.gmra.mxu0 %v1659_v56  ;;  %v1815_v56 = vor.u32 %v1994_v51, %v1812_v54 }
  0x62   :  { %647 = vmatmul.bf16.gmra.mxu2 %v1787_v11 }
  0x65   :  { %1922 = vmatmul.msk.bf16.gmra.mxu1 %vm442_vm0, %v1679_v62  ;;  %v1699_v62 = vor.u32 %v1967_v61, %v1698_v60 }
  0x6e   :  { %1939 = vmatmul.msk.bf16.gmra.mxu3 %vm442_vm0, %v1815_v56 }
  0x71   :  { %572 = vmatmul.bf16.gmra.mxu0 %v1667_v4  ;;  %v1997_v4 = vld [vmem:[%s3802_s0 + $0x184] sm:$0xf0] }
  0x72   :  { %652 = vmatmul.bf16.gmra.mxu2 %v1795_v23  ;;  %v1819_v7 = vor.u32 %v1997_v4, %v1818_v3  ;;  %v1826_v23 = vld [vmem:[%s3802_s0 + $0x190] sm:$0xf]  ;;  %v1976_v4 = vld [vmem:[%s3802_s0 + $0xe4] sm:$0xf] }
  0x75   :  { %1923 = vmatmul.msk.bf16.gmra.mxu1 %vm442_vm0, %v1687_v10  ;;  %v1823_v10 = vor.u32 %v1996_v5, %v1820_v8  ;;  %v1740_v5 = vld [vmem:[%s3802_s0 + $0xe8] sm:$0xf0] }
  0x7e   :  { %1940 = vmatmul.msk.bf16.gmra.mxu3 %vm442_vm0, %v1823_v10  ;;  %v1842_v10 = vld [vmem:[%s3802_s0 + $0x1b0] sm:$0xf] }
  0x81   :  { %577 = vmatmul.bf16.gmra.mxu0 %v1675_v16  ;;  %v1969_v16 = vld [vmem:[%s3802_s0 + $0xa4] sm:$0xf0] }
  0x82   :  { %v717_v25 = vpop.f32.mrf.mxu1  ;;  %657 = vmatmul.bf16.gmra.mxu2 %v1803_v37  ;;  %v1707_v17 = vor.u32 %v1969_v16, %v1706_v15  ;;  %v1971_v37 = vld [vmem:[%s3802_s0 + $0xb4] sm:$0xf0]  ;;  %v1743_v15 = vor.u32 %v1976_v4, %v1740_v5 }
  0x85   :  { %1924 = vmatmul.msk.bf16.gmra.mxu1 %vm442_vm0, %v1695_v22 }
  0x8a   :  { %v719_v27 = vpop.f32.mrf.mxu1 }
  0x91   :  { %582 = vmatmul.bf16.gmra.mxu0 %v1683_v30  ;;  %v802_v34 = vpop.f32.mrf.mxu3 }
  0x92   :  { %v722_v39 = vpop.f32.mrf.mxu1  ;;  %662 = vmatmul.bf16.gmra.mxu2 %v1811_v53  ;;  %v1836_v53 = vld [vmem:[%s3802_s0 + $0x1a8] sm:$0xf0] }
  0x95   :  { %1925 = vmatmul.msk.bf16.gmra.mxu1 %vm442_vm0, %v1703_v36  ;;  %v1714_v36 = vld [vmem:[%s3802_s0 + $0xb0] sm:$0xf] }
  0x9a   :  { %v724_v41 = vpop.f32.mrf.mxu1 }
  0x9e   :  { %v548_v45 = vpop.f32.mrf.mxu0 }
  0x9f   :  { %v2304_v48 = vadd.f32 %v717_v25, %v548_v45  ;;  %v1998_v25 = vld [vmem:[%s3802_s0 + $0x194] sm:$0xf]  ;;  %v804_v45 = vpop.f32.mrf.mxu3 }
  0xa0   :  { %v1831_v30 = vor.u32 %v1998_v25, %v1828_v28  ;;  %v1975_v28 = vld [vmem:[%s3802_s0 + $0xd4] sm:$0xf0] }
  0xa1   :  { %587 = vmatmul.bf16.gmra.mxu0 %v1691_v44 }
  0xa2   :  { %v727_v55 = vpop.f32.mrf.mxu1  ;;  %667 = vmatmul.bf16.gmra.mxu2 %v1819_v7  ;;  %1941 = vmatmul.msk.bf16.gmra.mxu3 %vm442_vm0, %v1831_v30 }
  0xa5   :  { %1926 = vmatmul.msk.bf16.gmra.mxu1 %vm442_vm0, %v1711_v52  ;;  %v2350_v12 = vpop.f32.mrf.mxu2  ;;  %v1835_v52 = vor.u32 %v2001_v49, %v1834_v47  ;;  %v1852_v47 = vld [vmem:[%s3802_s0 + $0x1c8] sm:$0xf0] }
  0xa6   :  { %v550_v57 = vpop.f32.mrf.mxu0 }
  0xa7   :  { %v2320_v58 = vadd.f32 %v719_v27, %v550_v57  ;;  %v1827_v27 = vor.u32 %v1999_v24, %v1826_v23  ;;  %v807_v60 = vpop.f32.mrf.mxu3 }
  0xa9   :  { %3846 = vst [vmem:[#allocation2_spill] sm:$0xff] %v2320_v58 }
  0xaa   :  { %v729_v59 = vpop.f32.mrf.mxu1 }
  0xad   :  { %v2366_v21 = vpop.f32.mrf.mxu2 }
  0xae   :  { %v553_v63 = vpop.f32.mrf.mxu0 }
  0xaf   :  { %v2334_v2 = vadd.f32 %v722_v39, %v553_v63  ;;  %v1715_v39 = vor.u32 %v1971_v37, %v1714_v36  ;;  %v1973_v63 = vld [vmem:[%s3802_s0 + $0xc4] sm:$0xf0]  ;;  %v809_v8 = vpop.f32.mrf.mxu3 }
  0xb1   :  { %3847 = vst [vmem:[#allocation3_spill] sm:$0xff] %v2334_v2  ;;  %592 = vmatmul.bf16.gmra.mxu0 %v1699_v62  ;;  %v1722_v62 = vld [vmem:[%s3802_s0 + $0xc0] sm:$0xf] }
  0xb2   :  { %v732_v9 = vpop.f32.mrf.mxu1  ;;  %672 = vmatmul.bf16.gmra.mxu2 %v1827_v27  ;;  %v1723_v1 = vor.u32 %v1973_v63, %v1722_v62  ;;  %v1730_v27 = vld [vmem:[%s3802_s0 + $0xd0] sm:$0xf] }
  0xb3   :  { %v1731_v30 = vor.u32 %v1975_v28, %v1730_v27  ;;  %v1746_v28 = vld [vmem:[%s3802_s0 + $0xf0] sm:$0xf] }
  0xb5   :  { %1927 = vmatmul.msk.bf16.gmra.mxu1 %vm442_vm0, %v1719_v6  ;;  %v633_v32 = vpop.f32.mrf.mxu2 }
  0xb6   :  { %v555_v11 = vpop.f32.mrf.mxu0  ;;  %v2392_v38 = vadd.f32 %v802_v34, %v633_v32  ;;  %v1978_v32 = vld [vmem:[%s3802_s0 + $0xf4] sm:$0xf]  ;;  %v1748_v34 = vld [vmem:[%s3802_s0 + $0xf8] sm:$0xf0] }
  0xb7   :  { %v2352_v13 = vadd.f32 %v724_v41, %v555_v11  ;;  %v1974_v41 = vld [vmem:[%s3802_s0 + $0xd4] sm:$0xf]  ;;  %v2003_v11 = vld [vmem:[%s3802_s0 + $0x1b4] sm:$0xf0]  ;;  %v812_v25 = vpop.f32.mrf.mxu3 }
  0xb8   :  { %v1735_v51 = vor.u32 %v1974_v41, %v1732_v42  ;;  %v1843_v16 = vor.u32 %v2003_v11, %v1842_v10  ;;  %v2005_v41 = vld [vmem:[%s3802_s0 + $0x1c4] sm:$0xf0]  ;;  %v2004_v42 = vld [vmem:[%s3802_s0 + $0x1c4] sm:$0xf]  ;;  %v2007_v10 = vld [vmem:[%s3802_s0 + $0x1d4] sm:$0xf0] }
  0xb9   :  { %3848 = vst [vmem:[#allocation4_spill] sm:$0xff] %v2352_v13  ;;  %v2006_v11 = vld [vmem:[%s3802_s0 + $0x1d4] sm:$0xf] }
  0xba   :  { %v734_v14 = vpop.f32.mrf.mxu1 }
  0xbd   :  { %v635_v43 = vpop.f32.mrf.mxu2 }
  0xbe   :  { %v558_v18 = vpop.f32.mrf.mxu0  ;;  %v2402_v46 = vadd.f32 %v804_v45, %v635_v43  ;;  %v1751_v43 = vor.u32 %v1978_v32, %v1748_v34 }
  0xbf   :  { %v2368_v22 = vadd.f32 %v727_v55, %v558_v18  ;;  %v1839_v55 = vor.u32 %v2000_v50, %v1836_v53  ;;  %v814_v37 = vpop.f32.mrf.mxu3  ;;  %v1855_v50 = vor.u32 %v2004_v42, %v1852_v47  ;;  %v2009_v42 = vld [vmem:[%s3802_s0 + $0x1e4] sm:$0xf0]  ;;  %v1868_v47 = vld [vmem:[%s3802_s0 + $0x1e8] sm:$0xf0] }
  0xc1   :  { %597 = vmatmul.bf16.gmra.mxu0 %v1707_v17  ;;  %1942 = vmatmul.msk.bf16.gmra.mxu3 %vm442_vm0, %v1839_v55  ;;  %v1844_v17 = vld [vmem:[%s3802_s0 + $0x1b8] sm:$0xf0] }
  0xc2   :  { %v737_v29 = vpop.f32.mrf.mxu1  ;;  %677 = vmatmul.bf16.gmra.mxu2 %v1835_v52 }
  0xc5   :  { %1928 = vmatmul.msk.bf16.gmra.mxu1 %vm442_vm0, %v1727_v26  ;;  %v638_v57 = vpop.f32.mrf.mxu2 }
  0xc6   :  { %v560_v31 = vpop.f32.mrf.mxu0  ;;  %v2426_v0 = vadd.f32 %v807_v60, %v638_v57  ;;  %v1977_v57 = vld [vmem:[%s3802_s0 + $0xe4] sm:$0xf0] }
  0xc7   :  { %v2384_v33 = vadd.f32 %v729_v59, %v560_v31 }
  0xc9   :  { %3849 = vst [vmem:[#allocation5_spill] sm:$0xff] %v2384_v33 }
  0xca   :  { %v739_v35 = vpop.f32.mrf.mxu1 }
  0xcd   :  { %v640_v6 = vpop.f32.mrf.mxu2 }
  0xce   :  { %v563_v40 = vpop.f32.mrf.mxu0 }
  0xcf   :  { %v2400_v44 = vadd.f32 %v732_v9, %v563_v40  ;;  %v2436_v9 = vadd.f32 %v809_v8, %v640_v6  ;;  %v1850_v40 = vld [vmem:[%s3802_s0 + $0x1c0] sm:$0xf]  ;;  %v1858_v8 = vld [vmem:[%s3802_s0 + $0x1d0] sm:$0xf] }
  0xd0   :  { %v1851_v45 = vor.u32 %v2005_v41, %v1850_v40  ;;  %v1866_v41 = vld [vmem:[%s3802_s0 + $0x1e0] sm:$0xf] }
  0xd1   :  { %3850 = vst [vmem:[#allocation6_spill] sm:$0xff] %v2400_v44  ;;  %602 = vmatmul.bf16.gmra.mxu0 %v1715_v39 }
  0xd2   :  { %v742_v54 = vpop.f32.mrf.mxu1  ;;  %3851 = vst [vmem:[#allocation7_spill] sm:$0xff] %v2436_v9  ;;  %682 = vmatmul.bf16.gmra.mxu2 %v1843_v16  ;;  %v1860_v16 = vld [vmem:[%s3802_s0 + $0x1d8] sm:$0xf0] }
  0xd5   :  { %1929 = vmatmul.msk.bf16.gmra.mxu1 %vm442_vm0, %v1735_v51  ;;  %v643_v23 = vpop.f32.mrf.mxu2 }
  0xd6   :  { %v565_v56 = vpop.f32.mrf.mxu0 }
  0xd7   :  { %v2418_v59 = vadd.f32 %v734_v14, %v565_v56  ;;  %v2002_v14 = vld [vmem:[%s3802_s0 + $0x1b4] sm:$0xf]  ;;  %v1738_v56 = vld [vmem:[%s3802_s0 + $0xe0] sm:$0xf] }
  0xd8   :  { %v1847_v19 = vor.u32 %v2002_v14, %v1844_v17  ;;  %v1739_v62 = vor.u32 %v1977_v57, %v1738_v56 }
  0xda   :  { %v744_v61 = vpop.f32.mrf.mxu1  ;;  %1943 = vmatmul.msk.bf16.gmra.mxu3 %vm442_vm0, %v1847_v19 }
  0xde   :  { %v568_v3 = vpop.f32.mrf.mxu0 }
  0xdf   :  { %v2434_v7 = vadd.f32 %v737_v29, %v568_v3  ;;  %v2460_v29 = vadd.f32 %v812_v25, %v643_v23 }
  0xe1   :  { %607 = vmatmul.bf16.gmra.mxu0 %v1723_v1  ;;  %3852 = vst [vmem:[#allocation8_spill] sm:$0xff] %v2460_v29  ;;  %v1980_v1 = vld [vmem:[%s3802_s0 + $0x104] sm:$0xf] }
  0xe2   :  { %v747_v18 = vpop.f32.mrf.mxu1  ;;  %687 = vmatmul.bf16.gmra.mxu2 %v1851_v45  ;;  %v1867_v45 = vor.u32 %v2009_v42, %v1866_v41 }
  0xe5   :  { %1930 = vmatmul.msk.bf16.gmra.mxu1 %vm442_vm0, %v1743_v15  ;;  %v1859_v15 = vor.u32 %v2007_v10, %v1858_v8  ;;  %v1874_v8 = vld [vmem:[%s3802_s0 + $0x1f0] sm:$0xf]  ;;  %v2010_v10 = vld [vmem:[%s3802_s0 + $0x1f4] sm:$0xf] }
  0xe6   :  { %v570_v20 = vpop.f32.mrf.mxu0 }
  0xe7   :  { %v2452_v24 = vadd.f32 %v739_v35, %v570_v20  ;;  %v645_v35 = vpop.f32.mrf.mxu2 }
  0xe8   :  { %v2470_v39 = vadd.f32 %v814_v37, %v645_v35 }
  0xea   :  { %v749_v26 = vpop.f32.mrf.mxu1  ;;  %1944 = vmatmul.msk.bf16.gmra.mxu3 %vm442_vm0, %v1855_v50 }
  0xee   :  { %v573_v31 = vpop.f32.mrf.mxu0 }
  0xef   :  { %v2468_v36 = vadd.f32 %v742_v54, %v573_v31  ;;  %v648_v52 = vpop.f32.mrf.mxu2  ;;  %v817_v54 = vpop.f32.mrf.mxu3 }
  0xf0   :  { %v2494_v60 = vadd.f32 %v817_v54, %v648_v52 }
  0xf1   :  { %3853 = vst [vmem:[#allocation9_spill] sm:$0xff] %v2468_v36  ;;  %612 = vmatmul.bf16.gmra.mxu0 %v1731_v30  ;;  %v1979_v30 = vld [vmem:[%s3802_s0 + $0xf4] sm:$0xf0] }
  0xf2   :  { %v752_v49 = vpop.f32.mrf.mxu1  ;;  %692 = vmatmul.bf16.gmra.mxu2 %v1859_v15  ;;  %v1747_v32 = vor.u32 %v1979_v30, %v1746_v28 }
  0xf5   :  { %1931 = vmatmul.msk.bf16.gmra.mxu1 %vm442_vm0, %v1751_v43  ;;  %v2008_v43 = vld [vmem:[%s3802_s0 + $0x1e4] sm:$0xf] }
  0xf6   :  { %v575_v51 = vpop.f32.mrf.mxu0  ;;  %v1871_v50 = vor.u32 %v2008_v43, %v1868_v47 }
  0xf7   :  { %v2486_v53 = vadd.f32 %v744_v61, %v575_v51  ;;  %v1756_v61 = vld [vmem:[%s3802_s0 + $0x108] sm:$0xf0]  ;;  %v650_v3 = vpop.f32.mrf.mxu2  ;;  %v819_v5 = vpop.f32.mrf.mxu3 }
  0xf8   :  { %v2504_v6 = vadd.f32 %v819_v5, %v650_v3  ;;  %v1759_v14 = vor.u32 %v1980_v1, %v1756_v61 }
  0xf9   :  { %3854 = vst [vmem:[#allocation10_spill] sm:$0xff] %v2486_v53 }
  0xfa   :  { %v754_v55 = vpop.f32.mrf.mxu1 }
  0xfe   :  { %v578_v63 = vpop.f32.mrf.mxu0 }
  0xff   :  { %v2502_v4 = vadd.f32 %v747_v18, %v578_v63  ;;  %v1863_v18 = vor.u32 %v2006_v11, %v1860_v16  ;;  %v653_v20 = vpop.f32.mrf.mxu2  ;;  %v822_v25 = vpop.f32.mrf.mxu3 }
 0x100   :  { %v2528_v31 = vadd.f32 %v822_v25, %v653_v20 }
 0x101   :  { %617 = vmatmul.bf16.gmra.mxu0 %v1739_v62  ;;  %1945 = vmatmul.msk.bf16.gmra.mxu3 %vm442_vm0, %v1863_v18 }
 0x102   :  { %v757_v17 = vpop.f32.mrf.mxu1  ;;  %3856 = vst [vmem:[#allocation12_spill] sm:$0xff] %v2528_v31  ;;  %697 = vmatmul.bf16.gmra.mxu2 %v1867_v45 }
 0x105   :  { %1932 = vmatmul.msk.bf16.gmra.mxu1 %vm442_vm0, %v1759_v14  ;;  %v1876_v14 = vld [vmem:[%s3802_s0 + $0x1f8] sm:$0xf0] }
 0x106   :  { %v580_v19 = vpop.f32.mrf.mxu0  ;;  %v1879_v16 = vor.u32 %v2010_v10, %v1876_v14 }
 0x107   :  { %v2520_v23 = vadd.f32 %v749_v26, %v580_v19  ;;  %v655_v35 = vpop.f32.mrf.mxu2  ;;  %v824_v40 = vpop.f32.mrf.mxu3 }
 0x108   :  { %v2532_v26 = vadd.f32 %v824_v40, %v655_v35 }
 0x109   :  { %3855 = vst [vmem:[#allocation11_spill] sm:$0xff] %v2520_v23 }
 0x10a   :  { %v759_v27 = vpop.f32.mrf.mxu1  ;;  %3858 = vst [vmem:[#allocation14_spill] sm:$0xff] %v2532_v26 }
 0x10e   :  { %v583_v34 = vpop.f32.mrf.mxu0 }
 0x10f   :  { %v2530_v37 = vadd.f32 %v752_v49, %v583_v34  ;;  %v658_v52 = vpop.f32.mrf.mxu2  ;;  %v827_v56 = vpop.f32.mrf.mxu3 }
 0x110   :  { %v2549_v62 = vadd.f32 %v827_v56, %v658_v52 }
 0x111   :  { %3857 = vst [vmem:[#allocation13_spill] sm:$0xff] %v2530_v37  ;;  %622 = vmatmul.bf16.gmra.mxu0 %v1747_v32  ;;  %1946 = vmatmul.msk.bf16.gmra.mxu3 %vm442_vm0, %v1871_v50 }
 0x112   :  { %v762_v49 = vpop.f32.mrf.mxu1 }
 0x116   :  { %v585_v51 = vpop.f32.mrf.mxu0 }
 0x117   :  { %v2547_v54 = vadd.f32 %v754_v55, %v585_v51  ;;  %v660_v1 = vpop.f32.mrf.mxu2  ;;  %v829_v3 = vpop.f32.mrf.mxu3  ;;  %v2011_v55 = vld [vmem:[%s3802_s0 + $0x1f4] sm:$0xf0] }
 0x118   :  { %v2553_v5 = vadd.f32 %v829_v3, %v660_v1  ;;  %v1875_v11 = vor.u32 %v2011_v55, %v1874_v8 }
 0x119   :  { %3859 = vst [vmem:[#allocation15_spill] sm:$0xff] %v2547_v54 }
 0x11a   :  { %v764_v57 = vpop.f32.mrf.mxu1  ;;  %702 = vmatmul.bf16.gmra.mxu2 %v1875_v11 }
 0x11e   :  { %v588_v63 = vpop.f32.mrf.mxu0 }
 0x11f   :  { %v2551_v61 = vadd.f32 %v757_v17, %v588_v63  ;;  %v663_v18 = vpop.f32.mrf.mxu2  ;;  %v832_v20 = vpop.f32.mrf.mxu3 }
 0x120   :  { %v2572_v28 = vadd.f32 %v832_v20, %v663_v18 }
 0x121   :  { %1947 = vmatmul.msk.bf16.gmra.mxu3 %vm442_vm0, %v1879_v16 }
 0x122   :  { %v767_v15 = vpop.f32.mrf.mxu1 }
 0x126   :  { %v590_v17 = vpop.f32.mrf.mxu0 }
 0x127   :  { %v2568_v19 = vadd.f32 %v759_v27, %v590_v17  ;;  %v665_v32 = vpop.f32.mrf.mxu2  ;;  %v834_v35 = vpop.f32.mrf.mxu3 }
 0x128   :  { %v2576_v40 = vadd.f32 %v834_v35, %v665_v32 }
 0x12a   :  { %v2570_v25 = vpop.f32.mrf.mxu1 }
 0x12e   :  { %v593_v30 = vpop.f32.mrf.mxu0 }
 0x12f   :  { %v2574_v34 = vadd.f32 %v762_v49, %v593_v30  ;;  %v668_v43 = vpop.f32.mrf.mxu2  ;;  %v837_v27 = vpop.f32.mrf.mxu3 }
 0x130   :  { %v2584_v50 = vadd.f32 %v837_v27, %v668_v43  ;;  %v878_v43 = vsel %vm877_vm1, %v2304_v48, 0.0  ;;  %v881_v27 = vsel %vm877_vm1, %v2334_v2, 0.0 }
 0x132   :  { %v2578_v41 = vpop.f32.mrf.mxu1 }
 0x136   :  { %v595_v42 = vpop.f32.mrf.mxu0 }
 0x137   :  { %v2580_v45 = vadd.f32 %v764_v57, %v595_v42  ;;  %v670_v52 = vpop.f32.mrf.mxu2  ;;  %v839_v49 = vpop.f32.mrf.mxu3  ;;  %v879_v42 = vsel %vm877_vm1, %v2320_v58, 0.0  ;;  %v889_v58 = vsel %vm877_vm1, %v2400_v44, 0.0 }
 0x138   :  { %v2588_v63 = vadd.f32 %v839_v49, %v670_v52  ;;  %v883_v49 = vsel %vm877_vm1, %v2352_v13, 0.0 }
 0x139   :  { %3860 = vst [vmem:[#allocation16_spill] sm:$0xff] %v2580_v45 }
 0x13a   :  { %v2582_v47 = vpop.f32.mrf.mxu1 }
 0x13e   :  { %v598_v51 = vpop.f32.mrf.mxu0 }
 0x13f   :  { %v2586_v56 = vadd.f32 %v767_v15, %v598_v51  ;;  %v673_v8 = vpop.f32.mrf.mxu2  ;;  %v842_v55 = vpop.f32.mrf.mxu3  ;;  %v880_v51 = vadd.f32 %v879_v42, %v878_v43  ;;  %v891_v43 = vsel %vm877_vm1, %v2418_v59, 0.0 }
 0x140   :  { %v2596_v10 = vadd.f32 %v842_v55, %v673_v8  ;;  %v885_v55 = vsel %vm877_vm1, %v2368_v22, 0.0 }
 0x141   :  { %3861 = vst [vmem:[#allocation17_spill] sm:$0xff] %v2586_v56  ;;  %v882_v8 = vadd.f32 %v881_v27, %v880_v51  ;;  %v893_v27 = vsel %vm877_vm1, %v2434_v7, 0.0 }
 0x142   :  { %v2590_v1 = vpop.f32.mrf.mxu1 }
 0x146   :  { %v2592_v3 = vpop.f32.mrf.mxu0 }
 0x147   :  { %v675_v14 = vpop.f32.mrf.mxu2  ;;  %v844_v16 = vpop.f32.mrf.mxu3 }
 0x148   :  { %v2600_v17 = vadd.f32 %v844_v16, %v675_v14  ;;  %v884_v14 = vadd.f32 %v883_v49, %v882_v8  ;;  %v887_v16 = vsel %vm877_vm1, %v2384_v33, 0.0  ;;  %v895_v49 = vsel %vm877_vm1, %v2452_v24, 0.0 }
 0x14a   :  { %v2594_v57 = vpop.f32.mrf.mxu1 }
 0x14e   :  { %v2598_v11 = vpop.f32.mrf.mxu0 }
 0x14f   :  { %v678_v20 = vpop.f32.mrf.mxu2  ;;  %v847_v30 = vpop.f32.mrf.mxu3 }
 0x150   :  { %v2608_v35 = vadd.f32 %v847_v30, %v678_v20  ;;  %v886_v20 = vadd.f32 %v885_v55, %v884_v14  ;;  %v897_v55 = vsel %vm877_vm1, %v2468_v36, 0.0 }
 0x152   :  { %v2602_v15 = vpop.f32.mrf.mxu1  ;;  %v888_v2 = vadd.f32 %v887_v16, %v886_v20  ;;  %v899_v16 = vsel %vm877_vm1, %v2486_v53, 0.0 }
 0x154   :  { %v890_v13 = vadd.f32 %v889_v58, %v888_v2  ;;  %v901_v58 = vsel %vm877_vm1, %v2502_v4, 0.0 }
 0x156   :  { %v2604_v18 = vpop.f32.mrf.mxu0  ;;  %v892_v51 = vadd.f32 %v891_v43, %v890_v13  ;;  %v903_v13 = vsel %vm877_vm1, %v2520_v23, 0.0  ;;  %v915_v23 = vsel %vm877_vm1, %v2580_v45, 0.0 }
 0x157   :  { %v2644_v36 = vpop.f32.mrf.mxu3 }
 0x158   :  { %v894_v8 = vadd.f32 %v893_v27, %v892_v51  ;;  %v905_v27 = vsel %vm877_vm1, %v2530_v37, 0.0  ;;  %v2642_v51 = vpop.f32.mrf.mxu2  ;;  %v913_v37 = vsel %vm877_vm1, %v2574_v34, 0.0 }
 0x15a   :  { %v2606_v32 = vpop.f32.mrf.mxu1  ;;  %v896_v14 = vadd.f32 %v895_v49, %v894_v8 }
 0x15c   :  { %v898_v20 = vadd.f32 %v897_v55, %v896_v14  ;;  %v907_v55 = vsel %vm877_vm1, %v2547_v54, 0.0 }
 0x15e   :  { %v608_v52 = vpop.f32.mrf.mxu0  ;;  %v900_v2 = vadd.f32 %v899_v16, %v898_v20  ;;  %v909_v16 = vsel %vm877_vm1, %v2551_v61, 0.0 }
 0x160   :  { %v902_v43 = vadd.f32 %v901_v58, %v900_v2  ;;  %v911_v58 = vsel %vm877_vm1, %v2568_v19, 0.0  ;;  %v2660_v54 = vpop.f32.mrf.mxu2 }
 0x162   :  { %v2622_v30 = vpop.f32.mrf.mxu1  ;;  %v904_v49 = vadd.f32 %v903_v13, %v902_v43 }
 0x164   :  { %v906_v14 = vadd.f32 %v905_v27, %v904_v49  ;;  %v2658_v27 = vadd.f32 %v2570_v25, %v2592_v3  ;;  %v2674_v25 = vadd.f32 %v2582_v47, %v2604_v18 }
 0x166   :  { %v610_v42 = vpop.f32.mrf.mxu0  ;;  %v908_v20 = vadd.f32 %v907_v55, %v906_v14  ;;  %v2662_v55 = vpop.f32.mrf.mxu3  ;;  %v917_v14 = vsel %vm877_vm1, %v2586_v56, 0.0 }
 0x168   :  { %v910_v2 = vadd.f32 %v909_v16, %v908_v20  ;;  %v2668_v16 = vadd.f32 %v2578_v41, %v2598_v11  ;;  %v2684_v41 = vadd.f32 %v2594_v57, %v610_v42 }
 0x16a   :  { %v789_v33 = vpop.f32.mrf.mxu1  ;;  %v912_v13 = vadd.f32 %v911_v58, %v910_v2  ;;  %v919_v2 = vsel %vm877_vm1, %v2658_v27, 0.0  ;;  %v921_v3 = vsel %vm877_vm1, %v2668_v16, 0.0 }
 0x16c   :  { %v914_v49 = vadd.f32 %v913_v37, %v912_v13  ;;  %v2679_v13 = vadd.f32 %v2590_v1, %v608_v52  ;;  %v927_v52 = vsel %vm877_vm1, %v2684_v41, 0.0 }
 0x16e   :  { %v613_v44 = vpop.f32.mrf.mxu0  ;;  %v916_v20 = vadd.f32 %v915_v23, %v914_v49  ;;  %v923_v23 = vsel %vm877_vm1, %v2674_v25, 0.0  ;;  %v925_v47 = vsel %vm877_vm1, %v2679_v13, 0.0  ;;  %v2693_v1 = vpop.f32.mrf.mxu3 }
 0x16f   :  { %v2689_v18 = vadd.f32 %v2602_v15, %v613_v44 }
 0x170   :  { %v918_v37 = vadd.f32 %v917_v14, %v916_v20  ;;  %v2691_v14 = vpop.f32.mrf.mxu2 }
 0x172   :  { %v792_v53 = vpop.f32.mrf.mxu1  ;;  %v920_v56 = vadd.f32 %v919_v2, %v918_v37 }
 0x174   :  { %v922_v11 = vadd.f32 %v921_v3, %v920_v56  ;;  %v929_v56 = vsel %vm877_vm1, %v2689_v18, 0.0 }
 0x176   :  { %v615_v8 = vpop.f32.mrf.mxu0  ;;  %v924_v49 = vadd.f32 %v923_v23, %v922_v11 }
 0x177   :  { %v2698_v20 = vadd.f32 %v2606_v32, %v615_v8 }
 0x178   :  { %v926_v57 = vadd.f32 %v925_v47, %v924_v49 }
 0x179   :  { %v931_v37 = vsel %vm877_vm1, %v2698_v20, 0.0 }
 0x17a   :  { %v794_v58 = vpop.f32.mrf.mxu1  ;;  %v928_v44 = vadd.f32 %v927_v52, %v926_v57 }
 0x17c   :  { %v930_v23 = vadd.f32 %v929_v56, %v928_v44 }
 0x17e   :  { %v618_v43 = vpop.f32.mrf.mxu0  ;;  %v932_v11 = vadd.f32 %v931_v37, %v930_v23 }
 0x17f   :  { %v2703_v2 = vadd.f32 %v2622_v30, %v618_v43  ;;  %v2715_v30 = vpop.f32.mrf.mxu2  ;;  %v2717_v43 = vpop.f32.mrf.mxu3 }
 0x181   :  { %v933_v32 = vsel %vm877_vm1, %v2703_v2, 0.0 }
 0x182   :  { %v797_v42 = vpop.f32.mrf.mxu1  ;;  %v934_v49 = vadd.f32 %v933_v32, %v932_v11 }
 0x183   :  { %v2722_v56 = vadd.f32 %v797_v42, %v2350_v12 }
 0x185   :  { %v941_v32 = vsel %vm877_vm1, %v2722_v56, 0.0 }
 0x186   :  { %v620_v45 = vpop.f32.mrf.mxu0 }
 0x187   :  { %v2707_v3 = vadd.f32 %v789_v33, %v620_v45  ;;  %v690_v12 = vpop.f32.mrf.mxu2  ;;  %v859_v42 = vpop.f32.mrf.mxu3 }
 0x189   :  { %v935_v47 = vsel %vm877_vm1, %v2707_v3, 0.0 }
 0x18a   :  { %v936_v33 = vadd.f32 %v935_v47, %v934_v49  ;;  %v799_v45 = vpop.f32.mrf.mxu1 }
 0x18e   :  { %v623_v15 = vpop.f32.mrf.mxu0 }
 0x18f   :  { %v2711_v8 = vadd.f32 %v792_v53, %v623_v15  ;;  %v2727_v15 = vadd.f32 %v799_v45, %v2366_v21  ;;  %v947_v21 = vsel %vm877_vm1, %v2402_v46, 0.0  ;;  %v949_v45 = vsel %vm877_vm1, %v2426_v0, 0.0 }
 0x191   :  { %v937_v52 = vsel %vm877_vm1, %v2711_v8, 0.0  ;;  %v943_v47 = vsel %vm877_vm1, %v2727_v15, 0.0 }
 0x192   :  { %v938_v44 = vadd.f32 %v937_v52, %v936_v33 }
 0x196   :  { %v625_v57 = vpop.f32.mrf.mxu0 }
 0x197   :  { %v2724_v53 = vadd.f32 %v794_v58, %v625_v57  ;;  %v945_v58 = vsel %vm877_vm1, %v2392_v38, 0.0 }
 0x199   :  { %v939_v37 = vsel %vm877_vm1, %v2724_v53, 0.0 }
 0x19a   :  { %v940_v23 = vadd.f32 %v939_v37, %v938_v44  ;;  %v951_v44 = vsel %vm877_vm1, %v2436_v9, 0.0 }
 0x19c   :  { %v942_v11 = vadd.f32 %v941_v32, %v940_v23  ;;  %v953_v23 = vsel %vm877_vm1, %v2460_v29, 0.0 }
 0x19e   :  { %v944_v49 = vadd.f32 %v943_v47, %v942_v11  ;;  %v693_v11 = vpop.f32.mrf.mxu2  ;;  %v862_v47 = vpop.f32.mrf.mxu3 }
 0x1a0   :  { %v946_v52 = vadd.f32 %v945_v58, %v944_v49  ;;  %v955_v49 = vsel %vm877_vm1, %v2470_v39, 0.0 }
 0x1a2   :  { %v948_v33 = vadd.f32 %v947_v21, %v946_v52  ;;  %v957_v52 = vsel %vm877_vm1, %v2494_v60, 0.0 }
 0x1a4   :  { %v950_v57 = vadd.f32 %v949_v45, %v948_v33  ;;  %v959_v33 = vsel %vm877_vm1, %v2504_v6, 0.0 }
 0x1a6   :  { %v952_v37 = vadd.f32 %v951_v44, %v950_v57  ;;  %v961_v57 = vsel %vm877_vm1, %v2528_v31, 0.0  ;;  %v695_v29 = vpop.f32.mrf.mxu2  ;;  %v864_v9 = vpop.f32.mrf.mxu3 }
 0x1a8   :  { %v954_v32 = vadd.f32 %v953_v23, %v952_v37  ;;  %v963_v37 = vsel %vm877_vm1, %v2532_v26, 0.0 }
 0x1aa   :  { %v956_v58 = vadd.f32 %v955_v49, %v954_v32  ;;  %v965_v32 = vsel %vm877_vm1, %v2549_v62, 0.0 }
 0x1ac   :  { %v958_v21 = vadd.f32 %v957_v52, %v956_v58  ;;  %v967_v58 = vsel %vm877_vm1, %v2553_v5, 0.0 }
 0x1ae   :  { %v960_v45 = vadd.f32 %v959_v33, %v958_v21  ;;  %v969_v21 = vsel %vm877_vm1, %v2572_v28, 0.0  ;;  %v698_v26 = vpop.f32.mrf.mxu2  ;;  %v867_v31 = vpop.f32.mrf.mxu3 }
 0x1b0   :  { %v962_v44 = vadd.f32 %v961_v57, %v960_v45  ;;  %v971_v45 = vsel %vm877_vm1, %v2576_v40, 0.0 }
 0x1b2   :  { %v964_v23 = vadd.f32 %v963_v37, %v962_v44  ;;  %v973_v44 = vsel %vm877_vm1, %v2584_v50, 0.0 }
 0x1b4   :  { %v966_v49 = vadd.f32 %v965_v32, %v964_v23  ;;  %v975_v23 = vsel %vm877_vm1, %v2588_v63, 0.0 }
 0x1b6   :  { %v968_v52 = vadd.f32 %v967_v58, %v966_v49  ;;  %v977_v49 = vsel %vm877_vm1, %v2596_v10, 0.0 }
 0x1b8   :  { %v970_v33 = vadd.f32 %v969_v21, %v968_v52  ;;  %v979_v52 = vsel %vm877_vm1, %v2600_v17, 0.0  ;;  %v2773_v21 = vadd.f32 %v2644_v36, %v2642_v51  ;;  %v869_v36 = vpop.f32.mrf.mxu3 }
 0x1ba   :  { %v972_v57 = vadd.f32 %v971_v45, %v970_v33  ;;  %v981_v45 = vsel %vm877_vm1, %v2608_v35, 0.0 }
 0x1bc   :  { %v974_v37 = vadd.f32 %v973_v44, %v972_v57  ;;  %v2779_v57 = vadd.f32 %v2662_v55, %v2660_v54 }
 0x1be   :  { %v976_v32 = vadd.f32 %v975_v23, %v974_v37  ;;  %v983_v37 = vsel %vm877_vm1, %v2773_v21, 0.0  ;;  %v2785_v23 = vadd.f32 %v2693_v1, %v2691_v14  ;;  %v985_v51 = vsel %vm877_vm1, %v2779_v57, 0.0 }
 0x1bf   :  { %v2799_v1 = vadd.f32 %v862_v47, %v693_v11 }
 0x1c0   :  { %v978_v58 = vadd.f32 %v977_v49, %v976_v32  ;;  %v700_v49 = vpop.f32.mrf.mxu2  ;;  %v987_v55 = vsel %vm877_vm1, %v2785_v23, 0.0 }
 0x1c2   :  { %v980_v33 = vadd.f32 %v979_v52, %v978_v58  ;;  %v2791_v58 = vadd.f32 %v2717_v43, %v2715_v30  ;;  %v2795_v52 = vadd.f32 %v859_v42, %v690_v12  ;;  %v993_v43 = vsel %vm877_vm1, %v2799_v1, 0.0  ;;  %v872_v12 = vpop.f32.mrf.mxu3 }
 0x1c4   :  { %v982_v44 = vadd.f32 %v981_v45, %v980_v33  ;;  %v989_v14 = vsel %vm877_vm1, %v2791_v58, 0.0 }
 0x1c6   :  { %v984_v32 = vadd.f32 %v983_v37, %v982_v44  ;;  %v991_v44 = vsel %vm877_vm1, %v2795_v52, 0.0  ;;  %v2803_v37 = vadd.f32 %v864_v9, %v695_v29 }
 0x1c8   :  { %v986_v54 = vadd.f32 %v985_v51, %v984_v32  ;;  %v703_v51 = vpop.f32.mrf.mxu2  ;;  %v995_v42 = vsel %vm877_vm1, %v2803_v37, 0.0 }
 0x1ca   :  { %v988_v33 = vadd.f32 %v987_v55, %v986_v54  ;;  %v2809_v54 = vadd.f32 %v867_v31, %v698_v26  ;;  %v2813_v55 = vadd.f32 %v869_v36, %v700_v49  ;;  %v2037_v36 = vmov 512.0  }
 0x1cb   :  { %2033 = vrcp.f32 %v2037_v36 }
 0x1cc   :  { %v990_v45 = vadd.f32 %v989_v14, %v988_v33  ;;  %3862 = vst [vmem:[#allocation18_spill] sm:$0xff] %v2809_v54  ;;  %v997_v47 = vsel %vm877_vm1, %v2809_v54, 0.0  ;;  %v999_v29 = vsel %vm877_vm1, %v2813_v55, 0.0  ;;  %v2817_v33 = vadd.f32 %v872_v12, %v703_v51 }
 0x1cd   :  { %3863 = vst [vmem:[#allocation19_spill] sm:$0xff] %v2813_v55 }
 0x1ce   :  { %v992_v30 = vadd.f32 %v991_v44, %v990_v45  ;;  %v874_v44 = vpop.f32.mrf.mxu3 }
 0x1d0   :  { %v994_v32 = vadd.f32 %v993_v43, %v992_v30  ;;  %v705_v45 = vpop.f32.mrf.mxu2  ;;  %v1001_v30 = vsel %vm877_vm1, %v2817_v33, 0.0 }
 0x1d1   :  { %v2821_v31 = vadd.f32 %v874_v44, %v705_v45 }
 0x1d2   :  { %v996_v11 = vadd.f32 %v995_v42, %v994_v32  ;;  %v2034_v42 = vpop.eup %2033 }
 0x1d3   :  { %v1003_v43 = vsel %vm877_vm1, %v2821_v31, 0.0  ;;  %v1012_v51 = vmul.f32 512.0, %v2034_v42  ;;  %vm1016_vm2 = vweird.f32 %v2034_v42 }
 0x1d4   :  { %v998_v9 = vadd.f32 %v997_v47, %v996_v11 }
 0x1d5   :  { %v1013_v47 = vsub.f32 1.0, %v1012_v51  ;;  %v3868_v51 = vld [vmem:[#allocation5_spill] sm:$0xff] }
 0x1d6   :  { %v1000_v14 = vadd.f32 %v999_v29, %v998_v9 }
 0x1d7   :  { %v1014_v29 = vmul.f32 %v2034_v42, %v1013_v47 }
 0x1d8   :  { %v1002_v26 = vadd.f32 %v1001_v30, %v1000_v14 }
 0x1d9   :  { %v1015_v54 = vadd.f32 %v2034_v42, %v1014_v29 }
 0x1da   :  { %v1004_v49 = vadd.f32 %v1003_v43, %v1002_v26  ;;  %v3864_v26 = vld [vmem:[#allocation2_spill] sm:$0xff] }
 0x1db   :  { %v2825_v44 = vsel %vm1016_vm2, %v2034_v42, %v1015_v54 }
 0x1dc   :  { %v1005_v32 = vrot.slane %v1004_v49, 4 }
 0x1de   :  { %v1006_v11 = vadd.f32 %v1005_v32, %v1004_v49  ;;  %v3865_v49 = vld [vmem:[#allocation3_spill] sm:$0xff]  ;;  %v3867_v32 = vld [vmem:[#allocation4_spill] sm:$0xff] }
 0x1e0   :  { %v1007_v12 = vrot.slane %v1006_v11, 2 }
 0x1e2   :  { %v1008_v9 = vadd.f32 %v1007_v12, %v1006_v11 }
 0x1e4   :  { %v1009_v55 = vrot.slane %v1008_v9, 1 }
 0x1e6   :  { %v1010_v45 = vadd.f32 %v1009_v55, %v1008_v9 }
 0x1e8   :  { %v2828_v14 = vmul.f32 %v2825_v44, %v1010_v45 }
 0x1ea   :  { %v2832_v30 = vsub.f32 %v2304_v48, %v2828_v14  ;;  %v2836_v43 = vsub.f32 %v3864_v26, %v2828_v14  ;;  %v2840_v36 = vsub.f32 %v3865_v49, %v2828_v14  ;;  %v2844_v55 = vsub.f32 %v3867_v32, %v2828_v14  ;;  %v3869_v26 = vld [vmem:[#allocation6_spill] sm:$0xff] }
 0x1eb   :  { %v2852_v48 = vsub.f32 %v2368_v22, %v2828_v14  ;;  %v2858_v12 = vsub.f32 %v3868_v51, %v2828_v14  ;;  %v2866_v49 = vsub.f32 %v3869_v26, %v2828_v14  ;;  %v2873_v51 = vsub.f32 %v2418_v59, %v2828_v14 }
 0x1ec   :  { %3866 = vst [vmem:[#allocation2_spill] sm:$0xff] %v2840_v36  ;;  %v1083_v54 = vmul.f32 %v2832_v30, %v2832_v30  ;;  %v1084_v42 = vmul.f32 %v2836_v43, %v2836_v43  ;;  %v1085_v11 = vmul.f32 %v2840_v36, %v2840_v36  ;;  %v1086_v47 = vmul.f32 %v2844_v55, %v2844_v55 }
 0x1ed   :  { %3870 = vst [vmem:[#allocation3_spill] sm:$0xff] %v2866_v49  ;;  %v1087_v22 = vmul.f32 %v2852_v48, %v2852_v48  ;;  %v1089_v26 = vmul.f32 %v2866_v49, %v2866_v49  ;;  %v2887_v59 = vsub.f32 %v2452_v24, %v2828_v14 }
 0x1ee   :  { %v1147_v9 = vsel %vm877_vm1, %v1083_v54, 0.0  ;;  %v1148_v29 = vsel %vm877_vm1, %v1084_v42, 0.0  ;;  %v1150_v32 = vsel %vm877_vm1, %v1085_v11, 0.0  ;;  %3871 = vst [vmem:[#allocation4_spill] sm:$0xff] %v2873_v51  ;;  %v1088_v54 = vmul.f32 %v2858_v12, %v2858_v12 }
 0x1ef   :  { %v1149_v45 = vadd.f32 %v1148_v29, %v1147_v9  ;;  %v1152_v42 = vsel %vm877_vm1, %v1086_v47, 0.0  ;;  %v2880_v29 = vsub.f32 %v2434_v7, %v2828_v14  ;;  %v1154_v11 = vsel %vm877_vm1, %v1087_v22, 0.0  ;;  %3872 = vst [vmem:[#allocation5_spill] sm:$0xff] %v2887_v59 }
 0x1f0   :  { %v1156_v47 = vsel %vm877_vm1, %v1088_v54, 0.0  ;;  %v1158_v22 = vsel %vm877_vm1, %v1089_v26, 0.0 }
 0x1f1   :  { %v1151_v36 = vadd.f32 %v1150_v32, %v1149_v45  ;;  %v1090_v32 = vmul.f32 %v2873_v51, %v2873_v51  ;;  %v1091_v49 = vmul.f32 %v2880_v29, %v2880_v29  ;;  %v1092_v51 = vmul.f32 %v2887_v59, %v2887_v59 }
 0x1f3   :  { %v1153_v9 = vadd.f32 %v1152_v42, %v1151_v36  ;;  %v3873_v42 = vld [vmem:[#allocation9_spill] sm:$0xff]  ;;  %v1160_v54 = vsel %vm877_vm1, %v1090_v32, 0.0  ;;  %v1162_v26 = vsel %vm877_vm1, %v1091_v49, 0.0  ;;  %v1164_v32 = vsel %vm877_vm1, %v1092_v51, 0.0 }
 0x1f4   :  { %v2894_v7 = vsub.f32 %v3873_v42, %v2828_v14 }
 0x1f5   :  { %v1155_v45 = vadd.f32 %v1154_v11, %v1153_v9  ;;  %v3875_v11 = vld [vmem:[#allocation10_spill] sm:$0xff] }
 0x1f6   :  { %3874 = vst [vmem:[#allocation6_spill] sm:$0xff] %v2894_v7  ;;  %v2901_v24 = vsub.f32 %v3875_v11, %v2828_v14  ;;  %v1093_v42 = vmul.f32 %v2894_v7, %v2894_v7 }
 0x1f7   :  { %v1157_v36 = vadd.f32 %v1156_v47, %v1155_v45  ;;  %v2908_v47 = vsub.f32 %v2502_v4, %v2828_v14 }
 0x1f8   :  { %3876 = vst [vmem:[#allocation9_spill] sm:$0xff] %v2901_v24  ;;  %v1094_v59 = vmul.f32 %v2901_v24, %v2901_v24  ;;  %v1166_v49 = vsel %vm877_vm1, %v1093_v42, 0.0 }
 0x1f9   :  { %v1159_v9 = vadd.f32 %v1158_v22, %v1157_v36  ;;  %v3877_v22 = vld [vmem:[#allocation11_spill] sm:$0xff]  ;;  %v1095_v7 = vmul.f32 %v2908_v47, %v2908_v47 }
 0x1fa   :  { %v2915_v11 = vsub.f32 %v3877_v22, %v2828_v14  ;;  %v1168_v51 = vsel %vm877_vm1, %v1094_v59, 0.0 }
 0x1fb   :  { %v1161_v45 = vadd.f32 %v1160_v54, %v1159_v9  ;;  %v3878_v54 = vld [vmem:[#allocation13_spill] sm:$0xff]  ;;  %v1170_v42 = vsel %vm877_vm1, %v1095_v7, 0.0 }
 0x1fc   :  { %v2922_v4 = vsub.f32 %v3878_v54, %v2828_v14  ;;  %v1096_v24 = vmul.f32 %v2915_v11, %v2915_v11 }
 0x1fd   :  { %v1163_v36 = vadd.f32 %v1162_v26, %v1161_v45  ;;  %v3879_v26 = vld [vmem:[#allocation15_spill] sm:$0xff] }
 0x1fe   :  { %v2929_v22 = vsub.f32 %v3879_v26, %v2828_v14  ;;  %v1097_v54 = vmul.f32 %v2922_v4, %v2922_v4  ;;  %v1172_v59 = vsel %vm877_vm1, %v1096_v24, 0.0 }
 0x1ff   :  { %v1165_v9 = vadd.f32 %v1164_v32, %v1163_v36  ;;  %v2936_v32 = vsub.f32 %v2551_v61, %v2828_v14  ;;  %v2950_v61 = vsub.f32 %v2574_v34, %v2828_v14 }
 0x200   :  { %3880 = vst [vmem:[#allocation10_spill] sm:$0xff] %v2929_v22  ;;  %v1098_v26 = vmul.f32 %v2929_v22, %v2929_v22  ;;  %v1174_v7 = vsel %vm877_vm1, %v1097_v54, 0.0 }
 0x201   :  { %v1167_v45 = vadd.f32 %v1166_v49, %v1165_v9  ;;  %3881 = vst [vmem:[#allocation11_spill] sm:$0xff] %v2936_v32  ;;  %v2943_v49 = vsub.f32 %v2568_v19, %v2828_v14 }
 0x202   :  { %v1176_v24 = vsel %vm877_vm1, %v1098_v26, 0.0 }
 0x203   :  { %v1169_v36 = vadd.f32 %v1168_v51, %v1167_v45  ;;  %v1099_v51 = vmul.f32 %v2936_v32, %v2936_v32  ;;  %v1100_v22 = vmul.f32 %v2943_v49, %v2943_v49  ;;  %v1101_v32 = vmul.f32 %v2950_v61, %v2950_v61 }
 0x205   :  { %v1171_v9 = vadd.f32 %v1170_v42, %v1169_v36  ;;  %v3882_v42 = vld [vmem:[#allocation16_spill] sm:$0xff]  ;;  %v1178_v54 = vsel %vm877_vm1, %v1099_v51, 0.0  ;;  %v1180_v26 = vsel %vm877_vm1, %v1100_v22, 0.0  ;;  %v1182_v51 = vsel %vm877_vm1, %v1101_v32, 0.0 }
 0x206   :  { %v2957_v19 = vsub.f32 %v3882_v42, %v2828_v14 }
 0x207   :  { %v1173_v45 = vadd.f32 %v1172_v59, %v1171_v9  ;;  %v3883_v59 = vld [vmem:[#allocation17_spill] sm:$0xff] }
 0x208   :  { %v2964_v34 = vsub.f32 %v3883_v59, %v2828_v14  ;;  %v1102_v42 = vmul.f32 %v2957_v19, %v2957_v19 }
 0x209   :  { %v1175_v36 = vadd.f32 %v1174_v7, %v1173_v45  ;;  %v2971_v7 = vsub.f32 %v2658_v27, %v2828_v14  ;;  %v2985_v27 = vsub.f32 %v2674_v25, %v2828_v14  ;;  %v2999_v25 = vsub.f32 %v2684_v41, %v2828_v14 }
 0x20a   :  { %v1103_v59 = vmul.f32 %v2964_v34, %v2964_v34  ;;  %v1184_v22 = vsel %vm877_vm1, %v1102_v42, 0.0  ;;  %v3013_v41 = vsub.f32 %v2698_v20, %v2828_v14  ;;  %v3027_v20 = vsub.f32 %v2707_v3, %v2828_v14 }
 0x20b   :  { %v1177_v9 = vadd.f32 %v1176_v24, %v1175_v36  ;;  %v2978_v24 = vsub.f32 %v2668_v16, %v2828_v14  ;;  %v2992_v16 = vsub.f32 %v2679_v13, %v2828_v14  ;;  %v3006_v13 = vsub.f32 %v2689_v18, %v2828_v14 }
 0x20c   :  { %v1186_v32 = vsel %vm877_vm1, %v1103_v59, 0.0  ;;  %v3020_v18 = vsub.f32 %v2703_v2, %v2828_v14  ;;  %v3034_v2 = vsub.f32 %v2711_v8, %v2828_v14  ;;  %v3041_v3 = vsub.f32 %v2724_v53, %v2828_v14 }
 0x20d   :  { %v1179_v45 = vadd.f32 %v1178_v54, %v1177_v9  ;;  %v1104_v54 = vmul.f32 %v2971_v7, %v2971_v7  ;;  %v3048_v8 = vsub.f32 %v2722_v56, %v2828_v14  ;;  %v3055_v53 = vsub.f32 %v2727_v15, %v2828_v14 }
 0x20e   :  { %v3062_v56 = vsub.f32 %v2392_v38, %v2828_v14  ;;  %v3069_v15 = vsub.f32 %v2402_v46, %v2828_v14  ;;  %v3076_v38 = vsub.f32 %v2426_v0, %v2828_v14 }
 0x20f   :  { %v1181_v36 = vadd.f32 %v1180_v26, %v1179_v45  ;;  %v1105_v26 = vmul.f32 %v2978_v24, %v2978_v24  ;;  %v1188_v42 = vsel %vm877_vm1, %v1104_v54, 0.0  ;;  %3884 = vst [vmem:[#allocation13_spill] sm:$0xff] %v3055_v53 }
 0x210   :  { %3885 = vst [vmem:[#allocation15_spill] sm:$0xff] %v3062_v56 }
 0x211   :  { %v1183_v9 = vadd.f32 %v1182_v51, %v1181_v36  ;;  %v1106_v51 = vmul.f32 %v2985_v27, %v2985_v27  ;;  %v1190_v59 = vsel %vm877_vm1, %v1105_v26, 0.0 }
 0x213   :  { %v1185_v45 = vadd.f32 %v1184_v22, %v1183_v9  ;;  %v1107_v22 = vmul.f32 %v2992_v16, %v2992_v16  ;;  %v1192_v54 = vsel %vm877_vm1, %v1106_v51, 0.0 }
 0x215   :  { %v1187_v36 = vadd.f32 %v1186_v32, %v1185_v45  ;;  %v1108_v32 = vmul.f32 %v2999_v25, %v2999_v25  ;;  %v1194_v26 = vsel %vm877_vm1, %v1107_v22, 0.0 }
 0x217   :  { %v1189_v9 = vadd.f32 %v1188_v42, %v1187_v36  ;;  %v1109_v42 = vmul.f32 %v3006_v13, %v3006_v13  ;;  %v1196_v51 = vsel %vm877_vm1, %v1108_v32, 0.0 }
 0x219   :  { %v1191_v45 = vadd.f32 %v1190_v59, %v1189_v9  ;;  %v1110_v59 = vmul.f32 %v3013_v41, %v3013_v41  ;;  %v1198_v22 = vsel %vm877_vm1, %v1109_v42, 0.0 }
 0x21b   :  { %v1193_v36 = vadd.f32 %v1192_v54, %v1191_v45  ;;  %v1111_v54 = vmul.f32 %v3020_v18, %v3020_v18  ;;  %v1200_v32 = vsel %vm877_vm1, %v1110_v59, 0.0 }
 0x21d   :  { %v1195_v9 = vadd.f32 %v1194_v26, %v1193_v36  ;;  %v1112_v26 = vmul.f32 %v3027_v20, %v3027_v20  ;;  %v1202_v42 = vsel %vm877_vm1, %v1111_v54, 0.0 }
 0x21f   :  { %v1197_v45 = vadd.f32 %v1196_v51, %v1195_v9  ;;  %v1113_v51 = vmul.f32 %v3034_v2, %v3034_v2  ;;  %v1204_v59 = vsel %vm877_vm1, %v1112_v26, 0.0 }
 0x221   :  { %v1199_v36 = vadd.f32 %v1198_v22, %v1197_v45  ;;  %v1114_v22 = vmul.f32 %v3041_v3, %v3041_v3  ;;  %v1206_v54 = vsel %vm877_vm1, %v1113_v51, 0.0 }
 0x223   :  { %v1201_v9 = vadd.f32 %v1200_v32, %v1199_v36  ;;  %v1115_v32 = vmul.f32 %v3048_v8, %v3048_v8  ;;  %v1208_v26 = vsel %vm877_vm1, %v1114_v22, 0.0 }
 0x225   :  { %v1203_v45 = vadd.f32 %v1202_v42, %v1201_v9  ;;  %v1116_v42 = vmul.f32 %v3055_v53, %v3055_v53  ;;  %v1210_v51 = vsel %vm877_vm1, %v1115_v32, 0.0  ;;  %v1118_v53 = vmul.f32 %v3069_v15, %v3069_v15 }
 0x227   :  { %v1205_v36 = vadd.f32 %v1204_v59, %v1203_v45  ;;  %v1117_v59 = vmul.f32 %v3062_v56, %v3062_v56  ;;  %v1212_v22 = vsel %vm877_vm1, %v1116_v42, 0.0  ;;  %v1119_v56 = vmul.f32 %v3076_v38, %v3076_v38 }
 0x228   :  { %v1216_v42 = vsel %vm877_vm1, %v1118_v53, 0.0 }
 0x229   :  { %v1207_v9 = vadd.f32 %v1206_v54, %v1205_v36  ;;  %v3886_v54 = vld [vmem:[#allocation7_spill] sm:$0xff]  ;;  %v1214_v32 = vsel %vm877_vm1, %v1117_v59, 0.0  ;;  %v1218_v59 = vsel %vm877_vm1, %v1119_v56, 0.0 }
 0x22a   :  { %v3083_v46 = vsub.f32 %v3886_v54, %v2828_v14 }
 0x22b   :  { %v1209_v45 = vadd.f32 %v1208_v26, %v1207_v9  ;;  %v3887_v26 = vld [vmem:[#allocation8_spill] sm:$0xff] }
 0x22c   :  { %v3090_v0 = vsub.f32 %v3887_v26, %v2828_v14  ;;  %v1120_v54 = vmul.f32 %v3083_v46, %v3083_v46 }
 0x22d   :  { %v1211_v36 = vadd.f32 %v1210_v51, %v1209_v45  ;;  %v3097_v51 = vsub.f32 %v2470_v39, %v2828_v14  ;;  %v3111_v39 = vsub.f32 %v2504_v6, %v2828_v14 }
 0x22e   :  { %3888 = vst [vmem:[#allocation16_spill] sm:$0xff] %v3090_v0  ;;  %v1121_v26 = vmul.f32 %v3090_v0, %v3090_v0  ;;  %v1220_v53 = vsel %vm877_vm1, %v1120_v54, 0.0 }
 0x22f   :  { %v1213_v9 = vadd.f32 %v1212_v22, %v1211_v36  ;;  %3889 = vst [vmem:[#allocation17_spill] sm:$0xff] %v3097_v51  ;;  %v3104_v22 = vsub.f32 %v2494_v60, %v2828_v14 }
 0x230   :  { %v1222_v56 = vsel %vm877_vm1, %v1121_v26, 0.0 }
 0x231   :  { %v1215_v45 = vadd.f32 %v1214_v32, %v1213_v9  ;;  %v1122_v32 = vmul.f32 %v3097_v51, %v3097_v51  ;;  %v1123_v0 = vmul.f32 %v3104_v22, %v3104_v22  ;;  %v1124_v51 = vmul.f32 %v3111_v39, %v3111_v39 }
 0x233   :  { %v1217_v36 = vadd.f32 %v1216_v42, %v1215_v45  ;;  %v3890_v42 = vld [vmem:[#allocation12_spill] sm:$0xff]  ;;  %v1224_v54 = vsel %vm877_vm1, %v1122_v32, 0.0  ;;  %v1226_v26 = vsel %vm877_vm1, %v1123_v0, 0.0  ;;  %v1228_v32 = vsel %vm877_vm1, %v1124_v51, 0.0 }
 0x234   :  { %v3118_v60 = vsub.f32 %v3890_v42, %v2828_v14 }
 0x235   :  { %v1219_v9 = vadd.f32 %v1218_v59, %v1217_v36  ;;  %v3891_v59 = vld [vmem:[#allocation14_spill] sm:$0xff] }
 0x236   :  { %v3125_v6 = vsub.f32 %v3891_v59, %v2828_v14  ;;  %v1125_v42 = vmul.f32 %v3118_v60, %v3118_v60 }
 0x237   :  { %v1221_v45 = vadd.f32 %v1220_v53, %v1219_v9  ;;  %v3132_v53 = vsub.f32 %v2549_v62, %v2828_v14  ;;  %v3146_v62 = vsub.f32 %v2572_v28, %v2828_v14  ;;  %v3160_v28 = vsub.f32 %v2584_v50, %v2828_v14 }
 0x238   :  { %v1126_v59 = vmul.f32 %v3125_v6, %v3125_v6  ;;  %v1230_v0 = vsel %vm877_vm1, %v1125_v42, 0.0  ;;  %v3174_v50 = vsub.f32 %v2596_v10, %v2828_v14  ;;  %v3188_v10 = vsub.f32 %v2608_v35, %v2828_v14 }
 0x239   :  { %v1223_v36 = vadd.f32 %v1222_v56, %v1221_v45  ;;  %v3139_v56 = vsub.f32 %v2553_v5, %v2828_v14  ;;  %v3153_v5 = vsub.f32 %v2576_v40, %v2828_v14  ;;  %v3167_v40 = vsub.f32 %v2588_v63, %v2828_v14 }
 0x23a   :  { %v1232_v51 = vsel %vm877_vm1, %v1126_v59, 0.0  ;;  %v3181_v63 = vsub.f32 %v2600_v17, %v2828_v14  ;;  %v3195_v17 = vsub.f32 %v2773_v21, %v2828_v14  ;;  %v3202_v35 = vsub.f32 %v2779_v57, %v2828_v14 }
 0x23b   :  { %v1225_v9 = vadd.f32 %v1224_v54, %v1223_v36  ;;  %v1127_v54 = vmul.f32 %v3132_v53, %v3132_v53  ;;  %v3209_v21 = vsub.f32 %v2785_v23, %v2828_v14  ;;  %v3216_v57 = vsub.f32 %v2791_v58, %v2828_v14 }
 0x23c   :  { %3892 = vst [vmem:[#allocation7_spill] sm:$0xff] %v3195_v17  ;;  %v3223_v23 = vsub.f32 %v2795_v52, %v2828_v14  ;;  %v3230_v58 = vsub.f32 %v2799_v1, %v2828_v14  ;;  %v3237_v52 = vsub.f32 %v2803_v37, %v2828_v14 }
 0x23d   :  { %v1227_v45 = vadd.f32 %v1226_v26, %v1225_v9  ;;  %v1128_v26 = vmul.f32 %v3139_v56, %v3139_v56  ;;  %v1234_v42 = vsel %vm877_vm1, %v1127_v54, 0.0  ;;  %3893 = vst [vmem:[#allocation8_spill] sm:$0xff] %v3202_v35 }
 0x23e   :  { %3894 = vst [vmem:[#allocation12_spill] sm:$0xff] %v3209_v21 }
 0x23f   :  { %v1229_v36 = vadd.f32 %v1228_v32, %v1227_v45  ;;  %v1129_v32 = vmul.f32 %v3146_v62, %v3146_v62  ;;  %v1236_v59 = vsel %vm877_vm1, %v1128_v26, 0.0  ;;  %3895 = vst [vmem:[#allocation14_spill] sm:$0xff] %v3216_v57 }
 0x240   :  { %3896 = vst [vmem:[#allocation20_spill] sm:$0xff] %v3223_v23 }
 0x241   :  { %v1231_v9 = vadd.f32 %v1230_v0, %v1229_v36  ;;  %v1130_v0 = vmul.f32 %v3153_v5, %v3153_v5  ;;  %v1238_v54 = vsel %vm877_vm1, %v1129_v32, 0.0  ;;  %3897 = vst [vmem:[#allocation21_spill] sm:$0xff] %v3230_v58 }
 0x242   :  { %3898 = vst [vmem:[#allocation22_spill] sm:$0xff] %v3237_v52 }
 0x243   :  { %v1233_v45 = vadd.f32 %v1232_v51, %v1231_v9  ;;  %v1131_v51 = vmul.f32 %v3160_v28, %v3160_v28  ;;  %v1240_v26 = vsel %vm877_vm1, %v1130_v0, 0.0 }
 0x245   :  { %v1235_v36 = vadd.f32 %v1234_v42, %v1233_v45  ;;  %v1132_v42 = vmul.f32 %v3167_v40, %v3167_v40  ;;  %v1242_v32 = vsel %vm877_vm1, %v1131_v51, 0.0 }
 0x247   :  { %v1237_v9 = vadd.f32 %v1236_v59, %v1235_v36  ;;  %v1133_v59 = vmul.f32 %v3174_v50, %v3174_v50  ;;  %v1244_v0 = vsel %vm877_vm1, %v1132_v42, 0.0 }
 0x249   :  { %v1239_v45 = vadd.f32 %v1238_v54, %v1237_v9  ;;  %v1134_v54 = vmul.f32 %v3181_v63, %v3181_v63  ;;  %v1246_v51 = vsel %vm877_vm1, %v1133_v59, 0.0 }
 0x24b   :  { %v1241_v36 = vadd.f32 %v1240_v26, %v1239_v45  ;;  %v1135_v26 = vmul.f32 %v3188_v10, %v3188_v10  ;;  %v1248_v42 = vsel %vm877_vm1, %v1134_v54, 0.0 }
 0x24d   :  { %v1243_v9 = vadd.f32 %v1242_v32, %v1241_v36  ;;  %v1136_v32 = vmul.f32 %v3195_v17, %v3195_v17  ;;  %v1250_v59 = vsel %vm877_vm1, %v1135_v26, 0.0  ;;  %v3912_v17 = vld [vmem:[#allocation11_spill] sm:$0xff] }
 0x24f   :  { %v1245_v45 = vadd.f32 %v1244_v0, %v1243_v9  ;;  %v1137_v0 = vmul.f32 %v3202_v35, %v3202_v35  ;;  %v1252_v54 = vsel %vm877_vm1, %v1136_v32, 0.0 }
 0x251   :  { %v1247_v36 = vadd.f32 %v1246_v51, %v1245_v45  ;;  %v1138_v51 = vmul.f32 %v3209_v21, %v3209_v21  ;;  %v1254_v26 = vsel %vm877_vm1, %v1137_v0, 0.0 }
 0x253   :  { %v1249_v9 = vadd.f32 %v1248_v42, %v1247_v36  ;;  %v1139_v42 = vmul.f32 %v3216_v57, %v3216_v57  ;;  %v1256_v32 = vsel %vm877_vm1, %v1138_v51, 0.0  ;;  %v1141_v57 = vmul.f32 %v3230_v58, %v3230_v58 }
 0x255   :  { %v1251_v45 = vadd.f32 %v1250_v59, %v1249_v9  ;;  %v1140_v59 = vmul.f32 %v3223_v23, %v3223_v23  ;;  %v1258_v0 = vsel %vm877_vm1, %v1139_v42, 0.0  ;;  %v1142_v23 = vmul.f32 %v3237_v52, %v3237_v52 }
 0x256   :  { %v3261_v42 = vsub.f32 %v2817_v33, %v2828_v14 }
 0x257   :  { %v1253_v36 = vadd.f32 %v1252_v54, %v1251_v45  ;;  %v3899_v54 = vld [vmem:[#allocation18_spill] sm:$0xff]  ;;  %v1260_v51 = vsel %vm877_vm1, %v1140_v59, 0.0 }
 0x258   :  { %v3244_v1 = vsub.f32 %v3899_v54, %v2828_v14  ;;  %v1262_v54 = vsel %vm877_vm1, %v1141_v57, 0.0  ;;  %3903 = vst [vmem:[#allocation23_spill] sm:$0xff] %v3261_v42  ;;  %v1145_v57 = vmul.f32 %v3261_v42, %v3261_v42 }
 0x259   :  { %v1255_v9 = vadd.f32 %v1254_v26, %v1253_v36  ;;  %v3901_v26 = vld [vmem:[#allocation19_spill] sm:$0xff] }
 0x25a   :  { %3900 = vst [vmem:[#allocation18_spill] sm:$0xff] %v3244_v1  ;;  %v3251_v37 = vsub.f32 %v3901_v26, %v2828_v14 }
 0x25b   :  { %v1257_v45 = vadd.f32 %v1256_v32, %v1255_v9  ;;  %v1143_v32 = vmul.f32 %v3244_v1, %v3244_v1 }
 0x25c   :  { %3902 = vst [vmem:[#allocation19_spill] sm:$0xff] %v3251_v37 }
 0x25d   :  { %v1259_v36 = vadd.f32 %v1258_v0, %v1257_v45  ;;  %v1144_v45 = vmul.f32 %v3251_v37, %v3251_v37  ;;  %v1264_v0 = vsel %vm877_vm1, %v1142_v23, 0.0  ;;  %v1266_v52 = vsel %vm877_vm1, %v1143_v32, 0.0 }
 0x25f   :  { %v1261_v9 = vadd.f32 %v1260_v51, %v1259_v36  ;;  %v1082_v36 = vsub.f32 %v2821_v31, %v2828_v14  ;;  %v1268_v51 = vsel %vm877_vm1, %v1144_v45, 0.0 }
 0x261   :  { %v1263_v21 = vadd.f32 %v1262_v54, %v1261_v9  ;;  %v1146_v33 = vmul.f32 %v1082_v36, %v1082_v36  ;;  %v1270_v54 = vsel %vm877_vm1, %v1145_v57, 0.0 }
 0x263   :  { %v1265_v26 = vadd.f32 %v1264_v0, %v1263_v21  ;;  %v1272_v37 = vsel %vm877_vm1, %v1146_v33, 0.0  ;;  %v3286_v33 = vld [vmem:[%s3803_s2] ss:$0 sm:$0xff] }
 0x265   :  { %v1267_v59 = vadd.f32 %v1266_v52, %v1265_v26 }
 0x267   :  { %v1269_v9 = vadd.f32 %v1268_v51, %v1267_v59 }
 0x269   :  { %v1271_v1 = vadd.f32 %v1270_v54, %v1269_v9 }
 0x26b   :  { %v1273_v23 = vadd.f32 %v1272_v37, %v1271_v1 }
 0x26d   :  { %v1274_v21 = vrot.slane %v1273_v23, 4 }
 0x26f   :  { %v1275_v0 = vadd.f32 %v1274_v21, %v1273_v23 }
 0x271   :  { %v1276_v32 = vrot.slane %v1275_v0, 2 }
 0x273   :  { %v1277_v52 = vadd.f32 %v1276_v32, %v1275_v0 }
 0x275   :  { %v1278_v26 = vrot.slane %v1277_v52, 1 }
 0x277   :  { %v1279_v58 = vadd.f32 %v1278_v26, %v1277_v52 }
 0x279   :  { %v1280_v31 = vmul.f32 %v1279_v58, %v2825_v44  ;;  %v3904_v44 = vld [vmem:[#allocation2_spill] sm:$0xff] }
 0x27b   :  { %v1281_v14 = vadd.f32 1e-05, %v1280_v31  ;;  %v3907_v31 = vld [vmem:[#allocation5_spill] sm:$0xff] }
 0x27d   :  { %2035 = vrsqrt.f32 %v1281_v14  ;;  %vm1288_vm4 = vweird.f32 %v1281_v14 }
 0x283   :  { %v2036_v42 = vpop.eup %2035 }
 0x284   :  { %v1283_v45 = vmul.f32 %v2036_v42, %v1281_v14  ;;  %vm1289_vm3 = vweird.f32 %v2036_v42 }
 0x285   :  { %vm1290_vm5 = vmor %vm1288_vm4, %vm1289_vm3 }
 0x286   :  { %v1284_v59 = vmul.f32 %v2036_v42, %v1283_v45  ;;  %v3908_v45 = vld [vmem:[#allocation6_spill] sm:$0xff] }
 0x288   :  { %v1285_v51 = vmul.f32 0.5, %v1284_v59 }
 0x28a   :  { %v1286_v35 = vsub.f32 1.5, %v1285_v51 }
 0x28c   :  { %v1287_v57 = vmul.f32 %v2036_v42, %v1286_v35 }
 0x28e   :  { %v3275_v1 = vsel %vm1290_vm5, %v2036_v42, %v1287_v57 }
 0x28f   :  { %v1292_v37 = vmul.f32 %v3275_v1, %v2832_v30  ;;  %v1293_v9 = vmul.f32 %v3275_v1, %v2836_v43  ;;  %v1294_v58 = vmul.f32 %v3275_v1, %v3904_v44  ;;  %v1295_v35 = vmul.f32 %v3275_v1, %v2844_v55  ;;  %v3905_v43 = vld [vmem:[#allocation3_spill] sm:$0xff]  ;;  %v3303_v55 = vld [vmem:[%s3804_s3] ss:$0 sm:$0xff] }
 0x290   :  { %v1296_v42 = vmul.f32 %v3275_v1, %v2852_v48  ;;  %v1297_v30 = vmul.f32 %v3275_v1, %v2858_v12  ;;  %v1355_v54 = vmul.f32 %v3275_v1, %v1082_v36  ;;  %v1298_v23 = vmul.f32 %v3275_v1, %v3905_v43  ;;  %v3906_v48 = vld [vmem:[#allocation4_spill] sm:$0xff] }
 0x291   :  { %v1360_v21 = vmul.f32 %v3286_v33, %v1292_v37  ;;  %v1361_v0 = vmul.f32 %v3286_v33, %v1293_v9  ;;  %v1362_v32 = vmul.f32 %v3286_v33, %v1294_v58  ;;  %v1299_v52 = vmul.f32 %v3275_v1, %v3906_v48  ;;  %v3909_v58 = vld [vmem:[#allocation9_spill] sm:$0xff] }
 0x292   :  { %v1363_v12 = vmul.f32 %v3286_v33, %v1295_v35  ;;  %v1300_v36 = vmul.f32 %v3275_v1, %v2880_v29  ;;  %v1364_v26 = vmul.f32 %v3286_v33, %v1296_v42  ;;  %v1301_v14 = vmul.f32 %v3275_v1, %v3907_v31 }
 0x293   :  { %v1302_v59 = vmul.f32 %v3275_v1, %v3908_v45  ;;  %v1365_v51 = vmul.f32 %v3286_v33, %v1297_v30  ;;  %v1423_v57 = vmul.f32 %v3286_v33, %v1355_v54  ;;  %v1366_v37 = vmul.f32 %v3286_v33, %v1298_v23 }
 0x294   :  { %v1428_v9 = vadd.f32 %v3303_v55, %v1360_v21  ;;  %v1429_v44 = vadd.f32 %v3303_v55, %v1361_v0  ;;  %v1430_v29 = vadd.f32 %v3303_v55, %v1362_v32  ;;  %v1303_v35 = vmul.f32 %v3275_v1, %v3909_v58  ;;  %v3911_v58 = vld [vmem:[#allocation10_spill] sm:$0xff] }
 0x295   :  { %v1304_v42 = vmul.f32 %v3275_v1, %v2908_v47  ;;  %v1367_v43 = vmul.f32 %v3286_v33, %v1299_v52  ;;  %v1431_v30 = vadd.f32 %v3303_v55, %v1363_v12  ;;  %v1305_v54 = vmul.f32 %v3275_v1, %v2915_v11 }
 0x296   :  { %v1306_v23 = vmul.f32 %v3275_v1, %v2922_v4  ;;  %v1368_v21 = vmul.f32 %v3286_v33, %v1300_v36  ;;  %v1432_v0 = vadd.f32 %v3303_v55, %v1364_v26  ;;  %v1369_v32 = vmul.f32 %v3286_v33, %v1301_v14 }
 0x297   :  { %v1370_v48 = vmul.f32 %v3286_v33, %v1302_v59  ;;  %v1433_v47 = vadd.f32 %v3303_v55, %v1365_v51  ;;  %v3337_v52 = vadd.f32 %v3303_v55, %v1423_v57  ;;  %v1434_v12 = vadd.f32 %v3303_v55, %v1366_v37 }
 0x298   :  { %v1492_v31 = vmax.f32 %v1428_v9, 0.0  ;;  %v1493_v11 = vmax.f32 %v1429_v44, 0.0  ;;  %v1494_v45 = vmax.f32 %v1430_v29, 0.0  ;;  %v1307_v4 = vmul.f32 %v3275_v1, %v3911_v58 }
 0x299   :  { %3910 = vst [vmem:[#allocation2_spill] sm:$0xff] %v3337_v52  ;;  %v1371_v36 = vmul.f32 %v3286_v33, %v1303_v35  ;;  %v1435_v26 = vadd.f32 %v3303_v55, %v1367_v43  ;;  %v1495_v14 = vmax.f32 %v1431_v30, 0.0  ;;  %v1308_v59 = vmul.f32 %v3275_v1, %v3912_v17 }
 0x29a   :  { %v1372_v51 = vmul.f32 %v3286_v33, %v1304_v42  ;;  %v1436_v57 = vadd.f32 %v3303_v55, %v1368_v21  ;;  %v1496_v52 = vmax.f32 %v1432_v0, 0.0  ;;  %1556 = vst.msk [vmem:[%s3805_s4] sm:$0xff] %vm877_vm1, %v1492_v31  ;;  %v1309_v37 = vmul.f32 %v3275_v1, %v2943_v49 }
 0x29b   :  { %v1373_v9 = vmul.f32 %v3286_v33, %v1305_v54  ;;  %v1437_v44 = vadd.f32 %v3303_v55, %v1369_v32  ;;  %v1497_v29 = vmax.f32 %v1433_v47, 0.0  ;;  %1557 = vst.msk [vmem:[%s3805_s4 + $0x8] sm:$0xff] %vm877_vm1, %v1493_v11  ;;  %v1310_v17 = vmul.f32 %v3275_v1, %v2950_v61 }
 0x29c   :  { %v1374_v35 = vmul.f32 %v3286_v33, %v1306_v23  ;;  %v1438_v42 = vadd.f32 %v3303_v55, %v1370_v48  ;;  %v1498_v43 = vmax.f32 %v1434_v12, 0.0  ;;  %1558 = vst.msk [vmem:[%s3805_s4 + $0x10] sm:$0xff] %vm877_vm1, %v1494_v45  ;;  %v1311_v49 = vmul.f32 %v3275_v1, %v2957_v19 }
 0x29d   :  { %v1375_v30 = vmul.f32 %v3286_v33, %v1307_v4  ;;  %v1439_v54 = vadd.f32 %v3303_v55, %v1371_v36  ;;  %v1499_v21 = vmax.f32 %v1435_v26, 0.0  ;;  %1559 = vst.msk [vmem:[%s3805_s4 + $0x18] sm:$0xff] %vm877_vm1, %v1495_v14  ;;  %v1312_v61 = vmul.f32 %v3275_v1, %v2964_v34 }
 0x29e   :  { %v1376_v23 = vmul.f32 %v3286_v33, %v1308_v59  ;;  %v1440_v0 = vadd.f32 %v3303_v55, %v1372_v51  ;;  %v1500_v32 = vmax.f32 %v1436_v57, 0.0  ;;  %1560 = vst.msk [vmem:[%s3805_s4 + $0x20] sm:$0xff] %vm877_vm1, %v1496_v52  ;;  %v1313_v19 = vmul.f32 %v3275_v1, %v2971_v7 }
 0x29f   :  { %v1377_v48 = vmul.f32 %v3286_v33, %v1309_v37  ;;  %v1441_v47 = vadd.f32 %v3303_v55, %v1373_v9  ;;  %v1501_v12 = vmax.f32 %v1437_v44, 0.0  ;;  %1561 = vst.msk [vmem:[%s3805_s4 + $0x28] sm:$0xff] %vm877_vm1, %v1497_v29  ;;  %v1314_v34 = vmul.f32 %v3275_v1, %v2978_v24 }
 0x2a0   :  { %v1378_v31 = vmul.f32 %v3286_v33, %v1310_v17  ;;  %v1442_v52 = vadd.f32 %v3303_v55, %v1374_v35  ;;  %v1502_v11 = vmax.f32 %v1438_v42, 0.0  ;;  %1562 = vst.msk [vmem:[%s3805_s4 + $0x30] sm:$0xff] %vm877_vm1, %v1498_v43  ;;  %v1315_v7 = vmul.f32 %v3275_v1, %v2985_v27 }
 0x2a1   :  { %v1379_v45 = vmul.f32 %v3286_v33, %v1311_v49  ;;  %v1443_v58 = vadd.f32 %v3303_v55, %v1375_v30  ;;  %v1503_v4 = vmax.f32 %v1439_v54, 0.0  ;;  %1563 = vst.msk [vmem:[%s3805_s4 + $0x38] sm:$0xff] %vm877_vm1, %v1499_v21  ;;  %v1316_v24 = vmul.f32 %v3275_v1, %v2992_v16 }
 0x2a2   :  { %v1380_v36 = vmul.f32 %v3286_v33, %v1312_v61  ;;  %v1444_v26 = vadd.f32 %v3303_v55, %v1376_v23  ;;  %v1504_v14 = vmax.f32 %v1440_v0, 0.0  ;;  %1564 = vst.msk [vmem:[%s3805_s4 + $0x40] sm:$0xff] %vm877_vm1, %v1500_v32  ;;  %v1317_v27 = vmul.f32 %v3275_v1, %v2999_v25 }
 0x2a3   :  { %v1381_v59 = vmul.f32 %v3286_v33, %v1313_v19  ;;  %v1445_v51 = vadd.f32 %v3303_v55, %v1377_v48  ;;  %v1505_v57 = vmax.f32 %v1441_v47, 0.0  ;;  %1565 = vst.msk [vmem:[%s3805_s4 + $0x48] sm:$0xff] %vm877_vm1, %v1501_v12  ;;  %v1318_v16 = vmul.f32 %v3275_v1, %v3006_v13 }
 0x2a4   :  { %v1382_v37 = vmul.f32 %v3286_v33, %v1314_v34  ;;  %v1446_v9 = vadd.f32 %v3303_v55, %v1378_v31  ;;  %v1506_v44 = vmax.f32 %v1442_v52, 0.0  ;;  %1566 = vst.msk [vmem:[%s3805_s4 + $0x50] sm:$0xff] %vm877_vm1, %v1502_v11  ;;  %v1319_v25 = vmul.f32 %v3275_v1, %v3013_v41 }
 0x2a5   :  { %v1383_v29 = vmul.f32 %v3286_v33, %v1315_v7  ;;  %v1447_v17 = vadd.f32 %v3303_v55, %v1379_v45  ;;  %v1507_v35 = vmax.f32 %v1443_v58, 0.0  ;;  %1567 = vst.msk [vmem:[%s3805_s4 + $0x58] sm:$0xff] %vm877_vm1, %v1503_v4  ;;  %v1320_v13 = vmul.f32 %v3275_v1, %v3020_v18 }
 0x2a6   :  { %v1384_v42 = vmul.f32 %v3286_v33, %v1316_v24  ;;  %v1448_v43 = vadd.f32 %v3303_v55, %v1380_v36  ;;  %v1508_v49 = vmax.f32 %v1444_v26, 0.0  ;;  %1568 = vst.msk [vmem:[%s3805_s4 + $0x60] sm:$0xff] %vm877_vm1, %v1504_v14  ;;  %v1321_v41 = vmul.f32 %v3275_v1, %v3027_v20 }
 0x2a7   :  { %v1385_v30 = vmul.f32 %v3286_v33, %v1317_v27  ;;  %v1449_v54 = vadd.f32 %v3303_v55, %v1381_v59  ;;  %v1509_v21 = vmax.f32 %v1445_v51, 0.0  ;;  %1569 = vst.msk [vmem:[%s3805_s4 + $0x68] sm:$0xff] %vm877_vm1, %v1505_v57  ;;  %v1322_v18 = vmul.f32 %v3275_v1, %v3034_v2 }
 0x2a8   :  { %v1386_v61 = vmul.f32 %v3286_v33, %v1318_v16  ;;  %v1450_v23 = vadd.f32 %v3303_v55, %v1382_v37  ;;  %v1510_v0 = vmax.f32 %v1446_v9, 0.0  ;;  %1570 = vst.msk [vmem:[%s3805_s4 + $0x70] sm:$0xff] %vm877_vm1, %v1506_v44  ;;  %v1323_v20 = vmul.f32 %v3275_v1, %v3041_v3  ;;  %v3913_v3 = vld [vmem:[#allocation13_spill] sm:$0xff] }
 0x2a9   :  { %v1387_v32 = vmul.f32 %v3286_v33, %v1319_v25  ;;  %v1451_v19 = vadd.f32 %v3303_v55, %v1383_v29  ;;  %v1511_v48 = vmax.f32 %v1447_v17, 0.0  ;;  %1571 = vst.msk [vmem:[%s3805_s4 + $0x78] sm:$0xff] %vm877_vm1, %v1507_v35  ;;  %v1324_v2 = vmul.f32 %v3275_v1, %v3048_v8  ;;  %v3914_v8 = vld [vmem:[#allocation15_spill] sm:$0xff] }
 0x2aa   :  { %v1388_v47 = vmul.f32 %v3286_v33, %v1320_v13  ;;  %v1452_v12 = vadd.f32 %v3303_v55, %v1384_v42  ;;  %v1512_v34 = vmax.f32 %v1448_v43, 0.0  ;;  %1572 = vst.msk [vmem:[%s3805_s4 + $0x80] sm:$0xff] %vm877_vm1, %v1508_v49  ;;  %v1325_v31 = vmul.f32 %v3275_v1, %v3913_v3 }
 0x2ab   :  { %v1389_v52 = vmul.f32 %v3286_v33, %v1321_v41  ;;  %v1453_v11 = vadd.f32 %v3303_v55, %v1385_v30  ;;  %v1513_v7 = vmax.f32 %v1449_v54, 0.0  ;;  %1573 = vst.msk [vmem:[%s3805_s4 + $0x88] sm:$0xff] %vm877_vm1, %v1509_v21  ;;  %v1326_v45 = vmul.f32 %v3275_v1, %v3914_v8 }
 0x2ac   :  { %v1390_v58 = vmul.f32 %v3286_v33, %v1322_v18  ;;  %v1454_v4 = vadd.f32 %v3303_v55, %v1386_v61  ;;  %v1514_v24 = vmax.f32 %v1450_v23, 0.0  ;;  %1574 = vst.msk [vmem:[%s3805_s4 + $0x90] sm:$0xff] %vm877_vm1, %v1510_v0  ;;  %v1327_v36 = vmul.f32 %v3275_v1, %v3069_v15 }
 0x2ad   :  { %v1391_v26 = vmul.f32 %v3286_v33, %v1323_v20  ;;  %v1455_v14 = vadd.f32 %v3303_v55, %v1387_v32  ;;  %v1515_v27 = vmax.f32 %v1451_v19, 0.0  ;;  %1575 = vst.msk [vmem:[%s3805_s4 + $0x98] sm:$0xff] %vm877_vm1, %v1511_v48  ;;  %v1328_v59 = vmul.f32 %v3275_v1, %v3076_v38  ;;  %v3915_v38 = vld [vmem:[#allocation16_spill] sm:$0xff] }
 0x2ae   :  { %v1392_v51 = vmul.f32 %v3286_v33, %v1324_v2  ;;  %v1456_v57 = vadd.f32 %v3303_v55, %v1388_v47  ;;  %v1516_v16 = vmax.f32 %v1452_v12, 0.0  ;;  %1576 = vst.msk [vmem:[%s3805_s4 + $0xa0] sm:$0xff] %vm877_vm1, %v1512_v34  ;;  %v1329_v15 = vmul.f32 %v3275_v1, %v3083_v46  ;;  %v3916_v46 = vld [vmem:[#allocation17_spill] sm:$0xff] }
 0x2af   :  { %v1393_v37 = vmul.f32 %v3286_v33, %v1325_v31  ;;  %v1457_v9 = vadd.f32 %v3303_v55, %v1389_v52  ;;  %v1517_v44 = vmax.f32 %v1453_v11, 0.0  ;;  %1577 = vst.msk [vmem:[%s3805_s4 + $0xa8] sm:$0xff] %vm877_vm1, %v1513_v7  ;;  %v1330_v25 = vmul.f32 %v3275_v1, %v3915_v38 }
 0x2b0   :  { %v1394_v29 = vmul.f32 %v3286_v33, %v1326_v45  ;;  %v1458_v17 = vadd.f32 %v3303_v55, %v1390_v58  ;;  %v1518_v35 = vmax.f32 %v1454_v4, 0.0  ;;  %1578 = vst.msk [vmem:[%s3805_s4 + $0xb0] sm:$0xff] %vm877_vm1, %v1514_v24  ;;  %v1331_v13 = vmul.f32 %v3275_v1, %v3916_v46 }
 0x2b1   :  { %v1395_v42 = vmul.f32 %v3286_v33, %v1327_v36  ;;  %v1459_v43 = vadd.f32 %v3303_v55, %v1391_v26  ;;  %v1519_v49 = vmax.f32 %v1455_v14, 0.0  ;;  %1579 = vst.msk [vmem:[%s3805_s4 + $0xb8] sm:$0xff] %vm877_vm1, %v1515_v27  ;;  %v1332_v41 = vmul.f32 %v3275_v1, %v3104_v22 }
 0x2b2   :  { %v1396_v30 = vmul.f32 %v3286_v33, %v1328_v59  ;;  %v1460_v54 = vadd.f32 %v3303_v55, %v1392_v51  ;;  %v1520_v21 = vmax.f32 %v1456_v57, 0.0  ;;  %1580 = vst.msk [vmem:[%s3805_s4 + $0xc0] sm:$0xff] %vm877_vm1, %v1516_v16  ;;  %v1333_v18 = vmul.f32 %v3275_v1, %v3111_v39 }
 0x2b3   :  { %v1397_v61 = vmul.f32 %v3286_v33, %v1329_v15  ;;  %v1461_v23 = vadd.f32 %v3303_v55, %v1393_v37  ;;  %v1521_v0 = vmax.f32 %v1457_v9, 0.0  ;;  %1581 = vst.msk [vmem:[%s3805_s4 + $0xc8] sm:$0xff] %vm877_vm1, %v1517_v44  ;;  %v1334_v22 = vmul.f32 %v3275_v1, %v3118_v60 }
 0x2b4   :  { %v1398_v20 = vmul.f32 %v3286_v33, %v1330_v25  ;;  %v1462_v32 = vadd.f32 %v3303_v55, %v1394_v29  ;;  %v1522_v19 = vmax.f32 %v1458_v17, 0.0  ;;  %1582 = vst.msk [vmem:[%s3805_s4 + $0xd0] sm:$0xff] %vm877_vm1, %v1518_v35  ;;  %v1335_v39 = vmul.f32 %v3275_v1, %v3125_v6 }
 0x2b5   :  { %v1399_v48 = vmul.f32 %v3286_v33, %v1331_v13  ;;  %v1463_v2 = vadd.f32 %v3303_v55, %v1395_v42  ;;  %v1523_v47 = vmax.f32 %v1459_v43, 0.0  ;;  %1583 = vst.msk [vmem:[%s3805_s4 + $0xd8] sm:$0xff] %vm877_vm1, %v1519_v49  ;;  %v1336_v60 = vmul.f32 %v3275_v1, %v3132_v53 }
 0x2b6   :  { %v1400_v12 = vmul.f32 %v3286_v33, %v1332_v41  ;;  %v1464_v34 = vadd.f32 %v3303_v55, %v1396_v30  ;;  %v1524_v3 = vmax.f32 %v1460_v54, 0.0  ;;  %1584 = vst.msk [vmem:[%s3805_s4 + $0xe0] sm:$0xff] %vm877_vm1, %v1520_v21  ;;  %v1337_v6 = vmul.f32 %v3275_v1, %v3139_v56  ;;  %v3919_v30 = vld [vmem:[#allocation12_spill] sm:$0xff] }
 0x2b7   :  { %v1401_v31 = vmul.f32 %v3286_v33, %v1333_v18  ;;  %v1465_v52 = vadd.f32 %v3303_v55, %v1397_v61  ;;  %v1525_v11 = vmax.f32 %v1461_v23, 0.0  ;;  %1585 = vst.msk [vmem:[%s3805_s4 + $0xe8] sm:$0xff] %vm877_vm1, %v1521_v0  ;;  %v1338_v53 = vmul.f32 %v3275_v1, %v3146_v62  ;;  %v3920_v23 = vld [vmem:[#allocation14_spill] sm:$0xff] }
 0x2b8   :  { %v1402_v7 = vmul.f32 %v3286_v33, %v1334_v22  ;;  %v1466_v8 = vadd.f32 %v3303_v55, %v1398_v20  ;;  %v1526_v45 = vmax.f32 %v1462_v32, 0.0  ;;  %1586 = vst.msk [vmem:[%s3805_s4 + $0xf0] sm:$0xff] %vm877_vm1, %v1522_v19  ;;  %v1339_v56 = vmul.f32 %v3275_v1, %v3153_v5  ;;  %v3921_v19 = vld [vmem:[#allocation20_spill] sm:$0xff] }
 0x2b9   :  { %v1403_v58 = vmul.f32 %v3286_v33, %v1335_v39  ;;  %v1467_v4 = vadd.f32 %v3303_v55, %v1399_v48  ;;  %v1527_v24 = vmax.f32 %v1463_v2, 0.0  ;;  %1587 = vst.msk [vmem:[%s3805_s4 + $0xf8] sm:$0xff] %vm877_vm1, %v1523_v47  ;;  %v1340_v62 = vmul.f32 %v3275_v1, %v3160_v28 }
 0x2ba   :  { %v1404_v36 = vmul.f32 %v3286_v33, %v1336_v60  ;;  %v1468_v26 = vadd.f32 %v3303_v55, %v1400_v12  ;;  %v1528_v14 = vmax.f32 %v1464_v34, 0.0  ;;  %1588 = vst.msk [vmem:[%s3805_s4 + $0x100] sm:$0xff] %vm877_vm1, %v1524_v3  ;;  %v1341_v5 = vmul.f32 %v3275_v1, %v3167_v40  ;;  %v3922_v60 = vld [vmem:[#allocation21_spill] sm:$0xff] }
 0x2bb   :  { %v1405_v27 = vmul.f32 %v3286_v33, %v1337_v6  ;;  %v1469_v59 = vadd.f32 %v3303_v55, %v1401_v31  ;;  %v1529_v51 = vmax.f32 %v1465_v52, 0.0  ;;  %1589 = vst.msk [vmem:[%s3805_s4 + $0x108] sm:$0xff] %vm877_vm1, %v1525_v11  ;;  %v1342_v28 = vmul.f32 %v3275_v1, %v3174_v50  ;;  %v3923_v31 = vld [vmem:[#allocation22_spill] sm:$0xff] }
 0x2bc   :  { %v1406_v57 = vmul.f32 %v3286_v33, %v1338_v53  ;;  %v1470_v16 = vadd.f32 %v3303_v55, %v1402_v7  ;;  %v1530_v15 = vmax.f32 %v1466_v8, 0.0  ;;  %1590 = vst.msk [vmem:[%s3805_s4 + $0x110] sm:$0xff] %vm877_vm1, %v1526_v45  ;;  %v1343_v40 = vmul.f32 %v3275_v1, %v3181_v63  ;;  %v3917_v63 = vld [vmem:[#allocation7_spill] sm:$0xff]  ;;  %v3924_v8 = vld [vmem:[#allocation18_spill] sm:$0xff] }
 0x2bd   :  { %v1407_v37 = vmul.f32 %v3286_v33, %v1339_v56  ;;  %v1471_v9 = vadd.f32 %v3303_v55, %v1403_v58  ;;  %v1531_v44 = vmax.f32 %v1467_v4, 0.0  ;;  %1591 = vst.msk [vmem:[%s3805_s4 + $0x118] sm:$0xff] %vm877_vm1, %v1527_v24  ;;  %v1344_v50 = vmul.f32 %v3275_v1, %v3188_v10  ;;  %v3918_v10 = vld [vmem:[#allocation8_spill] sm:$0xff]  ;;  %v3925_v24 = vld [vmem:[#allocation19_spill] sm:$0xff] }
 0x2be   :  { %v1408_v38 = vmul.f32 %v3286_v33, %v1340_v62  ;;  %v1472_v25 = vadd.f32 %v3303_v55, %v1404_v36  ;;  %v1532_v29 = vmax.f32 %v1468_v26, 0.0  ;;  %1592 = vst.msk [vmem:[%s3805_s4 + $0x120] sm:$0xff] %vm877_vm1, %v1528_v14  ;;  %v1345_v17 = vmul.f32 %v3275_v1, %v3917_v63 }
 0x2bf   :  { %v1409_v35 = vmul.f32 %v3286_v33, %v1341_v5  ;;  %v1473_v46 = vadd.f32 %v3303_v55, %v1405_v27  ;;  %v1533_v13 = vmax.f32 %v1469_v59, 0.0  ;;  %1593 = vst.msk [vmem:[%s3805_s4 + $0x128] sm:$0xff] %vm877_vm1, %v1529_v51  ;;  %v1346_v42 = vmul.f32 %v3275_v1, %v3918_v10  ;;  %v3926_v5 = vld [vmem:[#allocation23_spill] sm:$0xff] }
 0x2c0   :  { %v1410_v43 = vmul.f32 %v3286_v33, %v1342_v28  ;;  %v1474_v49 = vadd.f32 %v3303_v55, %v1406_v57  ;;  %v1534_v41 = vmax.f32 %v1470_v16, 0.0  ;;  %1594 = vst.msk [vmem:[%s3805_s4 + $0x130] sm:$0xff] %vm877_vm1, %v1530_v15  ;;  %v1347_v54 = vmul.f32 %v3275_v1, %v3919_v30  ;;  %v3927_v30 = vld [vmem:[#allocation2_spill] sm:$0xff] }
 0x2c1   :  { %v1411_v21 = vmul.f32 %v3286_v33, %v1343_v40  ;;  %v1475_v18 = vadd.f32 %v3303_v55, %v1407_v37  ;;  %v1535_v61 = vmax.f32 %v1471_v9, 0.0  ;;  %1595 = vst.msk [vmem:[%s3805_s4 + $0x138] sm:$0xff] %vm877_vm1, %v1531_v44  ;;  %v1348_v0 = vmul.f32 %v3275_v1, %v3920_v23 }
 0x2c2   :  { %v1412_v22 = vmul.f32 %v3286_v33, %v1344_v50  ;;  %v1476_v20 = vadd.f32 %v3303_v55, %v1408_v38  ;;  %v1536_v32 = vmax.f32 %v1472_v25, 0.0  ;;  %1596 = vst.msk [vmem:[%s3805_s4 + $0x140] sm:$0xff] %vm877_vm1, %v1532_v29  ;;  %v1349_v39 = vmul.f32 %v3275_v1, %v3921_v19 }
 0x2c3   :  { %v1413_v48 = vmul.f32 %v3286_v33, %v1345_v17  ;;  %v1477_v2 = vadd.f32 %v3303_v55, %v1409_v35  ;;  %v1537_v47 = vmax.f32 %v1473_v46, 0.0  ;;  %1597 = vst.msk [vmem:[%s3805_s4 + $0x148] sm:$0xff] %vm877_vm1, %v1533_v13  ;;  %v1350_v12 = vmul.f32 %v3275_v1, %v3922_v60 }
 0x2c4   :  { %v1414_v34 = vmul.f32 %v3286_v33, %v1346_v42  ;;  %v1478_v3 = vadd.f32 %v3303_v55, %v1410_v43  ;;  %v1538_v6 = vmax.f32 %v1474_v49, 0.0  ;;  %1598 = vst.msk [vmem:[%s3805_s4 + $0x150] sm:$0xff] %vm877_vm1, %v1534_v41  ;;  %v1351_v52 = vmul.f32 %v3275_v1, %v3923_v31 }
 0x2c5   :  { %v1415_v11 = vmul.f32 %v3286_v33, %v1347_v54  ;;  %v1479_v53 = vadd.f32 %v3303_v55, %v1411_v21  ;;  %v1539_v7 = vmax.f32 %v1475_v18, 0.0  ;;  %1599 = vst.msk [vmem:[%s3805_s4 + $0x158] sm:$0xff] %vm877_vm1, %v1535_v61  ;;  %v1352_v45 = vmul.f32 %v3275_v1, %v3924_v8 }
 0x2c6   :  { %v1416_v56 = vmul.f32 %v3286_v33, %v1348_v0  ;;  %v1480_v58 = vadd.f32 %v3303_v55, %v1412_v22  ;;  %v1540_v4 = vmax.f32 %v1476_v20, 0.0  ;;  %1600 = vst.msk [vmem:[%s3805_s4 + $0x160] sm:$0xff] %vm877_vm1, %v1536_v32  ;;  %v1353_v62 = vmul.f32 %v3275_v1, %v3925_v24 }
 0x2c7   :  { %v1417_v36 = vmul.f32 %v3286_v33, %v1349_v39  ;;  %v1481_v26 = vadd.f32 %v3303_v55, %v1413_v48  ;;  %v1541_v14 = vmax.f32 %v1477_v2, 0.0  ;;  %1601 = vst.msk [vmem:[%s3805_s4 + $0x168] sm:$0xff] %vm877_vm1, %v1537_v47  ;;  %v1354_v27 = vmul.f32 %v3275_v1, %v3926_v5 }
 0x2c8   :  { %v1418_v59 = vmul.f32 %v3286_v33, %v1350_v12  ;;  %v1482_v51 = vadd.f32 %v3303_v55, %v1414_v34  ;;  %v1542_v28 = vmax.f32 %v1478_v3, 0.0  ;;  %1602 = vst.msk [vmem:[%s3805_s4 + $0x170] sm:$0xff] %vm877_vm1, %v1538_v6  ;;  %v1419_v57 = vmul.f32 %v3286_v33, %v1351_v52 }
 0x2c9   :  { %v1483_v16 = vadd.f32 %v3303_v55, %v1415_v11  ;;  %v1543_v15 = vmax.f32 %v1479_v53, 0.0  ;;  %1603 = vst.msk [vmem:[%s3805_s4 + $0x178] sm:$0xff] %vm877_vm1, %v1539_v7  ;;  %v1420_v1 = vmul.f32 %v3286_v33, %v1352_v45  ;;  %v1484_v40 = vadd.f32 %v3303_v55, %v1416_v56 }
 0x2ca   :  { %v1544_v37 = vmax.f32 %v1480_v58, 0.0  ;;  %1604 = vst.msk [vmem:[%s3805_s4 + $0x180] sm:$0xff] %vm877_vm1, %v1540_v4  ;;  %v1421_v9 = vmul.f32 %v3286_v33, %v1353_v62  ;;  %v1485_v44 = vadd.f32 %v3303_v55, %v1417_v36  ;;  %v1545_v50 = vmax.f32 %v1481_v26, 0.0 }
 0x2cb   :  { %1605 = vst.msk [vmem:[%s3805_s4 + $0x188] sm:$0xff] %vm877_vm1, %v1541_v14  ;;  %v1422_v38 = vmul.f32 %v3286_v33, %v1354_v27  ;;  %v1486_v25 = vadd.f32 %v3303_v55, %v1418_v59  ;;  %v1546_v29 = vmax.f32 %v1482_v51, 0.0  ;;  %v1487_v63 = vadd.f32 %v3303_v55, %v1419_v57 }
 0x2cc   :  { %1606 = vst.msk [vmem:[%s3805_s4 + $0x190] sm:$0xff] %vm877_vm1, %v1542_v28  ;;  %v1547_v17 = vmax.f32 %v1483_v16, 0.0  ;;  %v1488_v35 = vadd.f32 %v3303_v55, %v1420_v1  ;;  %v1548_v46 = vmax.f32 %v1484_v40, 0.0  ;;  %v1489_v33 = vadd.f32 %v3303_v55, %v1421_v9 }
 0x2cd   :  { %1607 = vst.msk [vmem:[%s3805_s4 + $0x198] sm:$0xff] %vm877_vm1, %v1543_v15  ;;  %v1549_v13 = vmax.f32 %v1485_v44, 0.0  ;;  %v1490_v10 = vadd.f32 %v3303_v55, %v1422_v38  ;;  %v1550_v42 = vmax.f32 %v1486_v25, 0.0  ;;  %v1551_v43 = vmax.f32 %v1487_v63, 0.0 }
 0x2ce   :  { %1608 = vst.msk [vmem:[%s3805_s4 + $0x1a0] sm:$0xff] %vm877_vm1, %v1544_v37  ;;  %v1552_v49 = vmax.f32 %v1488_v35, 0.0  ;;  %v1553_v41 = vmax.f32 %v1489_v33, 0.0  ;;  %v1555_v54 = vmax.f32 %v3927_v30, 0.0 }
 0x2cf   :  { %1609 = vst.msk [vmem:[%s3805_s4 + $0x1a8] sm:$0xff] %vm877_vm1, %v1545_v50  ;;  %v1554_v55 = vmax.f32 %v1490_v10, 0.0 }
 0x2d0   :  { %1610 = vst.msk [vmem:[%s3805_s4 + $0x1b0] sm:$0xff] %vm877_vm1, %v1546_v29 }
 0x2d1   :  { %1611 = vst.msk [vmem:[%s3805_s4 + $0x1b8] sm:$0xff] %vm877_vm1, %v1547_v17 }
 0x2d2   :  { %1612 = vst.msk [vmem:[%s3805_s4 + $0x1c0] sm:$0xff] %vm877_vm1, %v1548_v46 }
 0x2d3   :  { %1613 = vst.msk [vmem:[%s3805_s4 + $0x1c8] sm:$0xff] %vm877_vm1, %v1549_v13 }
 0x2d4   :  { %1614 = vst.msk [vmem:[%s3805_s4 + $0x1d0] sm:$0xff] %vm877_vm1, %v1550_v42 }
 0x2d5   :  { %1615 = vst.msk [vmem:[%s3805_s4 + $0x1d8] sm:$0xff] %vm877_vm1, %v1551_v43 }
 0x2d6   :  { %1616 = vst.msk [vmem:[%s3805_s4 + $0x1e0] sm:$0xff] %vm877_vm1, %v1552_v49 }
 0x2d7   :  { %1617 = vst.msk [vmem:[%s3805_s4 + $0x1e8] sm:$0xff] %vm877_vm1, %v1553_v41 }
 0x2d8   :  { %1618 = vst.msk [vmem:[%s3805_s4 + $0x1f0] sm:$0xff] %vm877_vm1, %v1554_v55 }
 0x2d9   :  { %1619 = vst.msk [vmem:[%s3805_s4 + $0x1f8] sm:$0xff] %vm877_vm1, %v1555_v54 }

// kernel: resnet2d_forward.11
= control target key start
LH: loop header
LB: loop body
LE: loop exit
PB: predicated region body
PF: predicated region fallthrough
CT: control target
= control target key end

     0   :  { %vm1048_vm0 = vcmask 1043456   ;;  %vm951_vm1 = vcmask 64512   ;;  %vm1792_vm2 = vcmask 31744   ;;  %s4008_s1 = inlined_call_operand.vmem [shape: bf16[392,4], index: 1, kind: input, shape index: {}]   ;;  %s4009_s0 = inlined_call_operand.vmem [shape: bf16[512,392], index: 0, kind: input, shape index: {}]   ;;  %s4010_s2 = inlined_call_operand.vmem [shape: f32[1,4], index: 2, kind: input, shape index: {}]   ;;  %s4011_s3 = inlined_call_operand.vmem [shape: f32[512,4], index: 3, kind: output, shape index: {}]  }
   0x1   :  { %v2636_v0 = vld [vmem:[%s4008_s1 + $0x38] sm:$0xff]  ;;  %v2635_v3 = vld [vmem:[%s4008_s1 + $0x30] sm:$0xff]  ;;  %v2634_v6 = vld [vmem:[%s4008_s1 + $0x28] sm:$0xff] }
   0x2   :  { %v2644_v1 = vld [vmem:[%s4008_s1 + $0x78] sm:$0xff]  ;;  %1052 = vmatpush.bf16.msra.mxu0 %v2636_v0  ;;  %v2643_v4 = vld [vmem:[%s4008_s1 + $0x70] sm:$0xff]  ;;  %v2642_v7 = vld [vmem:[%s4008_s1 + $0x68] sm:$0xff] }
   0x3   :  { %v2652_v2 = vld [vmem:[%s4008_s1 + $0xb8] sm:$0xff]  ;;  %1221 = vmatpush.bf16.msra.mxu1 %v2644_v1  ;;  %v2651_v5 = vld [vmem:[%s4008_s1 + $0xb0] sm:$0xff]  ;;  %v191_v8 = vld [vmem:[%s4008_s1 + $0xc0] sm:$0xf] }
   0x4   :  { %1390 = vmatpush.bf16.msra.mxu2 %v2652_v2  ;;  %v2650_v9 = vld [vmem:[%s4008_s1 + $0xa8] sm:$0xff]  ;;  %v901_v10 = vunpack.c.l.b16 %v191_v8  ;;  %v1873_v12 = vld [vmem:[%s4009_s0 + $0x18] sm:$0xf0]  ;;  %v2633_v14 = vld [vmem:[%s4008_s1 + $0x20] sm:$0xff] }
   0x5   :  { %v2502_v11 = vld [vmem:[%s4009_s0 + $0xc] sm:$0xf]  ;;  %v2641_v15 = vld [vmem:[%s4008_s1 + $0x60] sm:$0xff]  ;;  %v2632_v19 = vld [vmem:[%s4008_s1 + $0x18] sm:$0xff] }
   0x6   :  { %1053 = vmatpush.bf16.msra.mxu0 %v2635_v3  ;;  %v926_v13 = vpack.c.b16 %v901_v10, %v901_v10  ;;  %v2649_v16 = vld [vmem:[%s4008_s1 + $0xa0] sm:$0xff]  ;;  %v1876_v18 = vor.u32 %v2502_v11, %v1873_v12  ;;  %v2640_v20 = vld [vmem:[%s4008_s1 + $0x58] sm:$0xff]  ;;  %v2631_v22 = vld [vmem:[%s4008_s1 + $0x10] sm:$0xff] }
   0x7   :  { %1222 = vmatpush.bf16.msra.mxu1 %v2643_v4  ;;  %v2648_v21 = vld [vmem:[%s4008_s1 + $0x98] sm:$0xff]  ;;  %v2639_v23 = vld [vmem:[%s4008_s1 + $0x50] sm:$0xff]  ;;  %v2630_v25 = vld [vmem:[%s4008_s1 + $0x8] sm:$0xff] }
   0x8   :  { %1391 = vmatpush.bf16.msra.mxu2 %v2651_v5  ;;  %v1050_v17 = vsel %vm1048_vm0, %v926_v13, 0  ;;  %v2647_v24 = vld [vmem:[%s4008_s1 + $0x90] sm:$0xff]  ;;  %v2638_v26 = vld [vmem:[%s4008_s1 + $0x48] sm:$0xff]  ;;  %v1889_v29 = vld [vmem:[%s4009_s0 + $0x38] sm:$0xf0] }
   0x9   :  { %1566 = vmatpush.bf16.msra.mxu3 %v1050_v17  ;;  %v2646_v27 = vld [vmem:[%s4008_s1 + $0x88] sm:$0xff]  ;;  %v2629_v30 = vld [vmem:[%s4008_s1] sm:$0xff]  ;;  %v2503_v33 = vld [vmem:[%s4009_s0 + $0xc] sm:$0xf0] }
   0xa   :  { %1054 = vmatpush.bf16.msra.mxu0 %v2634_v6  ;;  %v2506_v28 = vld [vmem:[%s4009_s0 + $0x2c] sm:$0xf]  ;;  %v2637_v31 = vld [vmem:[%s4008_s1 + $0x40] sm:$0xff]  ;;  %v1865_v35 = vld [vmem:[%s4009_s0 + $0x10] sm:$0xf0] }
   0xb   :  { %1223 = vmatpush.bf16.msra.mxu1 %v2642_v7  ;;  %v1863_v32 = vld [vmem:[%s4009_s0] sm:$0xf]  ;;  %v2501_v34 = vld [vmem:[%s4009_s0 + $0x4] sm:$0xf]  ;;  %v1871_v37 = vld [vmem:[%s4009_s0 + $0x8] sm:$0xf]  ;;  %v1892_v39 = vor.u32 %v2506_v28, %v1889_v29 }
   0xc   :  { %1392 = vmatpush.bf16.msra.mxu2 %v2650_v9  ;;  %2469 = vmatmul.msk.bf16.vlgmr.msra.gmra.mxu3 %vm951_vm1, %v1876_v18  ;;  %v2645_v36 = vld [vmem:[%s4008_s1 + $0x80] sm:$0xff]  ;;  %v2504_v38 = vld [vmem:[%s4009_s0 + $0x14] sm:$0xf0]  ;;  %v1864_v40 = vor.u32 %v2503_v33, %v1863_v32  ;;  %v1868_v41 = vor.u32 %v2501_v34, %v1865_v35  ;;  %v2510_v43 = vld [vmem:[%s4009_s0 + $0x4c] sm:$0xf] }
   0xd   :  { %v1872_v42 = vor.u32 %v2504_v38, %v1871_v37  ;;  %v1905_v44 = vld [vmem:[%s4009_s0 + $0x58] sm:$0xf0]  ;;  %v1879_v45 = vld [vmem:[%s4009_s0 + $0x20] sm:$0xf]  ;;  %v2507_v46 = vld [vmem:[%s4009_s0 + $0x2c] sm:$0xf0] }
   0xe   :  { %1055 = vmatpush.bf16.msra.mxu0 %v2633_v14  ;;  %v2505_v47 = vld [vmem:[%s4009_s0 + $0x24] sm:$0xf]  ;;  %v1881_v48 = vld [vmem:[%s4009_s0 + $0x30] sm:$0xf0]  ;;  %v1887_v49 = vld [vmem:[%s4009_s0 + $0x28] sm:$0xf]  ;;  %v1908_v51 = vor.u32 %v2510_v43, %v1905_v44  ;;  %v1880_v52 = vor.u32 %v2507_v46, %v1879_v45 }
   0xf   :  { %1224 = vmatpush.bf16.msra.mxu1 %v2641_v15  ;;  %v2508_v50 = vld [vmem:[%s4009_s0 + $0x34] sm:$0xf0]  ;;  %v1884_v53 = vor.u32 %v2505_v47, %v1881_v48  ;;  %v2514_v55 = vld [vmem:[%s4009_s0 + $0x6c] sm:$0xf]  ;;  %v1921_v56 = vld [vmem:[%s4009_s0 + $0x78] sm:$0xf0] }
  0x10   :  { %1393 = vmatpush.bf16.msra.mxu2 %v2649_v16  ;;  %v1888_v54 = vor.u32 %v2508_v50, %v1887_v49  ;;  %v1895_v57 = vld [vmem:[%s4009_s0 + $0x40] sm:$0xf]  ;;  %v2511_v58 = vld [vmem:[%s4009_s0 + $0x4c] sm:$0xf0]  ;;  %v2509_v59 = vld [vmem:[%s4009_s0 + $0x44] sm:$0xf]  ;;  %v1924_v63 = vor.u32 %v2514_v55, %v1921_v56 }
  0x11   :  { %v1897_v60 = vld [vmem:[%s4009_s0 + $0x50] sm:$0xf0]  ;;  %v1903_v61 = vld [vmem:[%s4009_s0 + $0x48] sm:$0xf]  ;;  %v2512_v62 = vld [vmem:[%s4009_s0 + $0x54] sm:$0xf0]  ;;  %v1896_v0 = vor.u32 %v2511_v58, %v1895_v57 }
  0x12   :  { %1056 = vmatpush.bf16.msra.mxu0 %v2632_v19  ;;  %v1900_v1 = vor.u32 %v2509_v59, %v1897_v60  ;;  %v1904_v2 = vor.u32 %v2512_v62, %v1903_v61  ;;  %v2518_v3 = vld [vmem:[%s4009_s0 + $0x8c] sm:$0xf]  ;;  %v1937_v4 = vld [vmem:[%s4009_s0 + $0x98] sm:$0xf0]  ;;  %v1911_v5 = vld [vmem:[%s4009_s0 + $0x60] sm:$0xf] }
  0x13   :  { %1225 = vmatpush.bf16.msra.mxu1 %v2640_v20  ;;  %v2515_v6 = vld [vmem:[%s4009_s0 + $0x6c] sm:$0xf0]  ;;  %v2513_v7 = vld [vmem:[%s4009_s0 + $0x64] sm:$0xf]  ;;  %v1913_v8 = vld [vmem:[%s4009_s0 + $0x70] sm:$0xf0]  ;;  %v1940_v11 = vor.u32 %v2518_v3, %v1937_v4 }
  0x14   :  { %1394 = vmatpush.bf16.msra.mxu2 %v2648_v21  ;;  %v1919_v9 = vld [vmem:[%s4009_s0 + $0x68] sm:$0xf]  ;;  %v2516_v10 = vld [vmem:[%s4009_s0 + $0x74] sm:$0xf0]  ;;  %v1912_v12 = vor.u32 %v2515_v6, %v1911_v5  ;;  %v1916_v13 = vor.u32 %v2513_v7, %v1913_v8  ;;  %v2522_v15 = vld [vmem:[%s4009_s0 + $0xac] sm:$0xf] }
  0x15   :  { %v1920_v14 = vor.u32 %v2516_v10, %v1919_v9  ;;  %v1953_v16 = vld [vmem:[%s4009_s0 + $0xb8] sm:$0xf0]  ;;  %v1927_v17 = vld [vmem:[%s4009_s0 + $0x80] sm:$0xf]  ;;  %v2519_v18 = vld [vmem:[%s4009_s0 + $0x8c] sm:$0xf0] }
  0x16   :  { %1057 = vmatpush.bf16.msra.mxu0 %v2631_v22  ;;  %v2517_v19 = vld [vmem:[%s4009_s0 + $0x84] sm:$0xf]  ;;  %v1929_v20 = vld [vmem:[%s4009_s0 + $0x90] sm:$0xf0]  ;;  %v1935_v21 = vld [vmem:[%s4009_s0 + $0x88] sm:$0xf] }
  0x17   :  { %1226 = vmatpush.bf16.msra.mxu1 %v2639_v23  ;;  %v2520_v22 = vld [vmem:[%s4009_s0 + $0x94] sm:$0xf0]  ;;  %v1956_v23 = vor.u32 %v2522_v15, %v1953_v16  ;;  %v1969_v28 = vld [vmem:[%s4009_s0 + $0xd8] sm:$0xf0]  ;;  %v1943_v29 = vld [vmem:[%s4009_s0 + $0xa0] sm:$0xf] }
  0x18   :  { %1395 = vmatpush.bf16.msra.mxu2 %v2647_v24  ;;  %v1928_v24 = vor.u32 %v2519_v18, %v1927_v17  ;;  %v1945_v32 = vld [vmem:[%s4009_s0 + $0xb0] sm:$0xf0]  ;;  %v1951_v33 = vld [vmem:[%s4009_s0 + $0xa8] sm:$0xf]  ;;  %v2524_v34 = vld [vmem:[%s4009_s0 + $0xb4] sm:$0xf0] }
  0x19   :  { %v1952_v38 = vor.u32 %v2524_v34, %v1951_v33  ;;  %v2525_v43 = vld [vmem:[%s4009_s0 + $0xc4] sm:$0xf]  ;;  %v1961_v44 = vld [vmem:[%s4009_s0 + $0xd0] sm:$0xf0]  ;;  %v1967_v45 = vld [vmem:[%s4009_s0 + $0xc8] sm:$0xf] }
  0x1a   :  { %1058 = vmatpush.bf16.msra.mxu0 %v2630_v25  ;;  %v1932_v25 = vor.u32 %v2517_v19, %v1929_v20  ;;  %v2528_v46 = vld [vmem:[%s4009_s0 + $0xd4] sm:$0xf0]  ;;  %v1964_v49 = vor.u32 %v2525_v43, %v1961_v44  ;;  %v2529_v55 = vld [vmem:[%s4009_s0 + $0xe4] sm:$0xf]  ;;  %v1977_v56 = vld [vmem:[%s4009_s0 + $0xf0] sm:$0xf0] }
  0x1b   :  { %1227 = vmatpush.bf16.msra.mxu1 %v2638_v26  ;;  %v1936_v26 = vor.u32 %v2520_v22, %v1935_v21  ;;  %v1968_v50 = vor.u32 %v2528_v46, %v1967_v45  ;;  %v1983_v57 = vld [vmem:[%s4009_s0 + $0xe8] sm:$0xf]  ;;  %v2532_v58 = vld [vmem:[%s4009_s0 + $0xf4] sm:$0xf0]  ;;  %v1980_v61 = vor.u32 %v2529_v55, %v1977_v56  ;;  %v2535_v3 = vld [vmem:[%s4009_s0 + $0x10c] sm:$0xf0] }
  0x1c   :  { %1396 = vmatpush.bf16.msra.mxu2 %v2646_v27  ;;  %2470 = vmatmul.msk.bf16.gmra.mxu3 %vm951_vm1, %v1892_v39  ;;  %v2526_v27 = vld [vmem:[%s4009_s0 + $0xcc] sm:$0xf]  ;;  %v1984_v62 = vor.u32 %v2532_v58, %v1983_v57  ;;  %v2533_v4 = vld [vmem:[%s4009_s0 + $0x104] sm:$0xf]  ;;  %v1993_v5 = vld [vmem:[%s4009_s0 + $0x110] sm:$0xf0] }
  0x1d   :  { %v1972_v35 = vor.u32 %v2526_v27, %v1969_v28  ;;  %v2530_v39 = vld [vmem:[%s4009_s0 + $0xec] sm:$0xf]  ;;  %v3107_v7 = vld [vmem:[%s4010_s2] ss:$0 sm:$0xff]  ;;  %v1999_v8 = vld [vmem:[%s4009_s0 + $0x108] sm:$0xf] }
  0x1e   :  { %1059 = vmatpush.bf16.msra.mxu0 %v2629_v30  ;;  %v2523_v30 = vld [vmem:[%s4009_s0 + $0xac] sm:$0xf0]  ;;  %v2536_v9 = vld [vmem:[%s4009_s0 + $0x114] sm:$0xf0]  ;;  %v2007_v27 = vld [vmem:[%s4009_s0 + $0x120] sm:$0xf] }
  0x1f   :  { %1228 = vmatpush.bf16.msra.mxu1 %v2637_v31  ;;  %v2521_v31 = vld [vmem:[%s4009_s0 + $0xa4] sm:$0xf]  ;;  %v2000_v15 = vor.u32 %v2536_v9, %v1999_v8  ;;  %v2539_v28 = vld [vmem:[%s4009_s0 + $0x12c] sm:$0xf0]  ;;  %v2540_v33 = vld [vmem:[%s4009_s0 + $0x134] sm:$0xf0] }
  0x20   :  { %1397 = vmatpush.bf16.msra.mxu2 %v2645_v36  ;;  %v1944_v36 = vor.u32 %v2523_v30, %v1943_v29  ;;  %v1948_v37 = vor.u32 %v2521_v31, %v1945_v32  ;;  %v2537_v29 = vld [vmem:[%s4009_s0 + $0x124] sm:$0xf]  ;;  %v2009_v30 = vld [vmem:[%s4009_s0 + $0x130] sm:$0xf0]  ;;  %v2015_v32 = vld [vmem:[%s4009_s0 + $0x128] sm:$0xf] }
  0x21   :  { %1060 = vmatmul.bf16.vlgmr.msra.gmra.mxu0 %v1864_v40  ;;  %v1985_v40 = vld [vmem:[%s4009_s0 + $0xf8] sm:$0xf0]  ;;  %v2546_v55 = vld [vmem:[%s4009_s0 + $0x16c] sm:$0xf]  ;;  %v2023_v57 = vld [vmem:[%s4009_s0 + $0x140] sm:$0xf] }
  0x22   :  { %1229 = vmatmul.bf16.vlgmr.msra.gmra.mxu1 %v1868_v41  ;;  %v1959_v41 = vld [vmem:[%s4009_s0 + $0xc0] sm:$0xf]  ;;  %v1988_v47 = vor.u32 %v2530_v39, %v1985_v40  ;;  %v2049_v56 = vld [vmem:[%s4009_s0 + $0x178] sm:$0xf0]  ;;  %v2543_v58 = vld [vmem:[%s4009_s0 + $0x14c] sm:$0xf0] }
  0x23   :  { %1398 = vmatmul.bf16.vlgmr.msra.gmra.mxu2 %v1872_v42  ;;  %v2527_v42 = vld [vmem:[%s4009_s0 + $0xcc] sm:$0xf0] }
  0x24   :  { %v1960_v48 = vor.u32 %v2527_v42, %v1959_v41  ;;  %v2016_v42 = vor.u32 %v2540_v33, %v2015_v32 }
  0x2c   :  { %2471 = vmatmul.msk.bf16.gmra.mxu3 %vm951_vm1, %v1908_v51  ;;  %v2534_v51 = vld [vmem:[%s4009_s0 + $0x10c] sm:$0xf] }
  0x31   :  { %1065 = vmatmul.bf16.gmra.mxu0 %v1880_v52  ;;  %v2001_v52 = vld [vmem:[%s4009_s0 + $0x118] sm:$0xf0] }
  0x32   :  { %1234 = vmatmul.bf16.gmra.mxu1 %v1884_v53  ;;  %v1975_v53 = vld [vmem:[%s4009_s0 + $0xe0] sm:$0xf]  ;;  %v2004_v59 = vor.u32 %v2534_v51, %v2001_v52 }
  0x33   :  { %1403 = vmatmul.bf16.gmra.mxu2 %v1888_v54  ;;  %v2531_v54 = vld [vmem:[%s4009_s0 + $0xec] sm:$0xf0] }
  0x34   :  { %v1976_v60 = vor.u32 %v2531_v54, %v1975_v53 }
  0x3c   :  { %2472 = vmatmul.msk.bf16.gmra.mxu3 %vm951_vm1, %v1924_v63 }
  0x41   :  { %1070 = vmatmul.bf16.gmra.mxu0 %v1896_v0  ;;  %v2538_v0 = vld [vmem:[%s4009_s0 + $0x12c] sm:$0xf] }
  0x42   :  { %1239 = vmatmul.bf16.gmra.mxu1 %v1900_v1  ;;  %v2017_v1 = vld [vmem:[%s4009_s0 + $0x138] sm:$0xf0] }
  0x43   :  { %1408 = vmatmul.bf16.gmra.mxu2 %v1904_v2  ;;  %v1991_v2 = vld [vmem:[%s4009_s0 + $0x100] sm:$0xf]  ;;  %v2020_v10 = vor.u32 %v2538_v0, %v2017_v1  ;;  %v2052_v0 = vor.u32 %v2546_v55, %v2049_v56  ;;  %v2551_v55 = vld [vmem:[%s4009_s0 + $0x18c] sm:$0xf0]  ;;  %v2549_v56 = vld [vmem:[%s4009_s0 + $0x184] sm:$0xf] }
  0x4c   :  { %2473 = vmatmul.msk.bf16.gmra.mxu3 %vm951_vm1, %v1940_v11  ;;  %v1992_v11 = vor.u32 %v2535_v3, %v1991_v2  ;;  %v2024_v3 = vor.u32 %v2543_v58, %v2023_v57  ;;  %v2057_v57 = vld [vmem:[%s4009_s0 + $0x190] sm:$0xf0] }
  0x51   :  { %1075 = vmatmul.bf16.gmra.mxu0 %v1912_v12  ;;  %v1996_v12 = vor.u32 %v2533_v4, %v1993_v5 }
  0x52   :  { %1244 = vmatmul.bf16.gmra.mxu1 %v1916_v13 }
  0x53   :  { %1413 = vmatmul.bf16.gmra.mxu2 %v1920_v14 }
  0x5c   :  { %2474 = vmatmul.msk.bf16.gmra.mxu3 %vm951_vm1, %v1956_v23 }
  0x61   :  { %1080 = vmatmul.bf16.gmra.mxu0 %v1928_v24 }
  0x62   :  { %1249 = vmatmul.bf16.gmra.mxu1 %v1932_v25  ;;  %v2542_v25 = vld [vmem:[%s4009_s0 + $0x14c] sm:$0xf] }
  0x63   :  { %1418 = vmatmul.bf16.gmra.mxu2 %v1936_v26  ;;  %v2033_v26 = vld [vmem:[%s4009_s0 + $0x158] sm:$0xf0] }
  0x64   :  { %v2036_v34 = vor.u32 %v2542_v25, %v2033_v26  ;;  %v2547_v25 = vld [vmem:[%s4009_s0 + $0x16c] sm:$0xf0]  ;;  %v2545_v26 = vld [vmem:[%s4009_s0 + $0x164] sm:$0xf] }
  0x6c   :  { %2475 = vmatmul.msk.bf16.gmra.mxu3 %vm951_vm1, %v1972_v35 }
  0x71   :  { %1085 = vmatmul.bf16.gmra.mxu0 %v1944_v36 }
  0x72   :  { %1254 = vmatmul.bf16.gmra.mxu1 %v1948_v37  ;;  %v2008_v37 = vor.u32 %v2539_v28, %v2007_v27  ;;  %v2041_v27 = vld [vmem:[%s4009_s0 + $0x170] sm:$0xf0] }
  0x73   :  { %1423 = vmatmul.bf16.gmra.mxu2 %v1952_v38  ;;  %v2012_v38 = vor.u32 %v2537_v29, %v2009_v30  ;;  %v2047_v29 = vld [vmem:[%s4009_s0 + $0x168] sm:$0xf]  ;;  %v2548_v30 = vld [vmem:[%s4009_s0 + $0x174] sm:$0xf0] }
  0x7c   :  { %2476 = vmatmul.msk.bf16.gmra.mxu3 %vm951_vm1, %v1988_v47 }
  0x81   :  { %1090 = vmatmul.bf16.gmra.mxu0 %v1960_v48 }
  0x82   :  { %1259 = vmatmul.bf16.gmra.mxu1 %v1964_v49 }
  0x83   :  { %1428 = vmatmul.bf16.gmra.mxu2 %v1968_v50 }
  0x8c   :  { %2477 = vmatmul.msk.bf16.gmra.mxu3 %vm951_vm1, %v2004_v59  ;;  %v2541_v59 = vld [vmem:[%s4009_s0 + $0x144] sm:$0xf] }
  0x8f   :  { %v1568_v63 = vpop.f32.mrf.mxu3 }
  0x91   :  { %1095 = vmatmul.bf16.gmra.mxu0 %v1976_v60  ;;  %v2025_v60 = vld [vmem:[%s4009_s0 + $0x150] sm:$0xf0] }
  0x92   :  { %1264 = vmatmul.bf16.gmra.mxu1 %v1980_v61  ;;  %v2028_v4 = vor.u32 %v2541_v59, %v2025_v60  ;;  %v2063_v59 = vld [vmem:[%s4009_s0 + $0x188] sm:$0xf]  ;;  %v2552_v60 = vld [vmem:[%s4009_s0 + $0x194] sm:$0xf0] }
  0x93   :  { %1433 = vmatmul.bf16.gmra.mxu2 %v1984_v62  ;;  %v2031_v62 = vld [vmem:[%s4009_s0 + $0x148] sm:$0xf] }
  0x97   :  { %v1570_v6 = vpop.f32.mrf.mxu3 }
  0x9c   :  { %2478 = vmatmul.msk.bf16.gmra.mxu3 %vm951_vm1, %v2020_v10 }
  0x9e   :  { %v1061_v13 = vpop.f32.mrf.mxu0 }
  0x9f   :  { %v1230_v14 = vpop.f32.mrf.mxu1  ;;  %v1062_v16 = vadd.f32 %v3107_v7, %v1061_v13  ;;  %v1573_v18 = vpop.f32.mrf.mxu3 }
  0xa1   :  { %1100 = vmatmul.bf16.gmra.mxu0 %v1992_v11  ;;  %v1231_v17 = vadd.f32 %v1230_v14, %v1062_v16 }
  0xa2   :  { %1269 = vmatmul.bf16.gmra.mxu1 %v1996_v12 }
  0xa3   :  { %1438 = vmatmul.bf16.gmra.mxu2 %v2000_v15 }
  0xa6   :  { %v1399_v19 = vpop.f32.mrf.mxu2  ;;  %v1063_v21 = vpop.f32.mrf.mxu0 }
  0xa7   :  { %v1400_v20 = vadd.f32 %v1399_v19, %v1231_v17  ;;  %v1232_v22 = vpop.f32.mrf.mxu1  ;;  %v1064_v24 = vadd.f32 %v3107_v7, %v1063_v21  ;;  %v1575_v31 = vpop.f32.mrf.mxu3 }
  0xa9   :  { %v1569_v23 = vadd.f32 %v1568_v63, %v1400_v20  ;;  %v1233_v35 = vadd.f32 %v1232_v22, %v1064_v24  ;;  %v2544_v63 = vld [vmem:[%s4009_s0 + $0x154] sm:$0xf0]  ;;  %v2550_v22 = vld [vmem:[%s4009_s0 + $0x18c] sm:$0xf]  ;;  %v2039_v24 = vld [vmem:[%s4009_s0 + $0x160] sm:$0xf] }
  0xaa   :  { %v2032_v9 = vor.u32 %v2544_v63, %v2031_v62 }
  0xab   :  { %2654 = vtanh.f32 %v1569_v23  ;;  %v2065_v23 = vld [vmem:[%s4009_s0 + $0x198] sm:$0xf0] }
  0xac   :  { %2479 = vmatmul.msk.bf16.gmra.mxu3 %vm951_vm1, %v2036_v34  ;;  %v2040_v34 = vor.u32 %v2547_v25, %v2039_v24  ;;  %v2073_v24 = vld [vmem:[%s4009_s0 + $0x1b0] sm:$0xf0] }
  0xae   :  { %v1401_v36 = vpop.f32.mrf.mxu2  ;;  %v1066_v40 = vpop.f32.mrf.mxu0 }
  0xaf   :  { %v1402_v39 = vadd.f32 %v1401_v36, %v1233_v35  ;;  %v1235_v41 = vpop.f32.mrf.mxu1  ;;  %v1067_v43 = vadd.f32 %v3107_v7, %v1066_v40  ;;  %v1578_v47 = vpop.f32.mrf.mxu3  ;;  %v2044_v35 = vor.u32 %v2545_v26, %v2041_v27  ;;  %v2079_v26 = vld [vmem:[%s4009_s0 + $0x1a8] sm:$0xf]  ;;  %v2556_v27 = vld [vmem:[%s4009_s0 + $0x1b4] sm:$0xf0] }
  0xb1   :  { %v2655_v44 = vpop.eup %2654  ;;  %v1571_v45 = vadd.f32 %v1570_v6, %v1402_v39  ;;  %1105 = vmatmul.bf16.gmra.mxu0 %v2008_v37  ;;  %v1236_v46 = vadd.f32 %v1235_v41, %v1067_v43  ;;  %v2048_v39 = vor.u32 %v2548_v30, %v2047_v29 }
  0xb2   :  { %1793 = vst.msk [vmem:[%s4011_s3] sm:$0xff] %vm1792_vm2, %v2655_v44  ;;  %1274 = vmatmul.bf16.gmra.mxu1 %v2012_v38 }
  0xb3   :  { %2656 = vtanh.f32 %v1571_v45  ;;  %1443 = vmatmul.bf16.gmra.mxu2 %v2016_v42 }
  0xb6   :  { %v1404_v48 = vpop.f32.mrf.mxu2  ;;  %v1068_v50 = vpop.f32.mrf.mxu0 }
  0xb7   :  { %v1405_v49 = vadd.f32 %v1404_v48, %v1236_v46  ;;  %v1237_v51 = vpop.f32.mrf.mxu1  ;;  %v1069_v54 = vadd.f32 %v3107_v7, %v1068_v50  ;;  %v1580_v61 = vpop.f32.mrf.mxu3 }
  0xb9   :  { %v2657_v52 = vpop.eup %2656  ;;  %v1574_v53 = vadd.f32 %v1573_v18, %v1405_v49  ;;  %v1238_v1 = vadd.f32 %v1237_v51, %v1069_v54  ;;  %v2055_v54 = vld [vmem:[%s4009_s0 + $0x180] sm:$0xf] }
  0xba   :  { %1794 = vst.msk [vmem:[%s4011_s3 + $0x8] sm:$0xff] %vm1792_vm2, %v2657_v52  ;;  %v2554_v52 = vld [vmem:[%s4009_s0 + $0x1ac] sm:$0xf] }
  0xbb   :  { %2658 = vtanh.f32 %v1574_v53  ;;  %v2081_v53 = vld [vmem:[%s4009_s0 + $0x1b8] sm:$0xf0] }
  0xbc   :  { %2480 = vmatmul.msk.bf16.gmra.mxu3 %vm951_vm1, %v2052_v0  ;;  %v2056_v0 = vor.u32 %v2551_v55, %v2055_v54  ;;  %v2089_v54 = vld [vmem:[%s4009_s0 + $0x1d0] sm:$0xf0] }
  0xbe   :  { %v1406_v2 = vpop.f32.mrf.mxu2  ;;  %v1071_v6 = vpop.f32.mrf.mxu0 }
  0xbf   :  { %v1407_v5 = vadd.f32 %v1406_v2, %v1238_v1  ;;  %v1240_v8 = vpop.f32.mrf.mxu1  ;;  %v1072_v10 = vadd.f32 %v3107_v7, %v1071_v6  ;;  %v1583_v14 = vpop.f32.mrf.mxu3  ;;  %v2060_v1 = vor.u32 %v2549_v56, %v2057_v57  ;;  %v2095_v56 = vld [vmem:[%s4009_s0 + $0x1c8] sm:$0xf]  ;;  %v2560_v57 = vld [vmem:[%s4009_s0 + $0x1d4] sm:$0xf0] }
  0xc1   :  { %v2659_v11 = vpop.eup %2658  ;;  %v1576_v12 = vadd.f32 %v1575_v31, %v1407_v5  ;;  %1110 = vmatmul.bf16.gmra.mxu0 %v2024_v3  ;;  %v1241_v13 = vadd.f32 %v1240_v8, %v1072_v10  ;;  %v2068_v31 = vor.u32 %v2550_v22, %v2065_v23  ;;  %v2064_v5 = vor.u32 %v2552_v60, %v2063_v59  ;;  %v2555_v22 = vld [vmem:[%s4009_s0 + $0x1ac] sm:$0xf0]  ;;  %v2553_v23 = vld [vmem:[%s4009_s0 + $0x1a4] sm:$0xf] }
  0xc2   :  { %1795 = vst.msk [vmem:[%s4011_s3 + $0x10] sm:$0xff] %vm1792_vm2, %v2659_v11  ;;  %1279 = vmatmul.bf16.gmra.mxu1 %v2028_v4 }
  0xc3   :  { %2660 = vtanh.f32 %v1576_v12  ;;  %1448 = vmatmul.bf16.gmra.mxu2 %v2032_v9 }
  0xc6   :  { %v1409_v15 = vpop.f32.mrf.mxu2  ;;  %v1073_v17 = vpop.f32.mrf.mxu0 }
  0xc7   :  { %v1410_v16 = vadd.f32 %v1409_v15, %v1241_v13  ;;  %v1242_v18 = vpop.f32.mrf.mxu1  ;;  %v1074_v21 = vadd.f32 %v3107_v7, %v1073_v17  ;;  %v1585_v28 = vpop.f32.mrf.mxu3 }
  0xc9   :  { %v2661_v19 = vpop.eup %2660  ;;  %v1579_v20 = vadd.f32 %v1578_v47, %v1410_v16  ;;  %v1243_v32 = vadd.f32 %v1242_v18, %v1074_v21  ;;  %v2071_v21 = vld [vmem:[%s4009_s0 + $0x1a0] sm:$0xf] }
  0xca   :  { %1796 = vst.msk [vmem:[%s4011_s3 + $0x18] sm:$0xff] %vm1792_vm2, %v2661_v19  ;;  %v2558_v19 = vld [vmem:[%s4009_s0 + $0x1cc] sm:$0xf] }
  0xcb   :  { %2662 = vtanh.f32 %v1579_v20  ;;  %v2097_v20 = vld [vmem:[%s4009_s0 + $0x1d8] sm:$0xf0] }
  0xcc   :  { %2481 = vmatmul.msk.bf16.gmra.mxu3 %vm951_vm1, %v2068_v31  ;;  %v2072_v31 = vor.u32 %v2555_v22, %v2071_v21  ;;  %v2105_v21 = vld [vmem:[%s4009_s0 + $0x1f0] sm:$0xf0] }
  0xce   :  { %v1411_v33 = vpop.f32.mrf.mxu2  ;;  %v1076_v37 = vpop.f32.mrf.mxu0 }
  0xcf   :  { %v1412_v36 = vadd.f32 %v1411_v33, %v1243_v32  ;;  %v1245_v38 = vpop.f32.mrf.mxu1  ;;  %v1077_v40 = vadd.f32 %v3107_v7, %v1076_v37  ;;  %v1588_v44 = vpop.f32.mrf.mxu3  ;;  %v2076_v32 = vor.u32 %v2553_v23, %v2073_v24  ;;  %v2111_v23 = vld [vmem:[%s4009_s0 + $0x1e8] sm:$0xf]  ;;  %v2564_v24 = vld [vmem:[%s4009_s0 + $0x1f4] sm:$0xf0] }
  0xd1   :  { %v2663_v41 = vpop.eup %2662  ;;  %v1581_v42 = vadd.f32 %v1580_v61, %v1412_v36  ;;  %1115 = vmatmul.bf16.gmra.mxu0 %v2040_v34  ;;  %v1246_v43 = vadd.f32 %v1245_v38, %v1077_v40  ;;  %v2084_v61 = vor.u32 %v2554_v52, %v2081_v53  ;;  %v2080_v36 = vor.u32 %v2556_v27, %v2079_v26  ;;  %v2559_v52 = vld [vmem:[%s4009_s0 + $0x1cc] sm:$0xf0]  ;;  %v2557_v53 = vld [vmem:[%s4009_s0 + $0x1c4] sm:$0xf] }
  0xd2   :  { %1797 = vst.msk [vmem:[%s4011_s3 + $0x20] sm:$0xff] %vm1792_vm2, %v2663_v41  ;;  %1284 = vmatmul.bf16.gmra.mxu1 %v2044_v35 }
  0xd3   :  { %2664 = vtanh.f32 %v1581_v42  ;;  %1453 = vmatmul.bf16.gmra.mxu2 %v2048_v39 }
  0xd6   :  { %v1414_v45 = vpop.f32.mrf.mxu2  ;;  %v1078_v47 = vpop.f32.mrf.mxu0 }
  0xd7   :  { %v1415_v46 = vadd.f32 %v1414_v45, %v1246_v43  ;;  %v1247_v48 = vpop.f32.mrf.mxu1  ;;  %v1079_v51 = vadd.f32 %v3107_v7, %v1078_v47  ;;  %v1590_v58 = vpop.f32.mrf.mxu3 }
  0xd9   :  { %v2665_v49 = vpop.eup %2664  ;;  %v1584_v50 = vadd.f32 %v1583_v14, %v1415_v46  ;;  %v1248_v62 = vadd.f32 %v1247_v48, %v1079_v51  ;;  %v2087_v51 = vld [vmem:[%s4009_s0 + $0x1c0] sm:$0xf] }
  0xda   :  { %1798 = vst.msk [vmem:[%s4011_s3 + $0x28] sm:$0xff] %vm1792_vm2, %v2665_v49  ;;  %v2562_v49 = vld [vmem:[%s4009_s0 + $0x1ec] sm:$0xf] }
  0xdb   :  { %2666 = vtanh.f32 %v1584_v50  ;;  %v2113_v50 = vld [vmem:[%s4009_s0 + $0x1f8] sm:$0xf0] }
  0xdc   :  { %2482 = vmatmul.msk.bf16.gmra.mxu3 %vm951_vm1, %v2084_v61  ;;  %v2088_v61 = vor.u32 %v2559_v52, %v2087_v51  ;;  %v2121_v51 = vld [vmem:[%s4009_s0 + $0x210] sm:$0xf0] }
  0xde   :  { %v1416_v63 = vpop.f32.mrf.mxu2  ;;  %v1081_v3 = vpop.f32.mrf.mxu0 }
  0xdf   :  { %v1417_v2 = vadd.f32 %v1416_v63, %v1248_v62  ;;  %v1250_v4 = vpop.f32.mrf.mxu1  ;;  %v1082_v6 = vadd.f32 %v3107_v7, %v1081_v3  ;;  %v1593_v11 = vpop.f32.mrf.mxu3  ;;  %v2092_v62 = vor.u32 %v2557_v53, %v2089_v54  ;;  %v2127_v53 = vld [vmem:[%s4009_s0 + $0x208] sm:$0xf]  ;;  %v2568_v54 = vld [vmem:[%s4009_s0 + $0x214] sm:$0xf0] }
  0xe1   :  { %v2667_v8 = vpop.eup %2666  ;;  %v1586_v9 = vadd.f32 %v1585_v28, %v1417_v2  ;;  %1120 = vmatmul.bf16.gmra.mxu0 %v2056_v0  ;;  %v1251_v10 = vadd.f32 %v1250_v4, %v1082_v6  ;;  %v2100_v28 = vor.u32 %v2558_v19, %v2097_v20  ;;  %v2096_v2 = vor.u32 %v2560_v57, %v2095_v56  ;;  %v2563_v19 = vld [vmem:[%s4009_s0 + $0x1ec] sm:$0xf0]  ;;  %v2561_v20 = vld [vmem:[%s4009_s0 + $0x1e4] sm:$0xf] }
  0xe2   :  { %1799 = vst.msk [vmem:[%s4011_s3 + $0x30] sm:$0xff] %vm1792_vm2, %v2667_v8  ;;  %1289 = vmatmul.bf16.gmra.mxu1 %v2060_v1 }
  0xe3   :  { %2668 = vtanh.f32 %v1586_v9  ;;  %1458 = vmatmul.bf16.gmra.mxu2 %v2064_v5 }
  0xe6   :  { %v1419_v12 = vpop.f32.mrf.mxu2  ;;  %v1083_v14 = vpop.f32.mrf.mxu0 }
  0xe7   :  { %v1420_v13 = vadd.f32 %v1419_v12, %v1251_v10  ;;  %v1252_v15 = vpop.f32.mrf.mxu1  ;;  %v1084_v18 = vadd.f32 %v3107_v7, %v1083_v14  ;;  %v1595_v25 = vpop.f32.mrf.mxu3 }
  0xe9   :  { %v2669_v16 = vpop.eup %2668  ;;  %v1589_v17 = vadd.f32 %v1588_v44, %v1420_v13  ;;  %v1253_v29 = vadd.f32 %v1252_v15, %v1084_v18  ;;  %v2103_v18 = vld [vmem:[%s4009_s0 + $0x1e0] sm:$0xf] }
  0xea   :  { %1800 = vst.msk [vmem:[%s4011_s3 + $0x38] sm:$0xff] %vm1792_vm2, %v2669_v16  ;;  %v2566_v16 = vld [vmem:[%s4009_s0 + $0x20c] sm:$0xf] }
  0xeb   :  { %2670 = vtanh.f32 %v1589_v17  ;;  %v2129_v17 = vld [vmem:[%s4009_s0 + $0x218] sm:$0xf0] }
  0xec   :  { %2483 = vmatmul.msk.bf16.gmra.mxu3 %vm951_vm1, %v2100_v28  ;;  %v2104_v28 = vor.u32 %v2563_v19, %v2103_v18  ;;  %v2137_v18 = vld [vmem:[%s4009_s0 + $0x230] sm:$0xf0] }
  0xee   :  { %v1421_v30 = vpop.f32.mrf.mxu2  ;;  %v1086_v34 = vpop.f32.mrf.mxu0 }
  0xef   :  { %v1422_v33 = vadd.f32 %v1421_v30, %v1253_v29  ;;  %v1255_v35 = vpop.f32.mrf.mxu1  ;;  %v1087_v37 = vadd.f32 %v3107_v7, %v1086_v34  ;;  %v1598_v41 = vpop.f32.mrf.mxu3  ;;  %v2108_v29 = vor.u32 %v2561_v20, %v2105_v21  ;;  %v2143_v20 = vld [vmem:[%s4009_s0 + $0x228] sm:$0xf]  ;;  %v2572_v21 = vld [vmem:[%s4009_s0 + $0x234] sm:$0xf0] }
  0xf1   :  { %v2671_v38 = vpop.eup %2670  ;;  %v1591_v39 = vadd.f32 %v1590_v58, %v1422_v33  ;;  %1125 = vmatmul.bf16.gmra.mxu0 %v2072_v31  ;;  %v1256_v40 = vadd.f32 %v1255_v35, %v1087_v37  ;;  %v2116_v58 = vor.u32 %v2562_v49, %v2113_v50  ;;  %v2112_v33 = vor.u32 %v2564_v24, %v2111_v23  ;;  %v2567_v49 = vld [vmem:[%s4009_s0 + $0x20c] sm:$0xf0]  ;;  %v2565_v50 = vld [vmem:[%s4009_s0 + $0x204] sm:$0xf] }
  0xf2   :  { %1801 = vst.msk [vmem:[%s4011_s3 + $0x40] sm:$0xff] %vm1792_vm2, %v2671_v38  ;;  %1294 = vmatmul.bf16.gmra.mxu1 %v2076_v32 }
  0xf3   :  { %2672 = vtanh.f32 %v1591_v39  ;;  %1463 = vmatmul.bf16.gmra.mxu2 %v2080_v36 }
  0xf6   :  { %v1424_v42 = vpop.f32.mrf.mxu2  ;;  %v1088_v44 = vpop.f32.mrf.mxu0 }
  0xf7   :  { %v1425_v43 = vadd.f32 %v1424_v42, %v1256_v40  ;;  %v1257_v45 = vpop.f32.mrf.mxu1  ;;  %v1089_v48 = vadd.f32 %v3107_v7, %v1088_v44  ;;  %v1600_v55 = vpop.f32.mrf.mxu3 }
  0xf9   :  { %v2673_v46 = vpop.eup %2672  ;;  %v1594_v47 = vadd.f32 %v1593_v11, %v1425_v43  ;;  %v1258_v59 = vadd.f32 %v1257_v45, %v1089_v48  ;;  %v2119_v48 = vld [vmem:[%s4009_s0 + $0x200] sm:$0xf] }
  0xfa   :  { %1802 = vst.msk [vmem:[%s4011_s3 + $0x48] sm:$0xff] %vm1792_vm2, %v2673_v46  ;;  %v2570_v46 = vld [vmem:[%s4009_s0 + $0x22c] sm:$0xf] }
  0xfb   :  { %2674 = vtanh.f32 %v1594_v47  ;;  %v2145_v47 = vld [vmem:[%s4009_s0 + $0x238] sm:$0xf0] }
  0xfc   :  { %2484 = vmatmul.msk.bf16.gmra.mxu3 %vm951_vm1, %v2116_v58  ;;  %v2120_v58 = vor.u32 %v2567_v49, %v2119_v48  ;;  %v2153_v48 = vld [vmem:[%s4009_s0 + $0x250] sm:$0xf0] }
  0xfe   :  { %v1426_v60 = vpop.f32.mrf.mxu2  ;;  %v1091_v0 = vpop.f32.mrf.mxu0 }
  0xff   :  { %v1427_v63 = vadd.f32 %v1426_v60, %v1258_v59  ;;  %v1260_v1 = vpop.f32.mrf.mxu1  ;;  %v1092_v3 = vadd.f32 %v3107_v7, %v1091_v0  ;;  %v1603_v8 = vpop.f32.mrf.mxu3  ;;  %v2124_v59 = vor.u32 %v2565_v50, %v2121_v51  ;;  %v2159_v50 = vld [vmem:[%s4009_s0 + $0x248] sm:$0xf]  ;;  %v2576_v51 = vld [vmem:[%s4009_s0 + $0x254] sm:$0xf0] }
 0x101   :  { %v2675_v4 = vpop.eup %2674  ;;  %v1596_v5 = vadd.f32 %v1595_v25, %v1427_v63  ;;  %1130 = vmatmul.bf16.gmra.mxu0 %v2088_v61  ;;  %v1261_v6 = vadd.f32 %v1260_v1, %v1092_v3  ;;  %v2132_v25 = vor.u32 %v2566_v16, %v2129_v17  ;;  %v2128_v63 = vor.u32 %v2568_v54, %v2127_v53  ;;  %v2571_v16 = vld [vmem:[%s4009_s0 + $0x22c] sm:$0xf0]  ;;  %v2569_v17 = vld [vmem:[%s4009_s0 + $0x224] sm:$0xf] }
 0x102   :  { %1803 = vst.msk [vmem:[%s4011_s3 + $0x50] sm:$0xff] %vm1792_vm2, %v2675_v4  ;;  %1299 = vmatmul.bf16.gmra.mxu1 %v2092_v62 }
 0x103   :  { %2676 = vtanh.f32 %v1596_v5  ;;  %1468 = vmatmul.bf16.gmra.mxu2 %v2096_v2 }
 0x106   :  { %v1429_v9 = vpop.f32.mrf.mxu2  ;;  %v1093_v11 = vpop.f32.mrf.mxu0 }
 0x107   :  { %v1430_v10 = vadd.f32 %v1429_v9, %v1261_v6  ;;  %v1262_v12 = vpop.f32.mrf.mxu1  ;;  %v1094_v15 = vadd.f32 %v3107_v7, %v1093_v11  ;;  %v1605_v22 = vpop.f32.mrf.mxu3 }
 0x109   :  { %v2677_v13 = vpop.eup %2676  ;;  %v1599_v14 = vadd.f32 %v1598_v41, %v1430_v10  ;;  %v1263_v26 = vadd.f32 %v1262_v12, %v1094_v15  ;;  %v2135_v15 = vld [vmem:[%s4009_s0 + $0x220] sm:$0xf] }
 0x10a   :  { %1804 = vst.msk [vmem:[%s4011_s3 + $0x58] sm:$0xff] %vm1792_vm2, %v2677_v13  ;;  %v2574_v13 = vld [vmem:[%s4009_s0 + $0x24c] sm:$0xf] }
 0x10b   :  { %2678 = vtanh.f32 %v1599_v14  ;;  %v2161_v14 = vld [vmem:[%s4009_s0 + $0x258] sm:$0xf0] }
 0x10c   :  { %2485 = vmatmul.msk.bf16.gmra.mxu3 %vm951_vm1, %v2132_v25  ;;  %v2136_v25 = vor.u32 %v2571_v16, %v2135_v15  ;;  %v2169_v15 = vld [vmem:[%s4009_s0 + $0x270] sm:$0xf0] }
 0x10e   :  { %v1431_v27 = vpop.f32.mrf.mxu2  ;;  %v1096_v31 = vpop.f32.mrf.mxu0 }
 0x10f   :  { %v1432_v30 = vadd.f32 %v1431_v27, %v1263_v26  ;;  %v1265_v32 = vpop.f32.mrf.mxu1  ;;  %v1097_v34 = vadd.f32 %v3107_v7, %v1096_v31  ;;  %v1608_v38 = vpop.f32.mrf.mxu3  ;;  %v2140_v26 = vor.u32 %v2569_v17, %v2137_v18  ;;  %v2175_v17 = vld [vmem:[%s4009_s0 + $0x268] sm:$0xf]  ;;  %v2580_v18 = vld [vmem:[%s4009_s0 + $0x274] sm:$0xf0] }
 0x111   :  { %v2679_v35 = vpop.eup %2678  ;;  %v1601_v36 = vadd.f32 %v1600_v55, %v1432_v30  ;;  %1135 = vmatmul.bf16.gmra.mxu0 %v2104_v28  ;;  %v1266_v37 = vadd.f32 %v1265_v32, %v1097_v34  ;;  %v2148_v55 = vor.u32 %v2570_v46, %v2145_v47  ;;  %v2144_v30 = vor.u32 %v2572_v21, %v2143_v20  ;;  %v2575_v46 = vld [vmem:[%s4009_s0 + $0x24c] sm:$0xf0]  ;;  %v2573_v47 = vld [vmem:[%s4009_s0 + $0x244] sm:$0xf] }
 0x112   :  { %1805 = vst.msk [vmem:[%s4011_s3 + $0x60] sm:$0xff] %vm1792_vm2, %v2679_v35  ;;  %1304 = vmatmul.bf16.gmra.mxu1 %v2108_v29 }
 0x113   :  { %2680 = vtanh.f32 %v1601_v36  ;;  %1473 = vmatmul.bf16.gmra.mxu2 %v2112_v33 }
 0x116   :  { %v1434_v39 = vpop.f32.mrf.mxu2  ;;  %v1098_v41 = vpop.f32.mrf.mxu0 }
 0x117   :  { %v1435_v40 = vadd.f32 %v1434_v39, %v1266_v37  ;;  %v1267_v42 = vpop.f32.mrf.mxu1  ;;  %v1099_v45 = vadd.f32 %v3107_v7, %v1098_v41  ;;  %v1610_v52 = vpop.f32.mrf.mxu3 }
 0x119   :  { %v2681_v43 = vpop.eup %2680  ;;  %v1604_v44 = vadd.f32 %v1603_v8, %v1435_v40  ;;  %v1268_v56 = vadd.f32 %v1267_v42, %v1099_v45  ;;  %v2151_v45 = vld [vmem:[%s4009_s0 + $0x240] sm:$0xf] }
 0x11a   :  { %1806 = vst.msk [vmem:[%s4011_s3 + $0x68] sm:$0xff] %vm1792_vm2, %v2681_v43  ;;  %v2578_v43 = vld [vmem:[%s4009_s0 + $0x26c] sm:$0xf] }
 0x11b   :  { %2682 = vtanh.f32 %v1604_v44  ;;  %v2177_v44 = vld [vmem:[%s4009_s0 + $0x278] sm:$0xf0] }
 0x11c   :  { %2486 = vmatmul.msk.bf16.gmra.mxu3 %vm951_vm1, %v2148_v55  ;;  %v2152_v55 = vor.u32 %v2575_v46, %v2151_v45  ;;  %v2185_v45 = vld [vmem:[%s4009_s0 + $0x290] sm:$0xf0] }
 0x11e   :  { %v1436_v57 = vpop.f32.mrf.mxu2  ;;  %v1101_v61 = vpop.f32.mrf.mxu0 }
 0x11f   :  { %v1437_v60 = vadd.f32 %v1436_v57, %v1268_v56  ;;  %v1270_v62 = vpop.f32.mrf.mxu1  ;;  %v1102_v0 = vadd.f32 %v3107_v7, %v1101_v61  ;;  %v1613_v4 = vpop.f32.mrf.mxu3  ;;  %v2156_v56 = vor.u32 %v2573_v47, %v2153_v48  ;;  %v2191_v47 = vld [vmem:[%s4009_s0 + $0x288] sm:$0xf]  ;;  %v2584_v48 = vld [vmem:[%s4009_s0 + $0x294] sm:$0xf0] }
 0x121   :  { %v2683_v1 = vpop.eup %2682  ;;  %v1606_v2 = vadd.f32 %v1605_v22, %v1437_v60  ;;  %1140 = vmatmul.bf16.gmra.mxu0 %v2120_v58  ;;  %v1271_v3 = vadd.f32 %v1270_v62, %v1102_v0  ;;  %v2164_v22 = vor.u32 %v2574_v13, %v2161_v14  ;;  %v2160_v60 = vor.u32 %v2576_v51, %v2159_v50  ;;  %v2579_v13 = vld [vmem:[%s4009_s0 + $0x26c] sm:$0xf0]  ;;  %v2577_v14 = vld [vmem:[%s4009_s0 + $0x264] sm:$0xf] }
 0x122   :  { %1807 = vst.msk [vmem:[%s4011_s3 + $0x70] sm:$0xff] %vm1792_vm2, %v2683_v1  ;;  %1309 = vmatmul.bf16.gmra.mxu1 %v2124_v59 }
 0x123   :  { %2684 = vtanh.f32 %v1606_v2  ;;  %1478 = vmatmul.bf16.gmra.mxu2 %v2128_v63 }
 0x126   :  { %v1439_v5 = vpop.f32.mrf.mxu2  ;;  %v1103_v8 = vpop.f32.mrf.mxu0 }
 0x127   :  { %v1440_v6 = vadd.f32 %v1439_v5, %v1271_v3  ;;  %v1272_v9 = vpop.f32.mrf.mxu1  ;;  %v1104_v12 = vadd.f32 %v3107_v7, %v1103_v8  ;;  %v1615_v19 = vpop.f32.mrf.mxu3 }
 0x129   :  { %v2685_v10 = vpop.eup %2684  ;;  %v1609_v11 = vadd.f32 %v1608_v38, %v1440_v6  ;;  %v1273_v23 = vadd.f32 %v1272_v9, %v1104_v12  ;;  %v2167_v12 = vld [vmem:[%s4009_s0 + $0x260] sm:$0xf] }
 0x12a   :  { %1808 = vst.msk [vmem:[%s4011_s3 + $0x78] sm:$0xff] %vm1792_vm2, %v2685_v10  ;;  %v2582_v10 = vld [vmem:[%s4009_s0 + $0x28c] sm:$0xf] }
 0x12b   :  { %2686 = vtanh.f32 %v1609_v11  ;;  %v2193_v11 = vld [vmem:[%s4009_s0 + $0x298] sm:$0xf0] }
 0x12c   :  { %2487 = vmatmul.msk.bf16.gmra.mxu3 %vm951_vm1, %v2164_v22  ;;  %v2168_v22 = vor.u32 %v2579_v13, %v2167_v12  ;;  %v2201_v12 = vld [vmem:[%s4009_s0 + $0x2b0] sm:$0xf0] }
 0x12e   :  { %v1441_v24 = vpop.f32.mrf.mxu2  ;;  %v1106_v28 = vpop.f32.mrf.mxu0 }
 0x12f   :  { %v1442_v27 = vadd.f32 %v1441_v24, %v1273_v23  ;;  %v1275_v29 = vpop.f32.mrf.mxu1  ;;  %v1107_v31 = vadd.f32 %v3107_v7, %v1106_v28  ;;  %v1618_v35 = vpop.f32.mrf.mxu3  ;;  %v2172_v23 = vor.u32 %v2577_v14, %v2169_v15  ;;  %v2207_v14 = vld [vmem:[%s4009_s0 + $0x2a8] sm:$0xf]  ;;  %v2588_v15 = vld [vmem:[%s4009_s0 + $0x2b4] sm:$0xf0] }
 0x131   :  { %v2687_v32 = vpop.eup %2686  ;;  %v1611_v33 = vadd.f32 %v1610_v52, %v1442_v27  ;;  %1145 = vmatmul.bf16.gmra.mxu0 %v2136_v25  ;;  %v1276_v34 = vadd.f32 %v1275_v29, %v1107_v31  ;;  %v2180_v52 = vor.u32 %v2578_v43, %v2177_v44  ;;  %v2176_v27 = vor.u32 %v2580_v18, %v2175_v17  ;;  %v2583_v43 = vld [vmem:[%s4009_s0 + $0x28c] sm:$0xf0]  ;;  %v2581_v44 = vld [vmem:[%s4009_s0 + $0x284] sm:$0xf] }
 0x132   :  { %1809 = vst.msk [vmem:[%s4011_s3 + $0x80] sm:$0xff] %vm1792_vm2, %v2687_v32  ;;  %1314 = vmatmul.bf16.gmra.mxu1 %v2140_v26 }
 0x133   :  { %2688 = vtanh.f32 %v1611_v33  ;;  %1483 = vmatmul.bf16.gmra.mxu2 %v2144_v30 }
 0x136   :  { %v1444_v36 = vpop.f32.mrf.mxu2  ;;  %v1108_v38 = vpop.f32.mrf.mxu0 }
 0x137   :  { %v1445_v37 = vadd.f32 %v1444_v36, %v1276_v34  ;;  %v1277_v39 = vpop.f32.mrf.mxu1  ;;  %v1109_v42 = vadd.f32 %v3107_v7, %v1108_v38  ;;  %v1620_v49 = vpop.f32.mrf.mxu3 }
 0x139   :  { %v2689_v40 = vpop.eup %2688  ;;  %v1614_v41 = vadd.f32 %v1613_v4, %v1445_v37  ;;  %v1278_v53 = vadd.f32 %v1277_v39, %v1109_v42  ;;  %v2183_v42 = vld [vmem:[%s4009_s0 + $0x280] sm:$0xf] }
 0x13a   :  { %1810 = vst.msk [vmem:[%s4011_s3 + $0x88] sm:$0xff] %vm1792_vm2, %v2689_v40  ;;  %v2586_v40 = vld [vmem:[%s4009_s0 + $0x2ac] sm:$0xf] }
 0x13b   :  { %2690 = vtanh.f32 %v1614_v41  ;;  %v2209_v41 = vld [vmem:[%s4009_s0 + $0x2b8] sm:$0xf0] }
 0x13c   :  { %2488 = vmatmul.msk.bf16.gmra.mxu3 %vm951_vm1, %v2180_v52  ;;  %v2184_v52 = vor.u32 %v2583_v43, %v2183_v42  ;;  %v2217_v42 = vld [vmem:[%s4009_s0 + $0x2d0] sm:$0xf0] }
 0x13e   :  { %v1446_v54 = vpop.f32.mrf.mxu2  ;;  %v1111_v58 = vpop.f32.mrf.mxu0 }
 0x13f   :  { %v1447_v57 = vadd.f32 %v1446_v54, %v1278_v53  ;;  %v1280_v59 = vpop.f32.mrf.mxu1  ;;  %v1112_v61 = vadd.f32 %v3107_v7, %v1111_v58  ;;  %v1623_v1 = vpop.f32.mrf.mxu3  ;;  %v2188_v53 = vor.u32 %v2581_v44, %v2185_v45  ;;  %v2223_v44 = vld [vmem:[%s4009_s0 + $0x2c8] sm:$0xf]  ;;  %v2592_v45 = vld [vmem:[%s4009_s0 + $0x2d4] sm:$0xf0] }
 0x141   :  { %v2691_v62 = vpop.eup %2690  ;;  %v1616_v63 = vadd.f32 %v1615_v19, %v1447_v57  ;;  %1150 = vmatmul.bf16.gmra.mxu0 %v2152_v55  ;;  %v1281_v0 = vadd.f32 %v1280_v59, %v1112_v61  ;;  %v2196_v19 = vor.u32 %v2582_v10, %v2193_v11  ;;  %v2192_v57 = vor.u32 %v2584_v48, %v2191_v47  ;;  %v2587_v10 = vld [vmem:[%s4009_s0 + $0x2ac] sm:$0xf0]  ;;  %v2585_v11 = vld [vmem:[%s4009_s0 + $0x2a4] sm:$0xf] }
 0x142   :  { %1811 = vst.msk [vmem:[%s4011_s3 + $0x90] sm:$0xff] %vm1792_vm2, %v2691_v62  ;;  %1319 = vmatmul.bf16.gmra.mxu1 %v2156_v56 }
 0x143   :  { %2692 = vtanh.f32 %v1616_v63  ;;  %1488 = vmatmul.bf16.gmra.mxu2 %v2160_v60 }
 0x146   :  { %v1449_v2 = vpop.f32.mrf.mxu2  ;;  %v1113_v4 = vpop.f32.mrf.mxu0 }
 0x147   :  { %v1450_v3 = vadd.f32 %v1449_v2, %v1281_v0  ;;  %v1282_v5 = vpop.f32.mrf.mxu1  ;;  %v1114_v9 = vadd.f32 %v3107_v7, %v1113_v4  ;;  %v1625_v16 = vpop.f32.mrf.mxu3 }
 0x149   :  { %v2693_v6 = vpop.eup %2692  ;;  %v1619_v8 = vadd.f32 %v1618_v35, %v1450_v3  ;;  %v1283_v20 = vadd.f32 %v1282_v5, %v1114_v9  ;;  %v2199_v9 = vld [vmem:[%s4009_s0 + $0x2a0] sm:$0xf] }
 0x14a   :  { %1812 = vst.msk [vmem:[%s4011_s3 + $0x98] sm:$0xff] %vm1792_vm2, %v2693_v6  ;;  %v2590_v6 = vld [vmem:[%s4009_s0 + $0x2cc] sm:$0xf] }
 0x14b   :  { %2694 = vtanh.f32 %v1619_v8  ;;  %v2225_v8 = vld [vmem:[%s4009_s0 + $0x2d8] sm:$0xf0] }
 0x14c   :  { %2489 = vmatmul.msk.bf16.gmra.mxu3 %vm951_vm1, %v2196_v19  ;;  %v2200_v19 = vor.u32 %v2587_v10, %v2199_v9  ;;  %v2233_v9 = vld [vmem:[%s4009_s0 + $0x2f0] sm:$0xf0] }
 0x14e   :  { %v1451_v21 = vpop.f32.mrf.mxu2  ;;  %v1116_v25 = vpop.f32.mrf.mxu0 }
 0x14f   :  { %v1452_v24 = vadd.f32 %v1451_v21, %v1283_v20  ;;  %v1285_v26 = vpop.f32.mrf.mxu1  ;;  %v1117_v28 = vadd.f32 %v3107_v7, %v1116_v25  ;;  %v1628_v32 = vpop.f32.mrf.mxu3  ;;  %v2204_v20 = vor.u32 %v2585_v11, %v2201_v12  ;;  %v2239_v11 = vld [vmem:[%s4009_s0 + $0x2e8] sm:$0xf]  ;;  %v2596_v12 = vld [vmem:[%s4009_s0 + $0x2f4] sm:$0xf0] }
 0x151   :  { %v2695_v29 = vpop.eup %2694  ;;  %v1621_v30 = vadd.f32 %v1620_v49, %v1452_v24  ;;  %1155 = vmatmul.bf16.gmra.mxu0 %v2168_v22  ;;  %v1286_v31 = vadd.f32 %v1285_v26, %v1117_v28  ;;  %v2212_v49 = vor.u32 %v2586_v40, %v2209_v41  ;;  %v2208_v24 = vor.u32 %v2588_v15, %v2207_v14  ;;  %v2591_v40 = vld [vmem:[%s4009_s0 + $0x2cc] sm:$0xf0]  ;;  %v2589_v41 = vld [vmem:[%s4009_s0 + $0x2c4] sm:$0xf] }
 0x152   :  { %1813 = vst.msk [vmem:[%s4011_s3 + $0xa0] sm:$0xff] %vm1792_vm2, %v2695_v29  ;;  %1324 = vmatmul.bf16.gmra.mxu1 %v2172_v23 }
 0x153   :  { %2696 = vtanh.f32 %v1621_v30  ;;  %1493 = vmatmul.bf16.gmra.mxu2 %v2176_v27 }
 0x156   :  { %v1454_v33 = vpop.f32.mrf.mxu2  ;;  %v1118_v35 = vpop.f32.mrf.mxu0 }
 0x157   :  { %v1455_v34 = vadd.f32 %v1454_v33, %v1286_v31  ;;  %v1287_v36 = vpop.f32.mrf.mxu1  ;;  %v1119_v39 = vadd.f32 %v3107_v7, %v1118_v35  ;;  %v1630_v46 = vpop.f32.mrf.mxu3  ;;  %v3571_v35 = vld [vmem:[%s4010_s2] ss:$0 sm:$0xff] }
 0x159   :  { %v2697_v37 = vpop.eup %2696  ;;  %v1624_v38 = vadd.f32 %v1623_v1, %v1455_v34  ;;  %v1288_v50 = vadd.f32 %v1287_v36, %v1119_v39  ;;  %v2215_v39 = vld [vmem:[%s4009_s0 + $0x2c0] sm:$0xf] }
 0x15a   :  { %1814 = vst.msk [vmem:[%s4011_s3 + $0xa8] sm:$0xff] %vm1792_vm2, %v2697_v37  ;;  %v2594_v37 = vld [vmem:[%s4009_s0 + $0x2ec] sm:$0xf] }
 0x15b   :  { %2698 = vtanh.f32 %v1624_v38  ;;  %v2241_v38 = vld [vmem:[%s4009_s0 + $0x2f8] sm:$0xf0] }
 0x15c   :  { %2490 = vmatmul.msk.bf16.gmra.mxu3 %vm951_vm1, %v2212_v49  ;;  %v2216_v49 = vor.u32 %v2591_v40, %v2215_v39  ;;  %v2249_v39 = vld [vmem:[%s4009_s0 + $0x310] sm:$0xf0] }
 0x15e   :  { %v1456_v51 = vpop.f32.mrf.mxu2  ;;  %v1121_v55 = vpop.f32.mrf.mxu0 }
 0x15f   :  { %v1457_v54 = vadd.f32 %v1456_v51, %v1288_v50  ;;  %v1290_v56 = vpop.f32.mrf.mxu1  ;;  %v1122_v58 = vadd.f32 %v3107_v7, %v1121_v55  ;;  %v1633_v62 = vpop.f32.mrf.mxu3  ;;  %v2220_v50 = vor.u32 %v2589_v41, %v2217_v42  ;;  %v2255_v41 = vld [vmem:[%s4009_s0 + $0x308] sm:$0xf]  ;;  %v2600_v42 = vld [vmem:[%s4009_s0 + $0x314] sm:$0xf0] }
 0x161   :  { %v2699_v59 = vpop.eup %2698  ;;  %v1626_v60 = vadd.f32 %v1625_v16, %v1457_v54  ;;  %1160 = vmatmul.bf16.gmra.mxu0 %v2184_v52  ;;  %v1291_v61 = vadd.f32 %v1290_v56, %v1122_v58  ;;  %v2228_v16 = vor.u32 %v2590_v6, %v2225_v8  ;;  %v2224_v54 = vor.u32 %v2592_v45, %v2223_v44  ;;  %v2595_v6 = vld [vmem:[%s4009_s0 + $0x2ec] sm:$0xf0]  ;;  %v2593_v8 = vld [vmem:[%s4009_s0 + $0x2e4] sm:$0xf] }
 0x162   :  { %1815 = vst.msk [vmem:[%s4011_s3 + $0xb0] sm:$0xff] %vm1792_vm2, %v2699_v59  ;;  %1329 = vmatmul.bf16.gmra.mxu1 %v2188_v53 }
 0x163   :  { %2700 = vtanh.f32 %v1626_v60  ;;  %1498 = vmatmul.bf16.gmra.mxu2 %v2192_v57 }
 0x166   :  { %v1459_v63 = vpop.f32.mrf.mxu2  ;;  %v1123_v1 = vpop.f32.mrf.mxu0 }
 0x167   :  { %v1460_v0 = vadd.f32 %v1459_v63, %v1291_v61  ;;  %v1292_v2 = vpop.f32.mrf.mxu1  ;;  %v1124_v5 = vadd.f32 %v3107_v7, %v1123_v1  ;;  %v1635_v13 = vpop.f32.mrf.mxu3 }
 0x169   :  { %v2701_v3 = vpop.eup %2700  ;;  %v1629_v4 = vadd.f32 %v1628_v32, %v1460_v0  ;;  %v1293_v17 = vadd.f32 %v1292_v2, %v1124_v5  ;;  %v2231_v5 = vld [vmem:[%s4009_s0 + $0x2e0] sm:$0xf] }
 0x16a   :  { %1816 = vst.msk [vmem:[%s4011_s3 + $0xb8] sm:$0xff] %vm1792_vm2, %v2701_v3  ;;  %v2598_v3 = vld [vmem:[%s4009_s0 + $0x30c] sm:$0xf] }
 0x16b   :  { %2702 = vtanh.f32 %v1629_v4  ;;  %v2257_v4 = vld [vmem:[%s4009_s0 + $0x318] sm:$0xf0] }
 0x16c   :  { %2491 = vmatmul.msk.bf16.gmra.mxu3 %vm951_vm1, %v2228_v16  ;;  %v2232_v16 = vor.u32 %v2595_v6, %v2231_v5  ;;  %v2265_v5 = vld [vmem:[%s4009_s0 + $0x330] sm:$0xf0] }
 0x16e   :  { %v1461_v18 = vpop.f32.mrf.mxu2  ;;  %v1126_v22 = vpop.f32.mrf.mxu0 }
 0x16f   :  { %v1462_v21 = vadd.f32 %v1461_v18, %v1293_v17  ;;  %v1295_v23 = vpop.f32.mrf.mxu1  ;;  %v1127_v25 = vadd.f32 %v3107_v7, %v1126_v22  ;;  %v1638_v29 = vpop.f32.mrf.mxu3  ;;  %v2236_v17 = vor.u32 %v2593_v8, %v2233_v9  ;;  %v2271_v8 = vld [vmem:[%s4009_s0 + $0x328] sm:$0xf]  ;;  %v2604_v9 = vld [vmem:[%s4009_s0 + $0x334] sm:$0xf0] }
 0x171   :  { %v2703_v26 = vpop.eup %2702  ;;  %v1631_v27 = vadd.f32 %v1630_v46, %v1462_v21  ;;  %1165 = vmatmul.bf16.gmra.mxu0 %v2200_v19  ;;  %v1296_v28 = vadd.f32 %v1295_v23, %v1127_v25  ;;  %v2244_v46 = vor.u32 %v2594_v37, %v2241_v38  ;;  %v2240_v21 = vor.u32 %v2596_v12, %v2239_v11  ;;  %v2599_v37 = vld [vmem:[%s4009_s0 + $0x30c] sm:$0xf0]  ;;  %v2597_v38 = vld [vmem:[%s4009_s0 + $0x304] sm:$0xf] }
 0x172   :  { %1817 = vst.msk [vmem:[%s4011_s3 + $0xc0] sm:$0xff] %vm1792_vm2, %v2703_v26  ;;  %1334 = vmatmul.bf16.gmra.mxu1 %v2204_v20 }
 0x173   :  { %2704 = vtanh.f32 %v1631_v27  ;;  %1503 = vmatmul.bf16.gmra.mxu2 %v2208_v24 }
 0x176   :  { %v1464_v30 = vpop.f32.mrf.mxu2  ;;  %v1128_v32 = vpop.f32.mrf.mxu0 }
 0x177   :  { %v1465_v31 = vadd.f32 %v1464_v30, %v1296_v28  ;;  %v1297_v33 = vpop.f32.mrf.mxu1  ;;  %v1129_v36 = vadd.f32 %v3571_v35, %v1128_v32  ;;  %v1640_v43 = vpop.f32.mrf.mxu3 }
 0x179   :  { %v2705_v7 = vpop.eup %2704  ;;  %v1634_v34 = vadd.f32 %v1633_v62, %v1465_v31  ;;  %v1298_v47 = vadd.f32 %v1297_v33, %v1129_v36  ;;  %v2247_v36 = vld [vmem:[%s4009_s0 + $0x300] sm:$0xf] }
 0x17a   :  { %1818 = vst.msk [vmem:[%s4011_s3 + $0xc8] sm:$0xff] %vm1792_vm2, %v2705_v7  ;;  %v2602_v7 = vld [vmem:[%s4009_s0 + $0x32c] sm:$0xf] }
 0x17b   :  { %2706 = vtanh.f32 %v1634_v34  ;;  %v2273_v34 = vld [vmem:[%s4009_s0 + $0x338] sm:$0xf0] }
 0x17c   :  { %2492 = vmatmul.msk.bf16.gmra.mxu3 %vm951_vm1, %v2244_v46  ;;  %v2248_v46 = vor.u32 %v2599_v37, %v2247_v36  ;;  %v2281_v36 = vld [vmem:[%s4009_s0 + $0x350] sm:$0xf0] }
 0x17e   :  { %v1466_v48 = vpop.f32.mrf.mxu2  ;;  %v1131_v52 = vpop.f32.mrf.mxu0 }
 0x17f   :  { %v1467_v51 = vadd.f32 %v1466_v48, %v1298_v47  ;;  %v1300_v53 = vpop.f32.mrf.mxu1  ;;  %v1132_v55 = vadd.f32 %v3571_v35, %v1131_v52  ;;  %v1643_v59 = vpop.f32.mrf.mxu3  ;;  %v2252_v47 = vor.u32 %v2597_v38, %v2249_v39  ;;  %v2287_v38 = vld [vmem:[%s4009_s0 + $0x348] sm:$0xf]  ;;  %v2608_v39 = vld [vmem:[%s4009_s0 + $0x354] sm:$0xf0] }
 0x181   :  { %v2707_v56 = vpop.eup %2706  ;;  %v1636_v57 = vadd.f32 %v1635_v13, %v1467_v51  ;;  %1170 = vmatmul.bf16.gmra.mxu0 %v2216_v49  ;;  %v1301_v58 = vadd.f32 %v1300_v53, %v1132_v55  ;;  %v2260_v13 = vor.u32 %v2598_v3, %v2257_v4  ;;  %v2256_v51 = vor.u32 %v2600_v42, %v2255_v41  ;;  %v2603_v3 = vld [vmem:[%s4009_s0 + $0x32c] sm:$0xf0]  ;;  %v2601_v4 = vld [vmem:[%s4009_s0 + $0x324] sm:$0xf] }
 0x182   :  { %1819 = vst.msk [vmem:[%s4011_s3 + $0xd0] sm:$0xff] %vm1792_vm2, %v2707_v56  ;;  %1339 = vmatmul.bf16.gmra.mxu1 %v2220_v50 }
 0x183   :  { %2708 = vtanh.f32 %v1636_v57  ;;  %1508 = vmatmul.bf16.gmra.mxu2 %v2224_v54 }
 0x186   :  { %v1469_v60 = vpop.f32.mrf.mxu2  ;;  %v1133_v62 = vpop.f32.mrf.mxu0 }
 0x187   :  { %v1470_v61 = vadd.f32 %v1469_v60, %v1301_v58  ;;  %v1302_v63 = vpop.f32.mrf.mxu1  ;;  %v1134_v2 = vadd.f32 %v3571_v35, %v1133_v62  ;;  %v1645_v10 = vpop.f32.mrf.mxu3 }
 0x189   :  { %v2709_v0 = vpop.eup %2708  ;;  %v1639_v1 = vadd.f32 %v1638_v29, %v1470_v61  ;;  %v1303_v14 = vadd.f32 %v1302_v63, %v1134_v2  ;;  %v2263_v2 = vld [vmem:[%s4009_s0 + $0x320] sm:$0xf] }
 0x18a   :  { %1820 = vst.msk [vmem:[%s4011_s3 + $0xd8] sm:$0xff] %vm1792_vm2, %v2709_v0  ;;  %v2606_v0 = vld [vmem:[%s4009_s0 + $0x34c] sm:$0xf] }
 0x18b   :  { %2710 = vtanh.f32 %v1639_v1  ;;  %v2289_v1 = vld [vmem:[%s4009_s0 + $0x358] sm:$0xf0] }
 0x18c   :  { %2493 = vmatmul.msk.bf16.gmra.mxu3 %vm951_vm1, %v2260_v13  ;;  %v2264_v13 = vor.u32 %v2603_v3, %v2263_v2  ;;  %v2297_v2 = vld [vmem:[%s4009_s0 + $0x370] sm:$0xf0] }
 0x18e   :  { %v1471_v15 = vpop.f32.mrf.mxu2  ;;  %v1136_v19 = vpop.f32.mrf.mxu0 }
 0x18f   :  { %v1472_v18 = vadd.f32 %v1471_v15, %v1303_v14  ;;  %v1305_v20 = vpop.f32.mrf.mxu1  ;;  %v1137_v22 = vadd.f32 %v3571_v35, %v1136_v19  ;;  %v1648_v26 = vpop.f32.mrf.mxu3  ;;  %v2268_v14 = vor.u32 %v2601_v4, %v2265_v5  ;;  %v2303_v4 = vld [vmem:[%s4009_s0 + $0x368] sm:$0xf]  ;;  %v2612_v5 = vld [vmem:[%s4009_s0 + $0x374] sm:$0xf0] }
 0x191   :  { %v2711_v23 = vpop.eup %2710  ;;  %v1641_v24 = vadd.f32 %v1640_v43, %v1472_v18  ;;  %1175 = vmatmul.bf16.gmra.mxu0 %v2232_v16  ;;  %v1306_v25 = vadd.f32 %v1305_v20, %v1137_v22  ;;  %v2276_v43 = vor.u32 %v2602_v7, %v2273_v34  ;;  %v2272_v18 = vor.u32 %v2604_v9, %v2271_v8  ;;  %v2607_v7 = vld [vmem:[%s4009_s0 + $0x34c] sm:$0xf0]  ;;  %v2605_v34 = vld [vmem:[%s4009_s0 + $0x344] sm:$0xf] }
 0x192   :  { %1821 = vst.msk [vmem:[%s4011_s3 + $0xe0] sm:$0xff] %vm1792_vm2, %v2711_v23  ;;  %1344 = vmatmul.bf16.gmra.mxu1 %v2236_v17 }
 0x193   :  { %2712 = vtanh.f32 %v1641_v24  ;;  %1513 = vmatmul.bf16.gmra.mxu2 %v2240_v21 }
 0x196   :  { %v1474_v27 = vpop.f32.mrf.mxu2  ;;  %v1138_v29 = vpop.f32.mrf.mxu0 }
 0x197   :  { %v1475_v28 = vadd.f32 %v1474_v27, %v1306_v25  ;;  %v1307_v30 = vpop.f32.mrf.mxu1  ;;  %v1139_v33 = vadd.f32 %v3571_v35, %v1138_v29  ;;  %v1650_v40 = vpop.f32.mrf.mxu3 }
 0x199   :  { %v2713_v31 = vpop.eup %2712  ;;  %v1644_v32 = vadd.f32 %v1643_v59, %v1475_v28  ;;  %v1308_v44 = vadd.f32 %v1307_v30, %v1139_v33  ;;  %v2279_v33 = vld [vmem:[%s4009_s0 + $0x340] sm:$0xf] }
 0x19a   :  { %1822 = vst.msk [vmem:[%s4011_s3 + $0xe8] sm:$0xff] %vm1792_vm2, %v2713_v31  ;;  %v2610_v31 = vld [vmem:[%s4009_s0 + $0x36c] sm:$0xf] }
 0x19b   :  { %2714 = vtanh.f32 %v1644_v32  ;;  %v2305_v32 = vld [vmem:[%s4009_s0 + $0x378] sm:$0xf0] }
 0x19c   :  { %2494 = vmatmul.msk.bf16.gmra.mxu3 %vm951_vm1, %v2276_v43  ;;  %v2280_v43 = vor.u32 %v2607_v7, %v2279_v33  ;;  %v2313_v33 = vld [vmem:[%s4009_s0 + $0x390] sm:$0xf0] }
 0x19e   :  { %v1476_v45 = vpop.f32.mrf.mxu2  ;;  %v1141_v49 = vpop.f32.mrf.mxu0 }
 0x19f   :  { %v1477_v48 = vadd.f32 %v1476_v45, %v1308_v44  ;;  %v1310_v50 = vpop.f32.mrf.mxu1  ;;  %v1142_v52 = vadd.f32 %v3571_v35, %v1141_v49  ;;  %v1653_v56 = vpop.f32.mrf.mxu3  ;;  %v2284_v44 = vor.u32 %v2605_v34, %v2281_v36  ;;  %v2319_v34 = vld [vmem:[%s4009_s0 + $0x388] sm:$0xf]  ;;  %v2616_v36 = vld [vmem:[%s4009_s0 + $0x394] sm:$0xf0] }
 0x1a1   :  { %v2715_v53 = vpop.eup %2714  ;;  %v1646_v54 = vadd.f32 %v1645_v10, %v1477_v48  ;;  %1180 = vmatmul.bf16.gmra.mxu0 %v2248_v46  ;;  %v1311_v55 = vadd.f32 %v1310_v50, %v1142_v52  ;;  %v2292_v10 = vor.u32 %v2606_v0, %v2289_v1  ;;  %v2288_v48 = vor.u32 %v2608_v39, %v2287_v38  ;;  %v2611_v0 = vld [vmem:[%s4009_s0 + $0x36c] sm:$0xf0]  ;;  %v2609_v1 = vld [vmem:[%s4009_s0 + $0x364] sm:$0xf] }
 0x1a2   :  { %1823 = vst.msk [vmem:[%s4011_s3 + $0xf0] sm:$0xff] %vm1792_vm2, %v2715_v53  ;;  %1349 = vmatmul.bf16.gmra.mxu1 %v2252_v47 }
 0x1a3   :  { %2716 = vtanh.f32 %v1646_v54  ;;  %1518 = vmatmul.bf16.gmra.mxu2 %v2256_v51 }
 0x1a6   :  { %v1479_v57 = vpop.f32.mrf.mxu2  ;;  %v1143_v59 = vpop.f32.mrf.mxu0 }
 0x1a7   :  { %v1480_v58 = vadd.f32 %v1479_v57, %v1311_v55  ;;  %v1312_v60 = vpop.f32.mrf.mxu1  ;;  %v1144_v63 = vadd.f32 %v3571_v35, %v1143_v59  ;;  %v1655_v6 = vpop.f32.mrf.mxu3 }
 0x1a9   :  { %v2717_v61 = vpop.eup %2716  ;;  %v1649_v62 = vadd.f32 %v1648_v26, %v1480_v58  ;;  %v1313_v11 = vadd.f32 %v1312_v60, %v1144_v63  ;;  %v2295_v63 = vld [vmem:[%s4009_s0 + $0x360] sm:$0xf] }
 0x1aa   :  { %1824 = vst.msk [vmem:[%s4011_s3 + $0xf8] sm:$0xff] %vm1792_vm2, %v2717_v61  ;;  %v2614_v61 = vld [vmem:[%s4009_s0 + $0x38c] sm:$0xf] }
 0x1ab   :  { %2718 = vtanh.f32 %v1649_v62  ;;  %v2321_v62 = vld [vmem:[%s4009_s0 + $0x398] sm:$0xf0] }
 0x1ac   :  { %2495 = vmatmul.msk.bf16.gmra.mxu3 %vm951_vm1, %v2292_v10  ;;  %v2296_v10 = vor.u32 %v2611_v0, %v2295_v63  ;;  %v2329_v63 = vld [vmem:[%s4009_s0 + $0x3b0] sm:$0xf0] }
 0x1ae   :  { %v1481_v12 = vpop.f32.mrf.mxu2  ;;  %v1146_v16 = vpop.f32.mrf.mxu0 }
 0x1af   :  { %v1482_v15 = vadd.f32 %v1481_v12, %v1313_v11  ;;  %v1315_v17 = vpop.f32.mrf.mxu1  ;;  %v1147_v19 = vadd.f32 %v3571_v35, %v1146_v16  ;;  %v1658_v23 = vpop.f32.mrf.mxu3  ;;  %v2300_v11 = vor.u32 %v2609_v1, %v2297_v2  ;;  %v2335_v1 = vld [vmem:[%s4009_s0 + $0x3a8] sm:$0xf]  ;;  %v2620_v2 = vld [vmem:[%s4009_s0 + $0x3b4] sm:$0xf0] }
 0x1b1   :  { %v2719_v20 = vpop.eup %2718  ;;  %v1651_v21 = vadd.f32 %v1650_v40, %v1482_v15  ;;  %1185 = vmatmul.bf16.gmra.mxu0 %v2264_v13  ;;  %v1316_v22 = vadd.f32 %v1315_v17, %v1147_v19  ;;  %v2308_v40 = vor.u32 %v2610_v31, %v2305_v32  ;;  %v2304_v15 = vor.u32 %v2612_v5, %v2303_v4  ;;  %v2615_v31 = vld [vmem:[%s4009_s0 + $0x38c] sm:$0xf0]  ;;  %v2613_v32 = vld [vmem:[%s4009_s0 + $0x384] sm:$0xf] }
 0x1b2   :  { %1825 = vst.msk [vmem:[%s4011_s3 + $0x100] sm:$0xff] %vm1792_vm2, %v2719_v20  ;;  %1354 = vmatmul.bf16.gmra.mxu1 %v2268_v14 }
 0x1b3   :  { %2720 = vtanh.f32 %v1651_v21  ;;  %1523 = vmatmul.bf16.gmra.mxu2 %v2272_v18 }
 0x1b6   :  { %v1484_v24 = vpop.f32.mrf.mxu2  ;;  %v1148_v26 = vpop.f32.mrf.mxu0 }
 0x1b7   :  { %v1485_v25 = vadd.f32 %v1484_v24, %v1316_v22  ;;  %v1317_v27 = vpop.f32.mrf.mxu1  ;;  %v1149_v30 = vadd.f32 %v3571_v35, %v1148_v26  ;;  %v1660_v37 = vpop.f32.mrf.mxu3 }
 0x1b9   :  { %v2721_v28 = vpop.eup %2720  ;;  %v1654_v29 = vadd.f32 %v1653_v56, %v1485_v25  ;;  %v1318_v41 = vadd.f32 %v1317_v27, %v1149_v30  ;;  %v2311_v30 = vld [vmem:[%s4009_s0 + $0x380] sm:$0xf] }
 0x1ba   :  { %1826 = vst.msk [vmem:[%s4011_s3 + $0x108] sm:$0xff] %vm1792_vm2, %v2721_v28  ;;  %v2618_v28 = vld [vmem:[%s4009_s0 + $0x3ac] sm:$0xf] }
 0x1bb   :  { %2722 = vtanh.f32 %v1654_v29  ;;  %v2337_v29 = vld [vmem:[%s4009_s0 + $0x3b8] sm:$0xf0] }
 0x1bc   :  { %2496 = vmatmul.msk.bf16.gmra.mxu3 %vm951_vm1, %v2308_v40  ;;  %v2312_v40 = vor.u32 %v2615_v31, %v2311_v30  ;;  %v2345_v30 = vld [vmem:[%s4009_s0 + $0x3d0] sm:$0xf0] }
 0x1be   :  { %v1486_v42 = vpop.f32.mrf.mxu2  ;;  %v1151_v46 = vpop.f32.mrf.mxu0 }
 0x1bf   :  { %v1487_v45 = vadd.f32 %v1486_v42, %v1318_v41  ;;  %v1320_v47 = vpop.f32.mrf.mxu1  ;;  %v1152_v49 = vadd.f32 %v3571_v35, %v1151_v46  ;;  %v1663_v53 = vpop.f32.mrf.mxu3  ;;  %v2316_v41 = vor.u32 %v2613_v32, %v2313_v33  ;;  %v2351_v32 = vld [vmem:[%s4009_s0 + $0x3c8] sm:$0xf]  ;;  %v2624_v33 = vld [vmem:[%s4009_s0 + $0x3d4] sm:$0xf0] }
 0x1c1   :  { %v2723_v50 = vpop.eup %2722  ;;  %v1656_v51 = vadd.f32 %v1655_v6, %v1487_v45  ;;  %1190 = vmatmul.bf16.gmra.mxu0 %v2280_v43  ;;  %v1321_v52 = vadd.f32 %v1320_v47, %v1152_v49  ;;  %v2324_v6 = vor.u32 %v2614_v61, %v2321_v62  ;;  %v2320_v45 = vor.u32 %v2616_v36, %v2319_v34  ;;  %v2619_v61 = vld [vmem:[%s4009_s0 + $0x3ac] sm:$0xf0]  ;;  %v2617_v62 = vld [vmem:[%s4009_s0 + $0x3a4] sm:$0xf] }
 0x1c2   :  { %1827 = vst.msk [vmem:[%s4011_s3 + $0x110] sm:$0xff] %vm1792_vm2, %v2723_v50  ;;  %1359 = vmatmul.bf16.gmra.mxu1 %v2284_v44 }
 0x1c3   :  { %2724 = vtanh.f32 %v1656_v51  ;;  %1528 = vmatmul.bf16.gmra.mxu2 %v2288_v48 }
 0x1c6   :  { %v1489_v54 = vpop.f32.mrf.mxu2  ;;  %v1153_v56 = vpop.f32.mrf.mxu0 }
 0x1c7   :  { %v1490_v55 = vadd.f32 %v1489_v54, %v1321_v52  ;;  %v1322_v57 = vpop.f32.mrf.mxu1  ;;  %v1154_v60 = vadd.f32 %v3571_v35, %v1153_v56  ;;  %v1665_v3 = vpop.f32.mrf.mxu3 }
 0x1c9   :  { %v2725_v58 = vpop.eup %2724  ;;  %v1659_v59 = vadd.f32 %v1658_v23, %v1490_v55  ;;  %v1323_v8 = vadd.f32 %v1322_v57, %v1154_v60  ;;  %v2327_v60 = vld [vmem:[%s4009_s0 + $0x3a0] sm:$0xf] }
 0x1ca   :  { %1828 = vst.msk [vmem:[%s4011_s3 + $0x118] sm:$0xff] %vm1792_vm2, %v2725_v58  ;;  %v2622_v58 = vld [vmem:[%s4009_s0 + $0x3cc] sm:$0xf] }
 0x1cb   :  { %2726 = vtanh.f32 %v1659_v59  ;;  %v2353_v59 = vld [vmem:[%s4009_s0 + $0x3d8] sm:$0xf0] }
 0x1cc   :  { %2497 = vmatmul.msk.bf16.gmra.mxu3 %vm951_vm1, %v2324_v6  ;;  %v2328_v6 = vor.u32 %v2619_v61, %v2327_v60  ;;  %v2367_v60 = vld [vmem:[%s4009_s0 + $0x3e8] sm:$0xf]  ;;  %v2628_v61 = vld [vmem:[%s4009_s0 + $0x3f4] sm:$0xf0] }
 0x1ce   :  { %v1491_v9 = vpop.f32.mrf.mxu2  ;;  %v1156_v13 = vpop.f32.mrf.mxu0 }
 0x1cf   :  { %v1492_v12 = vadd.f32 %v1491_v9, %v1323_v8  ;;  %v1325_v14 = vpop.f32.mrf.mxu1  ;;  %v1157_v16 = vadd.f32 %v3571_v35, %v1156_v13  ;;  %v1668_v20 = vpop.f32.mrf.mxu3  ;;  %v2332_v8 = vor.u32 %v2617_v62, %v2329_v63 }
 0x1d1   :  { %v2727_v17 = vpop.eup %2726  ;;  %v1661_v18 = vadd.f32 %v1660_v37, %v1492_v12  ;;  %1195 = vmatmul.bf16.gmra.mxu0 %v2296_v10  ;;  %v1326_v19 = vadd.f32 %v1325_v14, %v1157_v16  ;;  %v2340_v37 = vor.u32 %v2618_v28, %v2337_v29  ;;  %v2336_v12 = vor.u32 %v2620_v2, %v2335_v1  ;;  %v2623_v28 = vld [vmem:[%s4009_s0 + $0x3cc] sm:$0xf0]  ;;  %v2621_v29 = vld [vmem:[%s4009_s0 + $0x3c4] sm:$0xf] }
 0x1d2   :  { %1829 = vst.msk [vmem:[%s4011_s3 + $0x120] sm:$0xff] %vm1792_vm2, %v2727_v17  ;;  %1364 = vmatmul.bf16.gmra.mxu1 %v2300_v11 }
 0x1d3   :  { %2728 = vtanh.f32 %v1661_v18  ;;  %1533 = vmatmul.bf16.gmra.mxu2 %v2304_v15 }
 0x1d6   :  { %v1494_v21 = vpop.f32.mrf.mxu2  ;;  %v1158_v23 = vpop.f32.mrf.mxu0 }
 0x1d7   :  { %v1495_v22 = vadd.f32 %v1494_v21, %v1326_v19  ;;  %v1327_v24 = vpop.f32.mrf.mxu1  ;;  %v1159_v27 = vadd.f32 %v3571_v35, %v1158_v23  ;;  %v1670_v7 = vpop.f32.mrf.mxu3 }
 0x1d9   :  { %v2729_v25 = vpop.eup %2728  ;;  %v1664_v26 = vadd.f32 %v1663_v53, %v1495_v22  ;;  %v1328_v38 = vadd.f32 %v1327_v24, %v1159_v27  ;;  %v2343_v27 = vld [vmem:[%s4009_s0 + $0x3c0] sm:$0xf] }
 0x1da   :  { %1830 = vst.msk [vmem:[%s4011_s3 + $0x128] sm:$0xff] %vm1792_vm2, %v2729_v25  ;;  %v2626_v25 = vld [vmem:[%s4009_s0 + $0x3ec] sm:$0xf] }
 0x1db   :  { %2730 = vtanh.f32 %v1664_v26  ;;  %v2369_v26 = vld [vmem:[%s4009_s0 + $0x3f8] sm:$0xf0] }
 0x1dc   :  { %2498 = vmatmul.msk.bf16.gmra.mxu3 %vm951_vm1, %v2340_v37  ;;  %v2344_v37 = vor.u32 %v2623_v28, %v2343_v27 }
 0x1de   :  { %v1496_v39 = vpop.f32.mrf.mxu2  ;;  %v1161_v43 = vpop.f32.mrf.mxu0 }
 0x1df   :  { %v1497_v42 = vadd.f32 %v1496_v39, %v1328_v38  ;;  %v1330_v44 = vpop.f32.mrf.mxu1  ;;  %v1162_v46 = vadd.f32 %v3571_v35, %v1161_v43  ;;  %v1673_v50 = vpop.f32.mrf.mxu3  ;;  %v2348_v38 = vor.u32 %v2621_v29, %v2345_v30 }
 0x1e1   :  { %v2731_v47 = vpop.eup %2730  ;;  %v1666_v48 = vadd.f32 %v1665_v3, %v1497_v42  ;;  %1200 = vmatmul.bf16.gmra.mxu0 %v2312_v40  ;;  %v1331_v49 = vadd.f32 %v1330_v44, %v1162_v46  ;;  %v2356_v3 = vor.u32 %v2622_v58, %v2353_v59  ;;  %v2352_v42 = vor.u32 %v2624_v33, %v2351_v32  ;;  %v2361_v58 = vld [vmem:[%s4009_s0 + $0x3f0] sm:$0xf0] }
 0x1e2   :  { %1831 = vst.msk [vmem:[%s4011_s3 + $0x130] sm:$0xff] %vm1792_vm2, %v2731_v47  ;;  %1369 = vmatmul.bf16.gmra.mxu1 %v2316_v41 }
 0x1e3   :  { %2732 = vtanh.f32 %v1666_v48  ;;  %1538 = vmatmul.bf16.gmra.mxu2 %v2320_v45 }
 0x1e6   :  { %v1499_v51 = vpop.f32.mrf.mxu2  ;;  %v1163_v53 = vpop.f32.mrf.mxu0 }
 0x1e7   :  { %v1500_v52 = vadd.f32 %v1499_v51, %v1331_v49  ;;  %v1332_v54 = vpop.f32.mrf.mxu1  ;;  %v1164_v57 = vadd.f32 %v3571_v35, %v1163_v53  ;;  %v1675_v0 = vpop.f32.mrf.mxu3 }
 0x1e9   :  { %v2733_v55 = vpop.eup %2732  ;;  %v1669_v56 = vadd.f32 %v1668_v20, %v1500_v52  ;;  %v1333_v4 = vadd.f32 %v1332_v54, %v1164_v57  ;;  %v2625_v57 = vld [vmem:[%s4009_s0 + $0x3e4] sm:$0xf] }
 0x1ea   :  { %1832 = vst.msk [vmem:[%s4011_s3 + $0x138] sm:$0xff] %vm1792_vm2, %v2733_v55  ;;  %v2359_v55 = vld [vmem:[%s4009_s0 + $0x3e0] sm:$0xf]  ;;  %v2364_v1 = vor.u32 %v2625_v57, %v2361_v58 }
 0x1eb   :  { %2734 = vtanh.f32 %v1669_v56  ;;  %v2627_v56 = vld [vmem:[%s4009_s0 + $0x3ec] sm:$0xf0] }
 0x1ec   :  { %2499 = vmatmul.msk.bf16.gmra.mxu3 %vm951_vm1, %v2356_v3 }
 0x1ee   :  { %v1501_v5 = vpop.f32.mrf.mxu2  ;;  %v1166_v10 = vpop.f32.mrf.mxu0 }
 0x1ef   :  { %v1502_v9 = vadd.f32 %v1501_v5, %v1333_v4  ;;  %v1335_v11 = vpop.f32.mrf.mxu1  ;;  %v1167_v13 = vadd.f32 %v3571_v35, %v1166_v10  ;;  %v1678_v17 = vpop.f32.mrf.mxu3  ;;  %v2368_v5 = vor.u32 %v2628_v61, %v2367_v60 }
 0x1f1   :  { %v2735_v14 = vpop.eup %2734  ;;  %v1671_v15 = vadd.f32 %v1670_v7, %v1502_v9  ;;  %1205 = vmatmul.bf16.gmra.mxu0 %v2328_v6  ;;  %v1336_v16 = vadd.f32 %v1335_v11, %v1167_v13  ;;  %v2372_v7 = vor.u32 %v2626_v25, %v2369_v26 }
 0x1f2   :  { %1833 = vst.msk [vmem:[%s4011_s3 + $0x140] sm:$0xff] %vm1792_vm2, %v2735_v14  ;;  %1374 = vmatmul.bf16.gmra.mxu1 %v2332_v8 }
 0x1f3   :  { %2736 = vtanh.f32 %v1671_v15  ;;  %1543 = vmatmul.bf16.gmra.mxu2 %v2336_v12 }
 0x1f6   :  { %v1504_v18 = vpop.f32.mrf.mxu2  ;;  %v1168_v20 = vpop.f32.mrf.mxu0 }
 0x1f7   :  { %v1505_v19 = vadd.f32 %v1504_v18, %v1336_v16  ;;  %v1337_v21 = vpop.f32.mrf.mxu1  ;;  %v1169_v24 = vadd.f32 %v3571_v35, %v1168_v20  ;;  %v1680_v31 = vpop.f32.mrf.mxu3 }
 0x1f9   :  { %v2737_v22 = vpop.eup %2736  ;;  %v1674_v23 = vadd.f32 %v1673_v50, %v1505_v19  ;;  %v1338_v34 = vadd.f32 %v1337_v21, %v1169_v24 }
 0x1fa   :  { %1834 = vst.msk [vmem:[%s4011_s3 + $0x148] sm:$0xff] %vm1792_vm2, %v2737_v22 }
 0x1fb   :  { %2738 = vtanh.f32 %v1674_v23 }
 0x1fc   :  { %2500 = vmatmul.msk.bf16.gmra.mxu3 %vm951_vm1, %v2372_v7 }
 0x1fe   :  { %v1506_v36 = vpop.f32.mrf.mxu2  ;;  %v1171_v40 = vpop.f32.mrf.mxu0 }
 0x1ff   :  { %v1507_v39 = vadd.f32 %v1506_v36, %v1338_v34  ;;  %v1340_v41 = vpop.f32.mrf.mxu1  ;;  %v1172_v43 = vadd.f32 %v3571_v35, %v1171_v40  ;;  %v1683_v47 = vpop.f32.mrf.mxu3 }
 0x201   :  { %v2739_v44 = vpop.eup %2738  ;;  %v1676_v45 = vadd.f32 %v1675_v0, %v1507_v39  ;;  %1210 = vmatmul.bf16.gmra.mxu0 %v2344_v37  ;;  %v1341_v46 = vadd.f32 %v1340_v41, %v1172_v43  ;;  %v2360_v0 = vor.u32 %v2627_v56, %v2359_v55 }
 0x202   :  { %1835 = vst.msk [vmem:[%s4011_s3 + $0x150] sm:$0xff] %vm1792_vm2, %v2739_v44  ;;  %1379 = vmatmul.bf16.gmra.mxu1 %v2348_v38 }
 0x203   :  { %2740 = vtanh.f32 %v1676_v45  ;;  %1548 = vmatmul.bf16.gmra.mxu2 %v2352_v42 }
 0x206   :  { %v1509_v48 = vpop.f32.mrf.mxu2  ;;  %v1173_v50 = vpop.f32.mrf.mxu0 }
 0x207   :  { %v1510_v49 = vadd.f32 %v1509_v48, %v1341_v46  ;;  %v1342_v51 = vpop.f32.mrf.mxu1  ;;  %v1174_v54 = vadd.f32 %v3571_v35, %v1173_v50  ;;  %v1685_v59 = vpop.f32.mrf.mxu3 }
 0x209   :  { %v2741_v52 = vpop.eup %2740  ;;  %v1679_v53 = vadd.f32 %v1678_v17, %v1510_v49  ;;  %v1343_v62 = vadd.f32 %v1342_v51, %v1174_v54 }
 0x20a   :  { %1836 = vst.msk [vmem:[%s4011_s3 + $0x158] sm:$0xff] %vm1792_vm2, %v2741_v52 }
 0x20b   :  { %2742 = vtanh.f32 %v1679_v53 }
 0x20e   :  { %v1511_v63 = vpop.f32.mrf.mxu2  ;;  %v1176_v3 = vpop.f32.mrf.mxu0 }
 0x20f   :  { %v1512_v2 = vadd.f32 %v1511_v63, %v1343_v62  ;;  %v1345_v4 = vpop.f32.mrf.mxu1  ;;  %v1177_v6 = vadd.f32 %v3571_v35, %v1176_v3  ;;  %v1688_v11 = vpop.f32.mrf.mxu3 }
 0x211   :  { %v2743_v8 = vpop.eup %2742  ;;  %v1681_v9 = vadd.f32 %v1680_v31, %v1512_v2  ;;  %1215 = vmatmul.bf16.gmra.mxu0 %v2360_v0  ;;  %v1346_v10 = vadd.f32 %v1345_v4, %v1177_v6 }
 0x212   :  { %1837 = vst.msk [vmem:[%s4011_s3 + $0x160] sm:$0xff] %vm1792_vm2, %v2743_v8  ;;  %1384 = vmatmul.bf16.gmra.mxu1 %v2364_v1 }
 0x213   :  { %2744 = vtanh.f32 %v1681_v9  ;;  %1553 = vmatmul.bf16.gmra.mxu2 %v2368_v5 }
 0x216   :  { %v1514_v12 = vpop.f32.mrf.mxu2  ;;  %v1178_v14 = vpop.f32.mrf.mxu0 }
 0x217   :  { %v1515_v13 = vadd.f32 %v1514_v12, %v1346_v10  ;;  %v1347_v15 = vpop.f32.mrf.mxu1  ;;  %v1179_v18 = vadd.f32 %v3571_v35, %v1178_v14  ;;  %v1690_v19 = vpop.f32.mrf.mxu3 }
 0x219   :  { %v2745_v16 = vpop.eup %2744  ;;  %v1684_v17 = vadd.f32 %v1683_v47, %v1515_v13  ;;  %v1348_v20 = vadd.f32 %v1347_v15, %v1179_v18 }
 0x21a   :  { %1838 = vst.msk [vmem:[%s4011_s3 + $0x168] sm:$0xff] %vm1792_vm2, %v2745_v16 }
 0x21b   :  { %2746 = vtanh.f32 %v1684_v17 }
 0x21e   :  { %v1516_v21 = vpop.f32.mrf.mxu2  ;;  %v1181_v23 = vpop.f32.mrf.mxu0 }
 0x21f   :  { %v1517_v22 = vadd.f32 %v1516_v21, %v1348_v20  ;;  %v1350_v24 = vpop.f32.mrf.mxu1  ;;  %v1182_v25 = vadd.f32 %v3571_v35, %v1181_v23  ;;  %v1693_v29 = vpop.f32.mrf.mxu3 }
 0x221   :  { %v2747_v26 = vpop.eup %2746  ;;  %v1686_v27 = vadd.f32 %v1685_v59, %v1517_v22  ;;  %v1351_v28 = vadd.f32 %v1350_v24, %v1182_v25 }
 0x222   :  { %1839 = vst.msk [vmem:[%s4011_s3 + $0x170] sm:$0xff] %vm1792_vm2, %v2747_v26 }
 0x223   :  { %2748 = vtanh.f32 %v1686_v27 }
 0x226   :  { %v1519_v30 = vpop.f32.mrf.mxu2  ;;  %v1183_v32 = vpop.f32.mrf.mxu0 }
 0x227   :  { %v1520_v31 = vadd.f32 %v1519_v30, %v1351_v28  ;;  %v1352_v33 = vpop.f32.mrf.mxu1  ;;  %v1184_v36 = vadd.f32 %v3571_v35, %v1183_v32  ;;  %v1695_v37 = vpop.f32.mrf.mxu3 }
 0x229   :  { %v2749_v7 = vpop.eup %2748  ;;  %v1689_v34 = vadd.f32 %v1688_v11, %v1520_v31  ;;  %v1353_v38 = vadd.f32 %v1352_v33, %v1184_v36 }
 0x22a   :  { %1840 = vst.msk [vmem:[%s4011_s3 + $0x178] sm:$0xff] %vm1792_vm2, %v2749_v7 }
 0x22b   :  { %2750 = vtanh.f32 %v1689_v34 }
 0x22e   :  { %v1521_v39 = vpop.f32.mrf.mxu2  ;;  %v1186_v41 = vpop.f32.mrf.mxu0 }
 0x22f   :  { %v1522_v40 = vadd.f32 %v1521_v39, %v1353_v38  ;;  %v1355_v42 = vpop.f32.mrf.mxu1  ;;  %v1187_v43 = vadd.f32 %v3571_v35, %v1186_v41  ;;  %v1698_v47 = vpop.f32.mrf.mxu3 }
 0x231   :  { %v2751_v44 = vpop.eup %2750  ;;  %v1691_v45 = vadd.f32 %v1690_v19, %v1522_v40  ;;  %v1356_v46 = vadd.f32 %v1355_v42, %v1187_v43 }
 0x232   :  { %1841 = vst.msk [vmem:[%s4011_s3 + $0x180] sm:$0xff] %vm1792_vm2, %v2751_v44 }
 0x233   :  { %2752 = vtanh.f32 %v1691_v45 }
 0x236   :  { %v1524_v48 = vpop.f32.mrf.mxu2  ;;  %v1188_v50 = vpop.f32.mrf.mxu0 }
 0x237   :  { %v1525_v49 = vadd.f32 %v1524_v48, %v1356_v46  ;;  %v1357_v51 = vpop.f32.mrf.mxu1  ;;  %v1189_v54 = vadd.f32 %v3571_v35, %v1188_v50  ;;  %v1700_v55 = vpop.f32.mrf.mxu3 }
 0x239   :  { %v2753_v52 = vpop.eup %2752  ;;  %v1694_v53 = vadd.f32 %v1693_v29, %v1525_v49  ;;  %v1358_v56 = vadd.f32 %v1357_v51, %v1189_v54 }
 0x23a   :  { %1842 = vst.msk [vmem:[%s4011_s3 + $0x188] sm:$0xff] %vm1792_vm2, %v2753_v52 }
 0x23b   :  { %2754 = vtanh.f32 %v1694_v53 }
 0x23e   :  { %v1526_v57 = vpop.f32.mrf.mxu2  ;;  %v1191_v59 = vpop.f32.mrf.mxu0 }
 0x23f   :  { %v1527_v58 = vadd.f32 %v1526_v57, %v1358_v56  ;;  %v1360_v60 = vpop.f32.mrf.mxu1  ;;  %v1192_v61 = vadd.f32 %v3571_v35, %v1191_v59  ;;  %v1703_v2 = vpop.f32.mrf.mxu3 }
 0x241   :  { %v2755_v62 = vpop.eup %2754  ;;  %v1696_v63 = vadd.f32 %v1695_v37, %v1527_v58  ;;  %v1361_v0 = vadd.f32 %v1360_v60, %v1192_v61 }
 0x242   :  { %1843 = vst.msk [vmem:[%s4011_s3 + $0x190] sm:$0xff] %vm1792_vm2, %v2755_v62 }
 0x243   :  { %2756 = vtanh.f32 %v1696_v63 }
 0x246   :  { %v1529_v1 = vpop.f32.mrf.mxu2  ;;  %v1193_v4 = vpop.f32.mrf.mxu0 }
 0x247   :  { %v1530_v3 = vadd.f32 %v1529_v1, %v1361_v0  ;;  %v1362_v5 = vpop.f32.mrf.mxu1  ;;  %v1194_v9 = vadd.f32 %v3571_v35, %v1193_v4  ;;  %v1705_v16 = vpop.f32.mrf.mxu3  ;;  %v2783_v4 = vld [vmem:[%s4010_s2] ss:$0 sm:$0xff] }
 0x249   :  { %v2757_v6 = vpop.eup %2756  ;;  %v1699_v8 = vadd.f32 %v1698_v47, %v1530_v3  ;;  %v1363_v10 = vadd.f32 %v1362_v5, %v1194_v9 }
 0x24a   :  { %1844 = vst.msk [vmem:[%s4011_s3 + $0x198] sm:$0xff] %vm1792_vm2, %v2757_v6 }
 0x24b   :  { %2758 = vtanh.f32 %v1699_v8 }
 0x24e   :  { %v1531_v11 = vpop.f32.mrf.mxu2  ;;  %v1196_v13 = vpop.f32.mrf.mxu0 }
 0x24f   :  { %v1532_v12 = vadd.f32 %v1531_v11, %v1363_v10  ;;  %v1365_v14 = vpop.f32.mrf.mxu1  ;;  %v1197_v15 = vadd.f32 %v3571_v35, %v1196_v13  ;;  %v1708_v27 = vpop.f32.mrf.mxu3 }
 0x251   :  { %v2759_v17 = vpop.eup %2758  ;;  %v1701_v18 = vadd.f32 %v1700_v55, %v1532_v12  ;;  %v1366_v19 = vadd.f32 %v1365_v14, %v1197_v15 }
 0x252   :  { %1845 = vst.msk [vmem:[%s4011_s3 + $0x1a0] sm:$0xff] %vm1792_vm2, %v2759_v17 }
 0x253   :  { %2760 = vtanh.f32 %v1701_v18 }
 0x256   :  { %v1534_v20 = vpop.f32.mrf.mxu2  ;;  %v1198_v22 = vpop.f32.mrf.mxu0 }
 0x257   :  { %v1535_v21 = vadd.f32 %v1534_v20, %v1366_v19  ;;  %v1367_v23 = vpop.f32.mrf.mxu1  ;;  %v1199_v26 = vadd.f32 %v3571_v35, %v1198_v22  ;;  %v1710_v37 = vpop.f32.mrf.mxu3 }
 0x259   :  { %v2761_v24 = vpop.eup %2760  ;;  %v1704_v25 = vadd.f32 %v1703_v2, %v1535_v21  ;;  %v1368_v28 = vadd.f32 %v1367_v23, %v1199_v26 }
 0x25a   :  { %1846 = vst.msk [vmem:[%s4011_s3 + $0x1a8] sm:$0xff] %vm1792_vm2, %v2761_v24 }
 0x25b   :  { %2762 = vtanh.f32 %v1704_v25 }
 0x25e   :  { %v1536_v29 = vpop.f32.mrf.mxu2  ;;  %v1201_v31 = vpop.f32.mrf.mxu0 }
 0x25f   :  { %v1537_v30 = vadd.f32 %v1536_v29, %v1368_v28  ;;  %v1370_v32 = vpop.f32.mrf.mxu1  ;;  %v1202_v33 = vadd.f32 %v3571_v35, %v1201_v31  ;;  %v1713_v47 = vpop.f32.mrf.mxu3 }
 0x261   :  { %v2763_v7 = vpop.eup %2762  ;;  %v1706_v34 = vadd.f32 %v1705_v16, %v1537_v30  ;;  %v1371_v36 = vadd.f32 %v1370_v32, %v1202_v33 }
 0x262   :  { %1847 = vst.msk [vmem:[%s4011_s3 + $0x1b0] sm:$0xff] %vm1792_vm2, %v2763_v7 }
 0x263   :  { %2764 = vtanh.f32 %v1706_v34 }
 0x266   :  { %v1539_v38 = vpop.f32.mrf.mxu2  ;;  %v1203_v40 = vpop.f32.mrf.mxu0 }
 0x267   :  { %v1540_v39 = vadd.f32 %v1539_v38, %v1371_v36  ;;  %v1372_v41 = vpop.f32.mrf.mxu1  ;;  %v1204_v44 = vadd.f32 %v3571_v35, %v1203_v40  ;;  %v1715_v59 = vpop.f32.mrf.mxu3 }
 0x269   :  { %v2765_v42 = vpop.eup %2764  ;;  %v1709_v43 = vadd.f32 %v1708_v27, %v1540_v39  ;;  %v1373_v45 = vadd.f32 %v1372_v41, %v1204_v44 }
 0x26a   :  { %1848 = vst.msk [vmem:[%s4011_s3 + $0x1b8] sm:$0xff] %vm1792_vm2, %v2765_v42 }
 0x26b   :  { %2766 = vtanh.f32 %v1709_v43 }
 0x26e   :  { %v1541_v46 = vpop.f32.mrf.mxu2  ;;  %v1206_v49 = vpop.f32.mrf.mxu0 }
 0x26f   :  { %v1542_v48 = vadd.f32 %v1541_v46, %v1373_v45  ;;  %v1375_v50 = vpop.f32.mrf.mxu1  ;;  %v1207_v51 = vadd.f32 %v3571_v35, %v1206_v49 }
 0x271   :  { %v2767_v52 = vpop.eup %2766  ;;  %v1711_v53 = vadd.f32 %v1710_v37, %v1542_v48  ;;  %v1376_v54 = vadd.f32 %v1375_v50, %v1207_v51 }
 0x272   :  { %1849 = vst.msk [vmem:[%s4011_s3 + $0x1c0] sm:$0xff] %vm1792_vm2, %v2767_v52 }
 0x273   :  { %2768 = vtanh.f32 %v1711_v53 }
 0x276   :  { %v1544_v55 = vpop.f32.mrf.mxu2  ;;  %v1208_v57 = vpop.f32.mrf.mxu0 }
 0x277   :  { %v1545_v56 = vadd.f32 %v1544_v55, %v1376_v54  ;;  %v1377_v58 = vpop.f32.mrf.mxu1  ;;  %v1209_v62 = vadd.f32 %v3571_v35, %v1208_v57  ;;  %v1718_v35 = vpop.f32.mrf.mxu3 }
 0x279   :  { %v2769_v60 = vpop.eup %2768  ;;  %v1714_v61 = vadd.f32 %v1713_v47, %v1545_v56  ;;  %v1378_v63 = vadd.f32 %v1377_v58, %v1209_v62 }
 0x27a   :  { %1850 = vst.msk [vmem:[%s4011_s3 + $0x1c8] sm:$0xff] %vm1792_vm2, %v2769_v60 }
 0x27b   :  { %2770 = vtanh.f32 %v1714_v61 }
 0x27e   :  { %v1546_v0 = vpop.f32.mrf.mxu2  ;;  %v1211_v2 = vpop.f32.mrf.mxu0 }
 0x27f   :  { %v1547_v1 = vadd.f32 %v1546_v0, %v1378_v63  ;;  %v1380_v3 = vpop.f32.mrf.mxu1  ;;  %v1212_v5 = vadd.f32 %v2783_v4, %v1211_v2  ;;  %v1720_v17 = vpop.f32.mrf.mxu3 }
 0x281   :  { %v2771_v6 = vpop.eup %2770  ;;  %v1716_v8 = vadd.f32 %v1715_v59, %v1547_v1  ;;  %v1381_v9 = vadd.f32 %v1380_v3, %v1212_v5 }
 0x282   :  { %1851 = vst.msk [vmem:[%s4011_s3 + $0x1d0] sm:$0xff] %vm1792_vm2, %v2771_v6 }
 0x283   :  { %2772 = vtanh.f32 %v1716_v8 }
 0x286   :  { %v1549_v10 = vpop.f32.mrf.mxu2  ;;  %v1213_v12 = vpop.f32.mrf.mxu0 }
 0x287   :  { %v1550_v11 = vadd.f32 %v1549_v10, %v1381_v9  ;;  %v1382_v13 = vpop.f32.mrf.mxu1  ;;  %v1214_v16 = vadd.f32 %v2783_v4, %v1213_v12  ;;  %v1723_v27 = vpop.f32.mrf.mxu3 }
 0x289   :  { %v2773_v14 = vpop.eup %2772  ;;  %v1719_v15 = vadd.f32 %v1718_v35, %v1550_v11  ;;  %v1383_v18 = vadd.f32 %v1382_v13, %v1214_v16 }
 0x28a   :  { %1852 = vst.msk [vmem:[%s4011_s3 + $0x1d8] sm:$0xff] %vm1792_vm2, %v2773_v14 }
 0x28b   :  { %2774 = vtanh.f32 %v1719_v15 }
 0x28e   :  { %v1551_v19 = vpop.f32.mrf.mxu2  ;;  %v1216_v21 = vpop.f32.mrf.mxu0 }
 0x28f   :  { %v1552_v20 = vadd.f32 %v1551_v19, %v1383_v18  ;;  %v1217_v22 = vadd.f32 %v2783_v4, %v1216_v21  ;;  %v1385_v25 = vpop.f32.mrf.mxu1  ;;  %v1725_v38 = vpop.f32.mrf.mxu3 }
 0x291   :  { %v2775_v23 = vpop.eup %2774  ;;  %v1721_v24 = vadd.f32 %v1720_v17, %v1552_v20  ;;  %v1386_v26 = vadd.f32 %v1385_v25, %v1217_v22 }
 0x292   :  { %1853 = vst.msk [vmem:[%s4011_s3 + $0x1e0] sm:$0xff] %vm1792_vm2, %v2775_v23 }
 0x293   :  { %2776 = vtanh.f32 %v1721_v24 }
 0x296   :  { %v1554_v28 = vpop.f32.mrf.mxu2  ;;  %v1218_v30 = vpop.f32.mrf.mxu0 }
 0x297   :  { %v1555_v29 = vadd.f32 %v1554_v28, %v1386_v26  ;;  %v1219_v33 = vadd.f32 %v2783_v4, %v1218_v30  ;;  %v1387_v7 = vpop.f32.mrf.mxu1 }
 0x299   :  { %v2777_v31 = vpop.eup %2776  ;;  %v1724_v32 = vadd.f32 %v1723_v27, %v1555_v29  ;;  %v1388_v34 = vadd.f32 %v1387_v7, %v1219_v33 }
 0x29a   :  { %1854 = vst.msk [vmem:[%s4011_s3 + $0x1e8] sm:$0xff] %vm1792_vm2, %v2777_v31 }
 0x29b   :  { %2778 = vtanh.f32 %v1724_v32 }
 0x29e   :  { %v1556_v36 = vpop.f32.mrf.mxu2 }
 0x29f   :  { %v1557_v37 = vadd.f32 %v1556_v36, %v1388_v34 }
 0x2a1   :  { %v2779_v39 = vpop.eup %2778  ;;  %v1726_v40 = vadd.f32 %v1725_v38, %v1557_v37 }
 0x2a2   :  { %1855 = vst.msk [vmem:[%s4011_s3 + $0x1f0] sm:$0xff] %vm1792_vm2, %v2779_v39 }
 0x2a3   :  { %2780 = vtanh.f32 %v1726_v40 }
 0x2a9   :  { %v2781_v41 = vpop.eup %2780 }
 0x2aa   :  { %1856 = vst.msk [vmem:[%s4011_s3 + $0x1f8] sm:$0xff] %vm1792_vm2, %v2781_v41 }

</bundles_post_ra>
